<compile_context>
chip_gen: v5e
topology: v5e:2x2
jax: 0.10.0
libtpu: 0.0.40
codegen_flags: <defaults>
</compile_context>

<pallas_src>
import jax
import jax.numpy as jnp
from jax.experimental import pallas as pl
from jax.experimental.pallas import tpu as pltpu

HDIM = 512
HALF = HDIM // 2          # 256
N_MEL = 80
N_PITCH = 360
MEL_PAD = 128             # lane-padded mel width (K and output)
PITCH_PAD = 384           # lane-padded pitch width (one-hot K and output)
TILE_N = 512              # rows per grid step (capped at row count)


def _round_up(x, m):
    return (x + m - 1) // m * m


def _model_kernel(
    mel_ref, ids_ref,
    w_em, b_e1, t_pitch,
    w_e2, b_e2,
    w_dp, b_dp,
    w_d2, b_d2,
    w_lm, b_lm,
    w_p2, b_p2,
    w_lp, b_lp,
    mel_hat_ref, pitch_hat_ref, embed_ref,
):
    f32 = jnp.float32
    n = ids_ref.shape[0]

    # Pitch-embedding "gather" as a one-hot matmul against the folded table.
    lanes = jax.lax.broadcasted_iota(jnp.int32, (n, PITCH_PAD), 1)
    onehot = (lanes == ids_ref[...]).astype(f32)                         # (n, 384)
    pitch_c = jnp.dot(onehot, t_pitch[...], preferred_element_type=f32)  # (n, 1024)
    enc_p = pitch_c[:, :HDIM]     # emb_pitch  @ w_e1[256:]
    dec_p = pitch_c[:, HDIM:]     # emb_pitch2 @ w_d1[512:]

    # encode (embed_mel folded into encoder layer 1; split matmul, no concat)
    h = jnp.dot(mel_ref[...], w_em[...], preferred_element_type=f32) + enc_p + b_e1[...]
    h = jnp.maximum(h, 0.0)
    h = jnp.maximum(jnp.dot(h, w_e2[...], preferred_element_type=f32) + b_e2[...], 0.0)
    embed_ref[...] = h

    # decode layer-1 and pitch-head layer-1 share input h: one fused (512,1024)
    # matmul, split at the lane-aligned 512 boundary.
    hd = jnp.dot(h, w_dp[...], preferred_element_type=f32) + b_dp[...]   # (n, 1024)
    d = jnp.maximum(hd[:, :HDIM] + dec_p, 0.0)
    p = jnp.maximum(hd[:, HDIM:], 0.0)

    # decode layer-2 + mel head
    d = jnp.maximum(jnp.dot(d, w_d2[...], preferred_element_type=f32) + b_d2[...], 0.0)
    mel_hat_ref[...] = jnp.dot(d, w_lm[...], preferred_element_type=f32) + b_lm[...]

    # pitch prediction head layer-2 + pitch head (GradientReversal == identity)
    p = jnp.maximum(jnp.dot(p, w_p2[...], preferred_element_type=f32) + b_p2[...], 0.0)
    pitch_hat_ref[...] = jnp.dot(p, w_lp[...], preferred_element_type=f32) + b_lp[...]


@jax.jit
def model_forward(mel, pitch_i, params):
    """mel: (B, T, 80) f32; pitch_i: (B, T) int32."""
    B, T, _ = mel.shape
    N = B * T
    f32 = jnp.float32
    hp = jax.lax.Precision.HIGHEST

    # ---- parameter preprocessing (done once per call by XLA; tiny) ----------
    w_e1, w_d1 = params["w_e1"], params["w_d1"]
    # embed_mel folded into encoder layer 1 (no nonlinearity in between).
    w_enc_mel = jnp.dot(params["w_mel"], w_e1[:HALF], precision=hp)        # (80, 512)
    w_enc_mel = jnp.pad(w_enc_mel, ((0, MEL_PAD - N_MEL), (0, 0)))         # (128, 512)
    b_enc1 = jnp.dot(params["b_mel"], w_e1[:HALF], precision=hp) + params["b_e1"]
    # Pitch embedding tables folded into the layers they feed.
    t_enc = jnp.dot(params["emb_pitch"], w_e1[HALF:], precision=hp)        # (360, 512)
    t_dec = jnp.dot(params["emb_pitch2"], w_d1[HDIM:], precision=hp)       # (360, 512)
    t_pitch = jnp.pad(jnp.concatenate([t_enc, t_dec], axis=-1),
                      ((0, PITCH_PAD - N_PITCH), (0, 0)))                  # (384, 1024)
    # decode layer-1 (h part) and pred_pitch layer-1 fused: both consume h.
    w_dp = jnp.concatenate([w_d1[:HDIM], params["w_p1"]], axis=-1)         # (512, 1024)
    b_dp = jnp.concatenate([params["b_d1"], params["b_p1"]], axis=-1)      # (1, 1024)
    # Lane-pad the narrow output heads.
    w_lm = jnp.pad(params["w_lm"], ((0, 0), (0, MEL_PAD - N_MEL)))
    b_lm = jnp.pad(params["b_lm"], ((0, 0), (0, MEL_PAD - N_MEL)))
    w_lp = jnp.pad(params["w_lp"], ((0, 0), (0, PITCH_PAD - N_PITCH)))
    b_lp = jnp.pad(params["b_lp"], ((0, 0), (0, PITCH_PAD - N_PITCH)))

    weights = [
        w_enc_mel, b_enc1, t_pitch,
        params["w_e2"], params["b_e2"],
        w_dp, b_dp,
        params["w_d2"], params["b_d2"],
        w_lm, b_lm,
        params["w_p2"], params["b_p2"],
        w_lp, b_lp,
    ]

    # ---- activations ---------------------------------------------------------
    tile = min(TILE_N, _round_up(N, 8))
    Np = _round_up(N, tile)
    mel_pad = jnp.pad(mel.reshape(N, N_MEL).astype(f32),
                      ((0, Np - N), (0, MEL_PAD - N_MEL)))                 # (Np, 128)
    ids = jnp.pad(pitch_i.reshape(N).astype(jnp.int32), (0, Np - N)).reshape(Np, 1)

    row = lambda feat: pl.BlockSpec((tile, feat), lambda i: (i, 0))
    wspec = lambda w: pl.BlockSpec(w.shape, lambda i: (0, 0))              # resident

    out_shapes = (
        jax.ShapeDtypeStruct((Np, MEL_PAD), f32),
        jax.ShapeDtypeStruct((Np, PITCH_PAD), f32),
        jax.ShapeDtypeStruct((Np, HDIM), f32),
    )

    mel_hat, pitch_hat, embed = pl.pallas_call(
        _model_kernel,
        out_shape=out_shapes,
        grid_spec=pltpu.PrefetchScalarGridSpec(
            num_scalar_prefetch=0,
            grid=(Np // tile,),
            in_specs=[row(MEL_PAD), pl.BlockSpec((tile, 1), lambda i: (i, 0))]
                     + [wspec(w) for w in weights],
            out_specs=[row(MEL_PAD), row(PITCH_PAD), row(HDIM)],
        ),
        compiler_params=pltpu.CompilerParams(
            dimension_semantics=("parallel",),
            vmem_limit_bytes=48 * 1024 * 1024,   # fits under v7x's 64 MiB VMEM
        ),
    )(mel_pad, ids, *weights)

    mel_hat = mel_hat[:N, :N_MEL].reshape(B, T, N_MEL)
    pitch_hat = pitch_hat[:N, :N_PITCH].reshape(B, T, N_PITCH)
    embed = embed[:N].reshape(B, T, HDIM)
    return mel_hat, pitch_hat, embed


def init_params(key):
    """Deterministic synthetic parameters. Linear weights stored as (in, out)."""
    ks = jax.random.split(key, 32)
    idx = iter(range(32))

    def lin(fan_in, fan_out):
        kw, kb = ks[next(idx)], ks[next(idx)]
        s = 1.0 / jnp.sqrt(jnp.float32(fan_in))
        w = jax.random.uniform(kw, (fan_in, fan_out), jnp.float32, -s, s)
        b = jax.random.uniform(kb, (1, fan_out), jnp.float32, -s, s)
        return w, b

    p = {}
    p["emb_pitch"] = jax.random.normal(ks[next(idx)], (N_PITCH, HALF), jnp.float32)
    p["emb_pitch2"] = jax.random.normal(ks[next(idx)], (N_PITCH, HALF), jnp.float32)
    p["w_mel"], p["b_mel"] = lin(N_MEL, HALF)
    p["w_e1"], p["b_e1"] = lin(HDIM, HDIM)
    p["w_e2"], p["b_e2"] = lin(HDIM, HDIM)
    p["w_d1"], p["b_d1"] = lin(HDIM + HALF, HDIM)
    p["w_d2"], p["b_d2"] = lin(HDIM, HDIM)
    p["w_lm"], p["b_lm"] = lin(HDIM, N_MEL)
    p["w_p1"], p["b_p1"] = lin(HDIM, HDIM)
    p["w_p2"], p["b_p2"] = lin(HDIM, HDIM)
    p["w_lp"], p["b_lp"] = lin(HDIM, N_PITCH)
    return p


def _reference_forward(mel, pitch_i, p):
    """Pure-JAX reference mirroring the PyTorch module (unfused math)."""
    relu = lambda v: jnp.maximum(v, 0.0)
    mel_e = mel @ p["w_mel"] + p["b_mel"]
    pe = jnp.take(p["emb_pitch"], pitch_i, axis=0)
    pe2 = jnp.take(p["emb_pitch2"], pitch_i, axis=0)
    x = jnp.concatenate([mel_e, pe], axis=-1)
    h = relu(x @ p["w_e1"] + p["b_e1"])
    h = relu(h @ p["w_e2"] + p["b_e2"])
    embed = h
    xd = jnp.concatenate([h, pe2], axis=-1)
    d = relu(xd @ p["w_d1"] + p["b_d1"])
    d = relu(d @ p["w_d2"] + p["b_d2"])
    mel_hat = d @ p["w_lm"] + p["b_lm"]
    q = relu(embed @ p["w_p1"] + p["b_p1"])
    q = relu(q @ p["w_p2"] + p["b_p2"])
    pitch_hat = q @ p["w_lp"] + p["b_lp"]
    return mel_hat, pitch_hat, embed


if __name__ == "__main__":
    key = jax.random.PRNGKey(0)
    kp, km, kpi = jax.random.split(key, 3)

    B, T = 2, 8
    params = init_params(kp)
    mel = jax.random.normal(km, (B, T, N_MEL), jnp.float32)
    # mirrors `pitch_i = pitch_i * 0 + 100` in the reference script
    pitch_i = jnp.full((B, T), 100, dtype=jnp.int32)

    mel_hat, pitch_hat, embed = model_forward(mel, pitch_i, params)
    jax.block_until_ready((mel_hat, pitch_hat, embed))

    ref_mel, ref_pitch, ref_embed = _reference_forward(mel, pitch_i, params)
    assert mel_hat.shape == (B, T, N_MEL)
    assert pitch_hat.shape == (B, T, N_PITCH)
    assert embed.shape == (B, T, HDIM)
    # Folding embed_mel / the embedding tables into adjacent linears
    # reassociates f32 sums (still ~1e-5 level).
    assert jnp.allclose(mel_hat, ref_mel, atol=2e-4, rtol=2e-4)
    assert jnp.allclose(pitch_hat, ref_pitch, atol=2e-4, rtol=2e-4)
    assert jnp.allclose(embed, ref_embed, atol=2e-4, rtol=2e-4)

    print("KERNEL_OK")
</pallas_src>

<mosaic_0001>
module attributes {stable_mosaic.version = 11 : i64} {
  func.func @_model_kernel(%arg0: i32, %arg1: memref<16x128xf32, #tpu.memory_space<vmem>>, %arg2: memref<16x1xi32, #tpu.memory_space<vmem>>, %arg3: memref<128x512xf32, #tpu.memory_space<vmem>>, %arg4: memref<1x512xf32, #tpu.memory_space<vmem>>, %arg5: memref<384x1024xf32, #tpu.memory_space<vmem>>, %arg6: memref<512x512xf32, #tpu.memory_space<vmem>>, %arg7: memref<1x512xf32, #tpu.memory_space<vmem>>, %arg8: memref<512x1024xf32, #tpu.memory_space<vmem>>, %arg9: memref<1x1024xf32, #tpu.memory_space<vmem>>, %arg10: memref<512x512xf32, #tpu.memory_space<vmem>>, %arg11: memref<1x512xf32, #tpu.memory_space<vmem>>, %arg12: memref<512x128xf32, #tpu.memory_space<vmem>>, %arg13: memref<1x128xf32, #tpu.memory_space<vmem>>, %arg14: memref<512x512xf32, #tpu.memory_space<vmem>>, %arg15: memref<1x512xf32, #tpu.memory_space<vmem>>, %arg16: memref<512x384xf32, #tpu.memory_space<vmem>>, %arg17: memref<1x384xf32, #tpu.memory_space<vmem>>, %arg18: memref<16x128xf32, #tpu.memory_space<vmem>>, %arg19: memref<16x384xf32, #tpu.memory_space<vmem>>, %arg20: memref<16x512xf32, #tpu.memory_space<vmem>>) attributes {dimension_semantics = [#tpu.dimension_semantics<parallel>], iteration_bounds = array<i64: 1>, scalar_prefetch = 0 : i64, scratch_operands = 0 : i64, tpu.core_type = #tpu.core_type<tc>, window_params = [{transform_indices = @transform_0, window_bounds = array<i64: 16, 128>}, {transform_indices = @transform_1, window_bounds = array<i64: 16, 1>}, {pipeline_mode = #tpu.pipeline_mode<synchronous>, transform_indices = @transform_2, window_bounds = array<i64: 128, 512>}, {pipeline_mode = #tpu.pipeline_mode<synchronous>, transform_indices = @transform_3, window_bounds = array<i64: 1, 512>}, {pipeline_mode = #tpu.pipeline_mode<synchronous>, transform_indices = @transform_4, window_bounds = array<i64: 384, 1024>}, {pipeline_mode = #tpu.pipeline_mode<synchronous>, transform_indices = @transform_5, window_bounds = array<i64: 512, 512>}, {pipeline_mode = #tpu.pipeline_mode<synchronous>, transform_indices = @transform_6, window_bounds = array<i64: 1, 512>}, {pipeline_mode = #tpu.pipeline_mode<synchronous>, transform_indices = @transform_7, window_bounds = array<i64: 512, 1024>}, {pipeline_mode = #tpu.pipeline_mode<synchronous>, transform_indices = @transform_8, window_bounds = array<i64: 1, 1024>}, {pipeline_mode = #tpu.pipeline_mode<synchronous>, transform_indices = @transform_9, window_bounds = array<i64: 512, 512>}, {pipeline_mode = #tpu.pipeline_mode<synchronous>, transform_indices = @transform_10, window_bounds = array<i64: 1, 512>}, {pipeline_mode = #tpu.pipeline_mode<synchronous>, transform_indices = @transform_11, window_bounds = array<i64: 512, 128>}, {pipeline_mode = #tpu.pipeline_mode<synchronous>, transform_indices = @transform_12, window_bounds = array<i64: 1, 128>}, {pipeline_mode = #tpu.pipeline_mode<synchronous>, transform_indices = @transform_13, window_bounds = array<i64: 512, 512>}, {pipeline_mode = #tpu.pipeline_mode<synchronous>, transform_indices = @transform_14, window_bounds = array<i64: 1, 512>}, {pipeline_mode = #tpu.pipeline_mode<synchronous>, transform_indices = @transform_15, window_bounds = array<i64: 512, 384>}, {pipeline_mode = #tpu.pipeline_mode<synchronous>, transform_indices = @transform_16, window_bounds = array<i64: 1, 384>}, {transform_indices = @transform_17, window_bounds = array<i64: 16, 128>}, {transform_indices = @transform_18, window_bounds = array<i64: 16, 384>}, {transform_indices = @transform_19, window_bounds = array<i64: 16, 512>}]} {
    %0 = tpu.iota {dimensions = array<i32: 1>} : vector<16x384xi32>
    %c0 = arith.constant 0 : index
    %c0_0 = arith.constant 0 : index
    %1 = vector.load %arg2[%c0, %c0_0] : memref<16x1xi32, #tpu.memory_space<vmem>>, vector<16x1xi32>
    %2 = vector.broadcast %1 : vector<16x1xi32> to vector<16x384xi32>
    %3 = arith.cmpi eq, %0, %2 : vector<16x384xi32>
    %4 = arith.extui %3 : vector<16x384xi1> to vector<16x384xi32>
    %5 = arith.sitofp %4 : vector<16x384xi32> to vector<16x384xf32>
    %c0_1 = arith.constant 0 : index
    %c0_2 = arith.constant 0 : index
    %6 = vector.load %arg5[%c0_1, %c0_2] : memref<384x1024xf32, #tpu.memory_space<vmem>>, vector<384x1024xf32>
    %cst = arith.constant dense<0.000000e+00> : vector<16x1024xf32>
    %7 = tpu.matmul %5, %6, %cst {dimension_numbers = #tpu.dot_dimension_numbers<[1], [0], [0], [1], [0, 0, 1, 1], [], []>} : vector<16x384xf32>, vector<384x1024xf32>, vector<16x1024xf32> -> vector<16x1024xf32>
    %8 = vector.extract_strided_slice %7 {offsets = [0, 0], sizes = [16, 512], strides = [1, 1]} : vector<16x1024xf32> to vector<16x512xf32>
    %9 = vector.extract_strided_slice %7 {offsets = [0, 512], sizes = [16, 512], strides = [1, 1]} : vector<16x1024xf32> to vector<16x512xf32>
    %c0_3 = arith.constant 0 : index
    %c0_4 = arith.constant 0 : index
    %10 = vector.load %arg1[%c0_3, %c0_4] : memref<16x128xf32, #tpu.memory_space<vmem>>, vector<16x128xf32>
    %c0_5 = arith.constant 0 : index
    %c0_6 = arith.constant 0 : index
    %11 = vector.load %arg3[%c0_5, %c0_6] : memref<128x512xf32, #tpu.memory_space<vmem>>, vector<128x512xf32>
    %cst_7 = arith.constant dense<0.000000e+00> : vector<16x512xf32>
    %12 = tpu.matmul %10, %11, %cst_7 {dimension_numbers = #tpu.dot_dimension_numbers<[1], [0], [0], [1], [0, 0, 1, 1], [], []>} : vector<16x128xf32>, vector<128x512xf32>, vector<16x512xf32> -> vector<16x512xf32>
    %13 = arith.addf %12, %8 : vector<16x512xf32>
    %c0_8 = arith.constant 0 : index
    %c0_9 = arith.constant 0 : index
    %14 = vector.load %arg4[%c0_8, %c0_9] : memref<1x512xf32, #tpu.memory_space<vmem>>, vector<1x512xf32>
    %15 = vector.broadcast %14 : vector<1x512xf32> to vector<16x512xf32>
    %16 = arith.addf %13, %15 : vector<16x512xf32>
    %cst_10 = arith.constant 0.000000e+00 : f32
    %17 = vector.broadcast %cst_10 : f32 to vector<16x512xf32>
    %18 = arith.maximumf %16, %17 : vector<16x512xf32>
    %c0_11 = arith.constant 0 : index
    %c0_12 = arith.constant 0 : index
    %19 = vector.load %arg6[%c0_11, %c0_12] : memref<512x512xf32, #tpu.memory_space<vmem>>, vector<512x512xf32>
    %cst_13 = arith.constant dense<0.000000e+00> : vector<16x512xf32>
    %20 = tpu.matmul %18, %19, %cst_13 {dimension_numbers = #tpu.dot_dimension_numbers<[1], [0], [0], [1], [0, 0, 1, 1], [], []>} : vector<16x512xf32>, vector<512x512xf32>, vector<16x512xf32> -> vector<16x512xf32>
    %c0_14 = arith.constant 0 : index
    %c0_15 = arith.constant 0 : index
    %21 = vector.load %arg7[%c0_14, %c0_15] : memref<1x512xf32, #tpu.memory_space<vmem>>, vector<1x512xf32>
    %22 = vector.broadcast %21 : vector<1x512xf32> to vector<16x512xf32>
    %23 = arith.addf %20, %22 : vector<16x512xf32>
    %cst_16 = arith.constant 0.000000e+00 : f32
    %24 = vector.broadcast %cst_16 : f32 to vector<16x512xf32>
    %25 = arith.maximumf %23, %24 : vector<16x512xf32>
    %c0_17 = arith.constant 0 : index
    %c0_18 = arith.constant 0 : index
    %26 = vector.load %arg20[%c0_17, %c0_18] : memref<16x512xf32, #tpu.memory_space<vmem>>, vector<16x512xf32>
    tpu.vector_store %arg20[%c0_17, %c0_18], %25 {strides = array<i32>} : memref<16x512xf32, #tpu.memory_space<vmem>>, vector<16x512xf32>,
    %c0_19 = arith.constant 0 : index
    %c0_20 = arith.constant 0 : index
    %27 = vector.load %arg8[%c0_19, %c0_20] : memref<512x1024xf32, #tpu.memory_space<vmem>>, vector<512x1024xf32>
    %cst_21 = arith.constant dense<0.000000e+00> : vector<16x1024xf32>
    %28 = tpu.matmul %25, %27, %cst_21 {dimension_numbers = #tpu.dot_dimension_numbers<[1], [0], [0], [1], [0, 0, 1, 1], [], []>} : vector<16x512xf32>, vector<512x1024xf32>, vector<16x1024xf32> -> vector<16x1024xf32>
    %c0_22 = arith.constant 0 : index
    %c0_23 = arith.constant 0 : index
    %29 = vector.load %arg9[%c0_22, %c0_23] : memref<1x1024xf32, #tpu.memory_space<vmem>>, vector<1x1024xf32>
    %30 = vector.broadcast %29 : vector<1x1024xf32> to vector<16x1024xf32>
    %31 = arith.addf %28, %30 : vector<16x1024xf32>
    %32 = vector.extract_strided_slice %31 {offsets = [0, 0], sizes = [16, 512], strides = [1, 1]} : vector<16x1024xf32> to vector<16x512xf32>
    %33 = arith.addf %32, %9 : vector<16x512xf32>
    %cst_24 = arith.constant 0.000000e+00 : f32
    %34 = vector.broadcast %cst_24 : f32 to vector<16x512xf32>
    %35 = arith.maximumf %33, %34 : vector<16x512xf32>
    %36 = vector.extract_strided_slice %31 {offsets = [0, 512], sizes = [16, 512], strides = [1, 1]} : vector<16x1024xf32> to vector<16x512xf32>
    %cst_25 = arith.constant 0.000000e+00 : f32
    %37 = vector.broadcast %cst_25 : f32 to vector<16x512xf32>
    %38 = arith.maximumf %36, %37 : vector<16x512xf32>
    %c0_26 = arith.constant 0 : index
    %c0_27 = arith.constant 0 : index
    %39 = vector.load %arg10[%c0_26, %c0_27] : memref<512x512xf32, #tpu.memory_space<vmem>>, vector<512x512xf32>
    %cst_28 = arith.constant dense<0.000000e+00> : vector<16x512xf32>
    %40 = tpu.matmul %35, %39, %cst_28 {dimension_numbers = #tpu.dot_dimension_numbers<[1], [0], [0], [1], [0, 0, 1, 1], [], []>} : vector<16x512xf32>, vector<512x512xf32>, vector<16x512xf32> -> vector<16x512xf32>
    %c0_29 = arith.constant 0 : index
    %c0_30 = arith.constant 0 : index
    %41 = vector.load %arg11[%c0_29, %c0_30] : memref<1x512xf32, #tpu.memory_space<vmem>>, vector<1x512xf32>
    %42 = vector.broadcast %41 : vector<1x512xf32> to vector<16x512xf32>
    %43 = arith.addf %40, %42 : vector<16x512xf32>
    %cst_31 = arith.constant 0.000000e+00 : f32
    %44 = vector.broadcast %cst_31 : f32 to vector<16x512xf32>
    %45 = arith.maximumf %43, %44 : vector<16x512xf32>
    %c0_32 = arith.constant 0 : index
    %c0_33 = arith.constant 0 : index
    %46 = vector.load %arg12[%c0_32, %c0_33] : memref<512x128xf32, #tpu.memory_space<vmem>>, vector<512x128xf32>
    %cst_34 = arith.constant dense<0.000000e+00> : vector<16x128xf32>
    %47 = tpu.matmul %45, %46, %cst_34 {dimension_numbers = #tpu.dot_dimension_numbers<[1], [0], [0], [1], [0, 0, 1, 1], [], []>} : vector<16x512xf32>, vector<512x128xf32>, vector<16x128xf32> -> vector<16x128xf32>
    %c0_35 = arith.constant 0 : index
    %c0_36 = arith.constant 0 : index
    %48 = vector.load %arg13[%c0_35, %c0_36] : memref<1x128xf32, #tpu.memory_space<vmem>>, vector<1x128xf32>
    %49 = vector.broadcast %48 : vector<1x128xf32> to vector<16x128xf32>
    %50 = arith.addf %47, %49 : vector<16x128xf32>
    %c0_37 = arith.constant 0 : index
    %c0_38 = arith.constant 0 : index
    %51 = vector.load %arg18[%c0_37, %c0_38] : memref<16x128xf32, #tpu.memory_space<vmem>>, vector<16x128xf32>
    tpu.vector_store %arg18[%c0_37, %c0_38], %50 {strides = array<i32>} : memref<16x128xf32, #tpu.memory_space<vmem>>, vector<16x128xf32>,
    %c0_39 = arith.constant 0 : index
    %c0_40 = arith.constant 0 : index
    %52 = vector.load %arg14[%c0_39, %c0_40] : memref<512x512xf32, #tpu.memory_space<vmem>>, vector<512x512xf32>
    %cst_41 = arith.constant dense<0.000000e+00> : vector<16x512xf32>
    %53 = tpu.matmul %38, %52, %cst_41 {dimension_numbers = #tpu.dot_dimension_numbers<[1], [0], [0], [1], [0, 0, 1, 1], [], []>} : vector<16x512xf32>, vector<512x512xf32>, vector<16x512xf32> -> vector<16x512xf32>
    %c0_42 = arith.constant 0 : index
    %c0_43 = arith.constant 0 : index
    %54 = vector.load %arg15[%c0_42, %c0_43] : memref<1x512xf32, #tpu.memory_space<vmem>>, vector<1x512xf32>
    %55 = vector.broadcast %54 : vector<1x512xf32> to vector<16x512xf32>
    %56 = arith.addf %53, %55 : vector<16x512xf32>
    %cst_44 = arith.constant 0.000000e+00 : f32
    %57 = vector.broadcast %cst_44 : f32 to vector<16x512xf32>
    %58 = arith.maximumf %56, %57 : vector<16x512xf32>
    %c0_45 = arith.constant 0 : index
    %c0_46 = arith.constant 0 : index
    %59 = vector.load %arg16[%c0_45, %c0_46] : memref<512x384xf32, #tpu.memory_space<vmem>>, vector<512x384xf32>
    %cst_47 = arith.constant dense<0.000000e+00> : vector<16x384xf32>
    %60 = tpu.matmul %58, %59, %cst_47 {dimension_numbers = #tpu.dot_dimension_numbers<[1], [0], [0], [1], [0, 0, 1, 1], [], []>} : vector<16x512xf32>, vector<512x384xf32>, vector<16x384xf32> -> vector<16x384xf32>
    %c0_48 = arith.constant 0 : index
    %c0_49 = arith.constant 0 : index
    %61 = vector.load %arg17[%c0_48, %c0_49] : memref<1x384xf32, #tpu.memory_space<vmem>>, vector<1x384xf32>
    %62 = vector.broadcast %61 : vector<1x384xf32> to vector<16x384xf32>
    %63 = arith.addf %60, %62 : vector<16x384xf32>
    %c0_50 = arith.constant 0 : index
    %c0_51 = arith.constant 0 : index
    %64 = vector.load %arg19[%c0_50, %c0_51] : memref<16x384xf32, #tpu.memory_space<vmem>>, vector<16x384xf32>
    tpu.vector_store %arg19[%c0_50, %c0_51], %63 {strides = array<i32>} : memref<16x384xf32, #tpu.memory_space<vmem>>, vector<16x384xf32>,
    return
  }
  func.func @transform_0(%arg0: i32) -> (i32, i32) {
    %c0_i32 = arith.constant 0 : i32
    %c0_i32_0 = arith.constant 0 : i32
    return %arg0, %c0_i32 : i32, i32
  }
  func.func @transform_1(%arg0: i32) -> (i32, i32) {
    %c0_i32 = arith.constant 0 : i32
    %c0_i32_0 = arith.constant 0 : i32
    return %arg0, %c0_i32 : i32, i32
  }
  func.func @transform_2(%arg0: i32) -> (i32, i32) {
    %c0_i32 = arith.constant 0 : i32
    %c0_i32_0 = arith.constant 0 : i32
    %c0_i32_1 = arith.constant 0 : i32
    return %c0_i32, %c0_i32_0 : i32, i32
  }
  func.func @transform_3(%arg0: i32) -> (i32, i32) {
    %c0_i32 = arith.constant 0 : i32
    %c0_i32_0 = arith.constant 0 : i32
    %c0_i32_1 = arith.constant 0 : i32
    return %c0_i32, %c0_i32_0 : i32, i32
  }
  func.func @transform_4(%arg0: i32) -> (i32, i32) {
    %c0_i32 = arith.constant 0 : i32
    %c0_i32_0 = arith.constant 0 : i32
    %c0_i32_1 = arith.constant 0 : i32
    return %c0_i32, %c0_i32_0 : i32, i32
  }
  func.func @transform_5(%arg0: i32) -> (i32, i32) {
    %c0_i32 = arith.constant 0 : i32
    %c0_i32_0 = arith.constant 0 : i32
    %c0_i32_1 = arith.constant 0 : i32
    return %c0_i32, %c0_i32_0 : i32, i32
  }
  func.func @transform_6(%arg0: i32) -> (i32, i32) {
    %c0_i32 = arith.constant 0 : i32
    %c0_i32_0 = arith.constant 0 : i32
    %c0_i32_1 = arith.constant 0 : i32
    return %c0_i32, %c0_i32_0 : i32, i32
  }
  func.func @transform_7(%arg0: i32) -> (i32, i32) {
    %c0_i32 = arith.constant 0 : i32
    %c0_i32_0 = arith.constant 0 : i32
    %c0_i32_1 = arith.constant 0 : i32
    return %c0_i32, %c0_i32_0 : i32, i32
  }
  func.func @transform_8(%arg0: i32) -> (i32, i32) {
    %c0_i32 = arith.constant 0 : i32
    %c0_i32_0 = arith.constant 0 : i32
    %c0_i32_1 = arith.constant 0 : i32
    return %c0_i32, %c0_i32_0 : i32, i32
  }
  func.func @transform_9(%arg0: i32) -> (i32, i32) {
    %c0_i32 = arith.constant 0 : i32
    %c0_i32_0 = arith.constant 0 : i32
    %c0_i32_1 = arith.constant 0 : i32
    return %c0_i32, %c0_i32_0 : i32, i32
  }
  func.func @transform_10(%arg0: i32) -> (i32, i32) {
    %c0_i32 = arith.constant 0 : i32
    %c0_i32_0 = arith.constant 0 : i32
    %c0_i32_1 = arith.constant 0 : i32
    return %c0_i32, %c0_i32_0 : i32, i32
  }
  func.func @transform_11(%arg0: i32) -> (i32, i32) {
    %c0_i32 = arith.constant 0 : i32
    %c0_i32_0 = arith.constant 0 : i32
    %c0_i32_1 = arith.constant 0 : i32
    return %c0_i32, %c0_i32_0 : i32, i32
  }
  func.func @transform_12(%arg0: i32) -> (i32, i32) {
    %c0_i32 = arith.constant 0 : i32
    %c0_i32_0 = arith.constant 0 : i32
    %c0_i32_1 = arith.constant 0 : i32
    return %c0_i32, %c0_i32_0 : i32, i32
  }
  func.func @transform_13(%arg0: i32) -> (i32, i32) {
    %c0_i32 = arith.constant 0 : i32
    %c0_i32_0 = arith.constant 0 : i32
    %c0_i32_1 = arith.constant 0 : i32
    return %c0_i32, %c0_i32_0 : i32, i32
  }
  func.func @transform_14(%arg0: i32) -> (i32, i32) {
    %c0_i32 = arith.constant 0 : i32
    %c0_i32_0 = arith.constant 0 : i32
    %c0_i32_1 = arith.constant 0 : i32
    return %c0_i32, %c0_i32_0 : i32, i32
  }
  func.func @transform_15(%arg0: i32) -> (i32, i32) {
    %c0_i32 = arith.constant 0 : i32
    %c0_i32_0 = arith.constant 0 : i32
    %c0_i32_1 = arith.constant 0 : i32
    return %c0_i32, %c0_i32_0 : i32, i32
  }
  func.func @transform_16(%arg0: i32) -> (i32, i32) {
    %c0_i32 = arith.constant 0 : i32
    %c0_i32_0 = arith.constant 0 : i32
    %c0_i32_1 = arith.constant 0 : i32
    return %c0_i32, %c0_i32_0 : i32, i32
  }
  func.func @transform_17(%arg0: i32) -> (i32, i32) {
    %c0_i32 = arith.constant 0 : i32
    %c0_i32_0 = arith.constant 0 : i32
    return %arg0, %c0_i32 : i32, i32
  }
  func.func @transform_18(%arg0: i32) -> (i32, i32) {
    %c0_i32 = arith.constant 0 : i32
    %c0_i32_0 = arith.constant 0 : i32
    return %arg0, %c0_i32 : i32, i32
  }
  func.func @transform_19(%arg0: i32) -> (i32, i32) {
    %c0_i32 = arith.constant 0 : i32
    %c0_i32_0 = arith.constant 0 : i32
    return %arg0, %c0_i32 : i32, i32
  }
}

</mosaic_0001>

<bundles_post_ra>
// kernel: model_forward.1
= control target key start
LH: loop header
LB: loop body
LE: loop exit
PB: predicated region body
PF: predicated region fallthrough
CT: control target
= control target key end

     0   :  { %s12053_s0 = inlined_call_operand.vmem [shape: f32[16,128], index: 0, kind: input, shape index: {}]   ;;  %s12054_s1 = inlined_call_operand.vmem [shape: s32[16,1], index: 1, kind: input, shape index: {}]   ;;  %s12055_s2 = inlined_call_operand.vmem [shape: f32[128,512], index: 2, kind: input, shape index: {}]   ;;  %s12056_s3 = inlined_call_operand.vmem [shape: f32[1,512], index: 3, kind: input, shape index: {}]   ;;  %s12057_s4 = inlined_call_operand.vmem [shape: f32[384,1024], index: 4, kind: input, shape index: {}]   ;;  %s12058_s5 = inlined_call_operand.vmem [shape: f32[512,512], index: 5, kind: input, shape index: {}]   ;;  %s12059_s6 = inlined_call_operand.vmem [shape: f32[1,512], index: 6, kind: input, shape index: {}]   ;;  %s12060_s7 = inlined_call_operand.vmem [shape: f32[512,1024], index: 7, kind: input, shape index: {}]   ;;  %s12061_s8 = inlined_call_operand.vmem [shape: f32[1,1024], index: 8, kind: input, shape index: {}]   ;;  %s12062_s9 = inlined_call_operand.vmem [shape: f32[512,512], index: 9, kind: input, shape index: {}]   ;;  %s12063_s10 = inlined_call_operand.vmem [shape: f32[1,512], index: 10, kind: input, shape index: {}]   ;;  %s12064_s11 = inlined_call_operand.vmem [shape: f32[512,128], index: 11, kind: input, shape index: {}]   ;;  %s12065_s12 = inlined_call_operand.vmem [shape: f32[1,128], index: 12, kind: input, shape index: {}]   ;;  %s12066_s13 = inlined_call_operand.vmem [shape: f32[512,512], index: 13, kind: input, shape index: {}]   ;;  %s12067_s14 = inlined_call_operand.vmem [shape: f32[1,512], index: 14, kind: input, shape index: {}]   ;;  %s12068_s15 = inlined_call_operand.vmem [shape: f32[512,384], index: 15, kind: input, shape index: {}]   ;;  %s12069_s16 = inlined_call_operand.vmem [shape: f32[1,384], index: 16, kind: input, shape index: {}]   ;;  %s12070_s17 = inlined_call_operand.vmem [shape: f32[16,128], index: 17, kind: output, shape index: {0}]   ;;  %s12071_s18 = inlined_call_operand.vmem [shape: f32[16,384], index: 18, kind: output, shape index: {1}]   ;;  %s12072_s19 = inlined_call_operand.hbm [shape: f32[16,512], index: 19, kind: output, shape index: {2}]  }
   0x1   :  { %12076 = sst [smem:[#allocation5_spill]] %s12053_s0 }
   0x2   :  { %12077 = sst [smem:[#allocation6_spill]] %s12054_s1 }
   0x3   :  { %12078 = sst [smem:[#allocation7_spill]] %s12055_s2 }
   0x4   :  { %12079 = sst [smem:[#allocation8_spill]] %s12056_s3 }
   0x5   :  { %s12080_s20 = sld [smem:[#allocation6_spill]]  ;;  %v210_v1 = vld [vmem:[%s12057_s4 + $0x3c0] sm:$0xff]  ;;  %v5200_v2 = vmov 0   ;;  %v211_v5 = vld [vmem:[%s12057_s4 + $0x3c8] sm:$0xff] }
   0x6   :  { %5163 = vset.pattern.permute.xlu0 %v5200_v2  ;;  %474 = vmatpush.msra.mxu0 %v210_v1  ;;  %v338_v3 = vld [vmem:[%s12057_s4 + $0x7c0] sm:$0xff]  ;;  %v203_v9 = vld [vmem:[%s12057_s4 + $0x388] sm:$0xff] }
   0x7   :  { %v466_v4 = vld [vmem:[%s12057_s4 + $0xbc0] sm:$0xff]  ;;  %497 = vmatpush.msra.mxu1 %v338_v3  ;;  %543 = vmatpush.msra.mxu3 %v211_v5  ;;  %v195_v13 = vld [vmem:[%s12057_s4 + $0x348] sm:$0xff]  ;;  %v212_v5 = vld [vmem:[%s12057_s4 + $0x3d0] sm:$0xff] }
   0x8   :  { %v202_v6 = vld [vmem:[%s12057_s4 + $0x380] sm:$0xff]  ;;  %520 = vmatpush.msra.mxu2 %v466_v4  ;;  %v187_v17 = vld [vmem:[%s12057_s4 + $0x308] sm:$0xff] }
   0x9   :  { %v330_v7 = vld [vmem:[%s12057_s4 + $0x780] sm:$0xff]  ;;  %475 = vmatpush.msra.mxu0 %v202_v6  ;;  %544 = vmatpush.msra.mxu3 %v203_v9  ;;  %v179_v22 = vld [vmem:[%s12057_s4 + $0x2c8] sm:$0xff]  ;;  %v340_v6 = vld [vmem:[%s12057_s4 + $0x7d0] sm:$0xff] }
   0xa   :  { %v458_v8 = vld [vmem:[%s12057_s4 + $0xb80] sm:$0xff]  ;;  %498 = vmatpush.msra.mxu1 %v330_v7  ;;  %v171_v26 = vld [vmem:[%s12057_s4 + $0x288] sm:$0xff]  ;;  %v204_v9 = vld [vmem:[%s12057_s4 + $0x390] sm:$0xff] }
   0xb   :  { %v64_v0 = vld [vmem:[%s12080_s20] sm:$0xff]  ;;  %521 = vmatpush.msra.mxu2 %v458_v8  ;;  %v65_v18 = vld [vmem:[%s12080_s20 + $0x8] sm:$0xff]  ;;  %545 = vmatpush.msra.mxu3 %v195_v13  ;;  %v196_v13 = vld [vmem:[%s12057_s4 + $0x350] sm:$0xff] }
   0xc   :  { %67 = vperm.xlu0 %5163, %v64_v0   ;;  %v194_v10 = vld [vmem:[%s12057_s4 + $0x340] sm:$0xff]  ;;  %v163_v30 = vld [vmem:[%s12057_s4 + $0x248] sm:$0xff] }
   0xd   :  { %v322_v11 = vld [vmem:[%s12057_s4 + $0x740] sm:$0xff]  ;;  %476 = vmatpush.msra.mxu0 %v194_v10  ;;  %546 = vmatpush.msra.mxu3 %v187_v17  ;;  %v155_v34 = vld [vmem:[%s12057_s4 + $0x208] sm:$0xff]  ;;  %v332_v10 = vld [vmem:[%s12057_s4 + $0x790] sm:$0xff] }
   0xe   :  { %v450_v12 = vld [vmem:[%s12057_s4 + $0xb40] sm:$0xff]  ;;  %499 = vmatpush.msra.mxu1 %v322_v11  ;;  %v147_v38 = vld [vmem:[%s12057_s4 + $0x1c8] sm:$0xff]  ;;  %v188_v17 = vld [vmem:[%s12057_s4 + $0x310] sm:$0xff] }
   0xf   :  { %v186_v14 = vld [vmem:[%s12057_s4 + $0x300] sm:$0xff]  ;;  %522 = vmatpush.msra.mxu2 %v450_v12  ;;  %547 = vmatpush.msra.mxu3 %v179_v22  ;;  %v139_v42 = vld [vmem:[%s12057_s4 + $0x188] sm:$0xff]  ;;  %v308_v22 = vld [vmem:[%s12057_s4 + $0x6d0] sm:$0xff] }
  0x10   :  { %v314_v15 = vld [vmem:[%s12057_s4 + $0x700] sm:$0xff]  ;;  %477 = vmatpush.msra.mxu0 %v186_v14  ;;  %v131_v46 = vld [vmem:[%s12057_s4 + $0x148] sm:$0xff]  ;;  %v324_v14 = vld [vmem:[%s12057_s4 + $0x750] sm:$0xff] }
  0x11   :  { %v442_v16 = vld [vmem:[%s12057_s4 + $0xb00] sm:$0xff]  ;;  %500 = vmatpush.msra.mxu1 %v314_v15  ;;  %548 = vmatpush.msra.mxu3 %v171_v26  ;;  %v123_v50 = vld [vmem:[%s12057_s4 + $0x108] sm:$0xff] }
  0x12   :  { %v178_v19 = vld [vmem:[%s12057_s4 + $0x2c0] sm:$0xff]  ;;  %523 = vmatpush.msra.mxu2 %v442_v16  ;;  %v115_v54 = vld [vmem:[%s12057_s4 + $0xc8] sm:$0xff] }
  0x13   :  { %v306_v20 = vld [vmem:[%s12057_s4 + $0x6c0] sm:$0xff]  ;;  %478 = vmatpush.msra.mxu0 %v178_v19  ;;  %549 = vmatpush.msra.mxu3 %v163_v30  ;;  %v107_v58 = vld [vmem:[%s12057_s4 + $0x88] sm:$0xff] }
  0x14   :  { %v434_v21 = vld [vmem:[%s12057_s4 + $0xac0] sm:$0xff]  ;;  %70 = vperm.xlu0 %5163, %v65_v18   ;;  %501 = vmatpush.msra.mxu1 %v306_v20  ;;  %v99_v62 = vld [vmem:[%s12057_s4 + $0x48] sm:$0xff]  ;;  %v316_v18 = vld [vmem:[%s12057_s4 + $0x710] sm:$0xff] }
  0x15   :  { %v170_v23 = vld [vmem:[%s12057_s4 + $0x280] sm:$0xff]  ;;  %524 = vmatpush.msra.mxu2 %v434_v21  ;;  %550 = vmatpush.msra.mxu3 %v155_v34  ;;  %v91_v2 = vld [vmem:[%s12057_s4 + $0x8] sm:$0xff]  ;;  %v180_v21 = vld [vmem:[%s12057_s4 + $0x2d0] sm:$0xff] }
  0x16   :  { %v298_v24 = vld [vmem:[%s12057_s4 + $0x680] sm:$0xff]  ;;  %479 = vmatpush.msra.mxu0 %v170_v23  ;;  %v339_v3 = vld [vmem:[%s12057_s4 + $0x7c8] sm:$0xff] }
  0x17   :  { %v426_v25 = vld [vmem:[%s12057_s4 + $0xa80] sm:$0xff]  ;;  %502 = vmatpush.msra.mxu1 %v298_v24  ;;  %551 = vmatpush.msra.mxu3 %v147_v38  ;;  %v467_v4 = vld [vmem:[%s12057_s4 + $0xbc8] sm:$0xff] }
  0x18   :  { %v162_v27 = vld [vmem:[%s12057_s4 + $0x240] sm:$0xff]  ;;  %525 = vmatpush.msra.mxu2 %v426_v25  ;;  %v331_v7 = vld [vmem:[%s12057_s4 + $0x788] sm:$0xff]  ;;  %v172_v25 = vld [vmem:[%s12057_s4 + $0x290] sm:$0xff] }
  0x19   :  { %v290_v28 = vld [vmem:[%s12057_s4 + $0x640] sm:$0xff]  ;;  %480 = vmatpush.msra.mxu0 %v162_v27  ;;  %552 = vmatpush.msra.mxu3 %v139_v42  ;;  %v459_v8 = vld [vmem:[%s12057_s4 + $0xb88] sm:$0xff] }
  0x1a   :  { %v418_v29 = vld [vmem:[%s12057_s4 + $0xa40] sm:$0xff]  ;;  %503 = vmatpush.msra.mxu1 %v290_v28  ;;  %v323_v11 = vld [vmem:[%s12057_s4 + $0x748] sm:$0xff] }
  0x1b   :  { %v154_v31 = vld [vmem:[%s12057_s4 + $0x200] sm:$0xff]  ;;  %526 = vmatpush.msra.mxu2 %v418_v29  ;;  %553 = vmatpush.msra.mxu3 %v131_v46  ;;  %v451_v12 = vld [vmem:[%s12057_s4 + $0xb48] sm:$0xff] }
  0x1c   :  { %v282_v32 = vld [vmem:[%s12057_s4 + $0x600] sm:$0xff]  ;;  %481 = vmatpush.msra.mxu0 %v154_v31  ;;  %v315_v15 = vld [vmem:[%s12057_s4 + $0x708] sm:$0xff] }
  0x1d   :  { %v410_v33 = vld [vmem:[%s12057_s4 + $0xa00] sm:$0xff]  ;;  %504 = vmatpush.msra.mxu1 %v282_v32  ;;  %554 = vmatpush.msra.mxu3 %v123_v50  ;;  %v443_v16 = vld [vmem:[%s12057_s4 + $0xb08] sm:$0xff] }
  0x1e   :  { %v146_v35 = vld [vmem:[%s12057_s4 + $0x1c0] sm:$0xff]  ;;  %527 = vmatpush.msra.mxu2 %v410_v33  ;;  %v307_v19 = vld [vmem:[%s12057_s4 + $0x6c8] sm:$0xff] }
  0x1f   :  { %v274_v36 = vld [vmem:[%s12057_s4 + $0x5c0] sm:$0xff]  ;;  %482 = vmatpush.msra.mxu0 %v146_v35  ;;  %555 = vmatpush.msra.mxu3 %v115_v54  ;;  %v435_v20 = vld [vmem:[%s12057_s4 + $0xac8] sm:$0xff] }
  0x20   :  { %v402_v37 = vld [vmem:[%s12057_s4 + $0x9c0] sm:$0xff]  ;;  %505 = vmatpush.msra.mxu1 %v274_v36  ;;  %v299_v23 = vld [vmem:[%s12057_s4 + $0x688] sm:$0xff] }
  0x21   :  { %v138_v39 = vld [vmem:[%s12057_s4 + $0x180] sm:$0xff]  ;;  %528 = vmatpush.msra.mxu2 %v402_v37  ;;  %556 = vmatpush.msra.mxu3 %v107_v58  ;;  %v427_v24 = vld [vmem:[%s12057_s4 + $0xa88] sm:$0xff] }
  0x22   :  { %v266_v40 = vld [vmem:[%s12057_s4 + $0x580] sm:$0xff]  ;;  %483 = vmatpush.msra.mxu0 %v138_v39 }
  0x23   :  { %v394_v41 = vld [vmem:[%s12057_s4 + $0x980] sm:$0xff]  ;;  %506 = vmatpush.msra.mxu1 %v266_v40  ;;  %557 = vmatpush.msra.mxu3 %v99_v62 }
  0x24   :  { %v130_v43 = vld [vmem:[%s12057_s4 + $0x140] sm:$0xff]  ;;  %529 = vmatpush.msra.mxu2 %v394_v41 }
  0x25   :  { %v258_v44 = vld [vmem:[%s12057_s4 + $0x540] sm:$0xff]  ;;  %484 = vmatpush.msra.mxu0 %v130_v43  ;;  %558 = vmatpush.msra.mxu3 %v91_v2 }
  0x26   :  { %v386_v45 = vld [vmem:[%s12057_s4 + $0x940] sm:$0xff]  ;;  %507 = vmatpush.msra.mxu1 %v258_v44 }
  0x27   :  { %v122_v47 = vld [vmem:[%s12057_s4 + $0x100] sm:$0xff]  ;;  %530 = vmatpush.msra.mxu2 %v386_v45  ;;  %635 = vmatpush.msrb.mxu3 %v340_v6 }
  0x28   :  { %v250_v48 = vld [vmem:[%s12057_s4 + $0x500] sm:$0xff]  ;;  %485 = vmatpush.msra.mxu0 %v122_v47 }
  0x29   :  { %v378_v49 = vld [vmem:[%s12057_s4 + $0x900] sm:$0xff]  ;;  %508 = vmatpush.msra.mxu1 %v250_v48  ;;  %636 = vmatpush.msrb.mxu3 %v332_v10 }
  0x2a   :  { %v114_v51 = vld [vmem:[%s12057_s4 + $0xc0] sm:$0xff]  ;;  %531 = vmatpush.msra.mxu2 %v378_v49 }
  0x2b   :  { %v242_v52 = vld [vmem:[%s12057_s4 + $0x4c0] sm:$0xff]  ;;  %486 = vmatpush.msra.mxu0 %v114_v51  ;;  %637 = vmatpush.msrb.mxu3 %v324_v14 }
  0x2c   :  { %v370_v53 = vld [vmem:[%s12057_s4 + $0x8c0] sm:$0xff]  ;;  %509 = vmatpush.msra.mxu1 %v242_v52 }
  0x2d   :  { %v106_v55 = vld [vmem:[%s12057_s4 + $0x80] sm:$0xff]  ;;  %532 = vmatpush.msra.mxu2 %v370_v53  ;;  %638 = vmatpush.msrb.mxu3 %v316_v18 }
  0x2e   :  { %v234_v56 = vld [vmem:[%s12057_s4 + $0x480] sm:$0xff]  ;;  %487 = vmatpush.msra.mxu0 %v106_v55 }
  0x2f   :  { %v362_v57 = vld [vmem:[%s12057_s4 + $0x880] sm:$0xff]  ;;  %510 = vmatpush.msra.mxu1 %v234_v56 }
  0x30   :  { %v98_v59 = vld [vmem:[%s12057_s4 + $0x40] sm:$0xff]  ;;  %533 = vmatpush.msra.mxu2 %v362_v57 }
  0x31   :  { %v226_v60 = vld [vmem:[%s12057_s4 + $0x440] sm:$0xff]  ;;  %488 = vmatpush.msra.mxu0 %v98_v59 }
  0x32   :  { %v354_v61 = vld [vmem:[%s12057_s4 + $0x840] sm:$0xff]  ;;  %511 = vmatpush.msra.mxu1 %v226_v60 }
  0x33   :  { %v90_v63 = vld [vmem:[%s12057_s4] sm:$0xff]  ;;  %534 = vmatpush.msra.mxu2 %v354_v61 }
  0x34   :  { %v218_v0 = vld [vmem:[%s12057_s4 + $0x400] sm:$0xff]  ;;  %489 = vmatpush.msra.mxu0 %v90_v63 }
  0x35   :  { %v346_v1 = vld [vmem:[%s12057_s4 + $0x800] sm:$0xff]  ;;  %512 = vmatpush.msra.mxu1 %v218_v0 }
  0x36   :  { %535 = vmatpush.msra.mxu2 %v346_v1  ;;  %566 = vmatpush.msrb.mxu0 %v339_v3 }
  0x37   :  { %589 = vmatpush.msrb.mxu1 %v467_v4 }
  0x38   :  { %612 = vmatpush.msrb.mxu2 %v212_v5  ;;  %567 = vmatpush.msrb.mxu0 %v331_v7 }
  0x39   :  { %590 = vmatpush.msrb.mxu1 %v459_v8 }
  0x3a   :  { %613 = vmatpush.msrb.mxu2 %v204_v9  ;;  %568 = vmatpush.msrb.mxu0 %v323_v11 }
  0x3b   :  { %591 = vmatpush.msrb.mxu1 %v451_v12 }
  0x3c   :  { %614 = vmatpush.msrb.mxu2 %v196_v13  ;;  %569 = vmatpush.msrb.mxu0 %v315_v15 }
  0x3d   :  { %592 = vmatpush.msrb.mxu1 %v443_v16 }
  0x3e   :  { %615 = vmatpush.msrb.mxu2 %v188_v17  ;;  %570 = vmatpush.msrb.mxu0 %v307_v19 }
  0x3f   :  { %25 = vsyncpa [#allocation3], 0  ;;  %593 = vmatpush.msrb.mxu1 %v435_v20  ;;  %v300_v26 = vld [vmem:[%s12057_s4 + $0x690] sm:$0xff]  ;;  %v291_v27 = vld [vmem:[%s12057_s4 + $0x648] sm:$0xff]  ;;  %639 = vmatpush.msrb.mxu3 %v308_v22  ;;  %v60_v3 = vlaneseq  ;;  %v5201_v13 = vmov 1.0   ;;  %s12093_s27 = sld [smem:[#allocation7_spill]] }
  0x40   :  { %616 = vmatpush.msrb.mxu2 %v180_v21  ;;  %571 = vmatpush.msrb.mxu0 %v299_v23  ;;  %v419_v28 = vld [vmem:[%s12057_s4 + $0xa48] sm:$0xff]  ;;  %v164_v29 = vld [vmem:[%s12057_s4 + $0x250] sm:$0xff]  ;;  %v213_v12 = vld [vmem:[%s12057_s4 + $0x3d8] sm:$0xff]  ;;  %s12094_s22 = sld [smem:[#allocation5_spill]]  ;;  %s5202_s1 = smov [#allocation2]  }
  0x41   :  { %594 = vmatpush.msrb.mxu1 %v427_v24  ;;  %v292_v30 = vld [vmem:[%s12057_s4 + $0x650] sm:$0xff]  ;;  %v283_v31 = vld [vmem:[%s12057_s4 + $0x608] sm:$0xff]  ;;  %640 = vmatpush.msrb.mxu3 %v300_v26  ;;  %v61_v4 = vand.u32 127, %v60_v3  ;;  %v341_v14 = vld [vmem:[%s12057_s4 + $0x7d8] sm:$0xff]  ;;  %s12095_s25 = sld [smem:[#allocation8_spill]]  ;;  %s5204_s23 = smov 32  }
  0x42   :  { %617 = vmatpush.msrb.mxu2 %v172_v25  ;;  %572 = vmatpush.msrb.mxu0 %v291_v27  ;;  %v411_v32 = vld [vmem:[%s12057_s4 + $0xa08] sm:$0xff]  ;;  %v156_v33 = vld [vmem:[%s12057_s4 + $0x210] sm:$0xff]  ;;  %v469_v15 = vld [vmem:[%s12057_s4 + $0xbd8] sm:$0xff] }
  0x43   :  { %595 = vmatpush.msrb.mxu1 %v419_v28  ;;  %v284_v34 = vld [vmem:[%s12057_s4 + $0x610] sm:$0xff]  ;;  %v275_v35 = vld [vmem:[%s12057_s4 + $0x5c8] sm:$0xff]  ;;  %641 = vmatpush.msrb.mxu3 %v292_v30  ;;  %v62_v5 = vadd.s32 128, %v61_v4  ;;  %v63_v6 = vadd.s32 256, %v61_v4  ;;  %v205_v17 = vld [vmem:[%s12057_s4 + $0x398] sm:$0xff] }
  0x44   :  { %618 = vmatpush.msrb.mxu2 %v164_v29  ;;  %573 = vmatpush.msrb.mxu0 %v283_v31  ;;  %v403_v36 = vld [vmem:[%s12057_s4 + $0x9c8] sm:$0xff]  ;;  %v148_v37 = vld [vmem:[%s12057_s4 + $0x1d0] sm:$0xff]  ;;  %v333_v18 = vld [vmem:[%s12057_s4 + $0x798] sm:$0xff] }
  0x45   :  { %596 = vmatpush.msrb.mxu1 %v411_v32  ;;  %v276_v38 = vld [vmem:[%s12057_s4 + $0x5d0] sm:$0xff]  ;;  %v267_v39 = vld [vmem:[%s12057_s4 + $0x588] sm:$0xff]  ;;  %642 = vmatpush.msrb.mxu3 %v284_v34  ;;  %v461_v19 = vld [vmem:[%s12057_s4 + $0xb98] sm:$0xff] }
  0x46   :  { %619 = vmatpush.msrb.mxu2 %v156_v33  ;;  %574 = vmatpush.msrb.mxu0 %v275_v35  ;;  %v395_v40 = vld [vmem:[%s12057_s4 + $0x988] sm:$0xff]  ;;  %v140_v41 = vld [vmem:[%s12057_s4 + $0x190] sm:$0xff]  ;;  %v197_v21 = vld [vmem:[%s12057_s4 + $0x358] sm:$0xff] }
  0x47   :  { %597 = vmatpush.msrb.mxu1 %v403_v36  ;;  %v268_v42 = vld [vmem:[%s12057_s4 + $0x590] sm:$0xff]  ;;  %v259_v43 = vld [vmem:[%s12057_s4 + $0x548] sm:$0xff]  ;;  %643 = vmatpush.msrb.mxu3 %v276_v38  ;;  %v325_v22 = vld [vmem:[%s12057_s4 + $0x758] sm:$0xff] }
  0x48   :  { %620 = vmatpush.msrb.mxu2 %v148_v37  ;;  %575 = vmatpush.msrb.mxu0 %v267_v39  ;;  %v387_v44 = vld [vmem:[%s12057_s4 + $0x948] sm:$0xff]  ;;  %v132_v45 = vld [vmem:[%s12057_s4 + $0x150] sm:$0xff]  ;;  %v453_v23 = vld [vmem:[%s12057_s4 + $0xb58] sm:$0xff] }
  0x49   :  { %598 = vmatpush.msrb.mxu1 %v395_v40  ;;  %v260_v46 = vld [vmem:[%s12057_s4 + $0x550] sm:$0xff]  ;;  %v251_v47 = vld [vmem:[%s12057_s4 + $0x508] sm:$0xff]  ;;  %644 = vmatpush.msrb.mxu3 %v268_v42  ;;  %v189_v25 = vld [vmem:[%s12057_s4 + $0x318] sm:$0xff] }
  0x4a   :  { %621 = vmatpush.msrb.mxu2 %v140_v41  ;;  %576 = vmatpush.msrb.mxu0 %v259_v43  ;;  %v379_v48 = vld [vmem:[%s12057_s4 + $0x908] sm:$0xff]  ;;  %v124_v49 = vld [vmem:[%s12057_s4 + $0x110] sm:$0xff]  ;;  %v317_v27 = vld [vmem:[%s12057_s4 + $0x718] sm:$0xff] }
  0x4b   :  { %599 = vmatpush.msrb.mxu1 %v387_v44  ;;  %v252_v50 = vld [vmem:[%s12057_s4 + $0x510] sm:$0xff]  ;;  %v243_v51 = vld [vmem:[%s12057_s4 + $0x4c8] sm:$0xff]  ;;  %645 = vmatpush.msrb.mxu3 %v260_v46  ;;  %v445_v28 = vld [vmem:[%s12057_s4 + $0xb18] sm:$0xff] }
  0x4c   :  { %622 = vmatpush.msrb.mxu2 %v132_v45  ;;  %577 = vmatpush.msrb.mxu0 %v251_v47  ;;  %v371_v52 = vld [vmem:[%s12057_s4 + $0x8c8] sm:$0xff]  ;;  %v116_v53 = vld [vmem:[%s12057_s4 + $0xd0] sm:$0xff]  ;;  %v181_v33 = vld [vmem:[%s12057_s4 + $0x2d8] sm:$0xff] }
  0x4d   :  { %600 = vmatpush.msrb.mxu1 %v379_v48  ;;  %v244_v54 = vld [vmem:[%s12057_s4 + $0x4d0] sm:$0xff]  ;;  %v235_v55 = vld [vmem:[%s12057_s4 + $0x488] sm:$0xff]  ;;  %646 = vmatpush.msrb.mxu3 %v252_v50  ;;  %v309_v34 = vld [vmem:[%s12057_s4 + $0x6d8] sm:$0xff] }
  0x4e   :  { %623 = vmatpush.msrb.mxu2 %v124_v49  ;;  %578 = vmatpush.msrb.mxu0 %v243_v51  ;;  %v363_v56 = vld [vmem:[%s12057_s4 + $0x888] sm:$0xff]  ;;  %v108_v57 = vld [vmem:[%s12057_s4 + $0x90] sm:$0xff]  ;;  %v437_v35 = vld [vmem:[%s12057_s4 + $0xad8] sm:$0xff] }
  0x4f   :  { %601 = vmatpush.msrb.mxu1 %v371_v52  ;;  %v236_v58 = vld [vmem:[%s12057_s4 + $0x490] sm:$0xff]  ;;  %v227_v59 = vld [vmem:[%s12057_s4 + $0x448] sm:$0xff]  ;;  %647 = vmatpush.msrb.mxu3 %v244_v54  ;;  %v173_v37 = vld [vmem:[%s12057_s4 + $0x298] sm:$0xff] }
  0x50   :  { %624 = vmatpush.msrb.mxu2 %v116_v53  ;;  %579 = vmatpush.msrb.mxu0 %v235_v55  ;;  %v355_v60 = vld [vmem:[%s12057_s4 + $0x848] sm:$0xff]  ;;  %v100_v61 = vld [vmem:[%s12057_s4 + $0x50] sm:$0xff]  ;;  %v301_v38 = vld [vmem:[%s12057_s4 + $0x698] sm:$0xff] }
  0x51   :  { %602 = vmatpush.msrb.mxu1 %v363_v56  ;;  %v228_v62 = vld [vmem:[%s12057_s4 + $0x450] sm:$0xff]  ;;  %648 = vmatpush.msrb.mxu3 %v236_v58  ;;  %v219_v63 = vld [vmem:[%s12057_s4 + $0x408] sm:$0xff]  ;;  %v429_v39 = vld [vmem:[%s12057_s4 + $0xa98] sm:$0xff] }
  0x52   :  { %625 = vmatpush.msrb.mxu2 %v108_v57  ;;  %580 = vmatpush.msrb.mxu0 %v227_v59  ;;  %v347_v0 = vld [vmem:[%s12057_s4 + $0x808] sm:$0xff]  ;;  %v92_v1 = vld [vmem:[%s12057_s4 + $0x10] sm:$0xff]  ;;  %v165_v41 = vld [vmem:[%s12057_s4 + $0x258] sm:$0xff] }
  0x53   :  { %603 = vmatpush.msrb.mxu1 %v355_v60  ;;  %649 = vmatpush.msrb.mxu3 %v228_v62  ;;  %v220_v2 = vld [vmem:[%s12057_s4 + $0x410] sm:$0xff]  ;;  %v293_v42 = vld [vmem:[%s12057_s4 + $0x658] sm:$0xff]  ;;  %v1084_v8 = vld [vmem:[%s12093_s27 + $0x1c0] sm:$0xff] }
  0x54   :  { %626 = vmatpush.msrb.mxu2 %v100_v61  ;;  %581 = vmatpush.msrb.mxu0 %v219_v63  ;;  %v468_v11 = vld [vmem:[%s12057_s4 + $0xbd0] sm:$0xff]  ;;  %v421_v43 = vld [vmem:[%s12057_s4 + $0xa58] sm:$0xff]  ;;  %v1080_v10 = vld [vmem:[%s12093_s27 + $0x1a0] sm:$0xff] }
  0x55   :  { %604 = vmatpush.msrb.mxu1 %v347_v0  ;;  %650 = vmatpush.msrb.mxu3 %v220_v2  ;;  %v460_v16 = vld [vmem:[%s12057_s4 + $0xb90] sm:$0xff]  ;;  %v157_v45 = vld [vmem:[%s12057_s4 + $0x218] sm:$0xff]  ;;  %v1068_v29 = vld [vmem:[%s12093_s27 + $0x140] sm:$0xff] }
  0x56   :  { %627 = vmatpush.msrb.mxu2 %v92_v1  ;;  %v452_v20 = vld [vmem:[%s12057_s4 + $0xb50] sm:$0xff]  ;;  %v285_v46 = vld [vmem:[%s12057_s4 + $0x618] sm:$0xff]  ;;  %v1065_v31 = vld [vmem:[%s12093_s27 + $0x128] sm:$0xff] }
  0x57   :  { %v444_v24 = vld [vmem:[%s12057_s4 + $0xb10] sm:$0xff]  ;;  %v413_v47 = vld [vmem:[%s12057_s4 + $0xa18] sm:$0xff] }
  0x58   :  { %v436_v32 = vld [vmem:[%s12057_s4 + $0xad0] sm:$0xff]  ;;  %v149_v49 = vld [vmem:[%s12057_s4 + $0x1d8] sm:$0xff] }
  0x59   :  { %v428_v36 = vld [vmem:[%s12057_s4 + $0xa90] sm:$0xff]  ;;  %v277_v50 = vld [vmem:[%s12057_s4 + $0x5d8] sm:$0xff] }
  0x5a   :  { %v420_v40 = vld [vmem:[%s12057_s4 + $0xa50] sm:$0xff]  ;;  %v405_v51 = vld [vmem:[%s12057_s4 + $0x9d8] sm:$0xff] }
  0x5b   :  { %v412_v44 = vld [vmem:[%s12057_s4 + $0xa10] sm:$0xff]  ;;  %v141_v53 = vld [vmem:[%s12057_s4 + $0x198] sm:$0xff] }
  0x5c   :  { %v404_v48 = vld [vmem:[%s12057_s4 + $0x9d0] sm:$0xff]  ;;  %v269_v54 = vld [vmem:[%s12057_s4 + $0x598] sm:$0xff] }
  0x5d   :  { %v396_v52 = vld [vmem:[%s12057_s4 + $0x990] sm:$0xff]  ;;  %v397_v55 = vld [vmem:[%s12057_s4 + $0x998] sm:$0xff] }
  0x5e   :  { %v388_v56 = vld [vmem:[%s12057_s4 + $0x950] sm:$0xff]  ;;  %v133_v57 = vld [vmem:[%s12057_s4 + $0x158] sm:$0xff] }
  0x5f   :  { %v261_v58 = vld [vmem:[%s12057_s4 + $0x558] sm:$0xff]  ;;  %v380_v60 = vld [vmem:[%s12057_s4 + $0x910] sm:$0xff] }
  0x60   :  { %v389_v59 = vld [vmem:[%s12057_s4 + $0x958] sm:$0xff]  ;;  %v372_v0 = vld [vmem:[%s12057_s4 + $0x8d0] sm:$0xff] }
  0x61   :  { %v125_v61 = vld [vmem:[%s12057_s4 + $0x118] sm:$0xff] }
  0x62   :  { %v253_v62 = vld [vmem:[%s12057_s4 + $0x518] sm:$0xff] }
  0x63   :  { %v381_v63 = vld [vmem:[%s12057_s4 + $0x918] sm:$0xff] }
  0x64   :  { %v117_v1 = vld [vmem:[%s12057_s4 + $0xd8] sm:$0xff] }
  0x65   :  { %v245_v2 = vld [vmem:[%s12057_s4 + $0x4d8] sm:$0xff] }
  0x66   :  { %v373_v3 = vld [vmem:[%s12057_s4 + $0x8d8] sm:$0xff] }
  0x67   :  { %v1087_v9 = vld [vmem:[%s12093_s27 + $0x1d8] sm:$0xff] }
  0x68   :  { %v1071_v30 = vld [vmem:[%s12093_s27 + $0x158] sm:$0xff] }
  0x7e   :  { %v68_v7 = vpop.permute.xlu0 %67 }
  0x7f   :  { %vm5695_vm0 = vcmp.eq.s32.totalorder %v61_v4, %v68_v7  ;;  %vm5699_vm1 = vcmp.eq.s32.totalorder %v62_v5, %v68_v7  ;;  %vm5703_vm2 = vcmp.eq.s32.totalorder %v63_v6, %v68_v7  ;;  %v365_v7 = vld [vmem:[%s12057_s4 + $0x898] sm:$0xff] }
  0x80   :  { %5110 = vmatmul.msk.f32.vlgmr.msra.gmra.mxu0 %vm5695_vm0, %v5201_v13  ;;  %5112 = vmatmul.msk.f32.vlgmr.msra.gmra.mxu1 %vm5699_vm1, %v5201_v13 }
  0x81   :  { %5114 = vmatmul.msk.f32.vlgmr.msra.gmra.mxu2 %vm5703_vm2, %v5201_v13  ;;  %5116 = vmatmul.msk.f32.vlgmr.msra.gmra.mxu3 %vm5695_vm0, %v5201_v13 }
  0x82   :  { %658 = vmatpush.msra.mxu0 %v468_v11  ;;  %681 = vmatpush.msra.mxu1 %v213_v12  ;;  %v356_v11 = vld [vmem:[%s12057_s4 + $0x850] sm:$0xff]  ;;  %v101_v12 = vld [vmem:[%s12057_s4 + $0x58] sm:$0xff] }
  0x83   :  { %704 = vmatpush.msra.mxu2 %v341_v14  ;;  %727 = vmatpush.msra.mxu3 %v469_v15  ;;  %v229_v14 = vld [vmem:[%s12057_s4 + $0x458] sm:$0xff] }
  0x84   :  { %659 = vmatpush.msra.mxu0 %v460_v16  ;;  %682 = vmatpush.msra.mxu1 %v205_v17  ;;  %v357_v15 = vld [vmem:[%s12057_s4 + $0x858] sm:$0xff]  ;;  %v348_v16 = vld [vmem:[%s12057_s4 + $0x810] sm:$0xff] }
  0x85   :  { %705 = vmatpush.msra.mxu2 %v333_v18  ;;  %728 = vmatpush.msra.mxu3 %v461_v19  ;;  %v93_v17 = vld [vmem:[%s12057_s4 + $0x18] sm:$0xff] }
  0x86   :  { %660 = vmatpush.msra.mxu0 %v452_v20  ;;  %683 = vmatpush.msra.mxu1 %v197_v21  ;;  %v71_v26 = vpop.permute.xlu0 %70  ;;  %v221_v18 = vld [vmem:[%s12057_s4 + $0x418] sm:$0xff]  ;;  %v214_v20 = vld [vmem:[%s12057_s4 + $0x3e0] sm:$0xff] }
  0x87   :  { %706 = vmatpush.msra.mxu2 %v325_v22  ;;  %729 = vmatpush.msra.mxu3 %v453_v23  ;;  %vm5767_vm3 = vcmp.eq.s32.totalorder %v61_v4, %v71_v26  ;;  %vm5771_vm4 = vcmp.eq.s32.totalorder %v62_v5, %v71_v26  ;;  %vm5775_vm5 = vcmp.eq.s32.totalorder %v63_v6, %v71_v26  ;;  %v364_v4 = vld [vmem:[%s12057_s4 + $0x890] sm:$0xff]  ;;  %v109_v5 = vld [vmem:[%s12057_s4 + $0x98] sm:$0xff]  ;;  %v342_v21 = vld [vmem:[%s12057_s4 + $0x7e0] sm:$0xff] }
  0x88   :  { %661 = vmatpush.msra.mxu0 %v444_v24  ;;  %684 = vmatpush.msra.mxu1 %v189_v25  ;;  %v237_v6 = vld [vmem:[%s12057_s4 + $0x498] sm:$0xff]  ;;  %v470_v22 = vld [vmem:[%s12057_s4 + $0xbe0] sm:$0xff]  ;;  %v215_v23 = vld [vmem:[%s12057_s4 + $0x3e8] sm:$0xff] }
  0x89   :  { %707 = vmatpush.msra.mxu2 %v317_v27  ;;  %730 = vmatpush.msra.mxu3 %v445_v28  ;;  %v349_v19 = vld [vmem:[%s12057_s4 + $0x818] sm:$0xff]  ;;  %v206_v24 = vld [vmem:[%s12057_s4 + $0x3a0] sm:$0xff]  ;;  %v207_v27 = vld [vmem:[%s12057_s4 + $0x3a8] sm:$0xff] }
  0x8a   :  { %5111 = vmatmul.msk.f32.gmra.mxu0 %vm5767_vm3, %v5201_v13  ;;  %5113 = vmatmul.msk.f32.gmra.mxu1 %vm5771_vm4, %v5201_v13  ;;  %v334_v25 = vld [vmem:[%s12057_s4 + $0x7a0] sm:$0xff] }
  0x8b   :  { %5115 = vmatmul.msk.f32.gmra.mxu2 %vm5775_vm5, %v5201_v13  ;;  %5117 = vmatmul.msk.f32.gmra.mxu3 %vm5767_vm3, %v5201_v13  ;;  %v462_v26 = vld [vmem:[%s12057_s4 + $0xba0] sm:$0xff] }
  0x8c   :  { %662 = vmatpush.msra.mxu0 %v436_v32  ;;  %685 = vmatpush.msra.mxu1 %v181_v33  ;;  %v198_v28 = vld [vmem:[%s12057_s4 + $0x360] sm:$0xff] }
  0x8d   :  { %708 = vmatpush.msra.mxu2 %v309_v34  ;;  %731 = vmatpush.msra.mxu3 %v437_v35  ;;  %v326_v32 = vld [vmem:[%s12057_s4 + $0x760] sm:$0xff]  ;;  %v199_v34 = vld [vmem:[%s12057_s4 + $0x368] sm:$0xff] }
  0x8e   :  { %663 = vmatpush.msra.mxu0 %v428_v36  ;;  %686 = vmatpush.msra.mxu1 %v173_v37  ;;  %v454_v33 = vld [vmem:[%s12057_s4 + $0xb60] sm:$0xff] }
  0x8f   :  { %709 = vmatpush.msra.mxu2 %v301_v38  ;;  %732 = vmatpush.msra.mxu3 %v429_v39  ;;  %v190_v35 = vld [vmem:[%s12057_s4 + $0x320] sm:$0xff]  ;;  %v191_v38 = vld [vmem:[%s12057_s4 + $0x328] sm:$0xff] }
  0x90   :  { %664 = vmatpush.msra.mxu0 %v420_v40  ;;  %687 = vmatpush.msra.mxu1 %v165_v41  ;;  %v318_v36 = vld [vmem:[%s12057_s4 + $0x720] sm:$0xff] }
  0x91   :  { %710 = vmatpush.msra.mxu2 %v293_v42  ;;  %733 = vmatpush.msra.mxu3 %v421_v43  ;;  %v446_v37 = vld [vmem:[%s12057_s4 + $0xb20] sm:$0xff]  ;;  %v183_v42 = vld [vmem:[%s12057_s4 + $0x2e8] sm:$0xff] }
  0x92   :  { %665 = vmatpush.msra.mxu0 %v412_v44  ;;  %688 = vmatpush.msra.mxu1 %v157_v45  ;;  %v182_v39 = vld [vmem:[%s12057_s4 + $0x2e0] sm:$0xff] }
  0x93   :  { %711 = vmatpush.msra.mxu2 %v285_v46  ;;  %734 = vmatpush.msra.mxu3 %v413_v47  ;;  %v310_v40 = vld [vmem:[%s12057_s4 + $0x6e0] sm:$0xff]  ;;  %v175_v46 = vld [vmem:[%s12057_s4 + $0x2a8] sm:$0xff] }
  0x94   :  { %5118 = vmatmul.msk.f32.vlgmr.msrb.gmra.mxu0 %vm5699_vm1, %v5201_v13  ;;  %5120 = vmatmul.msk.f32.vlgmr.msrb.gmra.mxu1 %vm5703_vm2, %v5201_v13  ;;  %v438_v41 = vld [vmem:[%s12057_s4 + $0xae0] sm:$0xff] }
  0x95   :  { %5122 = vmatmul.msk.f32.vlgmr.msrb.gmra.mxu2 %vm5695_vm0, %v5201_v13  ;;  %5124 = vmatmul.msk.f32.vlgmr.msrb.gmra.mxu3 %vm5699_vm1, %v5201_v13  ;;  %v174_v43 = vld [vmem:[%s12057_s4 + $0x2a0] sm:$0xff] }
  0x96   :  { %666 = vmatpush.msra.mxu0 %v404_v48  ;;  %689 = vmatpush.msra.mxu1 %v149_v49  ;;  %v302_v44 = vld [vmem:[%s12057_s4 + $0x6a0] sm:$0xff] }
  0x97   :  { %712 = vmatpush.msra.mxu2 %v277_v50  ;;  %735 = vmatpush.msra.mxu3 %v405_v51  ;;  %v430_v45 = vld [vmem:[%s12057_s4 + $0xaa0] sm:$0xff]  ;;  %v167_v50 = vld [vmem:[%s12057_s4 + $0x268] sm:$0xff] }
  0x98   :  { %667 = vmatpush.msra.mxu0 %v396_v52  ;;  %690 = vmatpush.msra.mxu1 %v141_v53  ;;  %v166_v47 = vld [vmem:[%s12057_s4 + $0x260] sm:$0xff] }
  0x99   :  { %713 = vmatpush.msra.mxu2 %v269_v54  ;;  %736 = vmatpush.msra.mxu3 %v397_v55  ;;  %v294_v48 = vld [vmem:[%s12057_s4 + $0x660] sm:$0xff]  ;;  %v159_v54 = vld [vmem:[%s12057_s4 + $0x228] sm:$0xff] }
  0x9a   :  { %668 = vmatpush.msra.mxu0 %v388_v56  ;;  %691 = vmatpush.msra.mxu1 %v133_v57  ;;  %v422_v49 = vld [vmem:[%s12057_s4 + $0xa60] sm:$0xff] }
  0x9b   :  { %714 = vmatpush.msra.mxu2 %v261_v58  ;;  %737 = vmatpush.msra.mxu3 %v389_v59  ;;  %v158_v51 = vld [vmem:[%s12057_s4 + $0x220] sm:$0xff]  ;;  %v151_v58 = vld [vmem:[%s12057_s4 + $0x1e8] sm:$0xff] }
  0x9c   :  { %669 = vmatpush.msra.mxu0 %v380_v60  ;;  %692 = vmatpush.msra.mxu1 %v125_v61  ;;  %v286_v52 = vld [vmem:[%s12057_s4 + $0x620] sm:$0xff] }
  0x9d   :  { %715 = vmatpush.msra.mxu2 %v253_v62  ;;  %738 = vmatpush.msra.mxu3 %v381_v63  ;;  %v414_v53 = vld [vmem:[%s12057_s4 + $0xa20] sm:$0xff]  ;;  %v143_v62 = vld [vmem:[%s12057_s4 + $0x1a8] sm:$0xff] }
  0x9e   :  { %5119 = vmatmul.msk.f32.gmra.mxu0 %vm5771_vm4, %v5201_v13  ;;  %5121 = vmatmul.msk.f32.gmra.mxu1 %vm5775_vm5, %v5201_v13  ;;  %v150_v55 = vld [vmem:[%s12057_s4 + $0x1e0] sm:$0xff] }
  0x9f   :  { %5123 = vmatmul.msk.f32.gmra.mxu2 %vm5767_vm3, %v5201_v13  ;;  %5125 = vmatmul.msk.f32.gmra.mxu3 %vm5771_vm4, %v5201_v13  ;;  %v278_v56 = vld [vmem:[%s12057_s4 + $0x5e0] sm:$0xff] }
  0xa0   :  { %670 = vmatpush.msra.mxu0 %v372_v0  ;;  %693 = vmatpush.msra.mxu1 %v117_v1  ;;  %v406_v57 = vld [vmem:[%s12057_s4 + $0x9e0] sm:$0xff] }
  0xa1   :  { %716 = vmatpush.msra.mxu2 %v245_v2  ;;  %739 = vmatpush.msra.mxu3 %v373_v3  ;;  %v142_v59 = vld [vmem:[%s12057_s4 + $0x1a0] sm:$0xff]  ;;  %v135_v2 = vld [vmem:[%s12057_s4 + $0x168] sm:$0xff] }
  0xa2   :  { %671 = vmatpush.msra.mxu0 %v364_v4  ;;  %694 = vmatpush.msra.mxu1 %v109_v5  ;;  %v270_v60 = vld [vmem:[%s12057_s4 + $0x5a0] sm:$0xff] }
  0xa3   :  { %717 = vmatpush.msra.mxu2 %v237_v6  ;;  %740 = vmatpush.msra.mxu3 %v365_v7  ;;  %v398_v61 = vld [vmem:[%s12057_s4 + $0x9a0] sm:$0xff]  ;;  %v127_v6 = vld [vmem:[%s12057_s4 + $0x128] sm:$0xff] }
  0xa4   :  { %672 = vmatpush.msra.mxu0 %v356_v11  ;;  %695 = vmatpush.msra.mxu1 %v101_v12  ;;  %v134_v63 = vld [vmem:[%s12057_s4 + $0x160] sm:$0xff] }
  0xa5   :  { %718 = vmatpush.msra.mxu2 %v229_v14  ;;  %741 = vmatpush.msra.mxu3 %v357_v15  ;;  %v262_v0 = vld [vmem:[%s12057_s4 + $0x560] sm:$0xff]  ;;  %v119_v14 = vld [vmem:[%s12057_s4 + $0xe8] sm:$0xff] }
  0xa6   :  { %673 = vmatpush.msra.mxu0 %v348_v16  ;;  %696 = vmatpush.msra.mxu1 %v93_v17  ;;  %v390_v1 = vld [vmem:[%s12057_s4 + $0x960] sm:$0xff] }
  0xa7   :  { %719 = vmatpush.msra.mxu2 %v221_v18  ;;  %742 = vmatpush.msra.mxu3 %v349_v19  ;;  %v126_v3 = vld [vmem:[%s12057_s4 + $0x120] sm:$0xff]  ;;  %v111_v18 = vld [vmem:[%s12057_s4 + $0xa8] sm:$0xff] }
  0xa8   :  { %750 = vmatpush.msrb.mxu0 %v214_v20  ;;  %773 = vmatpush.msrb.mxu1 %v342_v21  ;;  %v254_v4 = vld [vmem:[%s12057_s4 + $0x520] sm:$0xff] }
  0xa9   :  { %796 = vmatpush.msrb.mxu2 %v470_v22  ;;  %819 = vmatpush.msrb.mxu3 %v215_v23  ;;  %v382_v5 = vld [vmem:[%s12057_s4 + $0x920] sm:$0xff]  ;;  %v103_v22 = vld [vmem:[%s12057_s4 + $0x68] sm:$0xff] }
  0xaa   :  { %5126 = vmatmul.msk.f32.vlgmr.msra.gmra.mxu0 %vm5703_vm2, %v5201_v13  ;;  %5128 = vmatmul.msk.f32.vlgmr.msra.gmra.mxu1 %vm5695_vm0, %v5201_v13  ;;  %v118_v7 = vld [vmem:[%s12057_s4 + $0xe0] sm:$0xff] }
  0xab   :  { %5130 = vmatmul.msk.f32.vlgmr.msra.gmra.mxu2 %vm5699_vm1, %v5201_v13  ;;  %5132 = vmatmul.msk.f32.vlgmr.msra.gmra.mxu3 %vm5703_vm2, %v5201_v13  ;;  %v246_v11 = vld [vmem:[%s12057_s4 + $0x4e0] sm:$0xff] }
  0xac   :  { %751 = vmatpush.msrb.mxu0 %v206_v24  ;;  %774 = vmatpush.msrb.mxu1 %v334_v25  ;;  %v374_v12 = vld [vmem:[%s12057_s4 + $0x8e0] sm:$0xff] }
  0xad   :  { %797 = vmatpush.msrb.mxu2 %v462_v26  ;;  %820 = vmatpush.msrb.mxu3 %v207_v27  ;;  %v110_v15 = vld [vmem:[%s12057_s4 + $0xa0] sm:$0xff]  ;;  %v95_v26 = vld [vmem:[%s12057_s4 + $0x28] sm:$0xff] }
  0xae   :  { %752 = vmatpush.msrb.mxu0 %v198_v28  ;;  %775 = vmatpush.msrb.mxu1 %v326_v32  ;;  %v238_v16 = vld [vmem:[%s12057_s4 + $0x4a0] sm:$0xff]  ;;  %v343_v27 = vld [vmem:[%s12057_s4 + $0x7e8] sm:$0xff]  ;;  %v216_v32 = vld [vmem:[%s12057_s4 + $0x3f0] sm:$0xff] }
  0xaf   :  { %798 = vmatpush.msrb.mxu2 %v454_v33  ;;  %821 = vmatpush.msrb.mxu3 %v199_v34  ;;  %v366_v17 = vld [vmem:[%s12057_s4 + $0x8a0] sm:$0xff]  ;;  %v471_v28 = vld [vmem:[%s12057_s4 + $0xbe8] sm:$0xff]  ;;  %v344_v33 = vld [vmem:[%s12057_s4 + $0x7f0] sm:$0xff] }
  0xb0   :  { %753 = vmatpush.msrb.mxu0 %v190_v35  ;;  %776 = vmatpush.msrb.mxu1 %v318_v36  ;;  %v102_v19 = vld [vmem:[%s12057_s4 + $0x60] sm:$0xff]  ;;  %v335_v34 = vld [vmem:[%s12057_s4 + $0x7a8] sm:$0xff]  ;;  %v208_v36 = vld [vmem:[%s12057_s4 + $0x3b0] sm:$0xff] }
  0xb1   :  { %799 = vmatpush.msrb.mxu2 %v446_v37  ;;  %822 = vmatpush.msrb.mxu3 %v191_v38  ;;  %v230_v20 = vld [vmem:[%s12057_s4 + $0x460] sm:$0xff]  ;;  %v463_v35 = vld [vmem:[%s12057_s4 + $0xba8] sm:$0xff]  ;;  %v336_v37 = vld [vmem:[%s12057_s4 + $0x7b0] sm:$0xff] }
  0xb2   :  { %754 = vmatpush.msrb.mxu0 %v182_v39  ;;  %777 = vmatpush.msrb.mxu1 %v310_v40  ;;  %v358_v21 = vld [vmem:[%s12057_s4 + $0x860] sm:$0xff]  ;;  %v327_v38 = vld [vmem:[%s12057_s4 + $0x768] sm:$0xff]  ;;  %v200_v40 = vld [vmem:[%s12057_s4 + $0x370] sm:$0xff] }
  0xb3   :  { %800 = vmatpush.msrb.mxu2 %v438_v41  ;;  %823 = vmatpush.msrb.mxu3 %v183_v42  ;;  %v94_v23 = vld [vmem:[%s12057_s4 + $0x20] sm:$0xff]  ;;  %v455_v39 = vld [vmem:[%s12057_s4 + $0xb68] sm:$0xff]  ;;  %v328_v41 = vld [vmem:[%s12057_s4 + $0x770] sm:$0xff] }
  0xb4   :  { %5127 = vmatmul.msk.f32.gmra.mxu0 %vm5775_vm5, %v5201_v13  ;;  %5129 = vmatmul.msk.f32.gmra.mxu1 %vm5767_vm3, %v5201_v13  ;;  %v222_v24 = vld [vmem:[%s12057_s4 + $0x420] sm:$0xff]  ;;  %v319_v42 = vld [vmem:[%s12057_s4 + $0x728] sm:$0xff] }
  0xb5   :  { %5131 = vmatmul.msk.f32.gmra.mxu2 %vm5771_vm4, %v5201_v13  ;;  %5133 = vmatmul.msk.f32.gmra.mxu3 %vm5775_vm5, %v5201_v13  ;;  %v350_v25 = vld [vmem:[%s12057_s4 + $0x820] sm:$0xff] }
  0xb6   :  { %755 = vmatpush.msrb.mxu0 %v174_v43  ;;  %778 = vmatpush.msrb.mxu1 %v302_v44  ;;  %v447_v43 = vld [vmem:[%s12057_s4 + $0xb28] sm:$0xff]  ;;  %v192_v44 = vld [vmem:[%s12057_s4 + $0x330] sm:$0xff] }
  0xb7   :  { %801 = vmatpush.msrb.mxu2 %v430_v45  ;;  %824 = vmatpush.msrb.mxu3 %v175_v46  ;;  %v320_v45 = vld [vmem:[%s12057_s4 + $0x730] sm:$0xff]  ;;  %v311_v46 = vld [vmem:[%s12057_s4 + $0x6e8] sm:$0xff] }
  0xb8   :  { %756 = vmatpush.msrb.mxu0 %v166_v47  ;;  %779 = vmatpush.msrb.mxu1 %v294_v48  ;;  %v439_v47 = vld [vmem:[%s12057_s4 + $0xae8] sm:$0xff]  ;;  %v184_v48 = vld [vmem:[%s12057_s4 + $0x2f0] sm:$0xff] }
  0xb9   :  { %802 = vmatpush.msrb.mxu2 %v422_v49  ;;  %825 = vmatpush.msrb.mxu3 %v167_v50  ;;  %v312_v49 = vld [vmem:[%s12057_s4 + $0x6f0] sm:$0xff]  ;;  %v303_v50 = vld [vmem:[%s12057_s4 + $0x6a8] sm:$0xff] }
  0xba   :  { %757 = vmatpush.msrb.mxu0 %v158_v51  ;;  %780 = vmatpush.msrb.mxu1 %v286_v52  ;;  %v431_v51 = vld [vmem:[%s12057_s4 + $0xaa8] sm:$0xff]  ;;  %v176_v52 = vld [vmem:[%s12057_s4 + $0x2b0] sm:$0xff] }
  0xbb   :  { %803 = vmatpush.msrb.mxu2 %v414_v53  ;;  %826 = vmatpush.msrb.mxu3 %v159_v54  ;;  %v304_v53 = vld [vmem:[%s12057_s4 + $0x6b0] sm:$0xff]  ;;  %v295_v54 = vld [vmem:[%s12057_s4 + $0x668] sm:$0xff] }
  0xbc   :  { %758 = vmatpush.msrb.mxu0 %v150_v55  ;;  %781 = vmatpush.msrb.mxu1 %v278_v56  ;;  %v423_v55 = vld [vmem:[%s12057_s4 + $0xa68] sm:$0xff]  ;;  %v168_v56 = vld [vmem:[%s12057_s4 + $0x270] sm:$0xff] }
  0xbd   :  { %804 = vmatpush.msrb.mxu2 %v406_v57  ;;  %827 = vmatpush.msrb.mxu3 %v151_v58  ;;  %v296_v57 = vld [vmem:[%s12057_s4 + $0x670] sm:$0xff]  ;;  %v287_v58 = vld [vmem:[%s12057_s4 + $0x628] sm:$0xff] }
  0xbe   :  { %759 = vmatpush.msrb.mxu0 %v142_v59  ;;  %782 = vmatpush.msrb.mxu1 %v270_v60  ;;  %v415_v59 = vld [vmem:[%s12057_s4 + $0xa28] sm:$0xff]  ;;  %v160_v60 = vld [vmem:[%s12057_s4 + $0x230] sm:$0xff] }
  0xbf   :  { %805 = vmatpush.msrb.mxu2 %v398_v61  ;;  %828 = vmatpush.msrb.mxu3 %v143_v62  ;;  %v288_v61 = vld [vmem:[%s12057_s4 + $0x630] sm:$0xff]  ;;  %v279_v62 = vld [vmem:[%s12057_s4 + $0x5e8] sm:$0xff] }
  0xc0   :  { %760 = vmatpush.msrb.mxu0 %v134_v63  ;;  %783 = vmatpush.msrb.mxu1 %v262_v0  ;;  %v407_v63 = vld [vmem:[%s12057_s4 + $0x9e8] sm:$0xff]  ;;  %v152_v0 = vld [vmem:[%s12057_s4 + $0x1f0] sm:$0xff] }
  0xc1   :  { %806 = vmatpush.msrb.mxu2 %v390_v1  ;;  %829 = vmatpush.msrb.mxu3 %v135_v2  ;;  %v280_v1 = vld [vmem:[%s12057_s4 + $0x5f0] sm:$0xff]  ;;  %v271_v2 = vld [vmem:[%s12057_s4 + $0x5a8] sm:$0xff] }
  0xc2   :  { %761 = vmatpush.msrb.mxu0 %v126_v3  ;;  %784 = vmatpush.msrb.mxu1 %v254_v4  ;;  %v399_v3 = vld [vmem:[%s12057_s4 + $0x9a8] sm:$0xff]  ;;  %v144_v4 = vld [vmem:[%s12057_s4 + $0x1b0] sm:$0xff] }
  0xc3   :  { %807 = vmatpush.msrb.mxu2 %v382_v5  ;;  %830 = vmatpush.msrb.mxu3 %v127_v6  ;;  %v272_v5 = vld [vmem:[%s12057_s4 + $0x5b0] sm:$0xff]  ;;  %v263_v6 = vld [vmem:[%s12057_s4 + $0x568] sm:$0xff] }
  0xc4   :  { %762 = vmatpush.msrb.mxu0 %v118_v7  ;;  %785 = vmatpush.msrb.mxu1 %v246_v11  ;;  %v391_v7 = vld [vmem:[%s12057_s4 + $0x968] sm:$0xff]  ;;  %v136_v11 = vld [vmem:[%s12057_s4 + $0x170] sm:$0xff] }
  0xc5   :  { %808 = vmatpush.msrb.mxu2 %v374_v12  ;;  %831 = vmatpush.msrb.mxu3 %v119_v14  ;;  %v264_v12 = vld [vmem:[%s12057_s4 + $0x570] sm:$0xff]  ;;  %v255_v14 = vld [vmem:[%s12057_s4 + $0x528] sm:$0xff] }
  0xc6   :  { %763 = vmatpush.msrb.mxu0 %v110_v15  ;;  %786 = vmatpush.msrb.mxu1 %v238_v16  ;;  %v383_v15 = vld [vmem:[%s12057_s4 + $0x928] sm:$0xff]  ;;  %v128_v16 = vld [vmem:[%s12057_s4 + $0x130] sm:$0xff] }
  0xc7   :  { %809 = vmatpush.msrb.mxu2 %v366_v17  ;;  %832 = vmatpush.msrb.mxu3 %v111_v18  ;;  %v256_v17 = vld [vmem:[%s12057_s4 + $0x530] sm:$0xff]  ;;  %v247_v18 = vld [vmem:[%s12057_s4 + $0x4e8] sm:$0xff] }
  0xc8   :  { %764 = vmatpush.msrb.mxu0 %v102_v19  ;;  %787 = vmatpush.msrb.mxu1 %v230_v20  ;;  %v375_v19 = vld [vmem:[%s12057_s4 + $0x8e8] sm:$0xff]  ;;  %v120_v20 = vld [vmem:[%s12057_s4 + $0xf0] sm:$0xff] }
  0xc9   :  { %810 = vmatpush.msrb.mxu2 %v358_v21  ;;  %833 = vmatpush.msrb.mxu3 %v103_v22  ;;  %v248_v21 = vld [vmem:[%s12057_s4 + $0x4f0] sm:$0xff]  ;;  %v239_v22 = vld [vmem:[%s12057_s4 + $0x4a8] sm:$0xff] }
  0xca   :  { %765 = vmatpush.msrb.mxu0 %v94_v23  ;;  %788 = vmatpush.msrb.mxu1 %v222_v24  ;;  %v367_v23 = vld [vmem:[%s12057_s4 + $0x8a8] sm:$0xff]  ;;  %v112_v24 = vld [vmem:[%s12057_s4 + $0xb0] sm:$0xff] }
  0xcb   :  { %811 = vmatpush.msrb.mxu2 %v350_v25  ;;  %834 = vmatpush.msrb.mxu3 %v95_v26  ;;  %v240_v25 = vld [vmem:[%s12057_s4 + $0x4b0] sm:$0xff]  ;;  %v231_v26 = vld [vmem:[%s12057_s4 + $0x468] sm:$0xff] }
  0xcc   :  { %5134 = vmatmul.msk.f32.vlgmr.msrb.gmra.mxu0 %vm5695_vm0, %v5201_v13  ;;  %5136 = vmatmul.msk.f32.vlgmr.msrb.gmra.mxu1 %vm5699_vm1, %v5201_v13 }
  0xcd   :  { %5138 = vmatmul.msk.f32.vlgmr.msrb.gmra.mxu2 %vm5703_vm2, %v5201_v13  ;;  %5140 = vmatmul.msk.f32.vlgmr.msrb.gmra.mxu3 %vm5695_vm0, %v5201_v13 }
  0xce   :  { %842 = vmatpush.msra.mxu0 %v343_v27  ;;  %865 = vmatpush.msra.mxu1 %v471_v28  ;;  %v359_v27 = vld [vmem:[%s12057_s4 + $0x868] sm:$0xff]  ;;  %v104_v28 = vld [vmem:[%s12057_s4 + $0x70] sm:$0xff] }
  0xcf   :  { %888 = vmatpush.msra.mxu2 %v216_v32  ;;  %911 = vmatpush.msra.mxu3 %v344_v33  ;;  %v232_v32 = vld [vmem:[%s12057_s4 + $0x470] sm:$0xff]  ;;  %v223_v33 = vld [vmem:[%s12057_s4 + $0x428] sm:$0xff] }
  0xd0   :  { %843 = vmatpush.msra.mxu0 %v335_v34  ;;  %866 = vmatpush.msra.mxu1 %v463_v35  ;;  %v351_v34 = vld [vmem:[%s12057_s4 + $0x828] sm:$0xff]  ;;  %v96_v35 = vld [vmem:[%s12057_s4 + $0x30] sm:$0xff] }
  0xd1   :  { %889 = vmatpush.msra.mxu2 %v208_v36  ;;  %912 = vmatpush.msra.mxu3 %v336_v37  ;;  %v224_v36 = vld [vmem:[%s12057_s4 + $0x430] sm:$0xff] }
  0xd2   :  { %844 = vmatpush.msra.mxu0 %v327_v38  ;;  %867 = vmatpush.msra.mxu1 %v455_v39  ;;  %v472_v37 = vld [vmem:[%s12057_s4 + $0xbf0] sm:$0xff]  ;;  %v217_v38 = vld [vmem:[%s12057_s4 + $0x3f8] sm:$0xff] }
  0xd3   :  { %890 = vmatpush.msra.mxu2 %v200_v40  ;;  %913 = vmatpush.msra.mxu3 %v328_v41  ;;  %v345_v39 = vld [vmem:[%s12057_s4 + $0x7f8] sm:$0xff]  ;;  %v464_v41 = vld [vmem:[%s12057_s4 + $0xbb0] sm:$0xff] }
  0xd4   :  { %845 = vmatpush.msra.mxu0 %v319_v42  ;;  %868 = vmatpush.msra.mxu1 %v447_v43  ;;  %v473_v40 = vld [vmem:[%s12057_s4 + $0xbf8] sm:$0xff] }
  0xd5   :  { %891 = vmatpush.msra.mxu2 %v192_v44  ;;  %914 = vmatpush.msra.mxu3 %v320_v45  ;;  %v209_v42 = vld [vmem:[%s12057_s4 + $0x3b8] sm:$0xff]  ;;  %v456_v45 = vld [vmem:[%s12057_s4 + $0xb70] sm:$0xff] }
  0xd6   :  { %5135 = vmatmul.msk.f32.gmra.mxu0 %vm5767_vm3, %v5201_v13  ;;  %5137 = vmatmul.msk.f32.gmra.mxu1 %vm5771_vm4, %v5201_v13  ;;  %v337_v43 = vld [vmem:[%s12057_s4 + $0x7b8] sm:$0xff] }
  0xd7   :  { %5139 = vmatmul.msk.f32.gmra.mxu2 %vm5775_vm5, %v5201_v13  ;;  %5141 = vmatmul.msk.f32.gmra.mxu3 %vm5767_vm3, %v5201_v13  ;;  %v465_v44 = vld [vmem:[%s12057_s4 + $0xbb8] sm:$0xff] }
  0xd8   :  { %846 = vmatpush.msra.mxu0 %v311_v46  ;;  %869 = vmatpush.msra.mxu1 %v439_v47  ;;  %v201_v46 = vld [vmem:[%s12057_s4 + $0x378] sm:$0xff] }
  0xd9   :  { %892 = vmatpush.msra.mxu2 %v184_v48  ;;  %915 = vmatpush.msra.mxu3 %v312_v49  ;;  %v329_v47 = vld [vmem:[%s12057_s4 + $0x778] sm:$0xff]  ;;  %v448_v49 = vld [vmem:[%s12057_s4 + $0xb30] sm:$0xff] }
  0xda   :  { %847 = vmatpush.msra.mxu0 %v303_v50  ;;  %870 = vmatpush.msra.mxu1 %v431_v51  ;;  %v457_v48 = vld [vmem:[%s12057_s4 + $0xb78] sm:$0xff] }
  0xdb   :  { %893 = vmatpush.msra.mxu2 %v176_v52  ;;  %916 = vmatpush.msra.mxu3 %v304_v53  ;;  %v193_v50 = vld [vmem:[%s12057_s4 + $0x338] sm:$0xff]  ;;  %v440_v53 = vld [vmem:[%s12057_s4 + $0xaf0] sm:$0xff] }
  0xdc   :  { %848 = vmatpush.msra.mxu0 %v295_v54  ;;  %871 = vmatpush.msra.mxu1 %v423_v55  ;;  %v321_v51 = vld [vmem:[%s12057_s4 + $0x738] sm:$0xff] }
  0xdd   :  { %894 = vmatpush.msra.mxu2 %v168_v56  ;;  %917 = vmatpush.msra.mxu3 %v296_v57  ;;  %v449_v52 = vld [vmem:[%s12057_s4 + $0xb38] sm:$0xff]  ;;  %v432_v57 = vld [vmem:[%s12057_s4 + $0xab0] sm:$0xff] }
  0xde   :  { %849 = vmatpush.msra.mxu0 %v287_v58  ;;  %872 = vmatpush.msra.mxu1 %v415_v59  ;;  %v185_v54 = vld [vmem:[%s12057_s4 + $0x2f8] sm:$0xff] }
  0xdf   :  { %895 = vmatpush.msra.mxu2 %v160_v60  ;;  %918 = vmatpush.msra.mxu3 %v288_v61  ;;  %v313_v55 = vld [vmem:[%s12057_s4 + $0x6f8] sm:$0xff]  ;;  %v424_v61 = vld [vmem:[%s12057_s4 + $0xa70] sm:$0xff] }
  0xe0   :  { %850 = vmatpush.msra.mxu0 %v279_v62  ;;  %873 = vmatpush.msra.mxu1 %v407_v63  ;;  %v441_v56 = vld [vmem:[%s12057_s4 + $0xaf8] sm:$0xff] }
  0xe1   :  { %896 = vmatpush.msra.mxu2 %v152_v0  ;;  %919 = vmatpush.msra.mxu3 %v280_v1  ;;  %v177_v58 = vld [vmem:[%s12057_s4 + $0x2b8] sm:$0xff]  ;;  %v416_v1 = vld [vmem:[%s12057_s4 + $0xa30] sm:$0xff] }
  0xe2   :  { %851 = vmatpush.msra.mxu0 %v271_v2  ;;  %874 = vmatpush.msra.mxu1 %v399_v3  ;;  %v305_v59 = vld [vmem:[%s12057_s4 + $0x6b8] sm:$0xff] }
  0xe3   :  { %897 = vmatpush.msra.mxu2 %v144_v4  ;;  %920 = vmatpush.msra.mxu3 %v272_v5  ;;  %v433_v60 = vld [vmem:[%s12057_s4 + $0xab8] sm:$0xff]  ;;  %v408_v5 = vld [vmem:[%s12057_s4 + $0x9f0] sm:$0xff] }
  0xe4   :  { %852 = vmatpush.msra.mxu0 %v263_v6  ;;  %875 = vmatpush.msra.mxu1 %v391_v7  ;;  %v169_v62 = vld [vmem:[%s12057_s4 + $0x278] sm:$0xff] }
  0xe5   :  { %898 = vmatpush.msra.mxu2 %v136_v11  ;;  %921 = vmatpush.msra.mxu3 %v264_v12  ;;  %v297_v63 = vld [vmem:[%s12057_s4 + $0x678] sm:$0xff]  ;;  %v400_v12 = vld [vmem:[%s12057_s4 + $0x9b0] sm:$0xff] }
  0xe6   :  { %853 = vmatpush.msra.mxu0 %v255_v14  ;;  %876 = vmatpush.msra.mxu1 %v383_v15  ;;  %v425_v0 = vld [vmem:[%s12057_s4 + $0xa78] sm:$0xff] }
  0xe7   :  { %899 = vmatpush.msra.mxu2 %v128_v16  ;;  %922 = vmatpush.msra.mxu3 %v256_v17  ;;  %v161_v2 = vld [vmem:[%s12057_s4 + $0x238] sm:$0xff]  ;;  %v392_v17 = vld [vmem:[%s12057_s4 + $0x970] sm:$0xff] }
  0xe8   :  { %854 = vmatpush.msra.mxu0 %v247_v18  ;;  %877 = vmatpush.msra.mxu1 %v375_v19  ;;  %v289_v3 = vld [vmem:[%s12057_s4 + $0x638] sm:$0xff] }
  0xe9   :  { %900 = vmatpush.msra.mxu2 %v120_v20  ;;  %923 = vmatpush.msra.mxu3 %v248_v21  ;;  %v417_v4 = vld [vmem:[%s12057_s4 + $0xa38] sm:$0xff]  ;;  %v384_v21 = vld [vmem:[%s12057_s4 + $0x930] sm:$0xff] }
  0xea   :  { %855 = vmatpush.msra.mxu0 %v239_v22  ;;  %878 = vmatpush.msra.mxu1 %v367_v23  ;;  %v153_v6 = vld [vmem:[%s12057_s4 + $0x1f8] sm:$0xff] }
  0xeb   :  { %901 = vmatpush.msra.mxu2 %v112_v24  ;;  %924 = vmatpush.msra.mxu3 %v240_v25  ;;  %v281_v7 = vld [vmem:[%s12057_s4 + $0x5f8] sm:$0xff]  ;;  %v376_v25 = vld [vmem:[%s12057_s4 + $0x8f0] sm:$0xff] }
  0xec   :  { %856 = vmatpush.msra.mxu0 %v231_v26  ;;  %879 = vmatpush.msra.mxu1 %v359_v27  ;;  %v409_v11 = vld [vmem:[%s12057_s4 + $0x9f8] sm:$0xff] }
  0xed   :  { %902 = vmatpush.msra.mxu2 %v104_v28  ;;  %925 = vmatpush.msra.mxu3 %v232_v32  ;;  %v145_v14 = vld [vmem:[%s12057_s4 + $0x1b8] sm:$0xff]  ;;  %v368_v32 = vld [vmem:[%s12057_s4 + $0x8b0] sm:$0xff] }
  0xee   :  { %857 = vmatpush.msra.mxu0 %v223_v33  ;;  %880 = vmatpush.msra.mxu1 %v351_v34  ;;  %v273_v15 = vld [vmem:[%s12057_s4 + $0x5b8] sm:$0xff] }
  0xef   :  { %903 = vmatpush.msra.mxu2 %v96_v35  ;;  %926 = vmatpush.msra.mxu3 %v224_v36  ;;  %v401_v16 = vld [vmem:[%s12057_s4 + $0x9b8] sm:$0xff]  ;;  %v360_v36 = vld [vmem:[%s12057_s4 + $0x870] sm:$0xff] }
  0xf0   :  { %5142 = vmatmul.msk.f32.vlgmr.msra.gmra.mxu0 %vm5699_vm1, %v5201_v13  ;;  %5144 = vmatmul.msk.f32.vlgmr.msra.gmra.mxu1 %vm5703_vm2, %v5201_v13  ;;  %v137_v18 = vld [vmem:[%s12057_s4 + $0x178] sm:$0xff] }
  0xf1   :  { %5146 = vmatmul.msk.f32.vlgmr.msra.gmra.mxu2 %vm5695_vm0, %v5201_v13  ;;  %5148 = vmatmul.msk.f32.vlgmr.msra.gmra.mxu3 %vm5699_vm1, %v5201_v13  ;;  %v265_v19 = vld [vmem:[%s12057_s4 + $0x578] sm:$0xff] }
  0xf2   :  { %934 = vmatpush.msrb.mxu0 %v472_v37  ;;  %957 = vmatpush.msrb.mxu1 %v217_v38  ;;  %v393_v20 = vld [vmem:[%s12057_s4 + $0x978] sm:$0xff] }
  0xf3   :  { %980 = vmatpush.msrb.mxu2 %v345_v39  ;;  %1003 = vmatpush.msrb.mxu3 %v473_v40  ;;  %v129_v22 = vld [vmem:[%s12057_s4 + $0x138] sm:$0xff]  ;;  %v352_v40 = vld [vmem:[%s12057_s4 + $0x830] sm:$0xff] }
  0xf4   :  { %935 = vmatpush.msrb.mxu0 %v464_v41  ;;  %958 = vmatpush.msrb.mxu1 %v209_v42  ;;  %v257_v23 = vld [vmem:[%s12057_s4 + $0x538] sm:$0xff] }
  0xf5   :  { %981 = vmatpush.msrb.mxu2 %v337_v43  ;;  %1004 = vmatpush.msrb.mxu3 %v465_v44  ;;  %v385_v24 = vld [vmem:[%s12057_s4 + $0x938] sm:$0xff]  ;;  %v1088_v44 = vld [vmem:[%s12093_s27 + $0x1e0] sm:$0xff] }
  0xf6   :  { %936 = vmatpush.msrb.mxu0 %v456_v45  ;;  %959 = vmatpush.msrb.mxu1 %v201_v46  ;;  %v121_v26 = vld [vmem:[%s12057_s4 + $0xf8] sm:$0xff]  ;;  %v1089_v45 = vld [vmem:[%s12093_s27 + $0x1e8] sm:$0xff]  ;;  %v1090_v46 = vld [vmem:[%s12093_s27 + $0x1f0] sm:$0xff] }
  0xf7   :  { %982 = vmatpush.msrb.mxu2 %v329_v47  ;;  %1005 = vmatpush.msrb.mxu3 %v457_v48  ;;  %v249_v27 = vld [vmem:[%s12057_s4 + $0x4f8] sm:$0xff]  ;;  %v1085_v48 = vld [vmem:[%s12093_s27 + $0x1c8] sm:$0xff] }
  0xf8   :  { %937 = vmatpush.msrb.mxu0 %v448_v49  ;;  %960 = vmatpush.msrb.mxu1 %v193_v50  ;;  %v377_v28 = vld [vmem:[%s12057_s4 + $0x8f8] sm:$0xff]  ;;  %v1086_v49 = vld [vmem:[%s12093_s27 + $0x1d0] sm:$0xff]  ;;  %v1081_v50 = vld [vmem:[%s12093_s27 + $0x1a8] sm:$0xff] }
  0xf9   :  { %983 = vmatpush.msrb.mxu2 %v321_v51  ;;  %1006 = vmatpush.msrb.mxu3 %v449_v52  ;;  %v113_v33 = vld [vmem:[%s12057_s4 + $0xb8] sm:$0xff]  ;;  %v1082_v51 = vld [vmem:[%s12093_s27 + $0x1b0] sm:$0xff] }
  0xfa   :  { %5143 = vmatmul.msk.f32.gmra.mxu0 %vm5771_vm4, %v5201_v13  ;;  %5145 = vmatmul.msk.f32.gmra.mxu1 %vm5775_vm5, %v5201_v13  ;;  %v241_v34 = vld [vmem:[%s12057_s4 + $0x4b8] sm:$0xff] }
  0xfb   :  { %5147 = vmatmul.msk.f32.gmra.mxu2 %vm5767_vm3, %v5201_v13  ;;  %5149 = vmatmul.msk.f32.gmra.mxu3 %vm5771_vm4, %v5201_v13  ;;  %v369_v35 = vld [vmem:[%s12057_s4 + $0x8b8] sm:$0xff] }
  0xfc   :  { %938 = vmatpush.msrb.mxu0 %v440_v53  ;;  %961 = vmatpush.msrb.mxu1 %v185_v54  ;;  %v105_v37 = vld [vmem:[%s12057_s4 + $0x78] sm:$0xff]  ;;  %v1076_v53 = vld [vmem:[%s12093_s27 + $0x180] sm:$0xff]  ;;  %v1077_v54 = vld [vmem:[%s12093_s27 + $0x188] sm:$0xff] }
  0xfd   :  { %984 = vmatpush.msrb.mxu2 %v313_v55  ;;  %1007 = vmatpush.msrb.mxu3 %v441_v56  ;;  %v233_v38 = vld [vmem:[%s12057_s4 + $0x478] sm:$0xff]  ;;  %v1078_v55 = vld [vmem:[%s12093_s27 + $0x190] sm:$0xff] }
  0xfe   :  { %939 = vmatpush.msrb.mxu0 %v432_v57  ;;  %962 = vmatpush.msrb.mxu1 %v177_v58  ;;  %v361_v39 = vld [vmem:[%s12057_s4 + $0x878] sm:$0xff]  ;;  %v1072_v57 = vld [vmem:[%s12093_s27 + $0x160] sm:$0xff]  ;;  %v1073_v58 = vld [vmem:[%s12093_s27 + $0x168] sm:$0xff] }
  0xff   :  { %985 = vmatpush.msrb.mxu2 %v305_v59  ;;  %1008 = vmatpush.msrb.mxu3 %v433_v60  ;;  %v97_v41 = vld [vmem:[%s12057_s4 + $0x38] sm:$0xff]  ;;  %v1074_v59 = vld [vmem:[%s12093_s27 + $0x170] sm:$0xff] }
 0x100   :  { %940 = vmatpush.msrb.mxu0 %v424_v61  ;;  %963 = vmatpush.msrb.mxu1 %v169_v62  ;;  %v225_v42 = vld [vmem:[%s12057_s4 + $0x438] sm:$0xff]  ;;  %v1069_v61 = vld [vmem:[%s12093_s27 + $0x148] sm:$0xff]  ;;  %v1070_v62 = vld [vmem:[%s12093_s27 + $0x150] sm:$0xff] }
 0x101   :  { %986 = vmatpush.msrb.mxu2 %v297_v63  ;;  %1009 = vmatpush.msrb.mxu3 %v425_v0  ;;  %v353_v43 = vld [vmem:[%s12057_s4 + $0x838] sm:$0xff]  ;;  %v1066_v63 = vld [vmem:[%s12093_s27 + $0x130] sm:$0xff] }
 0x102   :  { %941 = vmatpush.msrb.mxu0 %v416_v1  ;;  %964 = vmatpush.msrb.mxu1 %v161_v2  ;;  %v1091_v47 = vld [vmem:[%s12093_s27 + $0x1f8] sm:$0xff]  ;;  %v1060_v1 = vld [vmem:[%s12093_s27 + $0x100] sm:$0xff]  ;;  %v1061_v2 = vld [vmem:[%s12093_s27 + $0x108] sm:$0xff] }
 0x103   :  { %987 = vmatpush.msrb.mxu2 %v289_v3  ;;  %1010 = vmatpush.msrb.mxu3 %v417_v4  ;;  %v1083_v52 = vld [vmem:[%s12093_s27 + $0x1b8] sm:$0xff]  ;;  %v1062_v3 = vld [vmem:[%s12093_s27 + $0x110] sm:$0xff] }
 0x104   :  { %942 = vmatpush.msrb.mxu0 %v408_v5  ;;  %965 = vmatpush.msrb.mxu1 %v153_v6  ;;  %v1079_v56 = vld [vmem:[%s12093_s27 + $0x198] sm:$0xff]  ;;  %v1056_v5 = vld [vmem:[%s12093_s27 + $0xe0] sm:$0xff]  ;;  %v1057_v6 = vld [vmem:[%s12093_s27 + $0xe8] sm:$0xff] }
 0x105   :  { %988 = vmatpush.msrb.mxu2 %v281_v7  ;;  %1011 = vmatpush.msrb.mxu3 %v409_v11  ;;  %v1075_v60 = vld [vmem:[%s12093_s27 + $0x178] sm:$0xff]  ;;  %v1058_v7 = vld [vmem:[%s12093_s27 + $0xf0] sm:$0xff] }
 0x106   :  { %943 = vmatpush.msrb.mxu0 %v400_v12  ;;  %966 = vmatpush.msrb.mxu1 %v145_v14  ;;  %v1067_v0 = vld [vmem:[%s12093_s27 + $0x138] sm:$0xff]  ;;  %v1052_v12 = vld [vmem:[%s12093_s27 + $0xc0] sm:$0xff]  ;;  %v1053_v14 = vld [vmem:[%s12093_s27 + $0xc8] sm:$0xff] }
 0x107   :  { %989 = vmatpush.msrb.mxu2 %v273_v15  ;;  %1012 = vmatpush.msrb.mxu3 %v401_v16  ;;  %v1063_v4 = vld [vmem:[%s12093_s27 + $0x118] sm:$0xff]  ;;  %v1054_v15 = vld [vmem:[%s12093_s27 + $0xd0] sm:$0xff] }
 0x108   :  { %944 = vmatpush.msrb.mxu0 %v392_v17  ;;  %967 = vmatpush.msrb.mxu1 %v137_v18  ;;  %v1059_v11 = vld [vmem:[%s12093_s27 + $0xf8] sm:$0xff]  ;;  %v1048_v17 = vld [vmem:[%s12093_s27 + $0xa0] sm:$0xff]  ;;  %v1049_v18 = vld [vmem:[%s12093_s27 + $0xa8] sm:$0xff] }
 0x109   :  { %990 = vmatpush.msrb.mxu2 %v265_v19  ;;  %1013 = vmatpush.msrb.mxu3 %v393_v20  ;;  %v1055_v16 = vld [vmem:[%s12093_s27 + $0xd8] sm:$0xff]  ;;  %v1050_v19 = vld [vmem:[%s12093_s27 + $0xb0] sm:$0xff] }
 0x10a   :  { %945 = vmatpush.msrb.mxu0 %v384_v21  ;;  %968 = vmatpush.msrb.mxu1 %v129_v22  ;;  %v1051_v20 = vld [vmem:[%s12093_s27 + $0xb8] sm:$0xff]  ;;  %v1044_v21 = vld [vmem:[%s12093_s27 + $0x80] sm:$0xff]  ;;  %v1045_v22 = vld [vmem:[%s12093_s27 + $0x88] sm:$0xff] }
 0x10b   :  { %991 = vmatpush.msrb.mxu2 %v257_v23  ;;  %1014 = vmatpush.msrb.mxu3 %v385_v24  ;;  %v1046_v23 = vld [vmem:[%s12093_s27 + $0x90] sm:$0xff]  ;;  %v1047_v24 = vld [vmem:[%s12093_s27 + $0x98] sm:$0xff] }
 0x10c   :  { %946 = vmatpush.msrb.mxu0 %v376_v25  ;;  %969 = vmatpush.msrb.mxu1 %v121_v26  ;;  %v1040_v25 = vld [vmem:[%s12093_s27 + $0x60] sm:$0xff]  ;;  %v1041_v26 = vld [vmem:[%s12093_s27 + $0x68] sm:$0xff] }
 0x10d   :  { %992 = vmatpush.msrb.mxu2 %v249_v27  ;;  %1015 = vmatpush.msrb.mxu3 %v377_v28  ;;  %v1042_v27 = vld [vmem:[%s12093_s27 + $0x70] sm:$0xff]  ;;  %v1043_v28 = vld [vmem:[%s12093_s27 + $0x78] sm:$0xff] }
 0x10e   :  { %947 = vmatpush.msrb.mxu0 %v368_v32  ;;  %970 = vmatpush.msrb.mxu1 %v113_v33  ;;  %v1036_v32 = vld [vmem:[%s12093_s27 + $0x40] sm:$0xff]  ;;  %v1037_v33 = vld [vmem:[%s12093_s27 + $0x48] sm:$0xff] }
 0x10f   :  { %993 = vmatpush.msrb.mxu2 %v241_v34  ;;  %1016 = vmatpush.msrb.mxu3 %v369_v35  ;;  %v1038_v34 = vld [vmem:[%s12093_s27 + $0x50] sm:$0xff]  ;;  %v1039_v35 = vld [vmem:[%s12093_s27 + $0x58] sm:$0xff] }
 0x110   :  { %948 = vmatpush.msrb.mxu0 %v360_v36  ;;  %971 = vmatpush.msrb.mxu1 %v105_v37  ;;  %v1032_v36 = vld [vmem:[%s12093_s27 + $0x20] sm:$0xff]  ;;  %v1033_v37 = vld [vmem:[%s12093_s27 + $0x28] sm:$0xff] }
 0x111   :  { %994 = vmatpush.msrb.mxu2 %v233_v38  ;;  %1017 = vmatpush.msrb.mxu3 %v361_v39  ;;  %v1034_v38 = vld [vmem:[%s12093_s27 + $0x30] sm:$0xff]  ;;  %v1035_v39 = vld [vmem:[%s12093_s27 + $0x38] sm:$0xff] }
 0x112   :  { %949 = vmatpush.msrb.mxu0 %v352_v40  ;;  %972 = vmatpush.msrb.mxu1 %v97_v41  ;;  %v1028_v40 = vld [vmem:[%s12093_s27] sm:$0xff]  ;;  %v1029_v41 = vld [vmem:[%s12093_s27 + $0x8] sm:$0xff] }
 0x113   :  { %995 = vmatpush.msrb.mxu2 %v225_v42  ;;  %1018 = vmatpush.msrb.mxu3 %v353_v43  ;;  %v1030_v42 = vld [vmem:[%s12093_s27 + $0x10] sm:$0xff]  ;;  %v1031_v43 = vld [vmem:[%s12093_s27 + $0x18] sm:$0xff] }
 0x114   :  { %5150 = vmatmul.msk.f32.vlgmr.msrb.gmra.mxu0 %vm5703_vm2, %v5201_v13  ;;  %5152 = vmatmul.msk.f32.vlgmr.msrb.gmra.mxu1 %vm5695_vm0, %v5201_v13 }
 0x115   :  { %5154 = vmatmul.msk.f32.vlgmr.msrb.gmra.mxu2 %vm5699_vm1, %v5201_v13  ;;  %5156 = vmatmul.msk.f32.vlgmr.msrb.gmra.mxu3 %vm5703_vm2, %v5201_v13 }
 0x116   :  { %1092 = vmatpush.msra.mxu0 %v1088_v44  ;;  %1115 = vmatpush.msra.mxu1 %v1089_v45  ;;  %v1026_v44 = vld [vmem:[%s12094_s22] sm:$0xff]  ;;  %v1027_v45 = vld [vmem:[%s12094_s22 + $0x8] sm:$0xff]  ;;  %s5086_s22 = sshll.u32 %s5202_s1, 4  ;;  %s5087_s22 = int_to_ptr.vmem [resolvable:$true] %s5086_s22 }
 0x117   :  { %1138 = vmatpush.msra.mxu2 %v1090_v46  ;;  %1161 = vmatpush.msra.mxu3 %v1091_v47  ;;  %v6829_v46 = vpop.f32.mrf.mxu0  ;;  %v6831_v47 = vpop.f32.mrf.mxu1 }
 0x118   :  { %1093 = vmatpush.msra.mxu0 %v1084_v8  ;;  %1116 = vmatpush.msra.mxu1 %v1085_v48  ;;  %v6833_v8 = vpop.f32.mrf.mxu2  ;;  %v6835_v48 = vpop.f32.mrf.mxu3 }
 0x119   :  { %1139 = vmatpush.msra.mxu2 %v1086_v49  ;;  %1162 = vmatpush.msra.mxu3 %v1087_v9 }
 0x11a   :  { %1094 = vmatpush.msra.mxu0 %v1080_v10  ;;  %1117 = vmatpush.msra.mxu1 %v1081_v50  ;;  %v1270_v10 = vld [vmem:[%s12058_s5 + $0x1e0] sm:$0xff] }
 0x11b   :  { %1140 = vmatpush.msra.mxu2 %v1082_v51  ;;  %1163 = vmatpush.msra.mxu3 %v1083_v52  ;;  %v1334_v50 = vld [vmem:[%s12058_s5 + $0x3e0] sm:$0xff] }
 0x11c   :  { %1095 = vmatpush.msra.mxu0 %v1076_v53  ;;  %1118 = vmatpush.msra.mxu1 %v1077_v54 }
 0x11d   :  { %1141 = vmatpush.msra.mxu2 %v1078_v55  ;;  %1164 = vmatpush.msra.mxu3 %v1079_v56  ;;  %v1266_v55 = vld [vmem:[%s12058_s5 + $0x1c0] sm:$0xff] }
 0x11e   :  { %5151 = vmatmul.msk.f32.gmra.mxu0 %vm5775_vm5, %v5201_v13  ;;  %5153 = vmatmul.msk.f32.gmra.mxu1 %vm5767_vm3, %v5201_v13  ;;  %v1330_v56 = vld [vmem:[%s12058_s5 + $0x3c0] sm:$0xff] }
 0x11f   :  { %5155 = vmatmul.msk.f32.gmra.mxu2 %vm5771_vm4, %v5201_v13  ;;  %5157 = vmatmul.msk.f32.gmra.mxu3 %vm5775_vm5, %v5201_v13  ;;  %v1064_v13 = vld [vmem:[%s12093_s27 + $0x120] sm:$0xff]  ;;  %v6837_v49 = vpop.f32.mrf.mxu0  ;;  %v6839_v9 = vpop.f32.mrf.mxu1 }
 0x120   :  { %1096 = vmatpush.msra.mxu0 %v1072_v57  ;;  %1119 = vmatpush.msra.mxu1 %v1073_v58  ;;  %v6847_v51 = vpop.f32.mrf.mxu2  ;;  %v6849_v52 = vpop.f32.mrf.mxu3  ;;  %v1262_v57 = vld [vmem:[%s12058_s5 + $0x1a0] sm:$0xff] }
 0x121   :  { %1142 = vmatpush.msra.mxu2 %v1074_v59  ;;  %1165 = vmatpush.msra.mxu3 %v1075_v60  ;;  %v1326_v58 = vld [vmem:[%s12058_s5 + $0x3a0] sm:$0xff] }
 0x122   :  { %1097 = vmatpush.msra.mxu0 %v1068_v29  ;;  %1120 = vmatpush.msra.mxu1 %v1069_v61  ;;  %v1258_v59 = vld [vmem:[%s12058_s5 + $0x180] sm:$0xff] }
 0x123   :  { %1143 = vmatpush.msra.mxu2 %v1070_v62  ;;  %1166 = vmatpush.msra.mxu3 %v1071_v30  ;;  %v1322_v60 = vld [vmem:[%s12058_s5 + $0x380] sm:$0xff] }
 0x124   :  { %1098 = vmatpush.msra.mxu0 %v1064_v13  ;;  %1121 = vmatpush.msra.mxu1 %v1065_v31  ;;  %v1398_v29 = vld [vmem:[%s12058_s5 + $0x5e0] sm:$0xff] }
 0x125   :  { %1144 = vmatpush.msra.mxu2 %v1066_v63  ;;  %1167 = vmatpush.msra.mxu3 %v1067_v0  ;;  %v1462_v61 = vld [vmem:[%s12058_s5 + $0x7e0] sm:$0xff] }
 0x126   :  { %1099 = vmatpush.msra.mxu0 %v1060_v1  ;;  %1122 = vmatpush.msra.mxu1 %v1061_v2  ;;  %v1254_v62 = vld [vmem:[%s12058_s5 + $0x160] sm:$0xff] }
 0x127   :  { %1145 = vmatpush.msra.mxu2 %v1062_v3  ;;  %1168 = vmatpush.msra.mxu3 %v1063_v4  ;;  %v6851_v53 = vpop.f32.mrf.mxu0  ;;  %v6853_v54 = vpop.f32.mrf.mxu1  ;;  %v1318_v30 = vld [vmem:[%s12058_s5 + $0x360] sm:$0xff] }
 0x128   :  { %1100 = vmatpush.msra.mxu0 %v1056_v5  ;;  %1123 = vmatpush.msra.mxu1 %v1057_v6  ;;  %v1394_v13 = vld [vmem:[%s12058_s5 + $0x5c0] sm:$0xff]  ;;  %v6888_v31 = vpop.f32.mrf.mxu2  ;;  %v6890_v63 = vpop.f32.mrf.mxu3 }
 0x129   :  { %1146 = vmatpush.msra.mxu2 %v1058_v7  ;;  %1169 = vmatpush.msra.mxu3 %v1059_v11  ;;  %v1458_v0 = vld [vmem:[%s12058_s5 + $0x7c0] sm:$0xff] }
 0x12a   :  { %1101 = vmatpush.msra.mxu0 %v1052_v12  ;;  %1124 = vmatpush.msra.mxu1 %v1053_v14  ;;  %v1250_v1 = vld [vmem:[%s12058_s5 + $0x140] sm:$0xff] }
 0x12b   :  { %1147 = vmatpush.msra.mxu2 %v1054_v15  ;;  %1170 = vmatpush.msra.mxu3 %v1055_v16  ;;  %v1314_v2 = vld [vmem:[%s12058_s5 + $0x340] sm:$0xff] }
 0x12c   :  { %1102 = vmatpush.msra.mxu0 %v1048_v17  ;;  %1125 = vmatpush.msra.mxu1 %v1049_v18  ;;  %v1390_v3 = vld [vmem:[%s12058_s5 + $0x5a0] sm:$0xff] }
 0x12d   :  { %1148 = vmatpush.msra.mxu2 %v1050_v19  ;;  %1171 = vmatpush.msra.mxu3 %v1051_v20  ;;  %v1454_v4 = vld [vmem:[%s12058_s5 + $0x7a0] sm:$0xff] }
 0x12e   :  { %1103 = vmatpush.msra.mxu0 %v1044_v21  ;;  %1126 = vmatpush.msra.mxu1 %v1045_v22  ;;  %v1246_v5 = vld [vmem:[%s12058_s5 + $0x120] sm:$0xff] }
 0x12f   :  { %1149 = vmatpush.msra.mxu2 %v1046_v23  ;;  %1172 = vmatpush.msra.mxu3 %v1047_v24  ;;  %v1310_v6 = vld [vmem:[%s12058_s5 + $0x320] sm:$0xff]  ;;  %v6916_v11 = vpop.f32.mrf.mxu0  ;;  %v6918_v12 = vpop.f32.mrf.mxu1 }
 0x130   :  { %1104 = vmatpush.msra.mxu0 %v1040_v25  ;;  %1127 = vmatpush.msra.mxu1 %v1041_v26  ;;  %v1386_v7 = vld [vmem:[%s12058_s5 + $0x580] sm:$0xff] }
 0x131   :  { %1150 = vmatpush.msra.mxu2 %v1042_v27  ;;  %1173 = vmatpush.msra.mxu3 %v1043_v28  ;;  %v1450_v14 = vld [vmem:[%s12058_s5 + $0x780] sm:$0xff]  ;;  %v6962_v28 = vpop.f32.mrf.mxu2 }
 0x132   :  { %1105 = vmatpush.msra.mxu0 %v1036_v32  ;;  %1128 = vmatpush.msra.mxu1 %v1037_v33  ;;  %v1382_v15 = vld [vmem:[%s12058_s5 + $0x560] sm:$0xff]  ;;  %v6964_v32 = vpop.f32.mrf.mxu3 }
 0x133   :  { %1151 = vmatpush.msra.mxu2 %v1038_v34  ;;  %1174 = vmatpush.msra.mxu3 %v1039_v35  ;;  %v1242_v16 = vld [vmem:[%s12058_s5 + $0x100] sm:$0xff] }
 0x134   :  { %1106 = vmatpush.msra.mxu0 %v1032_v36  ;;  %1129 = vmatpush.msra.mxu1 %v1033_v37  ;;  %v1306_v17 = vld [vmem:[%s12058_s5 + $0x300] sm:$0xff] }
 0x135   :  { %1152 = vmatpush.msra.mxu2 %v1034_v38  ;;  %1175 = vmatpush.msra.mxu3 %v1035_v39  ;;  %v1446_v18 = vld [vmem:[%s12058_s5 + $0x760] sm:$0xff] }
 0x136   :  { %1107 = vmatpush.msra.mxu0 %v1028_v40  ;;  %1130 = vmatpush.msra.mxu1 %v1029_v41  ;;  %v1378_v19 = vld [vmem:[%s12058_s5 + $0x540] sm:$0xff] }
 0x137   :  { %1153 = vmatpush.msra.mxu2 %v1030_v42  ;;  %1176 = vmatpush.msra.mxu3 %v1031_v43  ;;  %v1238_v20 = vld [vmem:[%s12058_s5 + $0xe0] sm:$0xff]  ;;  %v6984_v39 = vpop.f32.mrf.mxu0  ;;  %v6986_v40 = vpop.f32.mrf.mxu1 }
 0x138   :  { %1108 = vmatmul.f32.vlgmr.msra.gmra.mxu0 %v1026_v44  ;;  %1131 = vmatmul.f32.vlgmr.msra.gmra.mxu1 %v1026_v44  ;;  %v1302_v21 = vld [vmem:[%s12058_s5 + $0x2e0] sm:$0xff] }
 0x139   :  { %1154 = vmatmul.f32.vlgmr.msra.gmra.mxu2 %v1026_v44  ;;  %1177 = vmatmul.f32.vlgmr.msra.gmra.mxu3 %v1026_v44  ;;  %v1442_v22 = vld [vmem:[%s12058_s5 + $0x740] sm:$0xff] }
 0x13a   :  { %1476 = vmatpush.msrb.mxu0 %v1270_v10  ;;  %1499 = vmatpush.msrb.mxu1 %v1334_v50  ;;  %v1374_v23 = vld [vmem:[%s12058_s5 + $0x520] sm:$0xff] }
 0x13b   :  { %1522 = vmatpush.msrb.mxu2 %v1398_v29  ;;  %1545 = vmatpush.msrb.mxu3 %v1462_v61  ;;  %v1234_v24 = vld [vmem:[%s12058_s5 + $0xc0] sm:$0xff] }
 0x13c   :  { %1477 = vmatpush.msrb.mxu0 %v1266_v55  ;;  %1500 = vmatpush.msrb.mxu1 %v1330_v56  ;;  %v1298_v25 = vld [vmem:[%s12058_s5 + $0x2c0] sm:$0xff]  ;;  %v7009_v55 = vpop.f32.mrf.mxu2  ;;  %v7011_v56 = vpop.f32.mrf.mxu3 }
 0x13d   :  { %1523 = vmatpush.msrb.mxu2 %v1394_v13  ;;  %1546 = vmatpush.msrb.mxu3 %v1458_v0  ;;  %v1438_v26 = vld [vmem:[%s12058_s5 + $0x720] sm:$0xff] }
 0x13e   :  { %1478 = vmatpush.msrb.mxu0 %v1262_v57  ;;  %1501 = vmatpush.msrb.mxu1 %v1326_v58  ;;  %v1370_v27 = vld [vmem:[%s12058_s5 + $0x500] sm:$0xff] }
 0x13f   :  { %1524 = vmatpush.msrb.mxu2 %v1390_v3  ;;  %1547 = vmatpush.msrb.mxu3 %v1454_v4  ;;  %v1230_v33 = vld [vmem:[%s12058_s5 + $0xa0] sm:$0xff]  ;;  %v1271_v3 = vld [vmem:[%s12058_s5 + $0x1e8] sm:$0xff] }
 0x140   :  { %1111 = vmatmul.f32.gmra.mxu0 %v1027_v45  ;;  %1134 = vmatmul.f32.gmra.mxu1 %v1027_v45  ;;  %v1294_v34 = vld [vmem:[%s12058_s5 + $0x2a0] sm:$0xff]  ;;  %v1335_v4 = vld [vmem:[%s12058_s5 + $0x3e8] sm:$0xff] }
 0x141   :  { %1157 = vmatmul.f32.gmra.mxu2 %v1027_v45  ;;  %1180 = vmatmul.f32.gmra.mxu3 %v1027_v45  ;;  %v1434_v35 = vld [vmem:[%s12058_s5 + $0x700] sm:$0xff] }
 0x142   :  { %1479 = vmatpush.msrb.mxu0 %v1258_v59  ;;  %1502 = vmatpush.msrb.mxu1 %v1322_v60  ;;  %v1366_v36 = vld [vmem:[%s12058_s5 + $0x4e0] sm:$0xff] }
 0x143   :  { %1525 = vmatpush.msrb.mxu2 %v1386_v7  ;;  %1548 = vmatpush.msrb.mxu3 %v1450_v14  ;;  %v1226_v37 = vld [vmem:[%s12058_s5 + $0x80] sm:$0xff]  ;;  %v1267_v7 = vld [vmem:[%s12058_s5 + $0x1c8] sm:$0xff] }
 0x144   :  { %1480 = vmatpush.msrb.mxu0 %v1254_v62  ;;  %1503 = vmatpush.msrb.mxu1 %v1318_v30  ;;  %v1290_v38 = vld [vmem:[%s12058_s5 + $0x280] sm:$0xff]  ;;  %v7031_v62 = vpop.f32.mrf.mxu0  ;;  %v7033_v30 = vpop.f32.mrf.mxu1 }
 0x145   :  { %1526 = vmatpush.msrb.mxu2 %v1382_v15  ;;  %1549 = vmatpush.msrb.mxu3 %v1446_v18  ;;  %v1430_v41 = vld [vmem:[%s12058_s5 + $0x6e0] sm:$0xff]  ;;  %v7062_v14 = vpop.f32.mrf.mxu2  ;;  %v7064_v15 = vpop.f32.mrf.mxu3 }
 0x146   :  { %1481 = vmatpush.msrb.mxu0 %v1250_v1  ;;  %1504 = vmatpush.msrb.mxu1 %v1314_v2  ;;  %v1222_v42 = vld [vmem:[%s12058_s5 + $0x60] sm:$0xff] }
 0x147   :  { %1527 = vmatpush.msrb.mxu2 %v1378_v19  ;;  %1550 = vmatpush.msrb.mxu3 %v1442_v22  ;;  %v1286_v43 = vld [vmem:[%s12058_s5 + $0x260] sm:$0xff]  ;;  %v1327_v22 = vld [vmem:[%s12058_s5 + $0x3a8] sm:$0xff] }
 0x148   :  { %1482 = vmatpush.msrb.mxu0 %v1246_v5  ;;  %1505 = vmatpush.msrb.mxu1 %v1310_v6  ;;  %v1362_v44 = vld [vmem:[%s12058_s5 + $0x4c0] sm:$0xff] }
 0x149   :  { %1528 = vmatpush.msrb.mxu2 %v1374_v23  ;;  %1551 = vmatpush.msrb.mxu3 %v1438_v26  ;;  %v1426_v45 = vld [vmem:[%s12058_s5 + $0x6c0] sm:$0xff]  ;;  %v1323_v26 = vld [vmem:[%s12058_s5 + $0x388] sm:$0xff] }
 0x14a   :  { %1483 = vmatpush.msrb.mxu0 %v1242_v16  ;;  %1506 = vmatpush.msrb.mxu1 %v1306_v17  ;;  %v1218_v10 = vld [vmem:[%s12058_s5 + $0x40] sm:$0xff]  ;;  %v1331_v16 = vld [vmem:[%s12058_s5 + $0x3c8] sm:$0xff] }
 0x14b   :  { %1529 = vmatpush.msrb.mxu2 %v1370_v27  ;;  %1552 = vmatpush.msrb.mxu3 %v1434_v35  ;;  %v1282_v50 = vld [vmem:[%s12058_s5 + $0x240] sm:$0xff]  ;;  %v1399_v27 = vld [vmem:[%s12058_s5 + $0x5e8] sm:$0xff] }
 0x14c   :  { %1484 = vmatpush.msrb.mxu0 %v1238_v20  ;;  %1507 = vmatpush.msrb.mxu1 %v1302_v21  ;;  %v1358_v57 = vld [vmem:[%s12058_s5 + $0x4a0] sm:$0xff]  ;;  %v7075_v19 = vpop.f32.mrf.mxu0  ;;  %v7077_v20 = vpop.f32.mrf.mxu1  ;;  %v1263_v21 = vld [vmem:[%s12058_s5 + $0x1a8] sm:$0xff] }
 0x14d   :  { %1530 = vmatpush.msrb.mxu2 %v1366_v36  ;;  %1553 = vmatpush.msrb.mxu3 %v1430_v41  ;;  %v1422_v58 = vld [vmem:[%s12058_s5 + $0x6a0] sm:$0xff]  ;;  %v1319_v35 = vld [vmem:[%s12058_s5 + $0x368] sm:$0xff] }
 0x14e   :  { %1485 = vmatpush.msrb.mxu0 %v1234_v24  ;;  %1508 = vmatpush.msrb.mxu1 %v1298_v25  ;;  %v1214_v59 = vld [vmem:[%s12058_s5 + $0x20] sm:$0xff]  ;;  %v1259_v25 = vld [vmem:[%s12058_s5 + $0x188] sm:$0xff] }
 0x14f   :  { %1531 = vmatpush.msrb.mxu2 %v1362_v44  ;;  %1554 = vmatpush.msrb.mxu3 %v1426_v45  ;;  %v1278_v60 = vld [vmem:[%s12058_s5 + $0x220] sm:$0xff]  ;;  %v1395_v36 = vld [vmem:[%s12058_s5 + $0x5c8] sm:$0xff] }
 0x150   :  { %1486 = vmatpush.msrb.mxu0 %v1230_v33  ;;  %1509 = vmatpush.msrb.mxu1 %v1294_v34  ;;  %v1354_v29 = vld [vmem:[%s12058_s5 + $0x480] sm:$0xff]  ;;  %v1463_v33 = vld [vmem:[%s12058_s5 + $0x7e8] sm:$0xff] }
 0x151   :  { %v1418_v61 = vld [vmem:[%s12058_s5 + $0x680] sm:$0xff]  ;;  %1532 = vmatpush.msrb.mxu2 %v1358_v57  ;;  %1555 = vmatpush.msrb.mxu3 %v1422_v58  ;;  %v1255_v34 = vld [vmem:[%s12058_s5 + $0x168] sm:$0xff] }
 0x152   :  { %1487 = vmatpush.msrb.mxu0 %v1226_v37  ;;  %1510 = vmatpush.msrb.mxu1 %v1290_v38  ;;  %v1210_v13 = vld [vmem:[%s12058_s5] sm:$0xff]  ;;  %v7112_v37 = vpop.f32.mrf.mxu2  ;;  %v7114_v38 = vpop.f32.mrf.mxu3  ;;  %v1459_v41 = vld [vmem:[%s12058_s5 + $0x7c8] sm:$0xff] }
 0x153   :  { %1533 = vmatpush.msrb.mxu2 %v1354_v29  ;;  %1556 = vmatpush.msrb.mxu3 %v1418_v61  ;;  %v1274_v0 = vld [vmem:[%s12058_s5 + $0x200] sm:$0xff]  ;;  %v1391_v44 = vld [vmem:[%s12058_s5 + $0x5a8] sm:$0xff] }
 0x154   :  { %1488 = vmatpush.msrb.mxu0 %v1222_v42  ;;  %1511 = vmatpush.msrb.mxu1 %v1286_v43  ;;  %v1350_v1 = vld [vmem:[%s12058_s5 + $0x460] sm:$0xff]  ;;  %v1251_v42 = vld [vmem:[%s12058_s5 + $0x148] sm:$0xff] }
 0x155   :  { %v1414_v2 = vld [vmem:[%s12058_s5 + $0x660] sm:$0xff]  ;;  %1534 = vmatpush.msrb.mxu2 %v1350_v1  ;;  %v1315_v43 = vld [vmem:[%s12058_s5 + $0x348] sm:$0xff] }
 0x156   :  { %1489 = vmatpush.msrb.mxu0 %v1218_v10  ;;  %1512 = vmatpush.msrb.mxu1 %v1282_v50  ;;  %v1346_v5 = vld [vmem:[%s12058_s5 + $0x440] sm:$0xff]  ;;  %v1455_v45 = vld [vmem:[%s12058_s5 + $0x7a8] sm:$0xff] }
 0x157   :  { %1557 = vmatpush.msrb.mxu3 %v1414_v2  ;;  %v1410_v6 = vld [vmem:[%s12058_s5 + $0x640] sm:$0xff]  ;;  %1535 = vmatpush.msrb.mxu2 %v1346_v5  ;;  %v1247_v10 = vld [vmem:[%s12058_s5 + $0x128] sm:$0xff] }
 0x158   :  { %1490 = vmatpush.msrb.mxu0 %v1214_v59  ;;  %1513 = vmatpush.msrb.mxu1 %v1278_v60  ;;  %v1342_v17 = vld [vmem:[%s12058_s5 + $0x420] sm:$0xff]  ;;  %v1311_v50 = vld [vmem:[%s12058_s5 + $0x328] sm:$0xff]  ;;  %v7143_v59 = vpop.f32.mrf.mxu0  ;;  %v7145_v60 = vpop.f32.mrf.mxu1 }
 0x159   :  { %v1406_v18 = vld [vmem:[%s12058_s5 + $0x620] sm:$0xff]  ;;  %1558 = vmatpush.msrb.mxu3 %v1410_v6  ;;  %1536 = vmatpush.msrb.mxu2 %v1342_v17  ;;  %v1387_v57 = vld [vmem:[%s12058_s5 + $0x588] sm:$0xff] }
 0x15a   :  { %1491 = vmatpush.msrb.mxu0 %v1210_v13  ;;  %1514 = vmatpush.msrb.mxu1 %v1274_v0  ;;  %v1338_v23 = vld [vmem:[%s12058_s5 + $0x400] sm:$0xff]  ;;  %v1451_v58 = vld [vmem:[%s12058_s5 + $0x788] sm:$0xff] }
 0x15b   :  { %v1402_v24 = vld [vmem:[%s12058_s5 + $0x600] sm:$0xff]  ;;  %1559 = vmatpush.msrb.mxu3 %v1406_v18  ;;  %1537 = vmatpush.msrb.mxu2 %v1338_v23  ;;  %v1243_v29 = vld [vmem:[%s12058_s5 + $0x108] sm:$0xff] }
 0x15c   :  { %1568 = vmatpush.msra.mxu0 %v1271_v3  ;;  %1591 = vmatpush.msra.mxu1 %v1335_v4  ;;  %v1307_v61 = vld [vmem:[%s12058_s5 + $0x308] sm:$0xff] }
 0x15d   :  { %1560 = vmatpush.msrb.mxu3 %v1402_v24  ;;  %1614 = vmatpush.msra.mxu2 %v1399_v27  ;;  %v1383_v13 = vld [vmem:[%s12058_s5 + $0x568] sm:$0xff] }
 0x15e   :  { %1569 = vmatpush.msra.mxu0 %v1267_v7  ;;  %1592 = vmatpush.msra.mxu1 %v1331_v16  ;;  %v1447_v0 = vld [vmem:[%s12058_s5 + $0x768] sm:$0xff] }
 0x15f   :  { %1637 = vmatpush.msra.mxu3 %v1463_v33  ;;  %1615 = vmatpush.msra.mxu2 %v1395_v36  ;;  %v1239_v1 = vld [vmem:[%s12058_s5 + $0xe8] sm:$0xff] }
 0x160   :  { %1570 = vmatpush.msra.mxu0 %v1263_v21  ;;  %1593 = vmatpush.msra.mxu1 %v1327_v22  ;;  %v1303_v2 = vld [vmem:[%s12058_s5 + $0x2e8] sm:$0xff]  ;;  %v7189_v21 = vpop.f32.mrf.mxu2  ;;  %v7191_v22 = vpop.f32.mrf.mxu3 }
 0x161   :  { %1638 = vmatpush.msra.mxu3 %v1459_v41  ;;  %1616 = vmatpush.msra.mxu2 %v1391_v44  ;;  %v1379_v3 = vld [vmem:[%s12058_s5 + $0x548] sm:$0xff] }
 0x162   :  { %1571 = vmatpush.msra.mxu0 %v1259_v25  ;;  %1594 = vmatpush.msra.mxu1 %v1323_v26  ;;  %v1443_v4 = vld [vmem:[%s12058_s5 + $0x748] sm:$0xff] }
 0x163   :  { %1639 = vmatpush.msra.mxu3 %v1455_v45  ;;  %1617 = vmatpush.msra.mxu2 %v1387_v57  ;;  %v1235_v5 = vld [vmem:[%s12058_s5 + $0xc8] sm:$0xff] }
 0x164   :  { %1572 = vmatpush.msra.mxu0 %v1255_v34  ;;  %1595 = vmatpush.msra.mxu1 %v1319_v35  ;;  %v1299_v6 = vld [vmem:[%s12058_s5 + $0x2c8] sm:$0xff] }
 0x165   :  { %1640 = vmatpush.msra.mxu3 %v1451_v58  ;;  %1618 = vmatpush.msra.mxu2 %v1383_v13  ;;  %v1375_v7 = vld [vmem:[%s12058_s5 + $0x528] sm:$0xff] }
 0x166   :  { %1573 = vmatpush.msra.mxu0 %v1251_v42  ;;  %1596 = vmatpush.msra.mxu1 %v1315_v43  ;;  %v1439_v16 = vld [vmem:[%s12058_s5 + $0x728] sm:$0xff] }
 0x167   :  { %1641 = vmatpush.msra.mxu3 %v1447_v0  ;;  %1619 = vmatpush.msra.mxu2 %v1379_v3  ;;  %v1231_v17 = vld [vmem:[%s12058_s5 + $0xa8] sm:$0xff] }
 0x168   :  { %1574 = vmatpush.msra.mxu0 %v1247_v10  ;;  %1597 = vmatpush.msra.mxu1 %v1311_v50  ;;  %v1295_v18 = vld [vmem:[%s12058_s5 + $0x2a8] sm:$0xff] }
 0x169   :  { %1642 = vmatpush.msra.mxu3 %v1443_v4  ;;  %v1371_v23 = vld [vmem:[%s12058_s5 + $0x508] sm:$0xff]  ;;  %1620 = vmatpush.msra.mxu2 %v1375_v7 }
 0x16a   :  { %1575 = vmatpush.msra.mxu0 %v1243_v29  ;;  %1598 = vmatpush.msra.mxu1 %v1307_v61  ;;  %v1435_v24 = vld [vmem:[%s12058_s5 + $0x708] sm:$0xff] }
 0x16b   :  { %1643 = vmatpush.msra.mxu3 %v1439_v16  ;;  %v1227_v27 = vld [vmem:[%s12058_s5 + $0x88] sm:$0xff]  ;;  %1621 = vmatpush.msra.mxu2 %v1371_v23 }
 0x16c   :  { %1576 = vmatpush.msra.mxu0 %v1239_v1  ;;  %1599 = vmatpush.msra.mxu1 %v1303_v2  ;;  %v1291_v33 = vld [vmem:[%s12058_s5 + $0x288] sm:$0xff] }
 0x16d   :  { %v7199_v25 = vpop.f32.mrf.mxu0  ;;  %v7201_v26 = vpop.f32.mrf.mxu1  ;;  %v1367_v34 = vld [vmem:[%s12058_s5 + $0x4e8] sm:$0xff]  ;;  %1644 = vmatpush.msra.mxu3 %v1435_v24 }
 0x16e   :  { %1577 = vmatpush.msra.mxu0 %v1235_v5  ;;  %1600 = vmatpush.msra.mxu1 %v1299_v6  ;;  %v1431_v35 = vld [vmem:[%s12058_s5 + $0x6e8] sm:$0xff] }
 0x16f   :  { %1622 = vmatpush.msra.mxu2 %v1367_v34  ;;  %1645 = vmatpush.msra.mxu3 %v1431_v35  ;;  %v1223_v36 = vld [vmem:[%s12058_s5 + $0x68] sm:$0xff] }
 0x170   :  { %1578 = vmatpush.msra.mxu0 %v1231_v17  ;;  %1601 = vmatpush.msra.mxu1 %v1295_v18  ;;  %v1287_v41 = vld [vmem:[%s12058_s5 + $0x268] sm:$0xff] }
 0x171   :  { %v1363_v42 = vld [vmem:[%s12058_s5 + $0x4c8] sm:$0xff] }
 0x172   :  { %1579 = vmatpush.msra.mxu0 %v1227_v27  ;;  %1602 = vmatpush.msra.mxu1 %v1291_v33  ;;  %v1427_v43 = vld [vmem:[%s12058_s5 + $0x6c8] sm:$0xff] }
 0x173   :  { %1623 = vmatpush.msra.mxu2 %v1363_v42  ;;  %1646 = vmatpush.msra.mxu3 %v1427_v43  ;;  %v1219_v44 = vld [vmem:[%s12058_s5 + $0x48] sm:$0xff] }
 0x174   :  { %1580 = vmatpush.msra.mxu0 %v1223_v36  ;;  %1603 = vmatpush.msra.mxu1 %v1287_v41  ;;  %v1283_v45 = vld [vmem:[%s12058_s5 + $0x248] sm:$0xff]  ;;  %v7236_v50 = vpop.f32.mrf.mxu2  ;;  %v7238_v57 = vpop.f32.mrf.mxu3 }
 0x175   :  { %v1359_v10 = vld [vmem:[%s12058_s5 + $0x4a8] sm:$0xff] }
 0x176   :  { %1581 = vmatpush.msra.mxu0 %v1219_v44  ;;  %1604 = vmatpush.msra.mxu1 %v1283_v45  ;;  %v1423_v58 = vld [vmem:[%s12058_s5 + $0x6a8] sm:$0xff]  ;;  %v584_v44 = vadd.f32 %v6851_v53, %v6835_v48  ;;  %v7310_v45 = vld [vmem:[%s12095_s25] sm:$0xf] }
 0x177   :  { %1624 = vmatpush.msra.mxu2 %v1359_v10  ;;  %1647 = vmatpush.msra.mxu3 %v1423_v58  ;;  %v1215_v29 = vld [vmem:[%s12058_s5 + $0x28] sm:$0xff]  ;;  %v7255_v1 = vpop.f32.mrf.mxu0  ;;  %v7257_v2 = vpop.f32.mrf.mxu1  ;;  %v515_v10 = vadd.f32 %v6831_v47, %v6829_v46  ;;  %v1187_v48 = vperm.slane %v7310_v45, 1  ;;  %v587_v46 = vadd.f32 %v6916_v11, %v6849_v52  ;;  %v1336_v52 = vld [vmem:[%s12058_s5 + $0x3f0] sm:$0xff] }
 0x178   :  { %v1279_v61 = vld [vmem:[%s12058_s5 + $0x228] sm:$0xff]  ;;  %1582 = vmatpush.msra.mxu0 %v1215_v29  ;;  %v607_v29 = vadd.f32 %v6853_v54, %v584_v44  ;;  %v653_v54 = vadd.f32 %v6890_v63, %v6888_v31  ;;  %v1188_v31 = vperm.slane %v7310_v45, 2 }
 0x179   :  { %v1355_v13 = vld [vmem:[%s12058_s5 + $0x488] sm:$0xff]  ;;  %1605 = vmatpush.msra.mxu1 %v1279_v61  ;;  %v538_v58 = vadd.f32 %v6833_v8, %v515_v10  ;;  %v610_v63 = vadd.f32 %v6918_v12, %v587_v46  ;;  %v656_v46 = vadd.f32 %v6964_v32, %v6962_v28  ;;  %v1400_v28 = vld [vmem:[%s12058_s5 + $0x5f0] sm:$0xff] }
 0x17a   :  { %v1419_v0 = vld [vmem:[%s12058_s5 + $0x688] sm:$0xff]  ;;  %1625 = vmatpush.msra.mxu2 %v1355_v13  ;;  %v676_v11 = vadd.f32 %v6984_v39, %v653_v54  ;;  %v1268_v39 = vld [vmem:[%s12058_s5 + $0x1d0] sm:$0xff] }
 0x17b   :  { %1648 = vmatpush.msra.mxu3 %v1419_v0  ;;  %v1211_v3 = vld [vmem:[%s12058_s5 + $0x8] sm:$0xff]  ;;  %v1186_v0 = vperm.slane %v7310_v45, 0  ;;  %v1260_v54 = vld [vmem:[%s12058_s5 + $0x190] sm:$0xff] }
 0x17c   :  { %v1275_v4 = vld [vmem:[%s12058_s5 + $0x208] sm:$0xff]  ;;  %1583 = vmatpush.msra.mxu0 %v1211_v3  ;;  %v1464_v32 = vld [vmem:[%s12058_s5 + $0x7f0] sm:$0xff] }
 0x17d   :  { %v1351_v5 = vld [vmem:[%s12058_s5 + $0x468] sm:$0xff]  ;;  %1606 = vmatpush.msra.mxu1 %v1275_v4 }
 0x17e   :  { %v1415_v6 = vld [vmem:[%s12058_s5 + $0x668] sm:$0xff]  ;;  %1626 = vmatpush.msra.mxu2 %v1351_v5  ;;  %v7289_v27 = vpop.f32.mrf.mxu2  ;;  %v7291_v33 = vpop.f32.mrf.mxu3 }
 0x17f   :  { %1649 = vmatpush.msra.mxu3 %v1415_v6  ;;  %v1347_v7 = vld [vmem:[%s12058_s5 + $0x448] sm:$0xff]  ;;  %v722_v6 = vadd.f32 %v7009_v55, %v6986_v40 }
 0x180   :  { %v1411_v16 = vld [vmem:[%s12058_s5 + $0x648] sm:$0xff]  ;;  %1627 = vmatpush.msra.mxu2 %v1347_v7  ;;  %v518_v7 = vadd.f32 %v6839_v9, %v6837_v49  ;;  %v1189_v49 = vperm.slane %v7310_v45, 3 }
 0x181   :  { %1650 = vmatpush.msra.mxu3 %v1411_v16  ;;  %v1343_v17 = vld [vmem:[%s12058_s5 + $0x428] sm:$0xff]  ;;  %v745_v40 = vadd.f32 %v7011_v56, %v722_v6  ;;  %v1332_v56 = vld [vmem:[%s12058_s5 + $0x3d0] sm:$0xff] }
 0x182   :  { %v1407_v18 = vld [vmem:[%s12058_s5 + $0x628] sm:$0xff]  ;;  %1628 = vmatpush.msra.mxu2 %v1343_v17  ;;  %v541_v9 = vadd.f32 %v6847_v51, %v518_v7 }
 0x183   :  { %1651 = vmatpush.msra.mxu3 %v1407_v18  ;;  %v1339_v23 = vld [vmem:[%s12058_s5 + $0x408] sm:$0xff]  ;;  %v1272_v18 = vld [vmem:[%s12058_s5 + $0x1f0] sm:$0xff] }
 0x184   :  { %v1403_v24 = vld [vmem:[%s12058_s5 + $0x608] sm:$0xff]  ;;  %1629 = vmatpush.msra.mxu2 %v1339_v23 }
 0x185   :  { %1652 = vmatpush.msra.mxu3 %v1403_v24 }
 0x191   :  { %v7293_v34 = vpop.f32.mrf.mxu0  ;;  %v7295_v35 = vpop.f32.mrf.mxu1 }
 0x198   :  { %v7297_v36 = vpop.f32.mrf.mxu2  ;;  %v7299_v41 = vpop.f32.mrf.mxu3 }
 0x19b   :  { %v7301_v42 = vpop.f32.mrf.mxu0  ;;  %v7303_v43 = vpop.f32.mrf.mxu1 }
 0x1a2   :  { %v7316_v61 = vpop.f32.mrf.mxu2  ;;  %v7318_v13 = vpop.f32.mrf.mxu3 }
 0x1b5   :  { %v1109_v53 = vpop.f32.mrf.mxu0  ;;  %v1132_v3 = vpop.f32.mrf.mxu1 }
 0x1b6   :  { %v1110_v4 = vadd.f32 %v1109_v53, %v538_v58  ;;  %v1133_v5 = vadd.f32 %v1132_v3, %v607_v29  ;;  %v1264_v58 = vld [vmem:[%s12058_s5 + $0x1b0] sm:$0xff]  ;;  %v725_v53 = vadd.f32 %v7062_v14, %v7033_v30 }
 0x1b7   :  { %v1328_v29 = vld [vmem:[%s12058_s5 + $0x3b0] sm:$0xff] }
 0x1b8   :  { %v1194_v47 = vadd.f32 %v1186_v0, %v1110_v4  ;;  %v1195_v8 = vadd.f32 %v1187_v48, %v1133_v5  ;;  %v1324_v30 = vld [vmem:[%s12058_s5 + $0x390] sm:$0xff]  ;;  %v748_v7 = vadd.f32 %v7064_v15, %v725_v53 }
 0x1b9   :  { %v1384_v53 = vld [vmem:[%s12058_s5 + $0x570] sm:$0xff] }
 0x1ba   :  { %v7330_v16 = vmax.f32 %v1194_v47, 0.0  ;;  %v7332_v17 = vmax.f32 %v1195_v8, 0.0 }
 0x1bc   :  { %v1155_v55 = vpop.f32.mrf.mxu2  ;;  %v1178_v23 = vpop.f32.mrf.mxu3  ;;  %1492 = vmatmul.f32.vlgmr.msrb.gmra.mxu0 %v7330_v16  ;;  %1515 = vmatmul.f32.vlgmr.msrb.gmra.mxu1 %v7332_v17 }
 0x1bd   :  { %v1156_v24 = vadd.f32 %v1155_v55, %v676_v11  ;;  %v1179_v44 = vadd.f32 %v1178_v23, %v745_v40  ;;  %1660 = vmatpush.msrb.mxu0 %v1272_v18  ;;  %1683 = vmatpush.msrb.mxu1 %v1336_v52  ;;  %v1112_v51 = vpop.f32.mrf.mxu0  ;;  %v1135_v12 = vpop.f32.mrf.mxu1  ;;  %v1256_v11 = vld [vmem:[%s12058_s5 + $0x170] sm:$0xff] }
 0x1be   :  { %v1113_v45 = vadd.f32 %v1112_v51, %v541_v9  ;;  %v1136_v10 = vadd.f32 %v1135_v12, %v610_v63  ;;  %v1320_v40 = vld [vmem:[%s12058_s5 + $0x370] sm:$0xff] }
 0x1bf   :  { %v1196_v3 = vadd.f32 %v1188_v31, %v1156_v24  ;;  %v1197_v4 = vadd.f32 %v1189_v49, %v1179_v44  ;;  %1661 = vmatpush.msrb.mxu0 %v1268_v39  ;;  %1684 = vmatpush.msrb.mxu1 %v1332_v56  ;;  %v1396_v9 = vld [vmem:[%s12058_s5 + $0x5d0] sm:$0xff] }
 0x1c0   :  { %v1198_v5 = vadd.f32 %v1186_v0, %v1113_v45  ;;  %v1199_v6 = vadd.f32 %v1187_v48, %v1136_v10  ;;  %v679_v48 = vadd.f32 %v7031_v62, %v656_v46  ;;  %v1460_v63 = vld [vmem:[%s12058_s5 + $0x7d0] sm:$0xff] }
 0x1c1   :  { %v7364_v47 = vmax.f32 %v1196_v3, 0.0  ;;  %v7366_v8 = vmax.f32 %v1197_v4, 0.0  ;;  %1662 = vmatpush.msrb.mxu0 %v1264_v58  ;;  %1685 = vmatpush.msrb.mxu1 %v1328_v29  ;;  %v1252_v55 = vld [vmem:[%s12058_s5 + $0x150] sm:$0xff] }
 0x1c2   :  { %v7374_v14 = vmax.f32 %v1198_v5, 0.0  ;;  %v7376_v0 = vmax.f32 %v1199_v6, 0.0  ;;  %v1316_v23 = vld [vmem:[%s12058_s5 + $0x350] sm:$0xff] }
 0x1c3   :  { %1538 = vmatmul.f32.vlgmr.msrb.gmra.mxu2 %v7364_v47  ;;  %1561 = vmatmul.f32.vlgmr.msrb.gmra.mxu3 %v7366_v8  ;;  %v1392_v24 = vld [vmem:[%s12058_s5 + $0x5b0] sm:$0xff] }
 0x1c4   :  { %1663 = vmatpush.msrb.mxu0 %v1260_v54  ;;  %1686 = vmatpush.msrb.mxu1 %v1324_v30  ;;  %v1158_v18 = vpop.f32.mrf.mxu2  ;;  %v1181_v52 = vpop.f32.mrf.mxu3  ;;  %v1456_v44 = vld [vmem:[%s12058_s5 + $0x7b0] sm:$0xff] }
 0x1c5   :  { %1706 = vmatpush.msrb.mxu2 %v1400_v28  ;;  %1729 = vmatpush.msrb.mxu3 %v1464_v32  ;;  %v1159_v62 = vadd.f32 %v1158_v18, %v679_v48  ;;  %v1182_v15 = vadd.f32 %v1181_v52, %v748_v7  ;;  %v1248_v51 = vld [vmem:[%s12058_s5 + $0x130] sm:$0xff] }
 0x1c6   :  { %1495 = vmatmul.f32.gmra.mxu0 %v7374_v14  ;;  %1518 = vmatmul.f32.gmra.mxu1 %v7376_v0  ;;  %v1388_v45 = vld [vmem:[%s12058_s5 + $0x590] sm:$0xff] }
 0x1c7   :  { %v1200_v39 = vadd.f32 %v1188_v31, %v1159_v62  ;;  %v1201_v56 = vadd.f32 %v1189_v49, %v1182_v15  ;;  %1664 = vmatpush.msrb.mxu0 %v1256_v11  ;;  %1687 = vmatpush.msrb.mxu1 %v1320_v40  ;;  %v1312_v31 = vld [vmem:[%s12058_s5 + $0x330] sm:$0xff] }
 0x1c8   :  { %1707 = vmatpush.msrb.mxu2 %v1396_v9  ;;  %1730 = vmatpush.msrb.mxu3 %v1460_v63  ;;  %v1452_v10 = vld [vmem:[%s12058_s5 + $0x790] sm:$0xff] }
 0x1c9   :  { %v7420_v49 = vmax.f32 %v1200_v39, 0.0  ;;  %v7422_v12 = vmax.f32 %v1201_v56, 0.0  ;;  %1665 = vmatpush.msrb.mxu0 %v1252_v55  ;;  %1688 = vmatpush.msrb.mxu1 %v1316_v23  ;;  %v1244_v58 = vld [vmem:[%s12058_s5 + $0x110] sm:$0xff] }
 0x1ca   :  { %1708 = vmatpush.msrb.mxu2 %v1392_v24  ;;  %1731 = vmatpush.msrb.mxu3 %v1456_v44  ;;  %v1308_v29 = vld [vmem:[%s12058_s5 + $0x310] sm:$0xff] }
 0x1cb   :  { %1666 = vmatpush.msrb.mxu0 %v1248_v51  ;;  %1689 = vmatpush.msrb.mxu1 %v1312_v31  ;;  %v1448_v3 = vld [vmem:[%s12058_s5 + $0x770] sm:$0xff] }
 0x1cc   :  { %1709 = vmatpush.msrb.mxu2 %v1388_v45  ;;  %1732 = vmatpush.msrb.mxu3 %v1452_v10  ;;  %v1240_v4 = vld [vmem:[%s12058_s5 + $0xf0] sm:$0xff] }
 0x1cd   :  { %1541 = vmatmul.f32.gmra.mxu2 %v7420_v49  ;;  %1564 = vmatmul.f32.gmra.mxu3 %v7422_v12  ;;  %v1304_v5 = vld [vmem:[%s12058_s5 + $0x2f0] sm:$0xff] }
 0x1ce   :  { %1667 = vmatpush.msrb.mxu0 %v1244_v58  ;;  %1690 = vmatpush.msrb.mxu1 %v1308_v29  ;;  %v1380_v6 = vld [vmem:[%s12058_s5 + $0x550] sm:$0xff] }
 0x1cf   :  { %1710 = vmatpush.msrb.mxu2 %v1384_v53  ;;  %1733 = vmatpush.msrb.mxu3 %v1448_v3  ;;  %v1444_v46 = vld [vmem:[%s12058_s5 + $0x750] sm:$0xff] }
 0x1d0   :  { %1584 = vmatmul.f32.vlgmr.msra.gmra.mxu0 %v7330_v16  ;;  %1607 = vmatmul.f32.vlgmr.msra.gmra.mxu1 %v7332_v17  ;;  %v1236_v54 = vld [vmem:[%s12058_s5 + $0xd0] sm:$0xff] }
 0x1d1   :  { %v1300_v30 = vld [vmem:[%s12058_s5 + $0x2d0] sm:$0xff]  ;;  %1668 = vmatpush.msrb.mxu0 %v1240_v4  ;;  %1691 = vmatpush.msrb.mxu1 %v1304_v5  ;;  %v1273_v4 = vld [vmem:[%s12058_s5 + $0x1f8] sm:$0xff] }
 0x1d2   :  { %v1376_v28 = vld [vmem:[%s12058_s5 + $0x530] sm:$0xff]  ;;  %1711 = vmatpush.msrb.mxu2 %v1380_v6  ;;  %1734 = vmatpush.msrb.mxu3 %v1444_v46  ;;  %v1337_v5 = vld [vmem:[%s12058_s5 + $0x3f8] sm:$0xff] }
 0x1d3   :  { %v1440_v32 = vld [vmem:[%s12058_s5 + $0x730] sm:$0xff]  ;;  %1669 = vmatpush.msrb.mxu0 %v1236_v54  ;;  %1692 = vmatpush.msrb.mxu1 %v1300_v30  ;;  %v1269_v54 = vld [vmem:[%s12058_s5 + $0x1d8] sm:$0xff] }
 0x1d4   :  { %v1232_v48 = vld [vmem:[%s12058_s5 + $0xb0] sm:$0xff]  ;;  %1712 = vmatpush.msrb.mxu2 %v1376_v28  ;;  %1735 = vmatpush.msrb.mxu3 %v1440_v32  ;;  %v1333_v30 = vld [vmem:[%s12058_s5 + $0x3d8] sm:$0xff] }
 0x1d5   :  { %v1296_v7 = vld [vmem:[%s12058_s5 + $0x2b0] sm:$0xff]  ;;  %1670 = vmatpush.msrb.mxu0 %v1232_v48  ;;  %1630 = vmatmul.f32.vlgmr.msra.gmra.mxu2 %v7364_v47  ;;  %v1265_v48 = vld [vmem:[%s12058_s5 + $0x1b8] sm:$0xff] }
 0x1d6   :  { %v1372_v18 = vld [vmem:[%s12058_s5 + $0x510] sm:$0xff]  ;;  %1693 = vmatpush.msrb.mxu1 %v1296_v7  ;;  %1653 = vmatmul.f32.vlgmr.msra.gmra.mxu3 %v7366_v8  ;;  %v1329_v7 = vld [vmem:[%s12058_s5 + $0x3b8] sm:$0xff] }
 0x1d7   :  { %v1436_v52 = vld [vmem:[%s12058_s5 + $0x710] sm:$0xff]  ;;  %1713 = vmatpush.msrb.mxu2 %v1372_v18 }
 0x1d8   :  { %v1228_v11 = vld [vmem:[%s12058_s5 + $0x90] sm:$0xff]  ;;  %1736 = vmatpush.msrb.mxu3 %v1436_v52  ;;  %1587 = vmatmul.f32.gmra.mxu0 %v7374_v14 }
 0x1d9   :  { %v1292_v40 = vld [vmem:[%s12058_s5 + $0x290] sm:$0xff]  ;;  %1671 = vmatpush.msrb.mxu0 %v1228_v11  ;;  %1610 = vmatmul.f32.gmra.mxu1 %v7376_v0  ;;  %v1261_v11 = vld [vmem:[%s12058_s5 + $0x198] sm:$0xff] }
 0x1da   :  { %v1368_v62 = vld [vmem:[%s12058_s5 + $0x4f0] sm:$0xff]  ;;  %1694 = vmatpush.msrb.mxu1 %v1292_v40  ;;  %v1325_v40 = vld [vmem:[%s12058_s5 + $0x398] sm:$0xff] }
 0x1db   :  { %v1432_v15 = vld [vmem:[%s12058_s5 + $0x6f0] sm:$0xff]  ;;  %1714 = vmatpush.msrb.mxu2 %v1368_v62  ;;  %v1401_v62 = vld [vmem:[%s12058_s5 + $0x5f8] sm:$0xff] }
 0x1dc   :  { %v1224_v9 = vld [vmem:[%s12058_s5 + $0x70] sm:$0xff]  ;;  %1737 = vmatpush.msrb.mxu3 %v1432_v15  ;;  %v1465_v15 = vld [vmem:[%s12058_s5 + $0x7f8] sm:$0xff] }
 0x1dd   :  { %v1288_v63 = vld [vmem:[%s12058_s5 + $0x270] sm:$0xff]  ;;  %1672 = vmatpush.msrb.mxu0 %v1224_v9  ;;  %1633 = vmatmul.f32.gmra.mxu2 %v7420_v49  ;;  %v1257_v9 = vld [vmem:[%s12058_s5 + $0x178] sm:$0xff] }
 0x1de   :  { %v1364_v55 = vld [vmem:[%s12058_s5 + $0x4d0] sm:$0xff]  ;;  %1695 = vmatpush.msrb.mxu1 %v1288_v63  ;;  %1656 = vmatmul.f32.gmra.mxu3 %v7422_v12  ;;  %v1321_v63 = vld [vmem:[%s12058_s5 + $0x378] sm:$0xff] }
 0x1df   :  { %v1428_v23 = vld [vmem:[%s12058_s5 + $0x6d0] sm:$0xff]  ;;  %1715 = vmatpush.msrb.mxu2 %v1364_v55  ;;  %v1397_v55 = vld [vmem:[%s12058_s5 + $0x5d8] sm:$0xff] }
 0x1e0   :  { %v1220_v39 = vld [vmem:[%s12058_s5 + $0x50] sm:$0xff]  ;;  %1738 = vmatpush.msrb.mxu3 %v1428_v23  ;;  %v1461_v23 = vld [vmem:[%s12058_s5 + $0x7d8] sm:$0xff] }
 0x1e1   :  { %v1284_v56 = vld [vmem:[%s12058_s5 + $0x250] sm:$0xff]  ;;  %1673 = vmatpush.msrb.mxu0 %v1220_v39  ;;  %v1253_v39 = vld [vmem:[%s12058_s5 + $0x158] sm:$0xff] }
 0x1e2   :  { %v1360_v24 = vld [vmem:[%s12058_s5 + $0x4b0] sm:$0xff]  ;;  %1696 = vmatpush.msrb.mxu1 %v1284_v56  ;;  %v1317_v56 = vld [vmem:[%s12058_s5 + $0x358] sm:$0xff] }
 0x1e3   :  { %v1424_v44 = vld [vmem:[%s12058_s5 + $0x6b0] sm:$0xff]  ;;  %1716 = vmatpush.msrb.mxu2 %v1360_v24  ;;  %v1393_v24 = vld [vmem:[%s12058_s5 + $0x5b8] sm:$0xff] }
 0x1e4   :  { %v1216_v51 = vld [vmem:[%s12058_s5 + $0x30] sm:$0xff]  ;;  %1739 = vmatpush.msrb.mxu3 %v1424_v44  ;;  %v1457_v44 = vld [vmem:[%s12058_s5 + $0x7b8] sm:$0xff] }
 0x1e5   :  { %v1280_v31 = vld [vmem:[%s12058_s5 + $0x230] sm:$0xff]  ;;  %1674 = vmatpush.msrb.mxu0 %v1216_v51  ;;  %v1249_v51 = vld [vmem:[%s12058_s5 + $0x138] sm:$0xff] }
 0x1e6   :  { %v1356_v45 = vld [vmem:[%s12058_s5 + $0x490] sm:$0xff]  ;;  %1697 = vmatpush.msrb.mxu1 %v1280_v31  ;;  %v1313_v31 = vld [vmem:[%s12058_s5 + $0x338] sm:$0xff] }
 0x1e7   :  { %v1420_v10 = vld [vmem:[%s12058_s5 + $0x690] sm:$0xff]  ;;  %1717 = vmatpush.msrb.mxu2 %v1356_v45  ;;  %v1389_v45 = vld [vmem:[%s12058_s5 + $0x598] sm:$0xff] }
 0x1e8   :  { %v1212_v58 = vld [vmem:[%s12058_s5 + $0x10] sm:$0xff]  ;;  %1740 = vmatpush.msrb.mxu3 %v1420_v10  ;;  %v1453_v10 = vld [vmem:[%s12058_s5 + $0x798] sm:$0xff] }
 0x1e9   :  { %v1276_v29 = vld [vmem:[%s12058_s5 + $0x210] sm:$0xff]  ;;  %1675 = vmatpush.msrb.mxu0 %v1212_v58  ;;  %v1245_v58 = vld [vmem:[%s12058_s5 + $0x118] sm:$0xff] }
 0x1ea   :  { %v1352_v53 = vld [vmem:[%s12058_s5 + $0x470] sm:$0xff]  ;;  %1698 = vmatpush.msrb.mxu1 %v1276_v29  ;;  %1676 = vmatmul.f32.vlgmr.msrb.gmra.mxu0 %v7330_v16  ;;  %v1309_v29 = vld [vmem:[%s12058_s5 + $0x318] sm:$0xff] }
 0x1eb   :  { %v1416_v3 = vld [vmem:[%s12058_s5 + $0x670] sm:$0xff]  ;;  %1718 = vmatpush.msrb.mxu2 %v1352_v53  ;;  %1752 = vmatpush.msra.mxu0 %v1273_v4  ;;  %v1385_v53 = vld [vmem:[%s12058_s5 + $0x578] sm:$0xff] }
 0x1ec   :  { %1741 = vmatpush.msrb.mxu3 %v1416_v3  ;;  %v1348_v6 = vld [vmem:[%s12058_s5 + $0x450] sm:$0xff]  ;;  %1775 = vmatpush.msra.mxu1 %v1337_v5  ;;  %v1449_v3 = vld [vmem:[%s12058_s5 + $0x778] sm:$0xff] }
 0x1ed   :  { %v1412_v46 = vld [vmem:[%s12058_s5 + $0x650] sm:$0xff]  ;;  %1699 = vmatmul.f32.vlgmr.msrb.gmra.mxu1 %v7332_v17  ;;  %1719 = vmatpush.msrb.mxu2 %v1348_v6  ;;  %v1241_v4 = vld [vmem:[%s12058_s5 + $0xf8] sm:$0xff] }
 0x1ee   :  { %v1344_v28 = vld [vmem:[%s12058_s5 + $0x430] sm:$0xff]  ;;  %1742 = vmatpush.msrb.mxu3 %v1412_v46  ;;  %1753 = vmatpush.msra.mxu0 %v1269_v54  ;;  %v1305_v5 = vld [vmem:[%s12058_s5 + $0x2f8] sm:$0xff] }
 0x1ef   :  { %v1408_v32 = vld [vmem:[%s12058_s5 + $0x630] sm:$0xff]  ;;  %1776 = vmatpush.msra.mxu1 %v1333_v30  ;;  %1720 = vmatpush.msrb.mxu2 %v1344_v28  ;;  %v1381_v6 = vld [vmem:[%s12058_s5 + $0x558] sm:$0xff] }
 0x1f0   :  { %v1340_v18 = vld [vmem:[%s12058_s5 + $0x410] sm:$0xff]  ;;  %1743 = vmatpush.msrb.mxu3 %v1408_v32  ;;  %1754 = vmatpush.msra.mxu0 %v1265_v48  ;;  %v1445_v46 = vld [vmem:[%s12058_s5 + $0x758] sm:$0xff] }
 0x1f1   :  { %v1404_v52 = vld [vmem:[%s12058_s5 + $0x610] sm:$0xff]  ;;  %1777 = vmatpush.msra.mxu1 %v1329_v7  ;;  %1721 = vmatpush.msrb.mxu2 %v1340_v18  ;;  %v1237_v54 = vld [vmem:[%s12058_s5 + $0xd8] sm:$0xff] }
 0x1f2   :  { %1744 = vmatpush.msrb.mxu3 %v1404_v52  ;;  %1755 = vmatpush.msra.mxu0 %v1261_v11  ;;  %v1301_v30 = vld [vmem:[%s12058_s5 + $0x2d8] sm:$0xff] }
 0x1f3   :  { %1778 = vmatpush.msra.mxu1 %v1325_v40  ;;  %1798 = vmatpush.msra.mxu2 %v1401_v62  ;;  %v1377_v28 = vld [vmem:[%s12058_s5 + $0x538] sm:$0xff] }
 0x1f4   :  { %1821 = vmatpush.msra.mxu3 %v1465_v15  ;;  %1722 = vmatmul.f32.vlgmr.msrb.gmra.mxu2 %v7364_v47  ;;  %v1441_v32 = vld [vmem:[%s12058_s5 + $0x738] sm:$0xff] }
 0x1f5   :  { %1745 = vmatmul.f32.vlgmr.msrb.gmra.mxu3 %v7366_v8  ;;  %1756 = vmatpush.msra.mxu0 %v1257_v9  ;;  %v1233_v48 = vld [vmem:[%s12058_s5 + $0xb8] sm:$0xff] }
 0x1f6   :  { %1779 = vmatpush.msra.mxu1 %v1321_v63  ;;  %1799 = vmatpush.msra.mxu2 %v1397_v55  ;;  %v1297_v7 = vld [vmem:[%s12058_s5 + $0x2b8] sm:$0xff] }
 0x1f7   :  { %1822 = vmatpush.msra.mxu3 %v1461_v23  ;;  %1679 = vmatmul.f32.gmra.mxu0 %v7374_v14  ;;  %v1373_v18 = vld [vmem:[%s12058_s5 + $0x518] sm:$0xff] }
 0x1f8   :  { %1702 = vmatmul.f32.gmra.mxu1 %v7376_v0  ;;  %1757 = vmatpush.msra.mxu0 %v1253_v39  ;;  %v1437_v52 = vld [vmem:[%s12058_s5 + $0x718] sm:$0xff] }
 0x1f9   :  { %1780 = vmatpush.msra.mxu1 %v1317_v56  ;;  %1800 = vmatpush.msra.mxu2 %v1393_v24  ;;  %v1229_v11 = vld [vmem:[%s12058_s5 + $0x98] sm:$0xff] }
 0x1fa   :  { %1823 = vmatpush.msra.mxu3 %v1457_v44  ;;  %1758 = vmatpush.msra.mxu0 %v1249_v51  ;;  %v1293_v40 = vld [vmem:[%s12058_s5 + $0x298] sm:$0xff] }
 0x1fb   :  { %1781 = vmatpush.msra.mxu1 %v1313_v31  ;;  %1801 = vmatpush.msra.mxu2 %v1389_v45  ;;  %v1369_v62 = vld [vmem:[%s12058_s5 + $0x4f8] sm:$0xff] }
 0x1fc   :  { %1824 = vmatpush.msra.mxu3 %v1453_v10  ;;  %1759 = vmatpush.msra.mxu0 %v1245_v58  ;;  %v1433_v15 = vld [vmem:[%s12058_s5 + $0x6f8] sm:$0xff] }
 0x1fd   :  { %1782 = vmatpush.msra.mxu1 %v1309_v29  ;;  %1802 = vmatpush.msra.mxu2 %v1385_v53  ;;  %v1225_v9 = vld [vmem:[%s12058_s5 + $0x78] sm:$0xff] }
 0x1fe   :  { %1825 = vmatpush.msra.mxu3 %v1449_v3  ;;  %1725 = vmatmul.f32.gmra.mxu2 %v7420_v49  ;;  %v1289_v63 = vld [vmem:[%s12058_s5 + $0x278] sm:$0xff] }
 0x1ff   :  { %1748 = vmatmul.f32.gmra.mxu3 %v7422_v12  ;;  %1760 = vmatpush.msra.mxu0 %v1241_v4  ;;  %v1365_v55 = vld [vmem:[%s12058_s5 + $0x4d8] sm:$0xff] }
 0x200   :  { %1783 = vmatpush.msra.mxu1 %v1305_v5  ;;  %1803 = vmatpush.msra.mxu2 %v1381_v6  ;;  %v1429_v23 = vld [vmem:[%s12058_s5 + $0x6d8] sm:$0xff]  ;;  %v1980_v6 = vld [vmem:[%s12060_s7 + $0x3c0] sm:$0xff] }
 0x201   :  { %1826 = vmatpush.msra.mxu3 %v1445_v46  ;;  %1761 = vmatpush.msra.mxu0 %v1237_v54  ;;  %v1221_v39 = vld [vmem:[%s12058_s5 + $0x58] sm:$0xff]  ;;  %v2108_v46 = vld [vmem:[%s12060_s7 + $0x7c0] sm:$0xff] }
 0x202   :  { %1784 = vmatpush.msra.mxu1 %v1301_v30  ;;  %1804 = vmatpush.msra.mxu2 %v1377_v28  ;;  %v1285_v56 = vld [vmem:[%s12058_s5 + $0x258] sm:$0xff]  ;;  %v1972_v28 = vld [vmem:[%s12060_s7 + $0x380] sm:$0xff] }
 0x203   :  { %1827 = vmatpush.msra.mxu3 %v1441_v32  ;;  %1762 = vmatpush.msra.mxu0 %v1233_v48  ;;  %v1361_v24 = vld [vmem:[%s12058_s5 + $0x4b8] sm:$0xff]  ;;  %v1964_v48 = vld [vmem:[%s12060_s7 + $0x340] sm:$0xff] }
 0x204   :  { %1785 = vmatpush.msra.mxu1 %v1297_v7  ;;  %1805 = vmatpush.msra.mxu2 %v1373_v18  ;;  %v1425_v44 = vld [vmem:[%s12058_s5 + $0x6b8] sm:$0xff]  ;;  %v2092_v7 = vld [vmem:[%s12060_s7 + $0x740] sm:$0xff] }
 0x205   :  { %1828 = vmatpush.msra.mxu3 %v1437_v52  ;;  %1763 = vmatpush.msra.mxu0 %v1229_v11  ;;  %v1217_v51 = vld [vmem:[%s12058_s5 + $0x38] sm:$0xff]  ;;  %v1956_v18 = vld [vmem:[%s12060_s7 + $0x300] sm:$0xff] }
 0x206   :  { %1786 = vmatpush.msra.mxu1 %v1293_v40  ;;  %1806 = vmatpush.msra.mxu2 %v1369_v62  ;;  %v1281_v31 = vld [vmem:[%s12058_s5 + $0x238] sm:$0xff]  ;;  %v2084_v52 = vld [vmem:[%s12060_s7 + $0x700] sm:$0xff] }
 0x207   :  { %1829 = vmatpush.msra.mxu3 %v1433_v15  ;;  %1764 = vmatpush.msra.mxu0 %v1225_v9  ;;  %v1357_v45 = vld [vmem:[%s12058_s5 + $0x498] sm:$0xff]  ;;  %v2236_v11 = vld [vmem:[%s12060_s7 + $0xbc0] sm:$0xff] }
 0x208   :  { %1787 = vmatpush.msra.mxu1 %v1289_v63  ;;  %1807 = vmatpush.msra.mxu2 %v1365_v55  ;;  %v1421_v10 = vld [vmem:[%s12058_s5 + $0x698] sm:$0xff]  ;;  %v2228_v40 = vld [vmem:[%s12060_s7 + $0xb80] sm:$0xff] }
 0x209   :  { %1830 = vmatpush.msra.mxu3 %v1429_v23  ;;  %1765 = vmatpush.msra.mxu0 %v1221_v39  ;;  %v1213_v58 = vld [vmem:[%s12058_s5 + $0x18] sm:$0xff]  ;;  %v1932_v62 = vld [vmem:[%s12060_s7 + $0x240] sm:$0xff] }
 0x20a   :  { %1788 = vmatpush.msra.mxu1 %v1285_v56  ;;  %1808 = vmatpush.msra.mxu2 %v1361_v24  ;;  %v1277_v29 = vld [vmem:[%s12058_s5 + $0x218] sm:$0xff]  ;;  %v2060_v15 = vld [vmem:[%s12060_s7 + $0x640] sm:$0xff] }
 0x20b   :  { %1831 = vmatpush.msra.mxu3 %v1425_v44  ;;  %1766 = vmatpush.msra.mxu0 %v1217_v51  ;;  %v1353_v53 = vld [vmem:[%s12058_s5 + $0x478] sm:$0xff]  ;;  %v2220_v9 = vld [vmem:[%s12060_s7 + $0xb40] sm:$0xff] }
 0x20c   :  { %1789 = vmatpush.msra.mxu1 %v1281_v31  ;;  %v1417_v3 = vld [vmem:[%s12058_s5 + $0x678] sm:$0xff]  ;;  %1809 = vmatpush.msra.mxu2 %v1357_v45  ;;  %v1924_v63 = vld [vmem:[%s12060_s7 + $0x200] sm:$0xff] }
 0x20d   :  { %1832 = vmatpush.msra.mxu3 %v1421_v10  ;;  %1767 = vmatpush.msra.mxu0 %v1213_v58  ;;  %v1349_v4 = vld [vmem:[%s12058_s5 + $0x458] sm:$0xff]  ;;  %v2052_v55 = vld [vmem:[%s12060_s7 + $0x600] sm:$0xff] }
 0x20e   :  { %1790 = vmatpush.msra.mxu1 %v1277_v29  ;;  %v1413_v5 = vld [vmem:[%s12058_s5 + $0x658] sm:$0xff]  ;;  %1810 = vmatpush.msra.mxu2 %v1353_v53  ;;  %v2212_v23 = vld [vmem:[%s12060_s7 + $0xb00] sm:$0xff] }
 0x20f   :  { %1833 = vmatpush.msra.mxu3 %v1417_v3  ;;  %1768 = vmatmul.f32.vlgmr.msra.gmra.mxu0 %v7330_v16  ;;  %v1345_v54 = vld [vmem:[%s12058_s5 + $0x438] sm:$0xff]  ;;  %v2100_v16 = vld [vmem:[%s12060_s7 + $0x780] sm:$0xff] }
 0x210   :  { %1791 = vmatmul.f32.vlgmr.msra.gmra.mxu1 %v7332_v17  ;;  %v1409_v30 = vld [vmem:[%s12058_s5 + $0x638] sm:$0xff]  ;;  %1811 = vmatpush.msra.mxu2 %v1349_v4  ;;  %v2204_v39 = vld [vmem:[%s12060_s7 + $0xac0] sm:$0xff] }
 0x211   :  { %1834 = vmatpush.msra.mxu3 %v1413_v5  ;;  %v1341_v17 = vld [vmem:[%s12058_s5 + $0x418] sm:$0xff]  ;;  %2390 = vmatpush.msrb.mxu0 %v1980_v6  ;;  %v1908_v56 = vld [vmem:[%s12060_s7 + $0x180] sm:$0xff] }
 0x212   :  { %v1405_v32 = vld [vmem:[%s12058_s5 + $0x618] sm:$0xff]  ;;  %2413 = vmatpush.msrb.mxu1 %v2108_v46  ;;  %1812 = vmatpush.msra.mxu2 %v1345_v54  ;;  %v2036_v24 = vld [vmem:[%s12060_s7 + $0x580] sm:$0xff]  ;;  %s5203_s5 = smov 512  }
 0x213   :  { %1835 = vmatpush.msra.mxu3 %v1409_v30  ;;  %2391 = vmatpush.msrb.mxu0 %v1972_v28  ;;  %v2196_v44 = vld [vmem:[%s12060_s7 + $0xa80] sm:$0xff] }
 0x214   :  { %2414 = vmatpush.msrb.mxu1 %v2100_v16  ;;  %1813 = vmatpush.msra.mxu2 %v1341_v17  ;;  %v1900_v51 = vld [vmem:[%s12060_s7 + $0x140] sm:$0xff] }
 0x215   :  { %1836 = vmatpush.msra.mxu3 %v1405_v32  ;;  %1814 = vmatmul.f32.vlgmr.msra.gmra.mxu2 %v7364_v47  ;;  %v1948_v47 = vld [vmem:[%s12060_s7 + $0x2c0] sm:$0xff]  ;;  %v1981_v32 = vld [vmem:[%s12060_s7 + $0x3c8] sm:$0xff] }
 0x216   :  { %1837 = vmatmul.f32.vlgmr.msra.gmra.mxu3 %v7366_v8  ;;  %2392 = vmatpush.msrb.mxu0 %v1964_v48  ;;  %v2076_v8 = vld [vmem:[%s12060_s7 + $0x6c0] sm:$0xff]  ;;  %v2109_v48 = vld [vmem:[%s12060_s7 + $0x7c8] sm:$0xff] }
 0x217   :  { %2415 = vmatpush.msrb.mxu1 %v2092_v7  ;;  %1771 = vmatmul.f32.gmra.mxu0 %v7374_v14  ;;  %v1940_v14 = vld [vmem:[%s12060_s7 + $0x280] sm:$0xff] }
 0x218   :  { %1794 = vmatmul.f32.gmra.mxu1 %v7376_v0  ;;  %2393 = vmatpush.msrb.mxu0 %v1956_v18  ;;  %v2068_v0 = vld [vmem:[%s12060_s7 + $0x680] sm:$0xff]  ;;  %v1973_v18 = vld [vmem:[%s12060_s7 + $0x388] sm:$0xff] }
 0x219   :  { %2416 = vmatpush.msrb.mxu1 %v2084_v52  ;;  %2436 = vmatpush.msrb.mxu2 %v2236_v11  ;;  %v2028_v31 = vld [vmem:[%s12060_s7 + $0x540] sm:$0xff]  ;;  %v2101_v52 = vld [vmem:[%s12060_s7 + $0x788] sm:$0xff] }
 0x21a   :  { %2394 = vmatpush.msrb.mxu0 %v1948_v47  ;;  %v2188_v45 = vld [vmem:[%s12060_s7 + $0xa40] sm:$0xff]  ;;  %v1965_v11 = vld [vmem:[%s12060_s7 + $0x348] sm:$0xff] }
 0x21b   :  { %2417 = vmatpush.msrb.mxu1 %v2076_v8  ;;  %2437 = vmatpush.msrb.mxu2 %v2228_v40  ;;  %v1892_v10 = vld [vmem:[%s12060_s7 + $0x100] sm:$0xff]  ;;  %v2093_v47 = vld [vmem:[%s12060_s7 + $0x748] sm:$0xff] }
 0x21c   :  { %2395 = vmatpush.msrb.mxu0 %v1940_v14  ;;  %v2020_v58 = vld [vmem:[%s12060_s7 + $0x500] sm:$0xff]  ;;  %v1957_v8 = vld [vmem:[%s12060_s7 + $0x308] sm:$0xff] }
 0x21d   :  { %2418 = vmatpush.msrb.mxu1 %v2068_v0  ;;  %1817 = vmatmul.f32.gmra.mxu2 %v7420_v49  ;;  %v1916_v49 = vld [vmem:[%s12060_s7 + $0x1c0] sm:$0xff]  ;;  %v2085_v40 = vld [vmem:[%s12060_s7 + $0x708] sm:$0xff] }
 0x21e   :  { %1840 = vmatmul.f32.gmra.mxu3 %v7422_v12  ;;  %2396 = vmatpush.msrb.mxu0 %v1932_v62  ;;  %v2044_v12 = vld [vmem:[%s12060_s7 + $0x5c0] sm:$0xff]  ;;  %v1949_v62 = vld [vmem:[%s12060_s7 + $0x2c8] sm:$0xff] }
 0x21f   :  { %2419 = vmatpush.msrb.mxu1 %v2060_v15  ;;  %2438 = vmatpush.msrb.mxu2 %v2220_v9  ;;  %v2180_v29 = vld [vmem:[%s12060_s7 + $0xa00] sm:$0xff]  ;;  %v2077_v15 = vld [vmem:[%s12060_s7 + $0x6c8] sm:$0xff] }
 0x220   :  { %2397 = vmatpush.msrb.mxu0 %v1924_v63  ;;  %v1884_v53 = vld [vmem:[%s12060_s7 + $0xc0] sm:$0xff]  ;;  %v1941_v63 = vld [vmem:[%s12060_s7 + $0x288] sm:$0xff] }
 0x221   :  { %2420 = vmatpush.msrb.mxu1 %v2052_v55  ;;  %2439 = vmatpush.msrb.mxu2 %v2212_v23  ;;  %v2012_v3 = vld [vmem:[%s12060_s7 + $0x4c0] sm:$0xff]  ;;  %v2069_v55 = vld [vmem:[%s12060_s7 + $0x688] sm:$0xff] }
 0x222   :  { %2398 = vmatpush.msrb.mxu0 %v1916_v49  ;;  %v2172_v4 = vld [vmem:[%s12060_s7 + $0x9c0] sm:$0xff] }
 0x223   :  { %2421 = vmatpush.msrb.mxu1 %v2044_v12  ;;  %2440 = vmatpush.msrb.mxu2 %v2204_v39  ;;  %v1876_v5 = vld [vmem:[%s12060_s7 + $0x80] sm:$0xff]  ;;  %v1933_v12 = vld [vmem:[%s12060_s7 + $0x248] sm:$0xff] }
 0x224   :  { %2399 = vmatpush.msrb.mxu0 %v1908_v56  ;;  %v2004_v6 = vld [vmem:[%s12060_s7 + $0x480] sm:$0xff]  ;;  %v2061_v39 = vld [vmem:[%s12060_s7 + $0x648] sm:$0xff] }
 0x225   :  { %2422 = vmatpush.msrb.mxu1 %v2036_v24  ;;  %2441 = vmatpush.msrb.mxu2 %v2196_v44  ;;  %v2164_v46 = vld [vmem:[%s12060_s7 + $0x980] sm:$0xff]  ;;  %v1925_v56 = vld [vmem:[%s12060_s7 + $0x208] sm:$0xff] }
 0x226   :  { %2400 = vmatpush.msrb.mxu0 %v1900_v51  ;;  %v1868_v54 = vld [vmem:[%s12060_s7 + $0x40] sm:$0xff]  ;;  %v2053_v24 = vld [vmem:[%s12060_s7 + $0x608] sm:$0xff] }
 0x227   :  { %2423 = vmatpush.msrb.mxu1 %v2028_v31  ;;  %2442 = vmatpush.msrb.mxu2 %v2188_v45  ;;  %v1996_v30 = vld [vmem:[%s12060_s7 + $0x440] sm:$0xff]  ;;  %v1917_v44 = vld [vmem:[%s12060_s7 + $0x1c8] sm:$0xff] }
 0x228   :  { %2401 = vmatpush.msrb.mxu0 %v1892_v10  ;;  %v1860_v28 = vld [vmem:[%s12060_s7] sm:$0xff]  ;;  %v2045_v51 = vld [vmem:[%s12060_s7 + $0x5c8] sm:$0xff] }
 0x229   :  { %2424 = vmatpush.msrb.mxu1 %v2020_v58  ;;  %2443 = vmatpush.msrb.mxu2 %v2180_v29  ;;  %v1988_v16 = vld [vmem:[%s12060_s7 + $0x400] sm:$0xff]  ;;  %v2237_v31 = vld [vmem:[%s12060_s7 + $0xbc8] sm:$0xff] }
 0x22a   :  { %2402 = vmatpush.msrb.mxu0 %v1884_v53  ;;  %v2156_v17 = vld [vmem:[%s12060_s7 + $0x940] sm:$0xff]  ;;  %v2229_v10 = vld [vmem:[%s12060_s7 + $0xb88] sm:$0xff] }
 0x22b   :  { %2425 = vmatpush.msrb.mxu1 %v2012_v3  ;;  %2444 = vmatpush.msrb.mxu2 %v2172_v4  ;;  %v2148_v7 = vld [vmem:[%s12060_s7 + $0x900] sm:$0xff]  ;;  %v1909_v58 = vld [vmem:[%s12060_s7 + $0x188] sm:$0xff] }
 0x22c   :  { %2403 = vmatpush.msrb.mxu0 %v1876_v5  ;;  %v2140_v14 = vld [vmem:[%s12060_s7 + $0x8c0] sm:$0xff]  ;;  %v2037_v29 = vld [vmem:[%s12060_s7 + $0x588] sm:$0xff] }
 0x22d   :  { %2426 = vmatpush.msrb.mxu1 %v2004_v6  ;;  %2445 = vmatpush.msrb.mxu2 %v2164_v46  ;;  %v2132_v0 = vld [vmem:[%s12060_s7 + $0x880] sm:$0xff]  ;;  %v2221_v4 = vld [vmem:[%s12060_s7 + $0xb48] sm:$0xff] }
 0x22e   :  { %2404 = vmatpush.msrb.mxu0 %v1868_v54  ;;  %v2124_v9 = vld [vmem:[%s12060_s7 + $0x840] sm:$0xff]  ;;  %v1901_v6 = vld [vmem:[%s12060_s7 + $0x148] sm:$0xff] }
 0x22f   :  { %2427 = vmatpush.msrb.mxu1 %v1996_v30  ;;  %2446 = vmatpush.msrb.mxu2 %v2156_v17  ;;  %v2116_v23 = vld [vmem:[%s12060_s7 + $0x800] sm:$0xff]  ;;  %v2029_v46 = vld [vmem:[%s12060_s7 + $0x548] sm:$0xff] }
 0x230   :  { %2405 = vmatpush.msrb.mxu0 %v1860_v28  ;;  %v2364_v49 = vld [vmem:[%s12060_s7 + $0xfc0] sm:$0xff]  ;;  %v2213_v54 = vld [vmem:[%s12060_s7 + $0xb08] sm:$0xff] }
 0x231   :  { %2428 = vmatpush.msrb.mxu1 %v1988_v16  ;;  %2447 = vmatpush.msrb.mxu2 %v2148_v7  ;;  %v2356_v45 = vld [vmem:[%s12060_s7 + $0xf80] sm:$0xff]  ;;  %v1893_v16 = vld [vmem:[%s12060_s7 + $0x108] sm:$0xff] }
 0x232   :  { %2482 = vmatpush.msra.mxu0 %v1981_v32  ;;  %2459 = vmatpush.msrb.mxu3 %v2364_v49  ;;  %v2348_v53 = vld [vmem:[%s12060_s7 + $0xf40] sm:$0xff]  ;;  %v2021_v17 = vld [vmem:[%s12060_s7 + $0x508] sm:$0xff] }
 0x233   :  { %2505 = vmatpush.msra.mxu1 %v2109_v48  ;;  %2448 = vmatpush.msrb.mxu2 %v2140_v14  ;;  %v7996_v3 = vld [vmem:[%s12059_s6] sm:$0xf]  ;;  %v1885_v48 = vld [vmem:[%s12060_s7 + $0xc8] sm:$0xff] }
 0x234   :  { %2483 = vmatpush.msra.mxu0 %v1973_v18  ;;  %2460 = vmatpush.msrb.mxu3 %v2356_v45  ;;  %v2340_v5 = vld [vmem:[%s12060_s7 + $0xf00] sm:$0xff]  ;;  %v1468_v28 = vperm.slane %v7996_v3, 0  ;;  %v1877_v7 = vld [vmem:[%s12060_s7 + $0x88] sm:$0xff] }
 0x235   :  { %2506 = vmatpush.msra.mxu1 %v2101_v52  ;;  %2449 = vmatpush.msrb.mxu2 %v2132_v0  ;;  %v2332_v30 = vld [vmem:[%s12060_s7 + $0xec0] sm:$0xff]  ;;  %v2013_v52 = vld [vmem:[%s12060_s7 + $0x4c8] sm:$0xff] }
 0x236   :  { %2484 = vmatpush.msra.mxu0 %v1965_v11  ;;  %2461 = vmatpush.msrb.mxu3 %v2348_v53  ;;  %v2205_v11 = vld [vmem:[%s12060_s7 + $0xac8] sm:$0xff]  ;;  %v2316_v0 = vld [vmem:[%s12060_s7 + $0xe40] sm:$0xff] }
 0x237   :  { %2507 = vmatpush.msra.mxu1 %v2093_v47  ;;  %2450 = vmatpush.msrb.mxu2 %v2124_v9  ;;  %v2324_v47 = vld [vmem:[%s12060_s7 + $0xe80] sm:$0xff]  ;;  %v1869_v14 = vld [vmem:[%s12060_s7 + $0x48] sm:$0xff] }
 0x238   :  { %2485 = vmatpush.msra.mxu0 %v1957_v8  ;;  %2462 = vmatpush.msrb.mxu3 %v2340_v5  ;;  %v2005_v8 = vld [vmem:[%s12060_s7 + $0x488] sm:$0xff]  ;;  %v2292_v53 = vld [vmem:[%s12060_s7 + $0xd80] sm:$0xff] }
 0x239   :  { %2508 = vmatpush.msra.mxu1 %v2085_v40  ;;  %2451 = vmatpush.msrb.mxu2 %v2116_v23  ;;  %v1493_v32 = vpop.f32.mrf.mxu0  ;;  %v2197_v40 = vld [vmem:[%s12060_s7 + $0xa88] sm:$0xff]  ;;  %v2308_v23 = vld [vmem:[%s12060_s7 + $0xe00] sm:$0xff] }
 0x23a   :  { %2486 = vmatpush.msra.mxu0 %v1949_v62  ;;  %2463 = vmatpush.msrb.mxu3 %v2332_v30  ;;  %v1494_v18 = vadd.f32 %v1493_v32, %v1468_v28  ;;  %v1516_v62 = vpop.f32.mrf.mxu1  ;;  %v2173_v45 = vld [vmem:[%s12060_s7 + $0x9c8] sm:$0xff]  ;;  %v2284_v5 = vld [vmem:[%s12060_s7 + $0xd40] sm:$0xff] }
 0x23b   :  { %2509 = vmatpush.msra.mxu1 %v2077_v15  ;;  %2528 = vmatpush.msra.mxu2 %v2237_v31  ;;  %v1861_v15 = vld [vmem:[%s12060_s7 + $0x8] sm:$0xff] }
 0x23c   :  { %2487 = vmatpush.msra.mxu0 %v1941_v63  ;;  %2464 = vmatpush.msrb.mxu3 %v2324_v47  ;;  %v1517_v9 = vadd.f32 %v1516_v62, %v1494_v18  ;;  %v1997_v63 = vld [vmem:[%s12060_s7 + $0x448] sm:$0xff] }
 0x23d   :  { %2510 = vmatpush.msra.mxu1 %v2069_v55  ;;  %2529 = vmatpush.msra.mxu2 %v2229_v10  ;;  %v2189_v55 = vld [vmem:[%s12060_s7 + $0xa48] sm:$0xff] }
 0x23e   :  { %2488 = vmatpush.msra.mxu0 %v1933_v12  ;;  %2465 = vmatpush.msrb.mxu3 %v2316_v0  ;;  %v1989_v12 = vld [vmem:[%s12060_s7 + $0x408] sm:$0xff]  ;;  %v2260_v0 = vld [vmem:[%s12060_s7 + $0xc80] sm:$0xff] }
 0x23f   :  { %2511 = vmatpush.msra.mxu1 %v2061_v39  ;;  %2530 = vmatpush.msra.mxu2 %v2221_v4  ;;  %v2181_v39 = vld [vmem:[%s12060_s7 + $0xa08] sm:$0xff] }
 0x240   :  { %2489 = vmatpush.msra.mxu0 %v1925_v56  ;;  %2466 = vmatpush.msrb.mxu3 %v2308_v23  ;;  %v2165_v4 = vld [vmem:[%s12060_s7 + $0x988] sm:$0xff] }
 0x241   :  { %2512 = vmatpush.msra.mxu1 %v2053_v24  ;;  %2531 = vmatpush.msra.mxu2 %v2213_v54  ;;  %v2300_v24 = vld [vmem:[%s12060_s7 + $0xdc0] sm:$0xff]  ;;  %v2157_v54 = vld [vmem:[%s12060_s7 + $0x948] sm:$0xff] }
 0x242   :  { %2490 = vmatpush.msra.mxu0 %v1917_v44  ;;  %2467 = vmatpush.msrb.mxu3 %v2300_v24  ;;  %v2149_v32 = vld [vmem:[%s12060_s7 + $0x908] sm:$0xff] }
 0x243   :  { %2513 = vmatpush.msra.mxu1 %v2045_v51  ;;  %2532 = vmatpush.msra.mxu2 %v2205_v11  ;;  %v1496_v44 = vpop.f32.mrf.mxu0  ;;  %v2133_v62 = vld [vmem:[%s12060_s7 + $0x888] sm:$0xff] }
 0x244   :  { %2491 = vmatpush.msra.mxu0 %v1909_v58  ;;  %v1497_v10 = vadd.f32 %v1496_v44, %v1468_v28  ;;  %2468 = vmatpush.msrb.mxu3 %v2292_v53  ;;  %v1966_v28 = vld [vmem:[%s12060_s7 + $0x350] sm:$0xff]  ;;  %v2125_v23 = vld [vmem:[%s12060_s7 + $0x848] sm:$0xff] }
 0x245   :  { %2514 = vmatpush.msra.mxu1 %v2037_v29  ;;  %2533 = vmatpush.msra.mxu2 %v2197_v40  ;;  %v1982_v29 = vld [vmem:[%s12060_s7 + $0x3d0] sm:$0xff]  ;;  %v2365_v24 = vld [vmem:[%s12060_s7 + $0xfc8] sm:$0xff] }
 0x246   :  { %2492 = vmatpush.msra.mxu0 %v1901_v6  ;;  %v1539_v49 = vpop.f32.mrf.mxu2  ;;  %v1562_v51 = vpop.f32.mrf.mxu3  ;;  %v1974_v6 = vld [vmem:[%s12060_s7 + $0x390] sm:$0xff]  ;;  %2469 = vmatpush.msrb.mxu3 %v2284_v5  ;;  %v2349_v5 = vld [vmem:[%s12060_s7 + $0xf48] sm:$0xff] }
 0x247   :  { %2515 = vmatpush.msra.mxu1 %v2029_v46  ;;  %v1540_v56 = vadd.f32 %v1539_v49, %v1517_v9  ;;  %2534 = vmatpush.msra.mxu2 %v2189_v55  ;;  %v1519_v46 = vpop.f32.mrf.mxu1  ;;  %v2252_v55 = vld [vmem:[%s12060_s7 + $0xc40] sm:$0xff]  ;;  %v1934_v49 = vld [vmem:[%s12060_s7 + $0x250] sm:$0xff] }
 0x248   :  { %2493 = vmatpush.msra.mxu0 %v1893_v16  ;;  %v1520_v30 = vadd.f32 %v1519_v46, %v1497_v10  ;;  %v2276_v16 = vld [vmem:[%s12060_s7 + $0xd00] sm:$0xff]  ;;  %v1910_v46 = vld [vmem:[%s12060_s7 + $0x190] sm:$0xff] }
 0x249   :  { %2516 = vmatpush.msra.mxu1 %v2021_v17  ;;  %v1563_v31 = vadd.f32 %v1562_v51, %v1540_v56  ;;  %2535 = vmatpush.msra.mxu2 %v2181_v39  ;;  %v2117_v56 = vld [vmem:[%s12060_s7 + $0x808] sm:$0xff]  ;;  %v1926_v51 = vld [vmem:[%s12060_s7 + $0x210] sm:$0xff] }
 0x24a   :  { %2494 = vmatpush.msra.mxu0 %v1885_v48  ;;  %2470 = vmatpush.msrb.mxu3 %v2276_v16  ;;  %v2268_v48 = vld [vmem:[%s12060_s7 + $0xcc0] sm:$0xff]  ;;  %v2110_v16 = vld [vmem:[%s12060_s7 + $0x7d0] sm:$0xff] }
 0x24b   :  { %2517 = vmatpush.msra.mxu1 %v2013_v52  ;;  %v8074_v58 = vmax.f32 %v1563_v31, 0.0  ;;  %2536 = vmatpush.msra.mxu2 %v2173_v45  ;;  %v1958_v52 = vld [vmem:[%s12060_s7 + $0x310] sm:$0xff]  ;;  %v2357_v45 = vld [vmem:[%s12060_s7 + $0xf88] sm:$0xff] }
 0x24c   :  { %2495 = vmatpush.msra.mxu0 %v1877_v7  ;;  %v1469_v7 = vperm.slane %v7996_v3, 1  ;;  %2471 = vmatpush.msrb.mxu3 %v2268_v48  ;;  %v2102_v48 = vld [vmem:[%s12060_s7 + $0x790] sm:$0xff] }
 0x24d   :  { %2518 = vmatpush.msra.mxu1 %v2005_v8  ;;  %1852 = vst [vmem:[#allocation2] sm:$0xff] %v8074_v58  ;;  %2406 = vmatmul.f32.vlgmr.msrb.gmra.mxu0 %v8074_v58  ;;  %v1585_v11 = vpop.f32.mrf.mxu0  ;;  %v2141_v8 = vld [vmem:[%s12060_s7 + $0x8c8] sm:$0xff] }
 0x24e   :  { %2496 = vmatpush.msra.mxu0 %v1869_v14  ;;  %2537 = vmatpush.msra.mxu2 %v2165_v4  ;;  %v1950_v14 = vld [vmem:[%s12060_s7 + $0x2d0] sm:$0xff] }
 0x24f   :  { %2519 = vmatpush.msra.mxu1 %v1997_v63  ;;  %2472 = vmatpush.msrb.mxu3 %v2260_v0  ;;  %v1942_v63 = vld [vmem:[%s12060_s7 + $0x290] sm:$0xff]  ;;  %v1608_v39 = vpop.f32.mrf.mxu1 }
 0x250   :  { %2497 = vmatpush.msra.mxu0 %v1861_v15  ;;  %2538 = vmatpush.msra.mxu2 %v2157_v54  ;;  %v1542_v17 = vpop.f32.mrf.mxu2  ;;  %v1565_v47 = vpop.f32.mrf.mxu3  ;;  %v1586_v15 = vadd.f32 %v1585_v11, %v1469_v7  ;;  %v2341_v54 = vld [vmem:[%s12060_s7 + $0xf08] sm:$0xff] }
 0x251   :  { %2520 = vmatpush.msra.mxu1 %v1989_v12  ;;  %v1543_v18 = vadd.f32 %v1542_v17, %v1520_v30  ;;  %2473 = vmatpush.msrb.mxu3 %v2252_v55  ;;  %v2244_v12 = vld [vmem:[%s12060_s7 + $0xc00] sm:$0xff]  ;;  %v1902_v17 = vld [vmem:[%s12060_s7 + $0x150] sm:$0xff]  ;;  %v2309_v55 = vld [vmem:[%s12060_s7 + $0xe08] sm:$0xff] }
 0x252   :  { %2574 = vmatpush.msrb.mxu0 %v1982_v29  ;;  %2539 = vmatpush.msra.mxu2 %v2149_v32  ;;  %v1609_v44 = vadd.f32 %v1608_v39, %v1586_v15  ;;  %v1918_v29 = vld [vmem:[%s12060_s7 + $0x1d0] sm:$0xff]  ;;  %v2333_v32 = vld [vmem:[%s12060_s7 + $0xec8] sm:$0xff] }
 0x253   :  { %v1566_v40 = vadd.f32 %v1565_v47, %v1543_v18  ;;  %2474 = vmatpush.msrb.mxu3 %v2244_v12  ;;  %v2325_v18 = vld [vmem:[%s12060_s7 + $0xe88] sm:$0xff]  ;;  %v2094_v47 = vld [vmem:[%s12060_s7 + $0x750] sm:$0xff] }
 0x254   :  { %2575 = vmatpush.msrb.mxu0 %v1974_v6  ;;  %2540 = vmatpush.msra.mxu2 %v2141_v8  ;;  %v1886_v8 = vld [vmem:[%s12060_s7 + $0xd0] sm:$0xff] }
 0x255   :  { %v8124_v9 = vmax.f32 %v1566_v40, 0.0  ;;  %2551 = vmatpush.msra.mxu3 %v2365_v24  ;;  %v1588_v53 = vpop.f32.mrf.mxu0  ;;  %v1878_v15 = vld [vmem:[%s12060_s7 + $0x90] sm:$0xff]  ;;  %v2301_v24 = vld [vmem:[%s12060_s7 + $0xdc8] sm:$0xff] }
 0x256   :  { %2576 = vmatpush.msrb.mxu0 %v1966_v28  ;;  %2541 = vmatpush.msra.mxu2 %v2133_v62  ;;  %v1589_v30 = vadd.f32 %v1588_v53, %v1469_v7  ;;  %v1894_v7 = vld [vmem:[%s12060_s7 + $0x110] sm:$0xff] }
 0x257   :  { %1856 = vst [vmem:[#allocation2 + $0x20] sm:$0xff] %v8124_v9  ;;  %2409 = vmatmul.f32.gmra.mxu0 %v8124_v9  ;;  %2552 = vmatpush.msra.mxu3 %v2357_v45  ;;  %v2086_v62 = vld [vmem:[%s12060_s7 + $0x710] sm:$0xff]  ;;  %v2293_v45 = vld [vmem:[%s12060_s7 + $0xd88] sm:$0xff] }
 0x258   :  { %2577 = vmatpush.msrb.mxu0 %v1958_v52  ;;  %2542 = vmatpush.msra.mxu2 %v2125_v23  ;;  %v1631_v31 = vpop.f32.mrf.mxu2  ;;  %v1611_v52 = vpop.f32.mrf.mxu1  ;;  %v1470_v23 = vperm.slane %v7996_v3, 2  ;;  %v2078_v12 = vld [vmem:[%s12060_s7 + $0x6d0] sm:$0xff] }
 0x259   :  { %v1632_v10 = vadd.f32 %v1631_v31, %v1609_v44  ;;  %v1654_v4 = vpop.f32.mrf.mxu3  ;;  %2553 = vmatpush.msra.mxu3 %v2349_v5  ;;  %v1612_v11 = vadd.f32 %v1611_v52, %v1589_v30  ;;  %v1870_v39 = vld [vmem:[%s12060_s7 + $0x50] sm:$0xff]  ;;  %v1959_v52 = vld [vmem:[%s12060_s7 + $0x318] sm:$0xff] }
 0x25a   :  { %2578 = vmatpush.msrb.mxu0 %v1950_v14  ;;  %2543 = vmatpush.msra.mxu2 %v2117_v56  ;;  %v2317_v14 = vld [vmem:[%s12060_s7 + $0xe48] sm:$0xff]  ;;  %v1862_v31 = vld [vmem:[%s12060_s7 + $0x10] sm:$0xff] }
 0x25b   :  { %v1655_v6 = vadd.f32 %v1654_v4, %v1632_v10  ;;  %2554 = vmatpush.msra.mxu3 %v2341_v54  ;;  %v1983_v10 = vld [vmem:[%s12060_s7 + $0x3d8] sm:$0xff]  ;;  %v2062_v53 = vld [vmem:[%s12060_s7 + $0x650] sm:$0xff]  ;;  %v2285_v4 = vld [vmem:[%s12060_s7 + $0xd48] sm:$0xff] }
 0x25c   :  { %2579 = vmatpush.msrb.mxu0 %v1942_v63  ;;  %v2054_v5 = vld [vmem:[%s12060_s7 + $0x610] sm:$0xff]  ;;  %v2277_v54 = vld [vmem:[%s12060_s7 + $0xd08] sm:$0xff] }
 0x25d   :  { %v8167_v28 = vmax.f32 %v1655_v6, 0.0  ;;  %2555 = vmatpush.msra.mxu3 %v2333_v32  ;;  %v1975_v6 = vld [vmem:[%s12060_s7 + $0x398] sm:$0xff] }
 0x25e   :  { %2580 = vmatpush.msrb.mxu0 %v1934_v49 }
 0x25f   :  { %2498 = vmatmul.f32.vlgmr.msra.gmra.mxu0 %v8074_v58  ;;  %1853 = vst [vmem:[#allocation2 + $0x8] sm:$0xff] %v8167_v28  ;;  %2429 = vmatmul.f32.vlgmr.msrb.gmra.mxu1 %v8167_v28 }
 0x260   :  { %2581 = vmatpush.msrb.mxu0 %v1926_v51  ;;  %2597 = vmatpush.msrb.mxu1 %v2110_v16  ;;  %v1634_v40 = vpop.f32.mrf.mxu2  ;;  %v2070_v51 = vld [vmem:[%s12060_s7 + $0x690] sm:$0xff] }
 0x261   :  { %2556 = vmatpush.msra.mxu3 %v2325_v18  ;;  %v1635_v0 = vadd.f32 %v1634_v40, %v1612_v11  ;;  %v1657_v63 = vpop.f32.mrf.mxu3  ;;  %v2046_v16 = vld [vmem:[%s12060_s7 + $0x5d0] sm:$0xff] }
 0x262   :  { %2582 = vmatpush.msrb.mxu0 %v1918_v29  ;;  %2598 = vmatpush.msrb.mxu1 %v2102_v48  ;;  %v2269_v48 = vld [vmem:[%s12060_s7 + $0xcc8] sm:$0xff]  ;;  %v2038_v18 = vld [vmem:[%s12060_s7 + $0x590] sm:$0xff] }
 0x263   :  { %2557 = vmatpush.msra.mxu3 %v2317_v14  ;;  %v1658_v49 = vadd.f32 %v1657_v63, %v1635_v0  ;;  %v2030_v14 = vld [vmem:[%s12060_s7 + $0x550] sm:$0xff]  ;;  %v1951_v0 = vld [vmem:[%s12060_s7 + $0x2d8] sm:$0xff] }
 0x264   :  { %2583 = vmatpush.msrb.mxu0 %v1910_v46  ;;  %2599 = vmatpush.msrb.mxu1 %v2094_v47 }
 0x265   :  { %2558 = vmatpush.msra.mxu3 %v2309_v55  ;;  %v8219_v44 = vmax.f32 %v1658_v49, 0.0  ;;  %v2238_v55 = vld [vmem:[%s12060_s7 + $0xbd0] sm:$0xff] }
 0x266   :  { %2584 = vmatpush.msrb.mxu0 %v1902_v17  ;;  %2600 = vmatpush.msrb.mxu1 %v2086_v62  ;;  %v1967_v17 = vld [vmem:[%s12060_s7 + $0x358] sm:$0xff]  ;;  %v2253_v62 = vld [vmem:[%s12060_s7 + $0xc48] sm:$0xff]  ;;  %v2022_v49 = vld [vmem:[%s12060_s7 + $0x510] sm:$0xff] }
 0x267   :  { %2501 = vmatmul.f32.gmra.mxu0 %v8124_v9  ;;  %v1677_v56 = vpop.f32.mrf.mxu0  ;;  %2559 = vmatpush.msra.mxu3 %v2301_v24  ;;  %1857 = vst [vmem:[#allocation2 + $0x28] sm:$0xff] %v8219_v44 }
 0x268   :  { %2585 = vmatpush.msrb.mxu0 %v1894_v7  ;;  %2601 = vmatpush.msrb.mxu1 %v2078_v12  ;;  %v1678_v29 = vadd.f32 %v1677_v56, %v1470_v23  ;;  %v1943_v12 = vld [vmem:[%s12060_s7 + $0x298] sm:$0xff]  ;;  %v2014_v56 = vld [vmem:[%s12060_s7 + $0x4d0] sm:$0xff] }
 0x269   :  { %2432 = vmatmul.f32.gmra.mxu1 %v8219_v44  ;;  %2560 = vmatpush.msra.mxu3 %v2293_v45  ;;  %v2222_v45 = vld [vmem:[%s12060_s7 + $0xb50] sm:$0xff] }
 0x26a   :  { %2586 = vmatpush.msrb.mxu0 %v1886_v8  ;;  %2602 = vmatpush.msrb.mxu1 %v2070_v51  ;;  %v1700_v46 = vpop.f32.mrf.mxu1  ;;  %v2261_v8 = vld [vmem:[%s12060_s7 + $0xc88] sm:$0xff]  ;;  %v1935_v51 = vld [vmem:[%s12060_s7 + $0x258] sm:$0xff] }
 0x26b   :  { %2561 = vmatpush.msra.mxu3 %v2285_v4  ;;  %v1701_v30 = vadd.f32 %v1700_v46, %v1678_v29 }
 0x26c   :  { %2587 = vmatpush.msrb.mxu0 %v1878_v15  ;;  %2603 = vmatpush.msrb.mxu1 %v2062_v53  ;;  %v1927_v53 = vld [vmem:[%s12060_s7 + $0x218] sm:$0xff] }
 0x26d   :  { %2562 = vmatpush.msra.mxu3 %v2277_v54  ;;  %v1919_v54 = vld [vmem:[%s12060_s7 + $0x1d8] sm:$0xff] }
 0x26e   :  { %2588 = vmatpush.msrb.mxu0 %v1870_v39  ;;  %2604 = vmatpush.msrb.mxu1 %v2054_v5  ;;  %v2230_v39 = vld [vmem:[%s12060_s7 + $0xb90] sm:$0xff] }
 0x26f   :  { %2563 = vmatpush.msra.mxu3 %v2269_v48  ;;  %v2214_v5 = vld [vmem:[%s12060_s7 + $0xb10] sm:$0xff] }
 0x270   :  { %2589 = vmatpush.msrb.mxu0 %v1862_v31  ;;  %2605 = vmatpush.msrb.mxu1 %v2046_v16  ;;  %v2206_v16 = vld [vmem:[%s12060_s7 + $0xad0] sm:$0xff] }
 0x271   :  { %2590 = vmatmul.f32.vlgmr.msrb.gmra.mxu0 %v8074_v58  ;;  %2521 = vmatmul.f32.vlgmr.msra.gmra.mxu1 %v8167_v28 }
 0x272   :  { %2666 = vmatpush.msra.mxu0 %v1983_v10  ;;  %2564 = vmatpush.msra.mxu3 %v2261_v8  ;;  %v2006_v10 = vld [vmem:[%s12060_s7 + $0x490] sm:$0xff] }
 0x273   :  { %2606 = vmatpush.msrb.mxu1 %v2038_v18  ;;  %v1911_v18 = vld [vmem:[%s12060_s7 + $0x198] sm:$0xff]  ;;  %v2182_v8 = vld [vmem:[%s12060_s7 + $0xa10] sm:$0xff] }
 0x274   :  { %2667 = vmatpush.msra.mxu0 %v1975_v6  ;;  %v1680_v11 = vpop.f32.mrf.mxu0  ;;  %2565 = vmatpush.msra.mxu3 %v2253_v62  ;;  %v1998_v6 = vld [vmem:[%s12060_s7 + $0x450] sm:$0xff]  ;;  %v2087_v62 = vld [vmem:[%s12060_s7 + $0x718] sm:$0xff] }
 0x275   :  { %v1681_v15 = vadd.f32 %v1680_v11, %v1470_v23  ;;  %2607 = vmatpush.msrb.mxu1 %v2030_v14  ;;  %v2245_v23 = vld [vmem:[%s12060_s7 + $0xc08] sm:$0xff]  ;;  %v1703_v24 = vpop.f32.mrf.mxu1  ;;  %v2103_v11 = vld [vmem:[%s12060_s7 + $0x798] sm:$0xff] }
 0x276   :  { %2668 = vmatpush.msra.mxu0 %v1967_v17  ;;  %2566 = vmatpush.msra.mxu3 %v2245_v23  ;;  %v1990_v17 = vld [vmem:[%s12060_s7 + $0x410] sm:$0xff]  ;;  %v1895_v14 = vld [vmem:[%s12060_s7 + $0x118] sm:$0xff]  ;;  %v1471_v23 = vperm.slane %v7996_v3, 3 }
 0x277   :  { %v1723_v32 = vpop.f32.mrf.mxu2  ;;  %2608 = vmatpush.msrb.mxu1 %v2022_v49  ;;  %v1704_v31 = vadd.f32 %v1703_v24, %v1681_v15  ;;  %v2166_v49 = vld [vmem:[%s12060_s7 + $0x990] sm:$0xff]  ;;  %v2071_v24 = vld [vmem:[%s12060_s7 + $0x698] sm:$0xff] }
 0x278   :  { %v1724_v7 = vadd.f32 %v1723_v32, %v1701_v30  ;;  %v1746_v47 = vpop.f32.mrf.mxu3  ;;  %2669 = vmatpush.msra.mxu0 %v1959_v52  ;;  %v2111_v32 = vld [vmem:[%s12060_s7 + $0x7d8] sm:$0xff]  ;;  %v2190_v52 = vld [vmem:[%s12060_s7 + $0xa50] sm:$0xff] }
 0x279   :  { %2593 = vmatmul.f32.gmra.mxu0 %v8124_v9  ;;  %2609 = vmatpush.msrb.mxu1 %v2014_v56  ;;  %v2158_v56 = vld [vmem:[%s12060_s7 + $0x950] sm:$0xff]  ;;  %v1871_v3 = vld [vmem:[%s12060_s7 + $0x58] sm:$0xff] }
 0x27a   :  { %v1747_v40 = vadd.f32 %v1746_v47, %v1724_v7  ;;  %2670 = vmatpush.msra.mxu0 %v1951_v0  ;;  %2524 = vmatmul.f32.gmra.mxu1 %v8219_v44  ;;  %v2198_v7 = vld [vmem:[%s12060_s7 + $0xa90] sm:$0xff]  ;;  %v1903_v47 = vld [vmem:[%s12060_s7 + $0x158] sm:$0xff] }
 0x27b   :  { %2610 = vmatpush.msrb.mxu1 %v2006_v10  ;;  %v2174_v0 = vld [vmem:[%s12060_s7 + $0x9d0] sm:$0xff]  ;;  %v1863_v10 = vld [vmem:[%s12060_s7 + $0x18] sm:$0xff] }
 0x27c   :  { %v8279_v63 = vmax.f32 %v1747_v40, 0.0  ;;  %2671 = vmatpush.msra.mxu0 %v1943_v12  ;;  %v2095_v40 = vld [vmem:[%s12060_s7 + $0x758] sm:$0xff] }
 0x27d   :  { %2611 = vmatpush.msrb.mxu1 %v1998_v6  ;;  %v2079_v12 = vld [vmem:[%s12060_s7 + $0x6d8] sm:$0xff]  ;;  %v1984_v6 = vld [vmem:[%s12060_s7 + $0x3e0] sm:$0xff] }
 0x27e   :  { %1854 = vst [vmem:[#allocation2 + $0x10] sm:$0xff] %v8279_v63  ;;  %2452 = vmatmul.f32.vlgmr.msrb.gmra.mxu2 %v8279_v63  ;;  %2672 = vmatpush.msra.mxu0 %v1935_v51  ;;  %v2150_v51 = vld [vmem:[%s12060_s7 + $0x910] sm:$0xff] }
 0x27f   :  { %2620 = vmatpush.msrb.mxu2 %v2238_v55  ;;  %2612 = vmatpush.msrb.mxu1 %v1990_v17  ;;  %v1887_v55 = vld [vmem:[%s12060_s7 + $0xd8] sm:$0xff] }
 0x280   :  { %2673 = vmatpush.msra.mxu0 %v1927_v53  ;;  %v2142_v53 = vld [vmem:[%s12060_s7 + $0x8d0] sm:$0xff] }
 0x281   :  { %v1726_v29 = vpop.f32.mrf.mxu2  ;;  %2621 = vmatpush.msrb.mxu2 %v2230_v39  ;;  %2689 = vmatpush.msra.mxu1 %v2111_v32  ;;  %v1879_v39 = vld [vmem:[%s12060_s7 + $0x98] sm:$0xff]  ;;  %v2126_v32 = vld [vmem:[%s12060_s7 + $0x850] sm:$0xff] }
 0x282   :  { %v1727_v4 = vadd.f32 %v1726_v29, %v1704_v31  ;;  %v1749_v46 = vpop.f32.mrf.mxu3  ;;  %2674 = vmatpush.msra.mxu0 %v1919_v54  ;;  %2613 = vmatmul.f32.vlgmr.msrb.gmra.mxu1 %v8167_v28  ;;  %v2063_v31 = vld [vmem:[%s12060_s7 + $0x658] sm:$0xff] }
 0x283   :  { %2622 = vmatpush.msrb.mxu2 %v2222_v45  ;;  %2690 = vmatpush.msra.mxu1 %v2103_v11  ;;  %v2118_v11 = vld [vmem:[%s12060_s7 + $0x810] sm:$0xff] }
 0x284   :  { %v1750_v30 = vadd.f32 %v1749_v46, %v1727_v4  ;;  %2675 = vmatpush.msra.mxu0 %v1911_v18  ;;  %v2055_v4 = vld [vmem:[%s12060_s7 + $0x618] sm:$0xff] }
 0x285   :  { %2623 = vmatpush.msrb.mxu2 %v2214_v5  ;;  %2691 = vmatpush.msra.mxu1 %v2095_v40  ;;  %v2134_v5 = vld [vmem:[%s12060_s7 + $0x890] sm:$0xff] }
 0x286   :  { %v8333_v48 = vmax.f32 %v1750_v30, 0.0  ;;  %2676 = vmatpush.msra.mxu0 %v1903_v47  ;;  %v2047_v30 = vld [vmem:[%s12060_s7 + $0x5d8] sm:$0xff]  ;;  %v1968_v47 = vld [vmem:[%s12060_s7 + $0x360] sm:$0xff] }
 0x287   :  { %2624 = vmatpush.msrb.mxu2 %v2206_v16  ;;  %2692 = vmatpush.msra.mxu1 %v2087_v62  ;;  %v1960_v62 = vld [vmem:[%s12060_s7 + $0x320] sm:$0xff] }
 0x288   :  { %1858 = vst [vmem:[#allocation2 + $0x30] sm:$0xff] %v8333_v48  ;;  %2455 = vmatmul.f32.gmra.mxu2 %v8333_v48  ;;  %2677 = vmatpush.msra.mxu0 %v1895_v14  ;;  %v2239_v14 = vld [vmem:[%s12060_s7 + $0xbd8] sm:$0xff] }
 0x289   :  { %2625 = vmatpush.msrb.mxu2 %v2198_v7  ;;  %2693 = vmatpush.msra.mxu1 %v2079_v12  ;;  %v1976_v7 = vld [vmem:[%s12060_s7 + $0x3a0] sm:$0xff]  ;;  %v2231_v12 = vld [vmem:[%s12060_s7 + $0xb98] sm:$0xff] }
 0x28a   :  { %2678 = vmatpush.msra.mxu0 %v1887_v55  ;;  %2616 = vmatmul.f32.gmra.mxu1 %v8219_v44  ;;  %v2366_v55 = vld [vmem:[%s12060_s7 + $0xfd0] sm:$0xff] }
 0x28b   :  { %2626 = vmatpush.msrb.mxu2 %v2190_v52  ;;  %2694 = vmatpush.msra.mxu1 %v2071_v24  ;;  %v2039_v52 = vld [vmem:[%s12060_s7 + $0x598] sm:$0xff] }
 0x28c   :  { %v1769_v15 = vpop.f32.mrf.mxu0  ;;  %2679 = vmatpush.msra.mxu0 %v1879_v39 }
 0x28d   :  { %2627 = vmatpush.msrb.mxu2 %v2182_v8  ;;  %v1770_v45 = vadd.f32 %v1769_v15, %v1471_v23  ;;  %v1792_v29 = vpop.f32.mrf.mxu1  ;;  %2695 = vmatpush.msra.mxu1 %v2063_v31 }
 0x28e   :  { %2680 = vmatpush.msra.mxu0 %v1871_v3  ;;  %v2223_v3 = vld [vmem:[%s12060_s7 + $0xb58] sm:$0xff] }
 0x28f   :  { %2628 = vmatpush.msrb.mxu2 %v2174_v0  ;;  %v1793_v46 = vadd.f32 %v1792_v29, %v1770_v45  ;;  %2696 = vmatpush.msra.mxu1 %v2055_v4  ;;  %v2031_v0 = vld [vmem:[%s12060_s7 + $0x558] sm:$0xff]  ;;  %v2350_v45 = vld [vmem:[%s12060_s7 + $0xf50] sm:$0xff]  ;;  %v1944_v4 = vld [vmem:[%s12060_s7 + $0x2a0] sm:$0xff] }
 0x290   :  { %2544 = vmatmul.f32.vlgmr.msra.gmra.mxu2 %v8279_v63  ;;  %2681 = vmatpush.msra.mxu0 %v1863_v10  ;;  %v2015_v10 = vld [vmem:[%s12060_s7 + $0x4d8] sm:$0xff] }
 0x291   :  { %2629 = vmatpush.msrb.mxu2 %v2166_v49  ;;  %2682 = vmatmul.f32.vlgmr.msra.gmra.mxu0 %v8074_v58 }
 0x292   :  { %2758 = vmatpush.msrb.mxu0 %v1984_v6  ;;  %2697 = vmatpush.msra.mxu1 %v2047_v30  ;;  %v2342_v6 = vld [vmem:[%s12060_s7 + $0xf10] sm:$0xff] }
 0x293   :  { %2630 = vmatpush.msrb.mxu2 %v2158_v56  ;;  %v2358_v56 = vld [vmem:[%s12060_s7 + $0xf90] sm:$0xff] }
 0x294   :  { %v1772_v54 = vpop.f32.mrf.mxu0  ;;  %2759 = vmatpush.msrb.mxu0 %v1976_v7  ;;  %2698 = vmatpush.msra.mxu1 %v2039_v52  ;;  %v2326_v7 = vld [vmem:[%s12060_s7 + $0xe90] sm:$0xff]  ;;  %v2191_v52 = vld [vmem:[%s12060_s7 + $0xa58] sm:$0xff] }
 0x295   :  { %2631 = vmatpush.msrb.mxu2 %v2150_v51  ;;  %v1773_v8 = vadd.f32 %v1772_v54, %v1471_v23  ;;  %v1795_v49 = vpop.f32.mrf.mxu1  ;;  %v2023_v23 = vld [vmem:[%s12060_s7 + $0x518] sm:$0xff]  ;;  %v1952_v51 = vld [vmem:[%s12060_s7 + $0x2e0] sm:$0xff] }
 0x296   :  { %2760 = vmatpush.msrb.mxu0 %v1968_v47  ;;  %2699 = vmatpush.msra.mxu1 %v2031_v0  ;;  %v2207_v54 = vld [vmem:[%s12060_s7 + $0xad8] sm:$0xff]  ;;  %v2318_v47 = vld [vmem:[%s12060_s7 + $0xe50] sm:$0xff]  ;;  %v1920_v0 = vld [vmem:[%s12060_s7 + $0x1e0] sm:$0xff] }
 0x297   :  { %2632 = vmatpush.msrb.mxu2 %v2142_v53  ;;  %v1796_v39 = vadd.f32 %v1795_v49, %v1773_v8  ;;  %v2215_v53 = vld [vmem:[%s12060_s7 + $0xb18] sm:$0xff] }
 0x298   :  { %v1815_v16 = vpop.f32.mrf.mxu2  ;;  %2547 = vmatmul.f32.gmra.mxu2 %v8333_v48  ;;  %2761 = vmatpush.msrb.mxu0 %v1960_v62  ;;  %v1991_v8 = vld [vmem:[%s12060_s7 + $0x418] sm:$0xff]  ;;  %v2112_v62 = vld [vmem:[%s12060_s7 + $0x7e0] sm:$0xff] }
 0x299   :  { %v1838_v17 = vpop.f32.mrf.mxu3  ;;  %v1816_v18 = vadd.f32 %v1815_v16, %v1793_v46  ;;  %2633 = vmatpush.msrb.mxu2 %v2134_v5  ;;  %2700 = vmatpush.msra.mxu1 %v2023_v23  ;;  %v2007_v46 = vld [vmem:[%s12060_s7 + $0x498] sm:$0xff]  ;;  %v2334_v16 = vld [vmem:[%s12060_s7 + $0xed0] sm:$0xff]  ;;  %v2104_v23 = vld [vmem:[%s12060_s7 + $0x7a0] sm:$0xff] }
 0x29a   :  { %2685 = vmatmul.f32.gmra.mxu0 %v8124_v9  ;;  %v2175_v49 = vld [vmem:[%s12060_s7 + $0x9d8] sm:$0xff] }
 0x29b   :  { %v1839_v40 = vadd.f32 %v1838_v17, %v1816_v18  ;;  %2634 = vmatpush.msrb.mxu2 %v2126_v32  ;;  %2762 = vmatpush.msrb.mxu0 %v1952_v51  ;;  %v2199_v17 = vld [vmem:[%s12060_s7 + $0xa98] sm:$0xff]  ;;  %v1936_v32 = vld [vmem:[%s12060_s7 + $0x260] sm:$0xff]  ;;  %v2286_v51 = vld [vmem:[%s12060_s7 + $0xd50] sm:$0xff] }
 0x29c   :  { %2701 = vmatpush.msra.mxu1 %v2015_v10  ;;  %v1999_v18 = vld [vmem:[%s12060_s7 + $0x458] sm:$0xff]  ;;  %v2088_v10 = vld [vmem:[%s12060_s7 + $0x720] sm:$0xff] }
 0x29d   :  { %v8442_v15 = vmax.f32 %v1839_v40, 0.0  ;;  %2635 = vmatpush.msrb.mxu2 %v2118_v11  ;;  %2763 = vmatpush.msrb.mxu0 %v1944_v4  ;;  %v1928_v11 = vld [vmem:[%s12060_s7 + $0x220] sm:$0xff]  ;;  %v2183_v40 = vld [vmem:[%s12060_s7 + $0xa18] sm:$0xff]  ;;  %v2270_v4 = vld [vmem:[%s12060_s7 + $0xcd0] sm:$0xff] }
 0x29e   :  { %2702 = vmatpush.msra.mxu1 %v2007_v46  ;;  %v2143_v46 = vld [vmem:[%s12060_s7 + $0x8d8] sm:$0xff] }
 0x29f   :  { %2712 = vmatpush.msra.mxu2 %v2239_v14  ;;  %1855 = vst [vmem:[#allocation2 + $0x18] sm:$0xff] %v8442_v15  ;;  %2475 = vmatmul.f32.vlgmr.msrb.gmra.mxu3 %v8442_v15  ;;  %v2310_v14 = vld [vmem:[%s12060_s7 + $0xe10] sm:$0xff] }
 0x2a0   :  { %2643 = vmatpush.msrb.mxu3 %v2366_v55  ;;  %v1818_v24 = vpop.f32.mrf.mxu2  ;;  %2636 = vmatmul.f32.vlgmr.msrb.gmra.mxu2 %v8279_v63  ;;  %v2302_v55 = vld [vmem:[%s12060_s7 + $0xdd0] sm:$0xff] }
 0x2a1   :  { %v1819_v31 = vadd.f32 %v1818_v24, %v1796_v39  ;;  %2713 = vmatpush.msra.mxu2 %v2231_v12  ;;  %v1841_v29 = vpop.f32.mrf.mxu3  ;;  %2764 = vmatpush.msrb.mxu0 %v1936_v32  ;;  %v1912_v12 = vld [vmem:[%s12060_s7 + $0x1a0] sm:$0xff]  ;;  %v2294_v39 = vld [vmem:[%s12060_s7 + $0xd90] sm:$0xff]  ;;  %v2135_v32 = vld [vmem:[%s12060_s7 + $0x898] sm:$0xff] }
 0x2a2   :  { %2644 = vmatpush.msrb.mxu3 %v2358_v56  ;;  %2703 = vmatpush.msra.mxu1 %v1999_v18  ;;  %v2167_v56 = vld [vmem:[%s12060_s7 + $0x998] sm:$0xff]  ;;  %v1904_v24 = vld [vmem:[%s12060_s7 + $0x160] sm:$0xff] }
 0x2a3   :  { %v1842_v5 = vadd.f32 %v1841_v29, %v1819_v31  ;;  %2714 = vmatpush.msra.mxu2 %v2223_v3  ;;  %2765 = vmatpush.msrb.mxu0 %v1928_v11  ;;  %v2096_v3 = vld [vmem:[%s12060_s7 + $0x760] sm:$0xff]  ;;  %v2159_v31 = vld [vmem:[%s12060_s7 + $0x958] sm:$0xff]  ;;  %v2278_v29 = vld [vmem:[%s12060_s7 + $0xd10] sm:$0xff] }
 0x2a4   :  { %2645 = vmatpush.msrb.mxu3 %v2350_v45  ;;  %2704 = vmatpush.msra.mxu1 %v1991_v8  ;;  %v1896_v45 = vld [vmem:[%s12060_s7 + $0x120] sm:$0xff]  ;;  %v2127_v11 = vld [vmem:[%s12060_s7 + $0x858] sm:$0xff] }
 0x2a5   :  { %v8487_v30 = vmax.f32 %v1842_v5, 0.0  ;;  %2715 = vmatpush.msra.mxu2 %v2215_v53  ;;  %2705 = vmatmul.f32.vlgmr.msra.gmra.mxu1 %v8167_v28  ;;  %v2151_v53 = vld [vmem:[%s12060_s7 + $0x918] sm:$0xff]  ;;  %v1888_v5 = vld [vmem:[%s12060_s7 + $0xe0] sm:$0xff] }
 0x2a6   :  { %2646 = vmatpush.msrb.mxu3 %v2342_v6  ;;  %2766 = vmatpush.msrb.mxu0 %v1920_v0  ;;  %v2080_v6 = vld [vmem:[%s12060_s7 + $0x6e0] sm:$0xff]  ;;  %v2367_v0 = vld [vmem:[%s12060_s7 + $0xfd8] sm:$0xff] }
 0x2a7   :  { %1859 = vst [vmem:[#allocation2 + $0x38] sm:$0xff] %v8487_v30  ;;  %2478 = vmatmul.f32.gmra.mxu3 %v8487_v30  ;;  %2716 = vmatpush.msra.mxu2 %v2207_v54  ;;  %v2262_v54 = vld [vmem:[%s12060_s7 + $0xc90] sm:$0xff]  ;;  %v1872_v18 = vld [vmem:[%s12060_s7 + $0x60] sm:$0xff] }
 0x2a8   :  { %2647 = vmatpush.msrb.mxu3 %v2334_v16  ;;  %2639 = vmatmul.f32.gmra.mxu2 %v8333_v48  ;;  %v1880_v16 = vld [vmem:[%s12060_s7 + $0xa0] sm:$0xff] }
 0x2a9   :  { %2717 = vmatpush.msra.mxu2 %v2199_v17  ;;  %2781 = vmatpush.msrb.mxu1 %v2112_v62  ;;  %v2072_v17 = vld [vmem:[%s12060_s7 + $0x6a0] sm:$0xff]  ;;  %v1985_v62 = vld [vmem:[%s12060_s7 + $0x3e8] sm:$0xff] }
 0x2aa   :  { %2648 = vmatpush.msrb.mxu3 %v2326_v7  ;;  %2767 = vmatpush.msrb.mxu0 %v1912_v12  ;;  %v2254_v7 = vld [vmem:[%s12060_s7 + $0xc50] sm:$0xff]  ;;  %v1864_v8 = vld [vmem:[%s12060_s7 + $0x20] sm:$0xff]  ;;  %v2359_v12 = vld [vmem:[%s12060_s7 + $0xf98] sm:$0xff] }
 0x2ab   :  { %2718 = vmatpush.msra.mxu2 %v2191_v52  ;;  %2782 = vmatpush.msrb.mxu1 %v2104_v23  ;;  %v2064_v52 = vld [vmem:[%s12060_s7 + $0x660] sm:$0xff]  ;;  %v1977_v23 = vld [vmem:[%s12060_s7 + $0x3a8] sm:$0xff] }
 0x2ac   :  { %2649 = vmatpush.msrb.mxu3 %v2318_v47  ;;  %2768 = vmatpush.msrb.mxu0 %v1904_v24  ;;  %v2246_v47 = vld [vmem:[%s12060_s7 + $0xc10] sm:$0xff]  ;;  %v1969_v24 = vld [vmem:[%s12060_s7 + $0x368] sm:$0xff] }
 0x2ad   :  { %2719 = vmatpush.msra.mxu2 %v2183_v40  ;;  %2783 = vmatpush.msrb.mxu1 %v2096_v3  ;;  %v2056_v40 = vld [vmem:[%s12060_s7 + $0x620] sm:$0xff] }
 0x2ae   :  { %2650 = vmatpush.msrb.mxu3 %v2310_v14  ;;  %2769 = vmatpush.msrb.mxu0 %v1896_v45  ;;  %v2119_v14 = vld [vmem:[%s12060_s7 + $0x818] sm:$0xff]  ;;  %v2032_v3 = vld [vmem:[%s12060_s7 + $0x560] sm:$0xff]  ;;  %v1961_v45 = vld [vmem:[%s12060_s7 + $0x328] sm:$0xff] }
 0x2af   :  { %2567 = vmatmul.f32.vlgmr.msra.gmra.mxu3 %v8442_v15  ;;  %2720 = vmatpush.msra.mxu2 %v2175_v49  ;;  %v2240_v49 = vld [vmem:[%s12060_s7 + $0xbe0] sm:$0xff] }
 0x2b0   :  { %2651 = vmatpush.msrb.mxu3 %v2302_v55  ;;  %2784 = vmatpush.msrb.mxu1 %v2088_v10  ;;  %v2048_v55 = vld [vmem:[%s12060_s7 + $0x5e0] sm:$0xff] }
 0x2b1   :  { %2721 = vmatpush.msra.mxu2 %v2167_v56  ;;  %2708 = vmatmul.f32.gmra.mxu1 %v8219_v44  ;;  %v2351_v56 = vld [vmem:[%s12060_s7 + $0xf58] sm:$0xff]  ;;  %v2024_v10 = vld [vmem:[%s12060_s7 + $0x520] sm:$0xff] }
 0x2b2   :  { %2652 = vmatpush.msrb.mxu3 %v2294_v39  ;;  %2770 = vmatpush.msrb.mxu0 %v1888_v5  ;;  %v2040_v39 = vld [vmem:[%s12060_s7 + $0x5a0] sm:$0xff] }
 0x2b3   :  { %2722 = vmatpush.msra.mxu2 %v2159_v31  ;;  %2785 = vmatpush.msrb.mxu1 %v2080_v6  ;;  %v2343_v31 = vld [vmem:[%s12060_s7 + $0xf18] sm:$0xff]  ;;  %v2016_v5 = vld [vmem:[%s12060_s7 + $0x4e0] sm:$0xff] }
 0x2b4   :  { %2653 = vmatpush.msrb.mxu3 %v2286_v51  ;;  %2771 = vmatpush.msrb.mxu0 %v1880_v16  ;;  %v2224_v51 = vld [vmem:[%s12060_s7 + $0xb60] sm:$0xff] }
 0x2b5   :  { %2723 = vmatpush.msra.mxu2 %v2151_v53  ;;  %2786 = vmatpush.msrb.mxu1 %v2072_v17  ;;  %v2335_v53 = vld [vmem:[%s12060_s7 + $0xed8] sm:$0xff]  ;;  %v2208_v6 = vld [vmem:[%s12060_s7 + $0xae0] sm:$0xff] }
 0x2b6   :  { %2654 = vmatpush.msrb.mxu3 %v2278_v29  ;;  %2772 = vmatpush.msrb.mxu0 %v1872_v18  ;;  %v2216_v29 = vld [vmem:[%s12060_s7 + $0xb20] sm:$0xff]  ;;  %v2319_v17 = vld [vmem:[%s12060_s7 + $0xe58] sm:$0xff] }
 0x2b7   :  { %2570 = vmatmul.f32.gmra.mxu3 %v8487_v30  ;;  %2724 = vmatpush.msra.mxu2 %v2143_v46  ;;  %v2327_v46 = vld [vmem:[%s12060_s7 + $0xe98] sm:$0xff]  ;;  %v2008_v16 = vld [vmem:[%s12060_s7 + $0x4a0] sm:$0xff] }
 0x2b8   :  { %2655 = vmatpush.msrb.mxu3 %v2270_v4  ;;  %2787 = vmatpush.msrb.mxu1 %v2064_v52  ;;  %v1953_v4 = vld [vmem:[%s12060_s7 + $0x2e8] sm:$0xff]  ;;  %v2192_v18 = vld [vmem:[%s12060_s7 + $0xa60] sm:$0xff]  ;;  %v2311_v52 = vld [vmem:[%s12060_s7 + $0xe18] sm:$0xff] }
 0x2b9   :  { %2725 = vmatpush.msra.mxu2 %v2135_v32  ;;  %2773 = vmatpush.msrb.mxu0 %v1864_v8  ;;  %v1937_v32 = vld [vmem:[%s12060_s7 + $0x268] sm:$0xff]  ;;  %v2184_v8 = vld [vmem:[%s12060_s7 + $0xa20] sm:$0xff] }
 0x2ba   :  { %2656 = vmatpush.msrb.mxu3 %v2262_v54  ;;  %2788 = vmatpush.msrb.mxu1 %v2056_v40  ;;  %v1945_v54 = vld [vmem:[%s12060_s7 + $0x2a8] sm:$0xff]  ;;  %v2303_v40 = vld [vmem:[%s12060_s7 + $0xdd8] sm:$0xff] }
 0x2bb   :  { %2726 = vmatpush.msra.mxu2 %v2127_v11  ;;  %2774 = vmatmul.f32.vlgmr.msrb.gmra.mxu0 %v8074_v58  ;;  %v2232_v58 = vld [vmem:[%s12060_s7 + $0xba0] sm:$0xff]  ;;  %v1929_v11 = vld [vmem:[%s12060_s7 + $0x228] sm:$0xff] }
 0x2bc   :  { %2657 = vmatpush.msrb.mxu3 %v2254_v7  ;;  %2850 = vmatpush.msra.mxu0 %v1985_v62  ;;  %v2000_v7 = vld [vmem:[%s12060_s7 + $0x460] sm:$0xff] }
 0x2bd   :  { %2727 = vmatpush.msra.mxu2 %v2119_v14  ;;  %2789 = vmatpush.msrb.mxu1 %v2048_v55  ;;  %v1921_v14 = vld [vmem:[%s12060_s7 + $0x1e8] sm:$0xff]  ;;  %v2176_v62 = vld [vmem:[%s12060_s7 + $0x9e0] sm:$0xff]  ;;  %v2295_v55 = vld [vmem:[%s12060_s7 + $0xd98] sm:$0xff] }
 0x2be   :  { %2658 = vmatpush.msrb.mxu3 %v2246_v47  ;;  %2728 = vmatmul.f32.vlgmr.msra.gmra.mxu2 %v8279_v63  ;;  %v1992_v47 = vld [vmem:[%s12060_s7 + $0x420] sm:$0xff] }
 0x2bf   :  { %2659 = vmatmul.f32.vlgmr.msrb.gmra.mxu3 %v8442_v15  ;;  %2804 = vmatpush.msrb.mxu2 %v2240_v49  ;;  %v1913_v49 = vld [vmem:[%s12060_s7 + $0x1a8] sm:$0xff] }
 0x2c0   :  { %2735 = vmatpush.msra.mxu3 %v2367_v0  ;;  %2851 = vmatpush.msra.mxu0 %v1977_v23  ;;  %v2113_v0 = vld [vmem:[%s12060_s7 + $0x7e8] sm:$0xff]  ;;  %v2168_v23 = vld [vmem:[%s12060_s7 + $0x9a0] sm:$0xff] }
 0x2c1   :  { %2790 = vmatpush.msrb.mxu1 %v2040_v39  ;;  %2805 = vmatpush.msrb.mxu2 %v2232_v58  ;;  %v2287_v39 = vld [vmem:[%s12060_s7 + $0xd58] sm:$0xff]  ;;  %v2097_v58 = vld [vmem:[%s12060_s7 + $0x768] sm:$0xff] }
 0x2c2   :  { %2736 = vmatpush.msra.mxu3 %v2359_v12  ;;  %2852 = vmatpush.msra.mxu0 %v1969_v24  ;;  %v2105_v12 = vld [vmem:[%s12060_s7 + $0x7a8] sm:$0xff]  ;;  %v2279_v24 = vld [vmem:[%s12060_s7 + $0xd18] sm:$0xff] }
 0x2c3   :  { %2791 = vmatpush.msrb.mxu1 %v2032_v3  ;;  %2806 = vmatpush.msrb.mxu2 %v2224_v51  ;;  %v1897_v3 = vld [vmem:[%s12060_s7 + $0x128] sm:$0xff] }
 0x2c4   :  { %2737 = vmatpush.msra.mxu3 %v2351_v56  ;;  %2853 = vmatpush.msra.mxu0 %v1961_v45  ;;  %v2160_v56 = vld [vmem:[%s12060_s7 + $0x960] sm:$0xff]  ;;  %v2089_v51 = vld [vmem:[%s12060_s7 + $0x728] sm:$0xff]  ;;  %v2271_v45 = vld [vmem:[%s12060_s7 + $0xcd8] sm:$0xff] }
 0x2c5   :  { %2792 = vmatpush.msrb.mxu1 %v2024_v10  ;;  %2807 = vmatpush.msrb.mxu2 %v2216_v29  ;;  %v1889_v10 = vld [vmem:[%s12060_s7 + $0xe8] sm:$0xff] }
 0x2c6   :  { %2738 = vmatpush.msra.mxu3 %v2343_v31  ;;  %2777 = vmatmul.f32.gmra.mxu0 %v8124_v9  ;;  %v2200_v9 = vld [vmem:[%s12060_s7 + $0xaa0] sm:$0xff]  ;;  %v2081_v29 = vld [vmem:[%s12060_s7 + $0x6e8] sm:$0xff] }
 0x2c7   :  { %2662 = vmatmul.f32.gmra.mxu3 %v8487_v30  ;;  %2854 = vmatpush.msra.mxu0 %v1953_v4  ;;  %v2152_v31 = vld [vmem:[%s12060_s7 + $0x920] sm:$0xff]  ;;  %v2263_v4 = vld [vmem:[%s12060_s7 + $0xc98] sm:$0xff] }
 0x2c8   :  { %2739 = vmatpush.msra.mxu3 %v2335_v53  ;;  %2731 = vmatmul.f32.gmra.mxu2 %v8333_v48  ;;  %v2144_v53 = vld [vmem:[%s12060_s7 + $0x8e0] sm:$0xff] }
 0x2c9   :  { %2793 = vmatpush.msrb.mxu1 %v2016_v5  ;;  %2808 = vmatpush.msrb.mxu2 %v2208_v6  ;;  %v1881_v5 = vld [vmem:[%s12060_s7 + $0xa8] sm:$0xff] }
 0x2ca   :  { %2740 = vmatpush.msra.mxu3 %v2327_v46  ;;  %2855 = vmatpush.msra.mxu0 %v1945_v54  ;;  %v2073_v6 = vld [vmem:[%s12060_s7 + $0x6a8] sm:$0xff]  ;;  %v2136_v46 = vld [vmem:[%s12060_s7 + $0x8a0] sm:$0xff]  ;;  %v2255_v54 = vld [vmem:[%s12060_s7 + $0xc58] sm:$0xff] }
 0x2cb   :  { %2794 = vmatpush.msrb.mxu1 %v2008_v16  ;;  %2809 = vmatpush.msrb.mxu2 %v2200_v9  ;;  %v1873_v16 = vld [vmem:[%s12060_s7 + $0x68] sm:$0xff]  ;;  %v2128_v9 = vld [vmem:[%s12060_s7 + $0x860] sm:$0xff] }
 0x2cc   :  { %2741 = vmatpush.msra.mxu3 %v2319_v17  ;;  %2856 = vmatpush.msra.mxu0 %v1937_v32  ;;  %v2247_v17 = vld [vmem:[%s12060_s7 + $0xc18] sm:$0xff]  ;;  %v1865_v32 = vld [vmem:[%s12060_s7 + $0x28] sm:$0xff] }
 0x2cd   :  { %2795 = vmatpush.msrb.mxu1 %v2000_v7  ;;  %2810 = vmatpush.msrb.mxu2 %v2192_v18  ;;  %v2057_v7 = vld [vmem:[%s12060_s7 + $0x628] sm:$0xff]  ;;  %v2120_v18 = vld [vmem:[%s12060_s7 + $0x820] sm:$0xff] }
 0x2ce   :  { %2742 = vmatpush.msra.mxu3 %v2311_v52  ;;  %2857 = vmatpush.msra.mxu0 %v1929_v11  ;;  %v2368_v52 = vld [vmem:[%s12060_s7 + $0xfe0] sm:$0xff]  ;;  %v1986_v11 = vld [vmem:[%s12060_s7 + $0x3f0] sm:$0xff] }
 0x2cf   :  { %2796 = vmatpush.msrb.mxu1 %v1992_v47  ;;  %2811 = vmatpush.msrb.mxu2 %v2184_v8  ;;  %v2049_v47 = vld [vmem:[%s12060_s7 + $0x5e8] sm:$0xff] }
 0x2d0   :  { %2743 = vmatpush.msra.mxu3 %v2303_v40  ;;  %2797 = vmatmul.f32.vlgmr.msrb.gmra.mxu1 %v8167_v28  ;;  %v1905_v28 = vld [vmem:[%s12060_s7 + $0x168] sm:$0xff]  ;;  %v2360_v40 = vld [vmem:[%s12060_s7 + $0xfa0] sm:$0xff] }
 0x2d1   :  { %2858 = vmatpush.msra.mxu0 %v1921_v14  ;;  %2873 = vmatpush.msra.mxu1 %v2113_v0  ;;  %v2241_v8 = vld [vmem:[%s12060_s7 + $0xbe8] sm:$0xff]  ;;  %v8841_v14 = vld [vmem:[#allocation2] sm:$0xff]  ;;  %v1978_v0 = vld [vmem:[%s12060_s7 + $0x3b0] sm:$0xff] }
 0x2d2   :  { %2812 = vmatpush.msrb.mxu2 %v2176_v62  ;;  %2744 = vmatpush.msra.mxu3 %v2295_v55  ;;  %v2041_v62 = vld [vmem:[%s12060_s7 + $0x5a8] sm:$0xff] }
 0x2d3   :  { %2859 = vmatpush.msra.mxu0 %v1913_v49  ;;  %2874 = vmatpush.msra.mxu1 %v2105_v12  ;;  %v2233_v55 = vld [vmem:[%s12060_s7 + $0xba8] sm:$0xff]  ;;  %v2352_v49 = vld [vmem:[%s12060_s7 + $0xf60] sm:$0xff] }
 0x2d4   :  { %2813 = vmatpush.msrb.mxu2 %v2168_v23  ;;  %2745 = vmatpush.msra.mxu3 %v2287_v39  ;;  %v2033_v12 = vld [vmem:[%s12060_s7 + $0x568] sm:$0xff]  ;;  %v2344_v39 = vld [vmem:[%s12060_s7 + $0xf20] sm:$0xff] }
 0x2d5   :  { %2860 = vmatpush.msra.mxu0 %v1905_v28  ;;  %2875 = vmatpush.msra.mxu1 %v2097_v58  ;;  %v2225_v23 = vld [vmem:[%s12060_s7 + $0xb68] sm:$0xff]  ;;  %v1962_v28 = vld [vmem:[%s12060_s7 + $0x330] sm:$0xff] }
 0x2d6   :  { %2814 = vmatpush.msrb.mxu2 %v2160_v56  ;;  %2746 = vmatpush.msra.mxu3 %v2279_v24  ;;  %v2025_v58 = vld [vmem:[%s12060_s7 + $0x528] sm:$0xff]  ;;  %v2336_v24 = vld [vmem:[%s12060_s7 + $0xee0] sm:$0xff] }
 0x2d7   :  { %2861 = vmatpush.msra.mxu0 %v1897_v3  ;;  %2876 = vmatpush.msra.mxu1 %v2089_v51  ;;  %v2217_v56 = vld [vmem:[%s12060_s7 + $0xb28] sm:$0xff]  ;;  %v1954_v3 = vld [vmem:[%s12060_s7 + $0x2f0] sm:$0xff] }
 0x2d8   :  { %2815 = vmatpush.msrb.mxu2 %v2152_v31  ;;  %2747 = vmatpush.msra.mxu3 %v2271_v45  ;;  %v2017_v51 = vld [vmem:[%s12060_s7 + $0x4e8] sm:$0xff]  ;;  %v8891_v45 = vld [vmem:[#allocation2 + $0x20] sm:$0xff] }
 0x2d9   :  { %2800 = vmatmul.f32.gmra.mxu1 %v8219_v44  ;;  %2862 = vmatpush.msra.mxu0 %v1889_v10  ;;  %v2065_v44 = vld [vmem:[%s12060_s7 + $0x668] sm:$0xff]  ;;  %v2328_v10 = vld [vmem:[%s12060_s7 + $0xea0] sm:$0xff] }
 0x2da   :  { %2877 = vmatpush.msra.mxu1 %v2081_v29  ;;  %2816 = vmatpush.msrb.mxu2 %v2144_v53  ;;  %v2209_v31 = vld [vmem:[%s12060_s7 + $0xae8] sm:$0xff]  ;;  %v1946_v29 = vld [vmem:[%s12060_s7 + $0x2b0] sm:$0xff] }
 0x2db   :  { %2748 = vmatpush.msra.mxu3 %v2263_v4  ;;  %2863 = vmatpush.msra.mxu0 %v1881_v5  ;;  %v2009_v53 = vld [vmem:[%s12060_s7 + $0x4a8] sm:$0xff]  ;;  %v2320_v5 = vld [vmem:[%s12060_s7 + $0xe60] sm:$0xff] }
 0x2dc   :  { %2878 = vmatpush.msra.mxu1 %v2073_v6  ;;  %2817 = vmatpush.msrb.mxu2 %v2136_v46  ;;  %v2201_v4 = vld [vmem:[%s12060_s7 + $0xaa8] sm:$0xff]  ;;  %v1938_v6 = vld [vmem:[%s12060_s7 + $0x270] sm:$0xff] }
 0x2dd   :  { %2749 = vmatpush.msra.mxu3 %v2255_v54  ;;  %2864 = vmatpush.msra.mxu0 %v1873_v16  ;;  %v2193_v46 = vld [vmem:[%s12060_s7 + $0xa68] sm:$0xff]  ;;  %v2312_v54 = vld [vmem:[%s12060_s7 + $0xe20] sm:$0xff]  ;;  %v1930_v16 = vld [vmem:[%s12060_s7 + $0x230] sm:$0xff] }
 0x2de   :  { %2879 = vmatpush.msra.mxu1 %v2065_v44  ;;  %2818 = vmatpush.msrb.mxu2 %v2128_v9  ;;  %v1993_v44 = vld [vmem:[%s12060_s7 + $0x428] sm:$0xff] }
 0x2df   :  { %2750 = vmatpush.msra.mxu3 %v2247_v17  ;;  %2865 = vmatpush.msra.mxu0 %v1865_v32  ;;  %v2185_v9 = vld [vmem:[%s12060_s7 + $0xa28] sm:$0xff]  ;;  %v2304_v17 = vld [vmem:[%s12060_s7 + $0xde0] sm:$0xff]  ;;  %v1922_v32 = vld [vmem:[%s12060_s7 + $0x1f0] sm:$0xff] }
 0x2e0   :  { %2880 = vmatpush.msra.mxu1 %v2057_v7  ;;  %2751 = vmatmul.f32.vlgmr.msra.gmra.mxu3 %v8442_v15  ;;  %v2114_v7 = vld [vmem:[%s12060_s7 + $0x7f0] sm:$0xff] }
 0x2e1   :  { %2819 = vmatpush.msrb.mxu2 %v2120_v18  ;;  %2827 = vmatpush.msrb.mxu3 %v2368_v52  ;;  %v2177_v18 = vld [vmem:[%s12060_s7 + $0x9e8] sm:$0xff]  ;;  %v2296_v52 = vld [vmem:[%s12060_s7 + $0xda0] sm:$0xff] }
 0x2e2   :  { %2866 = vmatmul.f32.vlgmr.msra.gmra.mxu0 %v8841_v14  ;;  %2820 = vmatmul.f32.vlgmr.msrb.gmra.mxu2 %v8279_v63  ;;  %v1970_v63 = vld [vmem:[%s12060_s7 + $0x370] sm:$0xff] }
 0x2e3   :  { %2942 = vmatpush.msrb.mxu0 %v1986_v11  ;;  %2881 = vmatpush.msra.mxu1 %v2049_v47  ;;  %v8946_v11 = vld [vmem:[#allocation2 + $0x8] sm:$0xff]  ;;  %v1914_v47 = vld [vmem:[%s12060_s7 + $0x1b0] sm:$0xff] }
 0x2e4   :  { %2896 = vmatpush.msra.mxu2 %v2241_v8  ;;  %2828 = vmatpush.msrb.mxu3 %v2360_v40  ;;  %v2106_v8 = vld [vmem:[%s12060_s7 + $0x7b0] sm:$0xff]  ;;  %v2169_v40 = vld [vmem:[%s12060_s7 + $0x9a8] sm:$0xff] }
 0x2e5   :  { %2943 = vmatpush.msrb.mxu0 %v1978_v0  ;;  %2882 = vmatpush.msra.mxu1 %v2041_v62  ;;  %v2288_v0 = vld [vmem:[%s12060_s7 + $0xd60] sm:$0xff]  ;;  %v1906_v62 = vld [vmem:[%s12060_s7 + $0x170] sm:$0xff] }
 0x2e6   :  { %2897 = vmatpush.msra.mxu2 %v2233_v55  ;;  %2829 = vmatpush.msrb.mxu3 %v2352_v49  ;;  %v2098_v55 = vld [vmem:[%s12060_s7 + $0x770] sm:$0xff]  ;;  %v2161_v49 = vld [vmem:[%s12060_s7 + $0x968] sm:$0xff] }
 0x2e7   :  { %2944 = vmatpush.msrb.mxu0 %v1970_v63  ;;  %2883 = vmatpush.msra.mxu1 %v2033_v12  ;;  %v2280_v63 = vld [vmem:[%s12060_s7 + $0xd20] sm:$0xff]  ;;  %v1898_v12 = vld [vmem:[%s12060_s7 + $0x130] sm:$0xff] }
 0x2e8   :  { %2898 = vmatpush.msra.mxu2 %v2225_v23  ;;  %2830 = vmatpush.msrb.mxu3 %v2344_v39  ;;  %v2090_v23 = vld [vmem:[%s12060_s7 + $0x730] sm:$0xff]  ;;  %v2153_v39 = vld [vmem:[%s12060_s7 + $0x928] sm:$0xff] }
 0x2e9   :  { %2945 = vmatpush.msrb.mxu0 %v1962_v28  ;;  %2884 = vmatpush.msra.mxu1 %v2025_v58  ;;  %v2272_v28 = vld [vmem:[%s12060_s7 + $0xce0] sm:$0xff]  ;;  %v1890_v58 = vld [vmem:[%s12060_s7 + $0xf0] sm:$0xff] }
 0x2ea   :  { %2899 = vmatpush.msra.mxu2 %v2217_v56  ;;  %2754 = vmatmul.f32.gmra.mxu3 %v8487_v30  ;;  %v2082_v56 = vld [vmem:[%s12060_s7 + $0x6f0] sm:$0xff] }
 0x2eb   :  { %2831 = vmatpush.msrb.mxu3 %v2336_v24  ;;  %2869 = vmatmul.f32.gmra.mxu0 %v8891_v45  ;;  %v2145_v24 = vld [vmem:[%s12060_s7 + $0x8e8] sm:$0xff] }
 0x2ec   :  { %2946 = vmatpush.msrb.mxu0 %v1954_v3  ;;  %2823 = vmatmul.f32.gmra.mxu2 %v8333_v48  ;;  %v2001_v48 = vld [vmem:[%s12060_s7 + $0x468] sm:$0xff]  ;;  %v2264_v3 = vld [vmem:[%s12060_s7 + $0xca0] sm:$0xff] }
 0x2ed   :  { %2885 = vmatpush.msra.mxu1 %v2017_v51  ;;  %2900 = vmatpush.msra.mxu2 %v2209_v31  ;;  %v1882_v51 = vld [vmem:[%s12060_s7 + $0xb0] sm:$0xff]  ;;  %v9000_v31 = vld [vmem:[#allocation2 + $0x28] sm:$0xff] }
 0x2ee   :  { %2832 = vmatpush.msrb.mxu3 %v2328_v10  ;;  %2947 = vmatpush.msrb.mxu0 %v1946_v29  ;;  %v2074_v10 = vld [vmem:[%s12060_s7 + $0x6b0] sm:$0xff]  ;;  %v2137_v29 = vld [vmem:[%s12060_s7 + $0x8a8] sm:$0xff] }
 0x2ef   :  { %2886 = vmatpush.msra.mxu1 %v2009_v53  ;;  %2901 = vmatpush.msra.mxu2 %v2201_v4  ;;  %v2256_v53 = vld [vmem:[%s12060_s7 + $0xc60] sm:$0xff]  ;;  %v1874_v4 = vld [vmem:[%s12060_s7 + $0x70] sm:$0xff] }
 0x2f0   :  { %2833 = vmatpush.msrb.mxu3 %v2320_v5  ;;  %2948 = vmatpush.msrb.mxu0 %v1938_v6  ;;  %v2066_v5 = vld [vmem:[%s12060_s7 + $0x670] sm:$0xff]  ;;  %v2129_v6 = vld [vmem:[%s12060_s7 + $0x868] sm:$0xff] }
 0x2f1   :  { %2887 = vmatpush.msra.mxu1 %v2001_v48  ;;  %2902 = vmatpush.msra.mxu2 %v2193_v46  ;;  %v2248_v48 = vld [vmem:[%s12060_s7 + $0xc20] sm:$0xff]  ;;  %v1866_v46 = vld [vmem:[%s12060_s7 + $0x30] sm:$0xff] }
 0x2f2   :  { %2834 = vmatpush.msrb.mxu3 %v2312_v54  ;;  %2949 = vmatpush.msrb.mxu0 %v1930_v16  ;;  %v2058_v54 = vld [vmem:[%s12060_s7 + $0x630] sm:$0xff]  ;;  %v2121_v16 = vld [vmem:[%s12060_s7 + $0x828] sm:$0xff] }
 0x2f3   :  { %2888 = vmatpush.msra.mxu1 %v1993_v44  ;;  %2903 = vmatpush.msra.mxu2 %v2185_v9  ;;  %v2369_v44 = vld [vmem:[%s12060_s7 + $0xfe8] sm:$0xff]  ;;  %v1987_v9 = vld [vmem:[%s12060_s7 + $0x3f8] sm:$0xff] }
 0x2f4   :  { %2835 = vmatpush.msrb.mxu3 %v2304_v17  ;;  %2889 = vmatmul.f32.vlgmr.msra.gmra.mxu1 %v8946_v11  ;;  %v2050_v17 = vld [vmem:[%s12060_s7 + $0x5f0] sm:$0xff] }
 0x2f5   :  { %2950 = vmatpush.msrb.mxu0 %v1922_v32  ;;  %2965 = vmatpush.msrb.mxu1 %v2114_v7  ;;  %v2242_v32 = vld [vmem:[%s12060_s7 + $0xbf0] sm:$0xff]  ;;  %v2361_v7 = vld [vmem:[%s12060_s7 + $0xfa8] sm:$0xff] }
 0x2f6   :  { %2904 = vmatpush.msra.mxu2 %v2177_v18  ;;  %2836 = vmatpush.msrb.mxu3 %v2296_v52  ;;  %v1979_v18 = vld [vmem:[%s12060_s7 + $0x3b8] sm:$0xff]  ;;  %v2042_v52 = vld [vmem:[%s12060_s7 + $0x5b0] sm:$0xff] }
 0x2f7   :  { %2951 = vmatpush.msrb.mxu0 %v1914_v47  ;;  %2966 = vmatpush.msrb.mxu1 %v2106_v8  ;;  %v2234_v47 = vld [vmem:[%s12060_s7 + $0xbb0] sm:$0xff]  ;;  %v2353_v8 = vld [vmem:[%s12060_s7 + $0xf68] sm:$0xff] }
 0x2f8   :  { %2905 = vmatpush.msra.mxu2 %v2169_v40  ;;  %2837 = vmatpush.msrb.mxu3 %v2288_v0  ;;  %v1971_v40 = vld [vmem:[%s12060_s7 + $0x378] sm:$0xff]  ;;  %v2034_v0 = vld [vmem:[%s12060_s7 + $0x570] sm:$0xff] }
 0x2f9   :  { %2952 = vmatpush.msrb.mxu0 %v1906_v62  ;;  %2967 = vmatpush.msrb.mxu1 %v2098_v55  ;;  %v2226_v62 = vld [vmem:[%s12060_s7 + $0xb70] sm:$0xff]  ;;  %v2345_v55 = vld [vmem:[%s12060_s7 + $0xf28] sm:$0xff] }
 0x2fa   :  { %2906 = vmatpush.msra.mxu2 %v2161_v49  ;;  %2838 = vmatpush.msrb.mxu3 %v2280_v63  ;;  %v1963_v49 = vld [vmem:[%s12060_s7 + $0x338] sm:$0xff]  ;;  %v2026_v63 = vld [vmem:[%s12060_s7 + $0x530] sm:$0xff] }
 0x2fb   :  { %2953 = vmatpush.msrb.mxu0 %v1898_v12  ;;  %2968 = vmatpush.msrb.mxu1 %v2090_v23  ;;  %v2218_v12 = vld [vmem:[%s12060_s7 + $0xb30] sm:$0xff]  ;;  %v2337_v23 = vld [vmem:[%s12060_s7 + $0xee8] sm:$0xff] }
 0x2fc   :  { %2907 = vmatpush.msra.mxu2 %v2153_v39  ;;  %2839 = vmatpush.msrb.mxu3 %v2272_v28  ;;  %v1955_v39 = vld [vmem:[%s12060_s7 + $0x2f8] sm:$0xff]  ;;  %v2018_v28 = vld [vmem:[%s12060_s7 + $0x4f0] sm:$0xff] }
 0x2fd   :  { %2892 = vmatmul.f32.gmra.mxu1 %v9000_v31  ;;  %2954 = vmatpush.msrb.mxu0 %v1890_v58  ;;  %v2210_v58 = vld [vmem:[%s12060_s7 + $0xaf0] sm:$0xff] }
 0x2fe   :  { %2969 = vmatpush.msrb.mxu1 %v2082_v56  ;;  %2908 = vmatpush.msra.mxu2 %v2145_v24  ;;  %v2329_v56 = vld [vmem:[%s12060_s7 + $0xea8] sm:$0xff]  ;;  %v1947_v24 = vld [vmem:[%s12060_s7 + $0x2b8] sm:$0xff] }
 0x2ff   :  { %2840 = vmatpush.msrb.mxu3 %v2264_v3  ;;  %2955 = vmatpush.msrb.mxu0 %v1882_v51  ;;  %v2010_v3 = vld [vmem:[%s12060_s7 + $0x4b0] sm:$0xff] }
 0x300   :  { %2970 = vmatpush.msrb.mxu1 %v2074_v10  ;;  %2909 = vmatpush.msra.mxu2 %v2137_v29  ;;  %v2202_v51 = vld [vmem:[%s12060_s7 + $0xab0] sm:$0xff]  ;;  %v2321_v10 = vld [vmem:[%s12060_s7 + $0xe68] sm:$0xff]  ;;  %v1939_v29 = vld [vmem:[%s12060_s7 + $0x278] sm:$0xff] }
 0x301   :  { %2841 = vmatpush.msrb.mxu3 %v2256_v53  ;;  %2956 = vmatpush.msrb.mxu0 %v1874_v4  ;;  %v2002_v53 = vld [vmem:[%s12060_s7 + $0x470] sm:$0xff] }
 0x302   :  { %2971 = vmatpush.msrb.mxu1 %v2066_v5  ;;  %2910 = vmatpush.msra.mxu2 %v2129_v6  ;;  %v2194_v4 = vld [vmem:[%s12060_s7 + $0xa70] sm:$0xff]  ;;  %v2313_v5 = vld [vmem:[%s12060_s7 + $0xe28] sm:$0xff]  ;;  %v1931_v6 = vld [vmem:[%s12060_s7 + $0x238] sm:$0xff] }
 0x303   :  { %2842 = vmatpush.msrb.mxu3 %v2248_v48  ;;  %2957 = vmatpush.msrb.mxu0 %v1866_v46  ;;  %v1994_v48 = vld [vmem:[%s12060_s7 + $0x430] sm:$0xff] }
 0x304   :  { %2972 = vmatpush.msrb.mxu1 %v2058_v54  ;;  %2843 = vmatmul.f32.vlgmr.msrb.gmra.mxu3 %v8442_v15  ;;  %v9050_v15 = vld [vmem:[#allocation2 + $0x10] sm:$0xff]  ;;  %v2305_v54 = vld [vmem:[%s12060_s7 + $0xde8] sm:$0xff] }
 0x305   :  { %2911 = vmatpush.msra.mxu2 %v2121_v16  ;;  %2919 = vmatpush.msra.mxu3 %v2369_v44  ;;  %v2186_v46 = vld [vmem:[%s12060_s7 + $0xa30] sm:$0xff]  ;;  %v1923_v16 = vld [vmem:[%s12060_s7 + $0x1f8] sm:$0xff] }
 0x306   :  { %2958 = vmatmul.f32.vlgmr.msrb.gmra.mxu0 %v8841_v14  ;;  %2912 = vmatmul.f32.vlgmr.msra.gmra.mxu2 %v9050_v15  ;;  %v2115_v44 = vld [vmem:[%s12060_s7 + $0x7f8] sm:$0xff] }
 0x307   :  { %3034 = vmatpush.msra.mxu0 %v1987_v9  ;;  %2973 = vmatpush.msrb.mxu1 %v2050_v17  ;;  %v2178_v9 = vld [vmem:[%s12060_s7 + $0x9f0] sm:$0xff]  ;;  %v2297_v17 = vld [vmem:[%s12060_s7 + $0xda8] sm:$0xff] }
 0x308   :  { %2988 = vmatpush.msrb.mxu2 %v2242_v32  ;;  %2920 = vmatpush.msra.mxu3 %v2361_v7  ;;  %v1915_v32 = vld [vmem:[%s12060_s7 + $0x1b8] sm:$0xff] }
 0x309   :  { %3035 = vmatpush.msra.mxu0 %v1979_v18  ;;  %2974 = vmatpush.msrb.mxu1 %v2042_v52  ;;  %v2107_v7 = vld [vmem:[%s12060_s7 + $0x7b8] sm:$0xff]  ;;  %v2170_v18 = vld [vmem:[%s12060_s7 + $0x9b0] sm:$0xff]  ;;  %v2289_v52 = vld [vmem:[%s12060_s7 + $0xd68] sm:$0xff] }
 0x30a   :  { %2989 = vmatpush.msrb.mxu2 %v2234_v47  ;;  %2921 = vmatpush.msra.mxu3 %v2353_v8  ;;  %v1907_v47 = vld [vmem:[%s12060_s7 + $0x178] sm:$0xff] }
 0x30b   :  { %3036 = vmatpush.msra.mxu0 %v1971_v40  ;;  %2975 = vmatpush.msrb.mxu1 %v2034_v0  ;;  %v2099_v8 = vld [vmem:[%s12060_s7 + $0x778] sm:$0xff]  ;;  %v2162_v40 = vld [vmem:[%s12060_s7 + $0x970] sm:$0xff]  ;;  %v2281_v0 = vld [vmem:[%s12060_s7 + $0xd28] sm:$0xff] }
 0x30c   :  { %2990 = vmatpush.msrb.mxu2 %v2226_v62  ;;  %2922 = vmatpush.msra.mxu3 %v2345_v55  ;;  %v1899_v62 = vld [vmem:[%s12060_s7 + $0x138] sm:$0xff] }
 0x30d   :  { %3037 = vmatpush.msra.mxu0 %v1963_v49  ;;  %2976 = vmatpush.msrb.mxu1 %v2026_v63  ;;  %v2091_v55 = vld [vmem:[%s12060_s7 + $0x738] sm:$0xff]  ;;  %v2154_v49 = vld [vmem:[%s12060_s7 + $0x930] sm:$0xff]  ;;  %v2273_v63 = vld [vmem:[%s12060_s7 + $0xce8] sm:$0xff] }
 0x30e   :  { %2991 = vmatpush.msrb.mxu2 %v2218_v12  ;;  %2846 = vmatmul.f32.gmra.mxu3 %v8487_v30  ;;  %v9106_v30 = vld [vmem:[#allocation2 + $0x30] sm:$0xff]  ;;  %v1891_v12 = vld [vmem:[%s12060_s7 + $0xf8] sm:$0xff] }
 0x30f   :  { %2923 = vmatpush.msra.mxu3 %v2337_v23  ;;  %2961 = vmatmul.f32.gmra.mxu0 %v8891_v45  ;;  %v2083_v23 = vld [vmem:[%s12060_s7 + $0x6f8] sm:$0xff] }
 0x310   :  { %3038 = vmatpush.msra.mxu0 %v1955_v39  ;;  %2915 = vmatmul.f32.gmra.mxu2 %v9106_v30  ;;  %v2146_v39 = vld [vmem:[%s12060_s7 + $0x8f0] sm:$0xff] }
 0x311   :  { %2977 = vmatpush.msrb.mxu1 %v2018_v28  ;;  %2992 = vmatpush.msrb.mxu2 %v2210_v58  ;;  %v2265_v28 = vld [vmem:[%s12060_s7 + $0xca8] sm:$0xff]  ;;  %v1883_v58 = vld [vmem:[%s12060_s7 + $0xb8] sm:$0xff] }
 0x312   :  { %2924 = vmatpush.msra.mxu3 %v2329_v56  ;;  %3039 = vmatpush.msra.mxu0 %v1947_v24  ;;  %v2075_v56 = vld [vmem:[%s12060_s7 + $0x6b8] sm:$0xff]  ;;  %v2138_v24 = vld [vmem:[%s12060_s7 + $0x8b0] sm:$0xff] }
 0x313   :  { %2978 = vmatpush.msrb.mxu1 %v2010_v3  ;;  %2993 = vmatpush.msrb.mxu2 %v2202_v51  ;;  %v2257_v3 = vld [vmem:[%s12060_s7 + $0xc68] sm:$0xff]  ;;  %v1875_v51 = vld [vmem:[%s12060_s7 + $0x78] sm:$0xff] }
 0x314   :  { %2925 = vmatpush.msra.mxu3 %v2321_v10  ;;  %3040 = vmatpush.msra.mxu0 %v1939_v29  ;;  %v2067_v10 = vld [vmem:[%s12060_s7 + $0x678] sm:$0xff]  ;;  %v2130_v29 = vld [vmem:[%s12060_s7 + $0x870] sm:$0xff] }
 0x315   :  { %2979 = vmatpush.msrb.mxu1 %v2002_v53  ;;  %2994 = vmatpush.msrb.mxu2 %v2194_v4  ;;  %v2249_v53 = vld [vmem:[%s12060_s7 + $0xc28] sm:$0xff]  ;;  %v1867_v4 = vld [vmem:[%s12060_s7 + $0x38] sm:$0xff] }
 0x316   :  { %2926 = vmatpush.msra.mxu3 %v2313_v5  ;;  %3041 = vmatpush.msra.mxu0 %v1931_v6  ;;  %v2059_v5 = vld [vmem:[%s12060_s7 + $0x638] sm:$0xff]  ;;  %v2122_v6 = vld [vmem:[%s12060_s7 + $0x830] sm:$0xff] }
 0x317   :  { %2980 = vmatpush.msrb.mxu1 %v1994_v48  ;;  %2995 = vmatpush.msrb.mxu2 %v2186_v46  ;;  %v2370_v48 = vld [vmem:[%s12060_s7 + $0xff0] sm:$0xff]  ;;  %v9240_v46 = vld [vmem:[#allocation2 + $0x18] sm:$0xff] }
 0x318   :  { %2927 = vmatpush.msra.mxu3 %v2305_v54  ;;  %2981 = vmatmul.f32.vlgmr.msrb.gmra.mxu1 %v8946_v11  ;;  %v3210_v54 = vld [vmem:[%s12062_s9 + $0x1e0] sm:$0xff] }
 0x319   :  { %3042 = vmatpush.msra.mxu0 %v1923_v16  ;;  %3057 = vmatpush.msra.mxu1 %v2115_v44  ;;  %v2051_v16 = vld [vmem:[%s12060_s7 + $0x5f8] sm:$0xff] }
 0x31a   :  { %2996 = vmatpush.msrb.mxu2 %v2178_v9  ;;  %2928 = vmatpush.msra.mxu3 %v2297_v17  ;;  %v2243_v44 = vld [vmem:[%s12060_s7 + $0xbf8] sm:$0xff]  ;;  %v2362_v9 = vld [vmem:[%s12060_s7 + $0xfb0] sm:$0xff]  ;;  %v3206_v17 = vld [vmem:[%s12062_s9 + $0x1c0] sm:$0xff] }
 0x31b   :  { %3043 = vmatpush.msra.mxu0 %v1915_v32  ;;  %3058 = vmatpush.msra.mxu1 %v2107_v7  ;;  %v2043_v32 = vld [vmem:[%s12060_s7 + $0x5b8] sm:$0xff] }
 0x31c   :  { %2997 = vmatpush.msrb.mxu2 %v2170_v18  ;;  %2929 = vmatpush.msra.mxu3 %v2289_v52  ;;  %v2235_v7 = vld [vmem:[%s12060_s7 + $0xbb8] sm:$0xff]  ;;  %v3202_v18 = vld [vmem:[%s12062_s9 + $0x1a0] sm:$0xff] }
 0x31d   :  { %3044 = vmatpush.msra.mxu0 %v1907_v47  ;;  %3059 = vmatpush.msra.mxu1 %v2099_v8  ;;  %v2035_v52 = vld [vmem:[%s12060_s7 + $0x578] sm:$0xff]  ;;  %v2346_v8 = vld [vmem:[%s12060_s7 + $0xf30] sm:$0xff] }
 0x31e   :  { %2998 = vmatpush.msrb.mxu2 %v2162_v40  ;;  %2930 = vmatpush.msra.mxu3 %v2281_v0  ;;  %v2227_v47 = vld [vmem:[%s12060_s7 + $0xb78] sm:$0xff]  ;;  %v3198_v40 = vld [vmem:[%s12062_s9 + $0x180] sm:$0xff] }
 0x31f   :  { %3045 = vmatpush.msra.mxu0 %v1899_v62  ;;  %3060 = vmatpush.msra.mxu1 %v2091_v55  ;;  %v2027_v0 = vld [vmem:[%s12060_s7 + $0x538] sm:$0xff]  ;;  %v2338_v55 = vld [vmem:[%s12060_s7 + $0xef0] sm:$0xff] }
 0x320   :  { %2999 = vmatpush.msrb.mxu2 %v2154_v49  ;;  %2931 = vmatpush.msra.mxu3 %v2273_v63  ;;  %v2219_v62 = vld [vmem:[%s12060_s7 + $0xb38] sm:$0xff]  ;;  %v3194_v49 = vld [vmem:[%s12062_s9 + $0x160] sm:$0xff] }
 0x321   :  { %2984 = vmatmul.f32.gmra.mxu1 %v9000_v31  ;;  %3046 = vmatpush.msra.mxu0 %v1891_v12  ;;  %v9296_v63 = vld [vmem:[#allocation2 + $0x38] sm:$0xff] }
 0x322   :  { %3061 = vmatpush.msra.mxu1 %v2083_v23  ;;  %3000 = vmatpush.msrb.mxu2 %v2146_v39  ;;  %v2019_v12 = vld [vmem:[%s12060_s7 + $0x4f8] sm:$0xff]  ;;  %v2330_v39 = vld [vmem:[%s12060_s7 + $0xeb0] sm:$0xff] }
 0x323   :  { %2932 = vmatpush.msra.mxu3 %v2265_v28  ;;  %3047 = vmatpush.msra.mxu0 %v1883_v58  ;;  %v2211_v23 = vld [vmem:[%s12060_s7 + $0xaf8] sm:$0xff]  ;;  %v3190_v28 = vld [vmem:[%s12062_s9 + $0x140] sm:$0xff] }
 0x324   :  { %3062 = vmatpush.msra.mxu1 %v2075_v56  ;;  %3001 = vmatpush.msrb.mxu2 %v2138_v24  ;;  %v2011_v58 = vld [vmem:[%s12060_s7 + $0x4b8] sm:$0xff]  ;;  %v3186_v24 = vld [vmem:[%s12062_s9 + $0x120] sm:$0xff] }
 0x325   :  { %2933 = vmatpush.msra.mxu3 %v2257_v3  ;;  %3048 = vmatpush.msra.mxu0 %v1875_v51  ;;  %v2203_v56 = vld [vmem:[%s12060_s7 + $0xab8] sm:$0xff] }
 0x326   :  { %3063 = vmatpush.msra.mxu1 %v2067_v10  ;;  %3002 = vmatpush.msrb.mxu2 %v2130_v29  ;;  %v2003_v3 = vld [vmem:[%s12060_s7 + $0x478] sm:$0xff]  ;;  %v9334_v10 = vld [vmem:[%s12061_s8] sm:$0xff]  ;;  %v2407_v29 = vpop.f32.mrf.mxu0 }
 0x327   :  { %2934 = vmatpush.msra.mxu3 %v2249_v53  ;;  %3049 = vmatpush.msra.mxu0 %v1867_v4  ;;  %v2195_v51 = vld [vmem:[%s12060_s7 + $0xa78] sm:$0xff]  ;;  %v2314_v53 = vld [vmem:[%s12060_s7 + $0xe30] sm:$0xff]  ;;  %v3182_v4 = vld [vmem:[%s12062_s9 + $0x100] sm:$0xff] }
 0x328   :  { %3064 = vmatpush.msra.mxu1 %v2059_v5  ;;  %2935 = vmatmul.f32.vlgmr.msra.gmra.mxu3 %v9240_v46  ;;  %v1995_v5 = vld [vmem:[%s12060_s7 + $0x438] sm:$0xff] }
 0x329   :  { %3003 = vmatpush.msrb.mxu2 %v2122_v6  ;;  %3011 = vmatpush.msrb.mxu3 %v2370_v48  ;;  %v2187_v6 = vld [vmem:[%s12060_s7 + $0xa38] sm:$0xff]  ;;  %v2430_v48 = vpop.f32.mrf.mxu1 }
 0x32a   :  { %3050 = vmatmul.f32.vlgmr.msra.gmra.mxu0 %v8841_v14  ;;  %3004 = vmatmul.f32.vlgmr.msrb.gmra.mxu2 %v9050_v15  ;;  %v2354_v14 = vld [vmem:[%s12060_s7 + $0xf70] sm:$0xff] }
 0x32b   :  { %3416 = vmatpush.msrb.mxu0 %v3210_v54  ;;  %3065 = vmatpush.msra.mxu1 %v2051_v16  ;;  %v2306_v54 = vld [vmem:[%s12060_s7 + $0xdf0] sm:$0xff]  ;;  %v2374_v16 = vperm.slane %v9334_v10, 0 }
 0x32c   :  { %3080 = vmatpush.msra.mxu2 %v2243_v44  ;;  %3012 = vmatpush.msrb.mxu3 %v2362_v9  ;;  %v3178_v44 = vld [vmem:[%s12062_s9 + $0xe0] sm:$0xff] }
 0x32d   :  { %3417 = vmatpush.msrb.mxu0 %v3206_v17  ;;  %3066 = vmatpush.msra.mxu1 %v2043_v32  ;;  %v3274_v9 = vld [vmem:[%s12062_s9 + $0x3e0] sm:$0xff]  ;;  %v2453_v17 = vpop.f32.mrf.mxu2  ;;  %v2179_v32 = vld [vmem:[%s12060_s7 + $0x9f8] sm:$0xff] }
 0x32e   :  { %3081 = vmatpush.msra.mxu2 %v2235_v7  ;;  %3013 = vmatpush.msrb.mxu3 %v2354_v14  ;;  %v2298_v7 = vld [vmem:[%s12060_s7 + $0xdb0] sm:$0xff]  ;;  %v3174_v14 = vld [vmem:[%s12062_s9 + $0xc0] sm:$0xff] }
 0x32f   :  { %3418 = vmatpush.msrb.mxu0 %v3202_v18  ;;  %3067 = vmatpush.msra.mxu1 %v2035_v52  ;;  %v3270_v18 = vld [vmem:[%s12062_s9 + $0x3c0] sm:$0xff]  ;;  %v2476_v52 = vpop.f32.mrf.mxu3 }
 0x330   :  { %3082 = vmatpush.msra.mxu2 %v2227_v47  ;;  %3014 = vmatpush.msrb.mxu3 %v2346_v8  ;;  %v2171_v47 = vld [vmem:[%s12060_s7 + $0x9b8] sm:$0xff]  ;;  %v2290_v8 = vld [vmem:[%s12060_s7 + $0xd70] sm:$0xff] }
 0x331   :  { %3419 = vmatpush.msrb.mxu0 %v3198_v40  ;;  %3068 = vmatpush.msra.mxu1 %v2027_v0  ;;  %v3170_v40 = vld [vmem:[%s12062_s9 + $0xa0] sm:$0xff] }
 0x332   :  { %3083 = vmatpush.msra.mxu2 %v2219_v62  ;;  %2938 = vmatmul.f32.gmra.mxu3 %v9296_v63  ;;  %v3266_v0 = vld [vmem:[%s12062_s9 + $0x3a0] sm:$0xff]  ;;  %v2163_v62 = vld [vmem:[%s12060_s7 + $0x978] sm:$0xff] }
 0x333   :  { %3015 = vmatpush.msrb.mxu3 %v2338_v55  ;;  %3053 = vmatmul.f32.gmra.mxu0 %v8891_v45  ;;  %v2322_v45 = vld [vmem:[%s12060_s7 + $0xe70] sm:$0xff] }
 0x334   :  { %3420 = vmatpush.msrb.mxu0 %v3194_v49  ;;  %3007 = vmatmul.f32.gmra.mxu2 %v9106_v30  ;;  %v2282_v55 = vld [vmem:[%s12060_s7 + $0xd30] sm:$0xff] }
 0x335   :  { %3069 = vmatpush.msra.mxu1 %v2019_v12  ;;  %3084 = vmatpush.msra.mxu2 %v2211_v23  ;;  %v3166_v12 = vld [vmem:[%s12062_s9 + $0x80] sm:$0xff] }
 0x336   :  { %3016 = vmatpush.msrb.mxu3 %v2330_v39  ;;  %3421 = vmatpush.msrb.mxu0 %v3190_v28  ;;  %v3262_v23 = vld [vmem:[%s12062_s9 + $0x380] sm:$0xff]  ;;  %v2410_v39 = vpop.f32.mrf.mxu0  ;;  %v2155_v28 = vld [vmem:[%s12060_s7 + $0x938] sm:$0xff] }
 0x337   :  { %3070 = vmatpush.msra.mxu1 %v2011_v58  ;;  %3085 = vmatpush.msra.mxu2 %v2203_v56  ;;  %v2274_v58 = vld [vmem:[%s12060_s7 + $0xcf0] sm:$0xff] }
 0x338   :  { %3017 = vmatpush.msrb.mxu3 %v2322_v45  ;;  %3422 = vmatpush.msrb.mxu0 %v3186_v24  ;;  %v3162_v45 = vld [vmem:[%s12062_s9 + $0x60] sm:$0xff]  ;;  %v2433_v24 = vpop.f32.mrf.mxu1 }
 0x339   :  { %3071 = vmatpush.msra.mxu1 %v2003_v3  ;;  %3086 = vmatpush.msra.mxu2 %v2195_v51  ;;  %v3258_v3 = vld [vmem:[%s12062_s9 + $0x360] sm:$0xff]  ;;  %v2147_v51 = vld [vmem:[%s12060_s7 + $0x8f8] sm:$0xff] }
 0x33a   :  { %3018 = vmatpush.msrb.mxu3 %v2314_v53  ;;  %3423 = vmatpush.msrb.mxu0 %v3182_v4  ;;  %v2266_v4 = vld [vmem:[%s12060_s7 + $0xcb0] sm:$0xff] }
 0x33b   :  { %3072 = vmatpush.msra.mxu1 %v1995_v5  ;;  %3087 = vmatpush.msra.mxu2 %v2187_v6  ;;  %v3158_v5 = vld [vmem:[%s12062_s9 + $0x40] sm:$0xff]  ;;  %v2456_v6 = vpop.f32.mrf.mxu2 }
 0x33c   :  { %3019 = vmatpush.msrb.mxu3 %v2306_v54  ;;  %3073 = vmatmul.f32.vlgmr.msra.gmra.mxu1 %v8946_v11  ;;  %v2408_v11 = vadd.f32 %v2407_v29, %v2374_v16  ;;  %v791_v29 = vadd.f32 %v7077_v20, %v7075_v19  ;;  %v2139_v19 = vld [vmem:[%s12060_s7 + $0x8b8] sm:$0xff]  ;;  %v2258_v54 = vld [vmem:[%s12060_s7 + $0xc70] sm:$0xff] }
 0x33d   :  { %3424 = vmatpush.msrb.mxu0 %v3178_v44  ;;  %3439 = vmatpush.msrb.mxu1 %v3274_v9  ;;  %v2411_v44 = vadd.f32 %v2410_v39, %v2374_v16  ;;  %v2479_v9 = vpop.f32.mrf.mxu3  ;;  %v3150_v16 = vld [vmem:[%s12062_s9] sm:$0xff] }
 0x33e   :  { %3088 = vmatpush.msra.mxu2 %v2179_v32  ;;  %3020 = vmatpush.msrb.mxu3 %v2298_v7  ;;  %v2431_v49 = vadd.f32 %v2430_v48, %v2408_v11  ;;  %v3254_v48 = vld [vmem:[%s12062_s9 + $0x340] sm:$0xff]  ;;  %v814_v20 = vadd.f32 %v7112_v37, %v791_v29  ;;  %v2250_v7 = vld [vmem:[%s12060_s7 + $0xc30] sm:$0xff] }
 0x33f   :  { %3425 = vmatpush.msrb.mxu0 %v3174_v14  ;;  %3440 = vmatpush.msrb.mxu1 %v3270_v18  ;;  %v3250_v37 = vld [vmem:[%s12062_s9 + $0x320] sm:$0xff]  ;;  %v2434_v14 = vadd.f32 %v2433_v24, %v2411_v44 }
 0x340   :  { %3089 = vmatpush.msra.mxu2 %v2171_v47  ;;  %3021 = vmatpush.msrb.mxu3 %v2290_v8  ;;  %v2454_v56 = vadd.f32 %v2453_v17, %v2431_v49  ;;  %v2131_v17 = vld [vmem:[%s12060_s7 + $0x878] sm:$0xff]  ;;  %v3246_v18 = vld [vmem:[%s12062_s9 + $0x300] sm:$0xff]  ;;  %v2499_v8 = vpop.f32.mrf.mxu0  ;;  %v794_v49 = vadd.f32 %v7145_v60, %v7143_v59  ;;  %v3207_v59 = vld [vmem:[%s12062_s9 + $0x1c8] sm:$0xff] }
 0x341   :  { %3426 = vmatpush.msrb.mxu0 %v3170_v40  ;;  %3441 = vmatpush.msrb.mxu1 %v3266_v0  ;;  %v2371_v47 = vld [vmem:[%s12060_s7 + $0xff8] sm:$0xff]  ;;  %v2457_v11 = vadd.f32 %v2456_v6, %v2434_v14  ;;  %v2375_v40 = vperm.slane %v9334_v10, 1  ;;  %v3338_v39 = vld [vmem:[%s12062_s9 + $0x5e0] sm:$0xff]  ;;  %v3199_v6 = vld [vmem:[%s12062_s9 + $0x188] sm:$0xff] }
 0x342   :  { %3090 = vmatpush.msra.mxu2 %v2163_v62  ;;  %3022 = vmatpush.msrb.mxu3 %v2282_v55  ;;  %v2477_v53 = vadd.f32 %v2476_v52, %v2454_v56  ;;  %v2123_v52 = vld [vmem:[%s12060_s7 + $0x838] sm:$0xff]  ;;  %v3211_v62 = vld [vmem:[%s12062_s9 + $0x1e8] sm:$0xff]  ;;  %v3242_v55 = vld [vmem:[%s12062_s9 + $0x2e0] sm:$0xff] }
 0x343   :  { %3427 = vmatpush.msrb.mxu0 %v3166_v12  ;;  %3442 = vmatpush.msrb.mxu1 %v3262_v23  ;;  %v2522_v12 = vpop.f32.mrf.mxu1  ;;  %v2480_v23 = vadd.f32 %v2479_v9, %v2457_v11  ;;  %v3238_v60 = vld [vmem:[%s12062_s9 + $0x2c0] sm:$0xff]  ;;  %v2545_v56 = vpop.f32.mrf.mxu2  ;;  %v2500_v24 = vadd.f32 %v2499_v8, %v2375_v40 }
 0x344   :  { %3091 = vmatpush.msra.mxu2 %v2155_v28  ;;  %3023 = vmatpush.msrb.mxu3 %v2274_v58  ;;  %v3126_v32 = vadd.f32 %v2477_v53, %v814_v20  ;;  %v2363_v28 = vld [vmem:[%s12060_s7 + $0xfb8] sm:$0xff]  ;;  %v817_v58 = vadd.f32 %v7189_v21, %v794_v49  ;;  %v3203_v21 = vld [vmem:[%s12062_s9 + $0x1a8] sm:$0xff]  ;;  %v3330_v53 = vld [vmem:[%s12062_s9 + $0x5a0] sm:$0xff]  ;;  %v860_v20 = vadd.f32 %v7199_v25, %v7114_v38 }
 0x345   :  { %3076 = vmatmul.f32.gmra.mxu1 %v9000_v31  ;;  %3428 = vmatpush.msrb.mxu0 %v3162_v45  ;;  %v3154_v31 = vld [vmem:[%s12062_s9 + $0x20] sm:$0xff]  ;;  %v2568_v29 = vpop.f32.mrf.mxu3 }
 0x346   :  { %3443 = vmatpush.msrb.mxu1 %v3258_v3  ;;  %3092 = vmatpush.msra.mxu2 %v2147_v51  ;;  %v9458_v0 = vmax.f32 %v3126_v32, 0.0  ;;  %v3334_v45 = vld [vmem:[%s12062_s9 + $0x5c0] sm:$0xff]  ;;  %v3130_v51 = vadd.f32 %v2480_v23, %v817_v58  ;;  %v883_v14 = vadd.f32 %v7201_v26, %v860_v20  ;;  %v2323_v26 = vld [vmem:[%s12060_s7 + $0xe78] sm:$0xff]  ;;  %v3183_v23 = vld [vmem:[%s12062_s9 + $0x108] sm:$0xff] }
 0x347   :  { %3024 = vmatpush.msrb.mxu3 %v2266_v4  ;;  %3429 = vmatpush.msrb.mxu0 %v3158_v5  ;;  %v3234_v3 = vld [vmem:[%s12062_s9 + $0x2a0] sm:$0xff]  ;;  %v2347_v4 = vld [vmem:[%s12060_s7 + $0xf38] sm:$0xff]  ;;  %v2523_v5 = vadd.f32 %v2522_v12, %v2500_v24 }
 0x348   :  { %3444 = vmatpush.msrb.mxu1 %v3254_v48  ;;  %3093 = vmatpush.msra.mxu2 %v2139_v19  ;;  %v3230_v48 = vld [vmem:[%s12062_s9 + $0x280] sm:$0xff]  ;;  %v2502_v44 = vpop.f32.mrf.mxu0  ;;  %v9518_v9 = vmax.f32 %v3130_v51, 0.0  ;;  %v2315_v12 = vld [vmem:[%s12060_s7 + $0xe38] sm:$0xff]  ;;  %v3175_v51 = vld [vmem:[%s12062_s9 + $0xc8] sm:$0xff] }
 0x349   :  { %3025 = vmatpush.msrb.mxu3 %v2258_v54  ;;  %3430 = vmatpush.msrb.mxu0 %v3154_v31  ;;  %v3326_v19 = vld [vmem:[%s12062_s9 + $0x580] sm:$0xff]  ;;  %v2546_v54 = vadd.f32 %v2545_v56, %v2523_v5  ;;  %v2339_v31 = vld [vmem:[%s12060_s7 + $0xef8] sm:$0xff]  ;;  %v2376_v56 = vperm.slane %v9334_v10, 2 }
 0x34a   :  { %3445 = vmatpush.msrb.mxu1 %v3250_v37  ;;  %3094 = vmatpush.msra.mxu2 %v2131_v17  ;;  %v3195_v37 = vld [vmem:[%s12062_s9 + $0x168] sm:$0xff]  ;;  %v3226_v38 = vld [vmem:[%s12062_s9 + $0x260] sm:$0xff]  ;;  %v2307_v58 = vld [vmem:[%s12060_s7 + $0xdf8] sm:$0xff] }
 0x34b   :  { %3026 = vmatpush.msrb.mxu3 %v2250_v7  ;;  %3431 = vmatpush.msrb.mxu0 %v3150_v16  ;;  %v2569_v17 = vadd.f32 %v2568_v29, %v2546_v54  ;;  %v3322_v25 = vld [vmem:[%s12062_s9 + $0x560] sm:$0xff]  ;;  %v2525_v32 = vpop.f32.mrf.mxu1  ;;  %v2331_v7 = vld [vmem:[%s12060_s7 + $0xeb8] sm:$0xff]  ;;  %v3191_v16 = vld [vmem:[%s12062_s9 + $0x148] sm:$0xff]  ;;  %v2548_v8 = vpop.f32.mrf.mxu2 }
 0x34c   :  { %3446 = vmatpush.msrb.mxu1 %v3246_v18  ;;  %3027 = vmatmul.f32.vlgmr.msrb.gmra.mxu3 %v9240_v46  ;;  %v3222_v18 = vld [vmem:[%s12062_s9 + $0x240] sm:$0xff]  ;;  %v3271_v29 = vld [vmem:[%s12062_s9 + $0x3c8] sm:$0xff] }
 0x34d   :  { %3095 = vmatpush.msra.mxu2 %v2123_v52  ;;  %3103 = vmatpush.msra.mxu3 %v2371_v47  ;;  %v3318_v52 = vld [vmem:[%s12062_s9 + $0x540] sm:$0xff]  ;;  %v2503_v47 = vadd.f32 %v2502_v44, %v2375_v40  ;;  %v3127_v11 = vadd.f32 %v2569_v17, %v883_v14  ;;  %v2571_v49 = vpop.f32.mrf.mxu3  ;;  %v2283_v44 = vld [vmem:[%s12060_s7 + $0xd38] sm:$0xff]  ;;  %v3167_v17 = vld [vmem:[%s12062_s9 + $0x88] sm:$0xff] }
 0x34e   :  { %3432 = vmatmul.f32.vlgmr.msrb.gmra.mxu0 %v9458_v0  ;;  %3096 = vmatmul.f32.vlgmr.msra.gmra.mxu2 %v9050_v15  ;;  %v2355_v15 = vld [vmem:[%s12060_s7 + $0xf78] sm:$0xff]  ;;  %v3314_v40 = vld [vmem:[%s12062_s9 + $0x520] sm:$0xff]  ;;  %v3163_v14 = vld [vmem:[%s12062_s9 + $0x68] sm:$0xff] }
 0x34f   :  { %3508 = vmatpush.msra.mxu0 %v3211_v62  ;;  %3447 = vmatpush.msrb.mxu1 %v3242_v55  ;;  %v3218_v62 = vld [vmem:[%s12062_s9 + $0x220] sm:$0xff]  ;;  %v2526_v55 = vadd.f32 %v2525_v32, %v2503_v47 }
 0x350   :  { %3462 = vmatpush.msrb.mxu2 %v3338_v39  ;;  %3104 = vmatpush.msra.mxu3 %v2363_v28  ;;  %v3214_v39 = vld [vmem:[%s12062_s9 + $0x200] sm:$0xff] }
 0x351   :  { %3509 = vmatpush.msra.mxu0 %v3207_v59  ;;  %3448 = vmatpush.msrb.mxu1 %v3238_v60  ;;  %v3310_v28 = vld [vmem:[%s12062_s9 + $0x500] sm:$0xff]  ;;  %v863_v59 = vadd.f32 %v7255_v1, %v7191_v22  ;;  %v2549_v60 = vadd.f32 %v2548_v8, %v2526_v55  ;;  %v3275_v22 = vld [vmem:[%s12062_s9 + $0x3e8] sm:$0xff]  ;;  %v2591_v1 = vpop.f32.mrf.mxu0  ;;  %v929_v8 = vadd.f32 %v7238_v57, %v7236_v50  ;;  %v2259_v55 = vld [vmem:[%s12060_s7 + $0xc78] sm:$0xff] }
 0x352   :  { %3463 = vmatpush.msrb.mxu2 %v3334_v45  ;;  %3105 = vmatpush.msra.mxu3 %v2355_v15  ;;  %v9577_v45 = vmax.f32 %v3127_v11, 0.0  ;;  %v3179_v15 = vld [vmem:[%s12062_s9 + $0xe8] sm:$0xff]  ;;  %v3302_v5 = vld [vmem:[%s12062_s9 + $0x4c0] sm:$0xff] }
 0x353   :  { %3510 = vmatpush.msra.mxu0 %v3203_v21  ;;  %3449 = vmatpush.msrb.mxu1 %v3234_v3  ;;  %v2572_v24 = vadd.f32 %v2571_v49, %v2549_v60  ;;  %v3306_v21 = vld [vmem:[%s12062_s9 + $0x4e0] sm:$0xff]  ;;  %v2299_v3 = vld [vmem:[%s12060_s7 + $0xdb8] sm:$0xff]  ;;  %v2637_v20 = vpop.f32.mrf.mxu2  ;;  %v3159_v11 = vld [vmem:[%s12062_s9 + $0x48] sm:$0xff]  ;;  %v952_v57 = vadd.f32 %v7293_v34, %v929_v8 }
 0x354   :  { %3464 = vmatpush.msrb.mxu2 %v3330_v53  ;;  %3106 = vmatpush.msra.mxu3 %v2347_v4  ;;  %v886_v53 = vadd.f32 %v7257_v2, %v863_v59  ;;  %v2614_v4 = vpop.f32.mrf.mxu1  ;;  %v3171_v2 = vld [vmem:[%s12062_s9 + $0xa8] sm:$0xff]  ;;  %v3294_v32 = vld [vmem:[%s12062_s9 + $0x480] sm:$0xff]  ;;  %v2251_v59 = vld [vmem:[%s12060_s7 + $0xc38] sm:$0xff] }
 0x355   :  { %3511 = vmatpush.msra.mxu0 %v3199_v6  ;;  %3450 = vmatpush.msrb.mxu1 %v3230_v48  ;;  %v2291_v6 = vld [vmem:[%s12060_s7 + $0xd78] sm:$0xff]  ;;  %v2592_v48 = vadd.f32 %v2591_v1, %v2376_v56  ;;  %v3290_v47 = vld [vmem:[%s12062_s9 + $0x460] sm:$0xff]  ;;  %v3155_v49 = vld [vmem:[%s12062_s9 + $0x28] sm:$0xff] }
 0x356   :  { %3465 = vmatpush.msrb.mxu2 %v3326_v19  ;;  %3030 = vmatmul.f32.gmra.mxu3 %v9296_v63  ;;  %v3267_v19 = vld [vmem:[%s12062_s9 + $0x3a8] sm:$0xff]  ;;  %v3131_v54 = vadd.f32 %v2572_v24, %v886_v53  ;;  %v3286_v50 = vld [vmem:[%s12062_s9 + $0x440] sm:$0xff] }
 0x357   :  { %3107 = vmatpush.msra.mxu3 %v2339_v31  ;;  %3435 = vmatmul.f32.gmra.mxu0 %v9518_v9  ;;  %v3298_v31 = vld [vmem:[%s12062_s9 + $0x4a0] sm:$0xff]  ;;  %v3151_v60 = vld [vmem:[%s12062_s9 + $0x8] sm:$0xff] }
 0x358   :  { %3512 = vmatpush.msra.mxu0 %v3195_v37  ;;  %3099 = vmatmul.f32.gmra.mxu2 %v9106_v30  ;;  %v3187_v30 = vld [vmem:[%s12062_s9 + $0x128] sm:$0xff]  ;;  %v2615_v37 = vadd.f32 %v2614_v4, %v2592_v48  ;;  %v3282_v34 = vld [vmem:[%s12062_s9 + $0x420] sm:$0xff] }
 0x359   :  { %3451 = vmatpush.msrb.mxu1 %v3226_v38  ;;  %3466 = vmatpush.msrb.mxu2 %v3322_v25  ;;  %v3263_v38 = vld [vmem:[%s12062_s9 + $0x388] sm:$0xff]  ;;  %v2660_v25 = vpop.f32.mrf.mxu3  ;;  %v3402_v1 = vld [vmem:[%s12062_s9 + $0x7e0] sm:$0xff] }
 0x35a   :  { %3108 = vmatpush.msra.mxu3 %v2331_v7  ;;  %3513 = vmatpush.msra.mxu0 %v3191_v16  ;;  %v2275_v7 = vld [vmem:[%s12060_s7 + $0xcf8] sm:$0xff]  ;;  %v2638_v16 = vadd.f32 %v2637_v20, %v2615_v37  ;;  %v3339_v53 = vld [vmem:[%s12062_s9 + $0x5e8] sm:$0xff]  ;;  %v3398_v4 = vld [vmem:[%s12062_s9 + $0x7c0] sm:$0xff] }
 0x35b   :  { %3452 = vmatpush.msrb.mxu1 %v3222_v18  ;;  %3467 = vmatpush.msrb.mxu2 %v3318_v52  ;;  %v9634_v18 = vmax.f32 %v3131_v54, 0.0  ;;  %v3259_v52 = vld [vmem:[%s12062_s9 + $0x368] sm:$0xff]  ;;  %v3378_v8 = vld [vmem:[%s12062_s9 + $0x720] sm:$0xff] }
 0x35c   :  { %3109 = vmatpush.msra.mxu3 %v2323_v26  ;;  %3514 = vmatpush.msra.mxu0 %v3187_v30  ;;  %v2661_v26 = vadd.f32 %v2660_v25, %v2638_v16  ;;  %v2267_v30 = vld [vmem:[%s12060_s7 + $0xcb8] sm:$0xff]  ;;  %v3239_v48 = vld [vmem:[%s12062_s9 + $0x2c8] sm:$0xff]  ;;  %v3196_v25 = vld [vmem:[%s12062_s9 + $0x170] sm:$0xff] }
 0x35d   :  { %3453 = vmatpush.msrb.mxu1 %v3218_v62  ;;  %3468 = vmatpush.msrb.mxu2 %v3314_v40  ;;  %v2594_v62 = vpop.f32.mrf.mxu0  ;;  %v3255_v40 = vld [vmem:[%s12062_s9 + $0x348] sm:$0xff] }
 0x35e   :  { %3110 = vmatpush.msra.mxu3 %v2315_v12  ;;  %3515 = vmatpush.msra.mxu0 %v3183_v23  ;;  %v2617_v12 = vpop.f32.mrf.mxu1  ;;  %v3251_v23 = vld [vmem:[%s12062_s9 + $0x328] sm:$0xff] }
 0x35f   :  { %3454 = vmatpush.msrb.mxu1 %v3214_v39  ;;  %3469 = vmatpush.msrb.mxu2 %v3310_v28  ;;  %v2595_v39 = vadd.f32 %v2594_v62, %v2376_v56  ;;  %v3128_v28 = vadd.f32 %v2661_v26, %v952_v57  ;;  %v3278_v56 = vld [vmem:[%s12062_s9 + $0x400] sm:$0xff]  ;;  %v3235_v20 = vld [vmem:[%s12062_s9 + $0x2a8] sm:$0xff]  ;;  %v3188_v26 = vld [vmem:[%s12062_s9 + $0x130] sm:$0xff] }
 0x360   :  { %3111 = vmatpush.msra.mxu3 %v2307_v58  ;;  %3455 = vmatmul.f32.vlgmr.msrb.gmra.mxu1 %v9577_v45  ;;  %v2640_v58 = vpop.f32.mrf.mxu2  ;;  %v3331_v54 = vld [vmem:[%s12062_s9 + $0x5a8] sm:$0xff]  ;;  %v3374_v62 = vld [vmem:[%s12062_s9 + $0x700] sm:$0xff] }
 0x361   :  { %3516 = vmatpush.msra.mxu0 %v3179_v15  ;;  %3531 = vmatpush.msra.mxu1 %v3275_v22  ;;  %v3247_v15 = vld [vmem:[%s12062_s9 + $0x308] sm:$0xff]  ;;  %v2618_v22 = vadd.f32 %v2617_v12, %v2595_v39  ;;  %v2663_v24 = vpop.f32.mrf.mxu3  ;;  %v3370_v12 = vld [vmem:[%s12062_s9 + $0x6e0] sm:$0xff] }
 0x362   :  { %3470 = vmatpush.msrb.mxu2 %v3306_v21  ;;  %3112 = vmatpush.msra.mxu3 %v2299_v3  ;;  %v9687_v3 = vmax.f32 %v3128_v28, 0.0  ;;  %v3231_v37 = vld [vmem:[%s12062_s9 + $0x288] sm:$0xff] }
 0x363   :  { %3517 = vmatpush.msra.mxu0 %v3175_v51  ;;  %3532 = vmatpush.msra.mxu1 %v3271_v29  ;;  %v2641_v21 = vadd.f32 %v2640_v58, %v2618_v22  ;;  %v3212_v51 = vld [vmem:[%s12062_s9 + $0x1f0] sm:$0xff]  ;;  %v3243_v29 = vld [vmem:[%s12062_s9 + $0x2e8] sm:$0xff] }
 0x364   :  { %3471 = vmatpush.msrb.mxu2 %v3302_v5  ;;  %3113 = vmatpush.msra.mxu3 %v2291_v6  ;;  %v3208_v6 = vld [vmem:[%s12062_s9 + $0x1d0] sm:$0xff]  ;;  %v3323_v16 = vld [vmem:[%s12062_s9 + $0x568] sm:$0xff] }
 0x365   :  { %3518 = vmatpush.msra.mxu0 %v3171_v2  ;;  %3533 = vmatpush.msra.mxu1 %v3267_v19  ;;  %v2664_v5 = vadd.f32 %v2663_v24, %v2641_v21  ;;  %v3335_v2 = vld [vmem:[%s12062_s9 + $0x5c8] sm:$0xff]  ;;  %v3204_v19 = vld [vmem:[%s12062_s9 + $0x1b0] sm:$0xff] }
 0x366   :  { %3472 = vmatpush.msrb.mxu2 %v3298_v31  ;;  %3114 = vmatpush.msra.mxu3 %v2283_v44  ;;  %v3200_v44 = vld [vmem:[%s12062_s9 + $0x190] sm:$0xff]  ;;  %v3215_v57 = vld [vmem:[%s12062_s9 + $0x208] sm:$0xff]  ;;  %v2706_v39 = vpop.f32.mrf.mxu1 }
 0x367   :  { %3519 = vmatpush.msra.mxu0 %v3167_v17  ;;  %3534 = vmatpush.msra.mxu1 %v3263_v38  ;;  %v3327_v17 = vld [vmem:[%s12062_s9 + $0x588] sm:$0xff]  ;;  %v3386_v38 = vld [vmem:[%s12062_s9 + $0x760] sm:$0xff]  ;;  %v3176_v58 = vld [vmem:[%s12062_s9 + $0xd0] sm:$0xff] }
 0x368   :  { %3473 = vmatpush.msrb.mxu2 %v3294_v32  ;;  %3115 = vmatpush.msra.mxu3 %v2275_v7  ;;  %v3227_v7 = vld [vmem:[%s12062_s9 + $0x268] sm:$0xff]  ;;  %v2729_v22 = vpop.f32.mrf.mxu2  ;;  %v3172_v21 = vld [vmem:[%s12062_s9 + $0xb0] sm:$0xff] }
 0x369   :  { %3458 = vmatmul.f32.gmra.mxu1 %v9634_v18  ;;  %3520 = vmatpush.msra.mxu0 %v3163_v14  ;;  %v3382_v14 = vld [vmem:[%s12062_s9 + $0x740] sm:$0xff]  ;;  %v3307_v28 = vld [vmem:[%s12062_s9 + $0x4e8] sm:$0xff] }
 0x36a   :  { %3535 = vmatpush.msra.mxu1 %v3259_v52  ;;  %3474 = vmatpush.msrb.mxu2 %v3290_v47  ;;  %v3192_v52 = vld [vmem:[%s12062_s9 + $0x150] sm:$0xff]  ;;  %v3319_v47 = vld [vmem:[%s12062_s9 + $0x548] sm:$0xff] }
 0x36b   :  { %3116 = vmatpush.msra.mxu3 %v2267_v30  ;;  %3521 = vmatpush.msra.mxu0 %v3159_v11  ;;  %v3219_v30 = vld [vmem:[%s12062_s9 + $0x228] sm:$0xff] }
 0x36c   :  { %3536 = vmatpush.msra.mxu1 %v3255_v40  ;;  %3475 = vmatpush.msrb.mxu2 %v3286_v50  ;;  %v3315_v11 = vld [vmem:[%s12062_s9 + $0x528] sm:$0xff]  ;;  %v3184_v40 = vld [vmem:[%s12062_s9 + $0x110] sm:$0xff]  ;;  %v2377_v50 = vperm.slane %v9334_v10, 3 }
 0x36d   :  { %3117 = vmatpush.msra.mxu3 %v2259_v55  ;;  %3522 = vmatpush.msra.mxu0 %v3155_v49  ;;  %v3311_v55 = vld [vmem:[%s12062_s9 + $0x508] sm:$0xff]  ;;  %v2683_v49 = vpop.f32.mrf.mxu0 }
 0x36e   :  { %3537 = vmatpush.msra.mxu1 %v3251_v23  ;;  %3476 = vmatpush.msrb.mxu2 %v3282_v34  ;;  %v3180_v23 = vld [vmem:[%s12062_s9 + $0xf0] sm:$0xff]  ;;  %v3283_v10 = vld [vmem:[%s12062_s9 + $0x428] sm:$0xff] }
 0x36f   :  { %3118 = vmatpush.msra.mxu3 %v2251_v59  ;;  %3523 = vmatpush.msra.mxu0 %v3151_v60  ;;  %v3276_v34 = vld [vmem:[%s12062_s9 + $0x3f0] sm:$0xff]  ;;  %v3366_v59 = vld [vmem:[%s12062_s9 + $0x6c0] sm:$0xff]  ;;  %v2684_v60 = vadd.f32 %v2683_v49, %v2377_v50  ;;  %v3399_v49 = vld [vmem:[%s12062_s9 + $0x7c8] sm:$0xff] }
 0x370   :  { %3538 = vmatpush.msra.mxu1 %v3247_v15  ;;  %3119 = vmatmul.f32.vlgmr.msra.gmra.mxu3 %v9240_v46  ;;  %v932_v46 = vadd.f32 %v7291_v33, %v7289_v27  ;;  %v3394_v27 = vld [vmem:[%s12062_s9 + $0x7a0] sm:$0xff]  ;;  %v3272_v15 = vld [vmem:[%s12062_s9 + $0x3d0] sm:$0xff] }
 0x371   :  { %3477 = vmatpush.msrb.mxu2 %v3278_v56  ;;  %3485 = vmatpush.msrb.mxu3 %v3402_v1  ;;  %v3303_v56 = vld [vmem:[%s12062_s9 + $0x4c8] sm:$0xff]  ;;  %v3362_v1 = vld [vmem:[%s12062_s9 + $0x6a0] sm:$0xff]  ;;  %v2707_v24 = vadd.f32 %v2706_v39, %v2684_v60  ;;  %v3336_v39 = vld [vmem:[%s12062_s9 + $0x5d0] sm:$0xff] }
 0x372   :  { %3524 = vmatmul.f32.vlgmr.msra.gmra.mxu0 %v9458_v0  ;;  %3478 = vmatmul.f32.vlgmr.msrb.gmra.mxu2 %v9687_v3  ;;  %v955_v33 = vadd.f32 %v7301_v42, %v932_v46  ;;  %v3390_v42 = vld [vmem:[%s12062_s9 + $0x780] sm:$0xff]  ;;  %v998_v46 = vadd.f32 %v7297_v36, %v7295_v35  ;;  %v3236_v60 = vld [vmem:[%s12062_s9 + $0x2b0] sm:$0xff] }
 0x373   :  { %3600 = vmatpush.msrb.mxu0 %v3212_v51  ;;  %3539 = vmatpush.msra.mxu1 %v3243_v29  ;;  %v3268_v51 = vld [vmem:[%s12062_s9 + $0x3b0] sm:$0xff]  ;;  %v2752_v29 = vpop.f32.mrf.mxu3  ;;  %v3354_v35 = vld [vmem:[%s12062_s9 + $0x660] sm:$0xff] }
 0x374   :  { %3554 = vmatpush.msra.mxu2 %v3339_v53  ;;  %3486 = vmatpush.msrb.mxu3 %v3398_v4  ;;  %v3132_v31 = vadd.f32 %v2664_v5, %v955_v33  ;;  %v3299_v53 = vld [vmem:[%s12062_s9 + $0x4a8] sm:$0xff]  ;;  %v3358_v4 = vld [vmem:[%s12062_s9 + $0x680] sm:$0xff]  ;;  %v2730_v5 = vadd.f32 %v2729_v22, %v2707_v24  ;;  %v3201_v22 = vld [vmem:[%s12062_s9 + $0x198] sm:$0xff] }
 0x375   :  { %3601 = vmatpush.msrb.mxu0 %v3208_v6  ;;  %3540 = vmatpush.msra.mxu1 %v3239_v48  ;;  %v3168_v6 = vld [vmem:[%s12062_s9 + $0x90] sm:$0xff]  ;;  %v2686_v33 = vpop.f32.mrf.mxu0 }
 0x376   :  { %3555 = vmatpush.msra.mxu2 %v3335_v2  ;;  %3487 = vmatpush.msrb.mxu3 %v3394_v27  ;;  %v9746_v32 = vmax.f32 %v3132_v31, 0.0  ;;  %v3264_v48 = vld [vmem:[%s12062_s9 + $0x390] sm:$0xff]  ;;  %v3295_v2 = vld [vmem:[%s12062_s9 + $0x488] sm:$0xff]  ;;  %v2753_v36 = vadd.f32 %v2752_v29, %v2730_v5 }
 0x377   :  { %3602 = vmatpush.msrb.mxu0 %v3204_v19  ;;  %3541 = vmatpush.msra.mxu1 %v3235_v20  ;;  %v3164_v27 = vld [vmem:[%s12062_s9 + $0x70] sm:$0xff]  ;;  %v3291_v20 = vld [vmem:[%s12062_s9 + $0x468] sm:$0xff] }
 0x378   :  { %3556 = vmatpush.msra.mxu2 %v3331_v54  ;;  %3488 = vmatpush.msrb.mxu3 %v3390_v42  ;;  %v3260_v19 = vld [vmem:[%s12062_s9 + $0x370] sm:$0xff]  ;;  %v1021_v54 = vadd.f32 %v7299_v41, %v998_v46  ;;  %v3350_v42 = vld [vmem:[%s12062_s9 + $0x640] sm:$0xff]  ;;  %v3287_v41 = vld [vmem:[%s12062_s9 + $0x448] sm:$0xff] }
 0x379   :  { %3603 = vmatpush.msrb.mxu0 %v3200_v44  ;;  %3542 = vmatpush.msra.mxu1 %v3231_v37  ;;  %v3160_v31 = vld [vmem:[%s12062_s9 + $0x50] sm:$0xff]  ;;  %v2709_v44 = vpop.f32.mrf.mxu1  ;;  %v3193_v46 = vld [vmem:[%s12062_s9 + $0x158] sm:$0xff] }
 0x37a   :  { %3557 = vmatpush.msra.mxu2 %v3327_v17  ;;  %3122 = vmatmul.f32.gmra.mxu3 %v9296_v63  ;;  %v3223_v63 = vld [vmem:[%s12062_s9 + $0x248] sm:$0xff]  ;;  %v3256_v37 = vld [vmem:[%s12062_s9 + $0x350] sm:$0xff]  ;;  %v2687_v17 = vadd.f32 %v2686_v33, %v2377_v50  ;;  %v3185_v33 = vld [vmem:[%s12062_s9 + $0x118] sm:$0xff] }
 0x37b   :  { %3489 = vmatpush.msrb.mxu3 %v3386_v38  ;;  %3527 = vmatmul.f32.gmra.mxu0 %v9518_v9  ;;  %v3129_v38 = vadd.f32 %v2753_v36, %v1021_v54  ;;  %v3403_v50 = vld [vmem:[%s12062_s9 + $0x7e8] sm:$0xff]  ;;  %v3228_v29 = vld [vmem:[%s12062_s9 + $0x270] sm:$0xff] }
 0x37c   :  { %3604 = vmatpush.msrb.mxu0 %v3196_v25  ;;  %3481 = vmatmul.f32.gmra.mxu2 %v9746_v32  ;;  %v3346_v25 = vld [vmem:[%s12062_s9 + $0x620] sm:$0xff]  ;;  %v3224_v5 = vld [vmem:[%s12062_s9 + $0x250] sm:$0xff]  ;;  %v3371_v54 = vld [vmem:[%s12062_s9 + $0x6e8] sm:$0xff] }
 0x37d   :  { %3543 = vmatpush.msra.mxu1 %v3227_v7  ;;  %3558 = vmatpush.msra.mxu2 %v3323_v16  ;;  %v3156_v7 = vld [vmem:[%s12062_s9 + $0x30] sm:$0xff]  ;;  %v2732_v16 = vpop.f32.mrf.mxu2 }
 0x37e   :  { %3490 = vmatpush.msrb.mxu3 %v3382_v14  ;;  %3605 = vmatpush.msrb.mxu0 %v3192_v52  ;;  %v3252_v14 = vld [vmem:[%s12062_s9 + $0x330] sm:$0xff]  ;;  %v2710_v52 = vadd.f32 %v2709_v44, %v2687_v17  ;;  %v3273_v17 = vld [vmem:[%s12062_s9 + $0x3d8] sm:$0xff] }
 0x37f   :  { %3544 = vmatpush.msra.mxu1 %v3223_v63  ;;  %3559 = vmatpush.msra.mxu2 %v3319_v47  ;;  %v3342_v63 = vld [vmem:[%s12062_s9 + $0x600] sm:$0xff]  ;;  %v3152_v47 = vld [vmem:[%s12062_s9 + $0x10] sm:$0xff] }
 0x380   :  { %3491 = vmatpush.msrb.mxu3 %v3378_v8  ;;  %3606 = vmatpush.msrb.mxu0 %v3188_v26  ;;  %v2755_v8 = vpop.f32.mrf.mxu3  ;;  %v3248_v26 = vld [vmem:[%s12062_s9 + $0x310] sm:$0xff] }
 0x381   :  { %3545 = vmatpush.msra.mxu1 %v3219_v30  ;;  %3560 = vmatpush.msra.mxu2 %v3315_v11  ;;  %v1001_v30 = vadd.f32 %v7316_v61, %v7303_v43  ;;  %v2733_v11 = vadd.f32 %v2732_v16, %v2710_v52  ;;  %v3213_v43 = vld [vmem:[%s12062_s9 + $0x1f8] sm:$0xff]  ;;  %v3244_v61 = vld [vmem:[%s12062_s9 + $0x2f0] sm:$0xff] }
 0x382   :  { %3492 = vmatpush.msrb.mxu3 %v3374_v62  ;;  %3607 = vmatpush.msrb.mxu0 %v3184_v40  ;;  %v9898_v62 = vmax.f32 %v3129_v38, 0.0  ;;  %v3279_v40 = vld [vmem:[%s12062_s9 + $0x408] sm:$0xff]  ;;  %v3316_v36 = vld [vmem:[%s12062_s9 + $0x530] sm:$0xff]  ;;  %v3269_v16 = vld [vmem:[%s12062_s9 + $0x3b8] sm:$0xff] }
 0x383   :  { %3546 = vmatpush.msra.mxu1 %v3215_v57  ;;  %3561 = vmatpush.msra.mxu2 %v3311_v55  ;;  %v2756_v57 = vadd.f32 %v2755_v8, %v2733_v11  ;;  %v3340_v55 = vld [vmem:[%s12062_s9 + $0x5f0] sm:$0xff]  ;;  %v3169_v52 = vld [vmem:[%s12062_s9 + $0x98] sm:$0xff]  ;;  %v3355_v8 = vld [vmem:[%s12062_s9 + $0x668] sm:$0xff] }
 0x384   :  { %3493 = vmatpush.msrb.mxu3 %v3370_v12  ;;  %3547 = vmatmul.f32.vlgmr.msra.gmra.mxu1 %v9577_v45  ;;  %v1024_v12 = vadd.f32 %v7318_v13, %v1001_v30  ;;  %v3395_v13 = vld [vmem:[%s12062_s9 + $0x7a8] sm:$0xff]  ;;  %v3308_v44 = vld [vmem:[%s12062_s9 + $0x4f0] sm:$0xff]  ;;  %v3261_v30 = vld [vmem:[%s12062_s9 + $0x378] sm:$0xff] }
 0x385   :  { %3608 = vmatpush.msrb.mxu0 %v3180_v23  ;;  %3623 = vmatpush.msrb.mxu1 %v3276_v34  ;;  %v3209_v23 = vld [vmem:[%s12062_s9 + $0x1d8] sm:$0xff]  ;;  %v3240_v34 = vld [vmem:[%s12062_s9 + $0x2d0] sm:$0xff] }
 0x386   :  { %3562 = vmatpush.msra.mxu2 %v3307_v28  ;;  %3494 = vmatpush.msrb.mxu3 %v3366_v59  ;;  %v3133_v28 = vadd.f32 %v2756_v57, %v1024_v12  ;;  %v3205_v59 = vld [vmem:[%s12062_s9 + $0x1b8] sm:$0xff]  ;;  %v3304_v38 = vld [vmem:[%s12062_s9 + $0x4d0] sm:$0xff] }
 0x387   :  { %3609 = vmatpush.msrb.mxu0 %v3176_v58  ;;  %3624 = vmatpush.msrb.mxu1 %v3272_v15  ;;  %v3332_v58 = vld [vmem:[%s12062_s9 + $0x5b0] sm:$0xff]  ;;  %v3391_v15 = vld [vmem:[%s12062_s9 + $0x788] sm:$0xff]  ;;  %v3257_v57 = vld [vmem:[%s12062_s9 + $0x358] sm:$0xff] }
 0x388   :  { %3563 = vmatpush.msra.mxu2 %v3303_v56  ;;  %3495 = vmatpush.msrb.mxu3 %v3362_v1  ;;  %v3232_v56 = vld [vmem:[%s12062_s9 + $0x290] sm:$0xff]  ;;  %v9955_v24 = vmax.f32 %v3133_v28, 0.0 }
 0x389   :  { %3610 = vmatpush.msrb.mxu0 %v3172_v21  ;;  %3625 = vmatpush.msrb.mxu1 %v3268_v51  ;;  %v3328_v1 = vld [vmem:[%s12062_s9 + $0x590] sm:$0xff]  ;;  %v3387_v21 = vld [vmem:[%s12062_s9 + $0x768] sm:$0xff]  ;;  %v3197_v51 = vld [vmem:[%s12062_s9 + $0x178] sm:$0xff] }
 0x38a   :  { %3564 = vmatpush.msra.mxu2 %v3299_v53  ;;  %3496 = vmatpush.msrb.mxu3 %v3358_v4  ;;  %v3324_v53 = vld [vmem:[%s12062_s9 + $0x570] sm:$0xff]  ;;  %v3383_v4 = vld [vmem:[%s12062_s9 + $0x748] sm:$0xff] }
 0x38b   :  { %3611 = vmatpush.msrb.mxu0 %v3168_v6  ;;  %3626 = vmatpush.msrb.mxu1 %v3264_v48  ;;  %v3320_v6 = vld [vmem:[%s12062_s9 + $0x550] sm:$0xff]  ;;  %v3379_v48 = vld [vmem:[%s12062_s9 + $0x728] sm:$0xff] }
 0x38c   :  { %3565 = vmatpush.msra.mxu2 %v3295_v2  ;;  %3497 = vmatpush.msrb.mxu3 %v3354_v35  ;;  %v3189_v2 = vld [vmem:[%s12062_s9 + $0x138] sm:$0xff]  ;;  %v3220_v35 = vld [vmem:[%s12062_s9 + $0x230] sm:$0xff] }
 0x38d   :  { %3550 = vmatmul.f32.gmra.mxu1 %v9634_v18  ;;  %3612 = vmatpush.msrb.mxu0 %v3164_v27  ;;  %v3375_v27 = vld [vmem:[%s12062_s9 + $0x708] sm:$0xff]  ;;  %v3292_v11 = vld [vmem:[%s12062_s9 + $0x470] sm:$0xff] }
 0x38e   :  { %3627 = vmatpush.msrb.mxu1 %v3260_v19  ;;  %3566 = vmatpush.msra.mxu2 %v3291_v20  ;;  %v3216_v19 = vld [vmem:[%s12062_s9 + $0x210] sm:$0xff] }
 0x38f   :  { %3498 = vmatpush.msrb.mxu3 %v3350_v42  ;;  %3613 = vmatpush.msrb.mxu0 %v3160_v31  ;;  %v3312_v20 = vld [vmem:[%s12062_s9 + $0x510] sm:$0xff]  ;;  %v3181_v42 = vld [vmem:[%s12062_s9 + $0xf8] sm:$0xff] }
 0x390   :  { %3628 = vmatpush.msrb.mxu1 %v3256_v37  ;;  %3567 = vmatpush.msra.mxu2 %v3287_v41  ;;  %v3277_v31 = vld [vmem:[%s12062_s9 + $0x3f8] sm:$0xff]  ;;  %v3367_v37 = vld [vmem:[%s12062_s9 + $0x6c8] sm:$0xff]  ;;  %v3284_v12 = vld [vmem:[%s12062_s9 + $0x430] sm:$0xff] }
 0x391   :  { %3499 = vmatpush.msrb.mxu3 %v3346_v25  ;;  %3614 = vmatpush.msrb.mxu0 %v3156_v7  ;;  %v3177_v41 = vld [vmem:[%s12062_s9 + $0xd8] sm:$0xff]  ;;  %v3363_v25 = vld [vmem:[%s12062_s9 + $0x6a8] sm:$0xff]  ;;  %v3404_v28 = vld [vmem:[%s12062_s9 + $0x7f0] sm:$0xff] }
 0x392   :  { %3629 = vmatpush.msrb.mxu1 %v3252_v14  ;;  %3568 = vmatpush.msra.mxu2 %v3283_v10  ;;  %v3173_v7 = vld [vmem:[%s12062_s9 + $0xb8] sm:$0xff]  ;;  %v3300_v14 = vld [vmem:[%s12062_s9 + $0x4b0] sm:$0xff]  ;;  %v3359_v10 = vld [vmem:[%s12062_s9 + $0x688] sm:$0xff] }
 0x393   :  { %3500 = vmatpush.msrb.mxu3 %v3342_v63  ;;  %3615 = vmatpush.msrb.mxu0 %v3152_v47  ;;  %v3265_v63 = vld [vmem:[%s12062_s9 + $0x398] sm:$0xff]  ;;  %v3296_v47 = vld [vmem:[%s12062_s9 + $0x490] sm:$0xff] }
 0x394   :  { %3630 = vmatpush.msrb.mxu1 %v3248_v26  ;;  %3501 = vmatmul.f32.vlgmr.msrb.gmra.mxu3 %v9898_v62  ;;  %v3165_v26 = vld [vmem:[%s12062_s9 + $0x78] sm:$0xff] }
 0x395   :  { %3569 = vmatpush.msra.mxu2 %v3279_v40  ;;  %3577 = vmatpush.msra.mxu3 %v3403_v50  ;;  %v3351_v40 = vld [vmem:[%s12062_s9 + $0x648] sm:$0xff]  ;;  %v3161_v50 = vld [vmem:[%s12062_s9 + $0x58] sm:$0xff] }
 0x396   :  { %3616 = vmatmul.f32.vlgmr.msrb.gmra.mxu0 %v9458_v0  ;;  %3570 = vmatmul.f32.vlgmr.msra.gmra.mxu2 %v9687_v3 }
 0x397   :  { %3692 = vmatpush.msra.mxu0 %v3213_v43  ;;  %3631 = vmatpush.msrb.mxu1 %v3244_v61  ;;  %v3288_v43 = vld [vmem:[%s12062_s9 + $0x450] sm:$0xff]  ;;  %v3347_v61 = vld [vmem:[%s12062_s9 + $0x628] sm:$0xff] }
 0x398   :  { %3646 = vmatpush.msrb.mxu2 %v3340_v55  ;;  %3578 = vmatpush.msra.mxu3 %v3399_v49  ;;  %v3157_v55 = vld [vmem:[%s12062_s9 + $0x38] sm:$0xff] }
 0x399   :  { %3693 = vmatpush.msra.mxu0 %v3209_v23  ;;  %3632 = vmatpush.msrb.mxu1 %v3240_v34  ;;  %v3253_v49 = vld [vmem:[%s12062_s9 + $0x338] sm:$0xff]  ;;  %v3343_v23 = vld [vmem:[%s12062_s9 + $0x608] sm:$0xff] }
 0x39a   :  { %3647 = vmatpush.msrb.mxu2 %v3336_v39  ;;  %3579 = vmatpush.msra.mxu3 %v3395_v13  ;;  %v3153_v34 = vld [vmem:[%s12062_s9 + $0x18] sm:$0xff]  ;;  %v3280_v13 = vld [vmem:[%s12062_s9 + $0x410] sm:$0xff] }
 0x39b   :  { %3694 = vmatpush.msra.mxu0 %v3205_v59  ;;  %3633 = vmatpush.msrb.mxu1 %v3236_v60  ;;  %v3249_v39 = vld [vmem:[%s12062_s9 + $0x318] sm:$0xff] }
 0x39c   :  { %3648 = vmatpush.msrb.mxu2 %v3332_v58  ;;  %3580 = vmatpush.msra.mxu3 %v3391_v15  ;;  %v3245_v59 = vld [vmem:[%s12062_s9 + $0x2f8] sm:$0xff]  ;;  %v3400_v58 = vld [vmem:[%s12062_s9 + $0x7d0] sm:$0xff] }
 0x39d   :  { %3695 = vmatpush.msra.mxu0 %v3201_v22  ;;  %3634 = vmatpush.msrb.mxu1 %v3232_v56  ;;  %v3341_v60 = vld [vmem:[%s12062_s9 + $0x5f8] sm:$0xff]  ;;  %v3396_v56 = vld [vmem:[%s12062_s9 + $0x7b0] sm:$0xff] }
 0x39e   :  { %3649 = vmatpush.msrb.mxu2 %v3328_v1  ;;  %3504 = vmatmul.f32.gmra.mxu3 %v9955_v24  ;;  %v3241_v15 = vld [vmem:[%s12062_s9 + $0x2d8] sm:$0xff] }
 0x39f   :  { %3581 = vmatpush.msra.mxu3 %v3387_v21  ;;  %3619 = vmatmul.f32.gmra.mxu0 %v9518_v9  ;;  %v3337_v22 = vld [vmem:[%s12062_s9 + $0x5d8] sm:$0xff]  ;;  %v3392_v21 = vld [vmem:[%s12062_s9 + $0x790] sm:$0xff] }
 0x3a0   :  { %3696 = vmatpush.msra.mxu0 %v3197_v51  ;;  %3573 = vmatmul.f32.gmra.mxu2 %v9746_v32  ;;  %v3333_v1 = vld [vmem:[%s12062_s9 + $0x5b8] sm:$0xff] }
 0x3a1   :  { %3635 = vmatpush.msrb.mxu1 %v3228_v29  ;;  %3650 = vmatpush.msrb.mxu2 %v3324_v53  ;;  %v3233_v51 = vld [vmem:[%s12062_s9 + $0x298] sm:$0xff]  ;;  %v3388_v53 = vld [vmem:[%s12062_s9 + $0x770] sm:$0xff] }
 0x3a2   :  { %3582 = vmatpush.msra.mxu3 %v3383_v4  ;;  %3697 = vmatpush.msra.mxu0 %v3193_v46  ;;  %v3329_v29 = vld [vmem:[%s12062_s9 + $0x598] sm:$0xff] }
 0x3a3   :  { %3636 = vmatpush.msrb.mxu1 %v3224_v5  ;;  %3651 = vmatpush.msrb.mxu2 %v3320_v6  ;;  %v3229_v4 = vld [vmem:[%s12062_s9 + $0x278] sm:$0xff]  ;;  %v3384_v5 = vld [vmem:[%s12062_s9 + $0x750] sm:$0xff] }
 0x3a4   :  { %3583 = vmatpush.msra.mxu3 %v3379_v48  ;;  %3698 = vmatpush.msra.mxu0 %v3189_v2  ;;  %v3325_v46 = vld [vmem:[%s12062_s9 + $0x578] sm:$0xff] }
 0x3a5   :  { %3637 = vmatpush.msrb.mxu1 %v3220_v35  ;;  %3652 = vmatpush.msrb.mxu2 %v3316_v36  ;;  %v3225_v6 = vld [vmem:[%s12062_s9 + $0x258] sm:$0xff]  ;;  %v3376_v36 = vld [vmem:[%s12062_s9 + $0x710] sm:$0xff] }
 0x3a6   :  { %3584 = vmatpush.msra.mxu3 %v3375_v27  ;;  %3699 = vmatpush.msra.mxu0 %v3185_v33  ;;  %v3321_v48 = vld [vmem:[%s12062_s9 + $0x558] sm:$0xff]  ;;  %v10181_v33 = vpop.f32.mrf.mxu0 }
 0x3a7   :  { %3638 = vmatpush.msrb.mxu1 %v3216_v19  ;;  %3653 = vmatpush.msrb.mxu2 %v3312_v20  ;;  %v3221_v2 = vld [vmem:[%s12062_s9 + $0x238] sm:$0xff] }
 0x3a8   :  { %3585 = vmatpush.msra.mxu3 %v3371_v54  ;;  %3639 = vmatmul.f32.vlgmr.msrb.gmra.mxu1 %v9577_v45  ;;  %v3317_v35 = vld [vmem:[%s12062_s9 + $0x538] sm:$0xff]  ;;  %v3372_v54 = vld [vmem:[%s12062_s9 + $0x6f0] sm:$0xff] }
 0x3a9   :  { %3700 = vmatpush.msra.mxu0 %v3181_v42  ;;  %3715 = vmatpush.msra.mxu1 %v3277_v31  ;;  %v3807_v27 = vld [vmem:[%s12064_s11 + $0x78] sm:$0xff]  ;;  %v3806_v42 = vld [vmem:[%s12064_s11 + $0x70] sm:$0xff]  ;;  %v10195_v31 = vpop.f32.mrf.mxu1 }
 0x3aa   :  { %3654 = vmatpush.msrb.mxu2 %v3308_v44  ;;  %3586 = vmatpush.msra.mxu3 %v3367_v37  ;;  %v3217_v19 = vld [vmem:[%s12062_s9 + $0x218] sm:$0xff]  ;;  %v3368_v37 = vld [vmem:[%s12062_s9 + $0x6d0] sm:$0xff] }
 0x3ab   :  { %3701 = vmatpush.msra.mxu0 %v3177_v41  ;;  %3716 = vmatpush.msra.mxu1 %v3273_v17  ;;  %v3313_v20 = vld [vmem:[%s12062_s9 + $0x518] sm:$0xff]  ;;  %v3805_v41 = vld [vmem:[%s12064_s11 + $0x68] sm:$0xff]  ;;  %v10206_v17 = vpop.f32.mrf.mxu2 }
 0x3ac   :  { %3655 = vmatpush.msrb.mxu2 %v3304_v38  ;;  %3587 = vmatpush.msra.mxu3 %v3363_v25  ;;  %v3309_v44 = vld [vmem:[%s12062_s9 + $0x4f8] sm:$0xff]  ;;  %v3364_v25 = vld [vmem:[%s12062_s9 + $0x6b0] sm:$0xff] }
 0x3ad   :  { %3702 = vmatpush.msra.mxu0 %v3173_v7  ;;  %3717 = vmatpush.msra.mxu1 %v3269_v16  ;;  %v3305_v38 = vld [vmem:[%s12062_s9 + $0x4d8] sm:$0xff]  ;;  %v3804_v7 = vld [vmem:[%s12064_s11 + $0x60] sm:$0xff] }
 0x3ae   :  { %3656 = vmatpush.msrb.mxu2 %v3300_v14  ;;  %3588 = vmatpush.msra.mxu3 %v3359_v10  ;;  %v3301_v16 = vld [vmem:[%s12062_s9 + $0x4b8] sm:$0xff]  ;;  %v10227_v10 = vpop.f32.mrf.mxu3 }
 0x3af   :  { %3703 = vmatpush.msra.mxu0 %v3169_v52  ;;  %3718 = vmatpush.msra.mxu1 %v3265_v63  ;;  %v3803_v14 = vld [vmem:[%s12064_s11 + $0x58] sm:$0xff]  ;;  %v3356_v63 = vld [vmem:[%s12062_s9 + $0x670] sm:$0xff] }
 0x3b0   :  { %3657 = vmatpush.msrb.mxu2 %v3296_v47  ;;  %3589 = vmatpush.msra.mxu3 %v3355_v8  ;;  %v3297_v52 = vld [vmem:[%s12062_s9 + $0x498] sm:$0xff]  ;;  %v3802_v47 = vld [vmem:[%s12064_s11 + $0x50] sm:$0xff]  ;;  %v10238_v8 = vpop.f32.mrf.mxu0 }
 0x3b1   :  { %3642 = vmatmul.f32.gmra.mxu1 %v9634_v18  ;;  %3704 = vmatpush.msra.mxu0 %v3165_v26  ;;  %v3293_v26 = vld [vmem:[%s12062_s9 + $0x478] sm:$0xff] }
 0x3b2   :  { %3719 = vmatpush.msra.mxu1 %v3261_v30  ;;  %3658 = vmatpush.msrb.mxu2 %v3292_v11  ;;  %v3352_v30 = vld [vmem:[%s12062_s9 + $0x650] sm:$0xff]  ;;  %v3801_v11 = vld [vmem:[%s12064_s11 + $0x48] sm:$0xff] }
 0x3b3   :  { %3590 = vmatpush.msra.mxu3 %v3351_v40  ;;  %3705 = vmatpush.msra.mxu0 %v3161_v50  ;;  %v10249_v40 = vpop.f32.mrf.mxu1  ;;  %v3289_v50 = vld [vmem:[%s12062_s9 + $0x458] sm:$0xff] }
 0x3b4   :  { %3720 = vmatpush.msra.mxu1 %v3257_v57  ;;  %3659 = vmatpush.msrb.mxu2 %v3288_v43  ;;  %v3348_v57 = vld [vmem:[%s12062_s9 + $0x630] sm:$0xff]  ;;  %v3800_v43 = vld [vmem:[%s12064_s11 + $0x40] sm:$0xff] }
 0x3b5   :  { %3591 = vmatpush.msra.mxu3 %v3347_v61  ;;  %3706 = vmatpush.msra.mxu0 %v3157_v55  ;;  %v10261_v61 = vpop.f32.mrf.mxu2  ;;  %v3344_v55 = vld [vmem:[%s12062_s9 + $0x610] sm:$0xff] }
 0x3b6   :  { %3721 = vmatpush.msra.mxu1 %v3253_v49  ;;  %3660 = vmatpush.msrb.mxu2 %v3284_v12  ;;  %v3799_v49 = vld [vmem:[%s12064_s11 + $0x38] sm:$0xff] }
 0x3b7   :  { %3592 = vmatpush.msra.mxu3 %v3343_v23  ;;  %3707 = vmatpush.msra.mxu0 %v3153_v34  ;;  %v3281_v12 = vld [vmem:[%s12062_s9 + $0x418] sm:$0xff] }
 0x3b8   :  { %3722 = vmatpush.msra.mxu1 %v3249_v39  ;;  %3593 = vmatmul.f32.vlgmr.msra.gmra.mxu3 %v9898_v62  ;;  %v3405_v23 = vld [vmem:[%s12062_s9 + $0x7f8] sm:$0xff]  ;;  %v10278_v34 = vpop.f32.mrf.mxu0  ;;  %v10280_v39 = vpop.f32.mrf.mxu3 }
 0x3b9   :  { %3661 = vmatpush.msrb.mxu2 %v3280_v13  ;;  %3669 = vmatpush.msrb.mxu3 %v3404_v28  ;;  %v3798_v13 = vld [vmem:[%s12064_s11 + $0x30] sm:$0xff]  ;;  %v3401_v28 = vld [vmem:[%s12062_s9 + $0x7d8] sm:$0xff] }
 0x3ba   :  { %3708 = vmatmul.f32.vlgmr.msra.gmra.mxu0 %v9458_v0  ;;  %3662 = vmatmul.f32.vlgmr.msrb.gmra.mxu2 %v9687_v3  ;;  %v3237_v0 = vld [vmem:[%s12062_s9 + $0x2b8] sm:$0xff] }
 0x3bb   :  { %3723 = vmatpush.msra.mxu1 %v3245_v59  ;;  %3738 = vmatpush.msra.mxu2 %v3341_v60  ;;  %v10289_v59 = vpop.f32.mrf.mxu1  ;;  %v3797_v60 = vld [vmem:[%s12064_s11 + $0x28] sm:$0xff] }
 0x3bc   :  { %3670 = vmatpush.msrb.mxu3 %v3400_v58  ;;  %3860 = vmatpush.msrb.mxu0 %v3807_v27  ;;  %v3397_v58 = vld [vmem:[%s12062_s9 + $0x7b8] sm:$0xff] }
 0x3bd   :  { %3724 = vmatpush.msra.mxu1 %v3241_v15  ;;  %3739 = vmatpush.msra.mxu2 %v3337_v22  ;;  %v10298_v15 = vpop.f32.mrf.mxu2  ;;  %v3796_v22 = vld [vmem:[%s12064_s11 + $0x20] sm:$0xff]  ;;  %v3373_v27 = vld [vmem:[%s12062_s9 + $0x6f8] sm:$0xff] }
 0x3be   :  { %3671 = vmatpush.msrb.mxu3 %v3396_v56  ;;  %3861 = vmatpush.msrb.mxu0 %v3806_v42  ;;  %v3795_v56 = vld [vmem:[%s12064_s11 + $0x18] sm:$0xff]  ;;  %v4006_v42 = vld [vmem:[%s12066_s13 + $0x1a0] sm:$0xff] }
 0x3bf   :  { %3725 = vmatpush.msra.mxu1 %v3237_v0  ;;  %3740 = vmatpush.msra.mxu2 %v3333_v1  ;;  %v3389_v0 = vld [vmem:[%s12062_s9 + $0x778] sm:$0xff] }
 0x3c0   :  { %3672 = vmatpush.msrb.mxu3 %v3392_v21  ;;  %3862 = vmatpush.msrb.mxu0 %v3805_v41  ;;  %v10312_v1 = vpop.f32.mrf.mxu3  ;;  %v3794_v21 = vld [vmem:[%s12064_s11 + $0x10] sm:$0xff] }
 0x3c1   :  { %3726 = vmatpush.msra.mxu1 %v3233_v51  ;;  %3741 = vmatpush.msra.mxu2 %v3329_v29  ;;  %v3385_v51 = vld [vmem:[%s12062_s9 + $0x758] sm:$0xff]  ;;  %v3818_v41 = vld [vmem:[%s12064_s11 + $0xd0] sm:$0xff] }
 0x3c2   :  { %3596 = vmatmul.f32.gmra.mxu3 %v9955_v24  ;;  %3711 = vmatmul.f32.gmra.mxu0 %v9518_v9  ;;  %v3380_v9 = vld [vmem:[%s12062_s9 + $0x730] sm:$0xff]  ;;  %v3823_v29 = vld [vmem:[%s12064_s11 + $0xf8] sm:$0xff] }
 0x3c3   :  { %3673 = vmatpush.msrb.mxu3 %v3388_v53  ;;  %3665 = vmatmul.f32.gmra.mxu2 %v9746_v32  ;;  %v10324_v53 = vpop.f32.mrf.mxu0 }
 0x3c4   :  { %3727 = vmatpush.msra.mxu1 %v3229_v4  ;;  %3742 = vmatpush.msra.mxu2 %v3325_v46  ;;  %v3793_v4 = vld [vmem:[%s12064_s11 + $0x8] sm:$0xff]  ;;  %v3822_v46 = vld [vmem:[%s12064_s11 + $0xf0] sm:$0xff] }
 0x3c5   :  { %3674 = vmatpush.msrb.mxu3 %v3384_v5  ;;  %3863 = vmatpush.msrb.mxu0 %v3804_v7  ;;  %v3381_v5 = vld [vmem:[%s12062_s9 + $0x738] sm:$0xff] }
 0x3c6   :  { %3728 = vmatpush.msra.mxu1 %v3225_v6  ;;  %3743 = vmatpush.msra.mxu2 %v3321_v48  ;;  %v10336_v6 = vpop.f32.mrf.mxu1  ;;  %v3821_v48 = vld [vmem:[%s12064_s11 + $0xe8] sm:$0xff] }
 0x3c7   :  { %3675 = vmatpush.msrb.mxu3 %v3380_v9  ;;  %3864 = vmatpush.msrb.mxu0 %v3803_v14  ;;  %v3377_v9 = vld [vmem:[%s12062_s9 + $0x718] sm:$0xff]  ;;  %v3998_v14 = vld [vmem:[%s12066_s13 + $0x160] sm:$0xff] }
 0x3c8   :  { %3729 = vmatpush.msra.mxu1 %v3221_v2  ;;  %3744 = vmatpush.msra.mxu2 %v3317_v35  ;;  %v4014_v2 = vld [vmem:[%s12066_s13 + $0x1e0] sm:$0xff]  ;;  %v10350_v35 = vpop.f32.mrf.mxu2 }
 0x3c9   :  { %3676 = vmatpush.msrb.mxu3 %v3376_v36  ;;  %3865 = vmatpush.msrb.mxu0 %v3802_v47  ;;  %v3820_v36 = vld [vmem:[%s12064_s11 + $0xe0] sm:$0xff]  ;;  %v3357_v47 = vld [vmem:[%s12062_s9 + $0x678] sm:$0xff] }
 0x3ca   :  { %3730 = vmatpush.msra.mxu1 %v3217_v19  ;;  %3745 = vmatpush.msra.mxu2 %v3313_v20  ;;  %v4010_v19 = vld [vmem:[%s12066_s13 + $0x1c0] sm:$0xff]  ;;  %v3819_v20 = vld [vmem:[%s12064_s11 + $0xd8] sm:$0xff] }
 0x3cb   :  { %3677 = vmatpush.msrb.mxu3 %v3372_v54  ;;  %3731 = vmatmul.f32.vlgmr.msra.gmra.mxu1 %v9577_v45  ;;  %v3360_v45 = vld [vmem:[%s12062_s9 + $0x690] sm:$0xff]  ;;  %v3369_v54 = vld [vmem:[%s12062_s9 + $0x6d8] sm:$0xff] }
 0x3cc   :  { %3746 = vmatpush.msra.mxu2 %v3309_v44  ;;  %3866 = vmatpush.msrb.mxu0 %v3801_v11  ;;  %v10370_v44 = vpop.f32.mrf.mxu0  ;;  %v3353_v11 = vld [vmem:[%s12062_s9 + $0x658] sm:$0xff] }
 0x3cd   :  { %3678 = vmatpush.msrb.mxu3 %v3368_v37  ;;  %3883 = vmatpush.msrb.mxu1 %v3823_v29  ;;  %v10372_v37 = vpop.f32.mrf.mxu3 }
 0x3ce   :  { %3747 = vmatpush.msra.mxu2 %v3305_v38  ;;  %3867 = vmatpush.msrb.mxu0 %v3800_v43  ;;  %v3365_v38 = vld [vmem:[%s12062_s9 + $0x6b8] sm:$0xff]  ;;  %v10383_v7 = vpop.f32.mrf.mxu1  ;;  %v3814_v43 = vld [vmem:[%s12064_s11 + $0xb0] sm:$0xff] }
 0x3cf   :  { %3679 = vmatpush.msrb.mxu3 %v3364_v25  ;;  %3884 = vmatpush.msrb.mxu1 %v3822_v46  ;;  %v4002_v25 = vld [vmem:[%s12066_s13 + $0x180] sm:$0xff]  ;;  %v3839_v46 = vld [vmem:[%s12064_s11 + $0x178] sm:$0xff] }
 0x3d0   :  { %3748 = vmatpush.msra.mxu2 %v3301_v16  ;;  %3868 = vmatpush.msrb.mxu0 %v3799_v49  ;;  %v3817_v16 = vld [vmem:[%s12064_s11 + $0xc8] sm:$0xff] }
 0x3d1   :  { %3680 = vmatpush.msrb.mxu3 %v3360_v45  ;;  %3885 = vmatpush.msrb.mxu1 %v3821_v48  ;;  %v3361_v45 = vld [vmem:[%s12062_s9 + $0x698] sm:$0xff]  ;;  %v3838_v48 = vld [vmem:[%s12064_s11 + $0x170] sm:$0xff] }
 0x3d2   :  { %3749 = vmatpush.msra.mxu2 %v3297_v52  ;;  %3869 = vmatpush.msrb.mxu0 %v3798_v13  ;;  %v10394_v52 = vpop.f32.mrf.mxu2  ;;  %v3982_v13 = vld [vmem:[%s12066_s13 + $0xe0] sm:$0xff] }
 0x3d3   :  { %3681 = vmatpush.msrb.mxu3 %v3356_v63  ;;  %3734 = vmatmul.f32.gmra.mxu1 %v9634_v18  ;;  %v3285_v18 = vld [vmem:[%s12062_s9 + $0x438] sm:$0xff]  ;;  %v3816_v63 = vld [vmem:[%s12064_s11 + $0xc0] sm:$0xff] }
 0x3d4   :  { %3750 = vmatpush.msra.mxu2 %v3293_v26  ;;  %3870 = vmatpush.msrb.mxu0 %v3797_v60  ;;  %v3994_v26 = vld [vmem:[%s12066_s13 + $0x140] sm:$0xff]  ;;  %v10425_v49 = vpop.f32.mrf.mxu0 }
 0x3d5   :  { %3682 = vmatpush.msrb.mxu3 %v3352_v30  ;;  %3886 = vmatpush.msrb.mxu1 %v3820_v36  ;;  %v3815_v30 = vld [vmem:[%s12064_s11 + $0xb8] sm:$0xff]  ;;  %v3812_v60 = vld [vmem:[%s12064_s11 + $0xa0] sm:$0xff] }
 0x3d6   :  { %3751 = vmatpush.msra.mxu2 %v3289_v50  ;;  %3871 = vmatpush.msrb.mxu0 %v3796_v22  ;;  %v3990_v50 = vld [vmem:[%s12066_s13 + $0x120] sm:$0xff] }
 0x3d7   :  { %3683 = vmatpush.msrb.mxu3 %v3348_v57  ;;  %3887 = vmatpush.msrb.mxu1 %v3819_v20  ;;  %v10414_v57 = vpop.f32.mrf.mxu3  ;;  %v3954_v20 = vld [vmem:[%s12066_s13] sm:$0xff] }
 0x3d8   :  { %3752 = vmatpush.msra.mxu2 %v3285_v18  ;;  %3872 = vmatpush.msrb.mxu0 %v3795_v56  ;;  %v3349_v18 = vld [vmem:[%s12062_s9 + $0x638] sm:$0xff]  ;;  %v3974_v56 = vld [vmem:[%s12066_s13 + $0xa0] sm:$0xff] }
 0x3d9   :  { %3684 = vmatpush.msrb.mxu3 %v3344_v55  ;;  %3888 = vmatpush.msrb.mxu1 %v3818_v41  ;;  %v3986_v55 = vld [vmem:[%s12066_s13 + $0x100] sm:$0xff] }
 0x3da   :  { %3685 = vmatmul.f32.vlgmr.msrb.gmra.mxu3 %v9898_v62  ;;  %3753 = vmatpush.msra.mxu2 %v3281_v12  ;;  %v3813_v12 = vld [vmem:[%s12064_s11 + $0xa8] sm:$0xff]  ;;  %v10444_v22 = vpop.f32.mrf.mxu2  ;;  %v3836_v41 = vld [vmem:[%s12064_s11 + $0x160] sm:$0xff] }
 0x3db   :  { %3761 = vmatpush.msra.mxu3 %v3405_v23  ;;  %3754 = vmatmul.f32.vlgmr.msra.gmra.mxu2 %v9687_v3  ;;  %v3393_v3 = vld [vmem:[%s12062_s9 + $0x798] sm:$0xff] }
 0x3dc   :  { %3873 = vmatpush.msrb.mxu0 %v3794_v21  ;;  %3889 = vmatpush.msrb.mxu1 %v3817_v16  ;;  %v3345_v23 = vld [vmem:[%s12062_s9 + $0x618] sm:$0xff]  ;;  %v3970_v21 = vld [vmem:[%s12066_s13 + $0x80] sm:$0xff] }
 0x3dd   :  { %3762 = vmatpush.msra.mxu3 %v3401_v28  ;;  %v10436_v28 = vpop.f32.mrf.mxu1  ;;  %3906 = vmatpush.msrb.mxu2 %v3839_v46  ;;  %v3835_v16 = vld [vmem:[%s12064_s11 + $0x158] sm:$0xff] }
 0x3de   :  { %3874 = vmatpush.msrb.mxu0 %v3793_v4  ;;  %3890 = vmatpush.msrb.mxu1 %v3816_v63  ;;  %v3966_v4 = vld [vmem:[%s12066_s13 + $0x60] sm:$0xff]  ;;  %v3834_v63 = vld [vmem:[%s12064_s11 + $0x150] sm:$0xff] }
 0x3df   :  { %3763 = vmatpush.msra.mxu3 %v3397_v58  ;;  %v3978_v58 = vld [vmem:[%s12066_s13 + $0xc0] sm:$0xff]  ;;  %v10461_v29 = vpop.f32.mrf.mxu3  ;;  %3907 = vmatpush.msrb.mxu2 %v3838_v48  ;;  %v3829_v48 = vld [vmem:[%s12064_s11 + $0x128] sm:$0xff] }
 0x3e0   :  { %3891 = vmatpush.msrb.mxu1 %v3815_v30 }
 0x3e1   :  { %3764 = vmatpush.msra.mxu3 %v3393_v3  ;;  %v3811_v3 = vld [vmem:[%s12064_s11 + $0x98] sm:$0xff] }
 0x3e2   :  { %3688 = vmatmul.f32.gmra.mxu3 %v9955_v24  ;;  %3892 = vmatpush.msrb.mxu1 %v3814_v43  ;;  %v10486_v36 = vpop.f32.mrf.mxu2 }
 0x3e3   :  { %3765 = vmatpush.msra.mxu3 %v3389_v0  ;;  %3757 = vmatmul.f32.gmra.mxu2 %v9746_v32  ;;  %v3792_v32 = vld [vmem:[%s12064_s11] sm:$0xff]  ;;  %v3810_v0 = vld [vmem:[%s12064_s11 + $0x90] sm:$0xff] }
 0x3e4   :  { %3875 = vmatpush.msrb.mxu0 %v3792_v32  ;;  %3893 = vmatpush.msrb.mxu1 %v3813_v12  ;;  %v3808_v32 = vld [vmem:[%s12064_s11 + $0x80] sm:$0xff] }
 0x3e5   :  { %3766 = vmatpush.msra.mxu3 %v3385_v51  ;;  %v10459_v51 = vpop.f32.mrf.mxu0  ;;  %v3832_v12 = vld [vmem:[%s12064_s11 + $0x140] sm:$0xff] }
 0x3e6   :  { %4220 = vmatpush.msra.mxu0 %v4014_v2  ;;  %3894 = vmatpush.msrb.mxu1 %v3812_v60  ;;  %v4078_v2 = vld [vmem:[%s12066_s13 + $0x3e0] sm:$0xff] }
 0x3e7   :  { %3767 = vmatpush.msra.mxu3 %v3381_v5  ;;  %v10472_v5 = vpop.f32.mrf.mxu1  ;;  %v4046_v60 = vld [vmem:[%s12066_s13 + $0x2e0] sm:$0xff] }
 0x3e8   :  { %4221 = vmatpush.msra.mxu0 %v4010_v19  ;;  %3895 = vmatpush.msrb.mxu1 %v3811_v3  ;;  %v4074_v19 = vld [vmem:[%s12066_s13 + $0x3c0] sm:$0xff]  ;;  %v3830_v3 = vld [vmem:[%s12064_s11 + $0x130] sm:$0xff] }
 0x3e9   :  { %3768 = vmatpush.msra.mxu3 %v3377_v9  ;;  %v3962_v9 = vld [vmem:[%s12066_s13 + $0x40] sm:$0xff] }
 0x3ea   :  { %4222 = vmatpush.msra.mxu0 %v4006_v42  ;;  %3896 = vmatpush.msrb.mxu1 %v3810_v0  ;;  %v10533_v30 = vpop.f32.mrf.mxu2  ;;  %v4042_v0 = vld [vmem:[%s12066_s13 + $0x2c0] sm:$0xff] }
 0x3eb   :  { %3769 = vmatpush.msra.mxu3 %v3373_v27  ;;  %v3958_v27 = vld [vmem:[%s12066_s13 + $0x20] sm:$0xff] }
 0x3ec   :  { %4223 = vmatpush.msra.mxu0 %v4002_v25 }
 0x3ed   :  { %3770 = vmatpush.msra.mxu3 %v3369_v54  ;;  %v3837_v54 = vld [vmem:[%s12064_s11 + $0x168] sm:$0xff]  ;;  %v10512_v25 = vpop.f32.mrf.mxu0 }
 0x3ee   :  { %4224 = vmatpush.msra.mxu0 %v3998_v14  ;;  %3908 = vmatpush.msrb.mxu2 %v3837_v54  ;;  %v4015_v54 = vld [vmem:[%s12066_s13 + $0x1e8] sm:$0xff] }
 0x3ef   :  { %3771 = vmatpush.msra.mxu3 %v3365_v38  ;;  %v4066_v38 = vld [vmem:[%s12066_s13 + $0x380] sm:$0xff]  ;;  %v10520_v14 = vpop.f32.mrf.mxu1 }
 0x3f0   :  { %4225 = vmatpush.msra.mxu0 %v3994_v26  ;;  %3909 = vmatpush.msrb.mxu2 %v3836_v41  ;;  %v10531_v26 = vld [vmem:[%s12063_s10] sm:$0xf] }
 0x3f1   :  { %3772 = vmatpush.msra.mxu3 %v3361_v45  ;;  %v4062_v45 = vld [vmem:[%s12066_s13 + $0x360] sm:$0xff]  ;;  %v3408_v43 = vperm.slane %v10531_v26, 0 }
 0x3f2   :  { %4226 = vmatpush.msra.mxu0 %v3990_v50  ;;  %3910 = vmatpush.msrb.mxu2 %v3835_v16  ;;  %v4054_v50 = vld [vmem:[%s12066_s13 + $0x320] sm:$0xff] }
 0x3f3   :  { %3773 = vmatpush.msra.mxu3 %v3357_v47  ;;  %v10504_v42 = vpop.f32.mrf.mxu3  ;;  %v4058_v47 = vld [vmem:[%s12066_s13 + $0x340] sm:$0xff] }
 0x3f4   :  { %4227 = vmatpush.msra.mxu0 %v3986_v55  ;;  %3911 = vmatpush.msrb.mxu2 %v3834_v63 }
 0x3f5   :  { %3774 = vmatpush.msra.mxu3 %v3353_v11  ;;  %v3833_v11 = vld [vmem:[%s12064_s11 + $0x148] sm:$0xff] }
 0x3f6   :  { %4228 = vmatpush.msra.mxu0 %v3982_v13  ;;  %3912 = vmatpush.msrb.mxu2 %v3833_v11  ;;  %v3831_v13 = vld [vmem:[%s12064_s11 + $0x138] sm:$0xff] }
 0x3f7   :  { %3775 = vmatpush.msra.mxu3 %v3349_v18  ;;  %v3433_v18 = vpop.f32.mrf.mxu0 }
 0x3f8   :  { %4229 = vmatpush.msra.mxu0 %v3978_v58  ;;  %3913 = vmatpush.msrb.mxu2 %v3832_v12  ;;  %v3456_v58 = vpop.f32.mrf.mxu1  ;;  %v4026_v12 = vld [vmem:[%s12066_s13 + $0x240] sm:$0xff] }
 0x3f9   :  { %3776 = vmatpush.msra.mxu3 %v3345_v23  ;;  %v4050_v23 = vld [vmem:[%s12066_s13 + $0x300] sm:$0xff] }
 0x3fa   :  { %3777 = vmatmul.f32.vlgmr.msra.gmra.mxu3 %v9898_v62  ;;  %4230 = vmatpush.msra.mxu0 %v3974_v56  ;;  %v3809_v62 = vld [vmem:[%s12064_s11 + $0x88] sm:$0xff]  ;;  %v3434_v56 = vadd.f32 %v3433_v18, %v3408_v43  ;;  %v3826_v18 = vld [vmem:[%s12064_s11 + $0x110] sm:$0xff] }
 0x3fb   :  { %3897 = vmatpush.msrb.mxu1 %v3809_v62  ;;  %3914 = vmatpush.msrb.mxu2 %v3831_v13  ;;  %v4003_v13 = vld [vmem:[%s12066_s13 + $0x188] sm:$0xff] }
 0x3fc   :  { %4231 = vmatpush.msra.mxu0 %v3970_v21  ;;  %v3479_v21 = vpop.f32.mrf.mxu2  ;;  %v3457_v62 = vadd.f32 %v3456_v58, %v3434_v56  ;;  %v4022_v58 = vld [vmem:[%s12066_s13 + $0x220] sm:$0xff] }
 0x3fd   :  { %3898 = vmatpush.msrb.mxu1 %v3808_v32  ;;  %v10542_v55 = vpop.f32.mrf.mxu3  ;;  %3915 = vmatpush.msrb.mxu2 %v3830_v3  ;;  %v3824_v56 = vld [vmem:[%s12064_s11 + $0x100] sm:$0xff] }
 0x3fe   :  { %4232 = vmatpush.msra.mxu0 %v3966_v4  ;;  %v3480_v4 = vadd.f32 %v3479_v21, %v3457_v62 }
 0x3ff   :  { %4243 = vmatpush.msra.mxu1 %v4078_v2  ;;  %v3436_v2 = vpop.f32.mrf.mxu0  ;;  %3916 = vmatpush.msrb.mxu2 %v3829_v48 }
 0x400   :  { %4233 = vmatpush.msra.mxu0 %v3962_v9  ;;  %v4038_v9 = vld [vmem:[%s12066_s13 + $0x2a0] sm:$0xff]  ;;  %v3459_v41 = vpop.f32.mrf.mxu1  ;;  %v3437_v16 = vadd.f32 %v3436_v2, %v3408_v43  ;;  %v4007_v43 = vld [vmem:[%s12066_s13 + $0x1a8] sm:$0xff] }
 0x401   :  { %4244 = vmatpush.msra.mxu1 %v4074_v19  ;;  %v4034_v19 = vld [vmem:[%s12066_s13 + $0x280] sm:$0xff]  ;;  %v3995_v2 = vld [vmem:[%s12066_s13 + $0x148] sm:$0xff] }
 0x402   :  { %3780 = vmatmul.f32.gmra.mxu3 %v9955_v24  ;;  %v4070_v24 = vld [vmem:[%s12066_s13 + $0x3a0] sm:$0xff]  ;;  %4234 = vmatpush.msra.mxu0 %v3958_v27 }
 0x403   :  { %4245 = vmatpush.msra.mxu1 %v4070_v24  ;;  %v3828_v27 = vld [vmem:[%s12064_s11 + $0x120] sm:$0xff]  ;;  %v3827_v24 = vld [vmem:[%s12064_s11 + $0x118] sm:$0xff] }
 0x404   :  { %4235 = vmatpush.msra.mxu0 %v3954_v20  ;;  %3917 = vmatpush.msrb.mxu2 %v3828_v27  ;;  %v3482_v63 = vpop.f32.mrf.mxu2  ;;  %v4138_v27 = vld [vmem:[%s12066_s13 + $0x5c0] sm:$0xff] }
 0x405   :  { %4246 = vmatpush.msra.mxu1 %v4066_v38  ;;  %v4030_v38 = vld [vmem:[%s12066_s13 + $0x260] sm:$0xff] }
 0x406   :  { %3918 = vmatpush.msrb.mxu2 %v3827_v24 }
 0x407   :  { %4247 = vmatpush.msra.mxu1 %v4062_v45  ;;  %v4011_v45 = vld [vmem:[%s12066_s13 + $0x1c8] sm:$0xff] }
 0x408   :  { %3919 = vmatpush.msrb.mxu2 %v3826_v18  ;;  %v4122_v18 = vld [vmem:[%s12066_s13 + $0x540] sm:$0xff] }
 0x409   :  { %4248 = vmatpush.msra.mxu1 %v4058_v47  ;;  %v10589_v47 = vld [vmem:[%s12061_s8] sm:$0xff] }
 0x40a   :  { %v2378_v11 = vperm.slane %v10589_v47, 4 }
 0x40b   :  { %4249 = vmatpush.msra.mxu1 %v4054_v50  ;;  %v3460_v50 = vadd.f32 %v3459_v41, %v3437_v16  ;;  %v3852_v41 = vld [vmem:[%s12064_s11 + $0x1e0] sm:$0xff] }
 0x40c   :  { %v2776_v21 = vadd.f32 %v10181_v33, %v2378_v11  ;;  %v3854_v33 = vld [vmem:[%s12064_s11 + $0x1f0] sm:$0xff]  ;;  %v2779_v16 = vadd.f32 %v10238_v8, %v2378_v11 }
 0x40d   :  { %4250 = vmatpush.msra.mxu1 %v4050_v23  ;;  %v3483_v23 = vadd.f32 %v3482_v63, %v3460_v50  ;;  %v4126_v63 = vld [vmem:[%s12066_s13 + $0x560] sm:$0xff]  ;;  %v3850_v50 = vld [vmem:[%s12064_s11 + $0x1d0] sm:$0xff] }
 0x40e   :  { %v2799_v48 = vadd.f32 %v10195_v31, %v2776_v21  ;;  %v3991_v31 = vld [vmem:[%s12066_s13 + $0x128] sm:$0xff]  ;;  %v2802_v8 = vadd.f32 %v10249_v40, %v2779_v16  ;;  %v4110_v21 = vld [vmem:[%s12066_s13 + $0x4e0] sm:$0xff] }
 0x40f   :  { %4251 = vmatpush.msra.mxu1 %v4046_v60  ;;  %v3825_v60 = vld [vmem:[%s12064_s11 + $0x108] sm:$0xff] }
 0x410   :  { %3920 = vmatpush.msrb.mxu2 %v3825_v60  ;;  %v3975_v40 = vld [vmem:[%s12066_s13 + $0xa8] sm:$0xff] }
 0x411   :  { %4252 = vmatpush.msra.mxu1 %v4042_v0  ;;  %v4018_v0 = vld [vmem:[%s12066_s13 + $0x200] sm:$0xff] }
 0x412   :  { %3921 = vmatpush.msrb.mxu2 %v3824_v56  ;;  %v3409_v56 = vperm.slane %v10531_v26, 1 }
 0x413   :  { %4253 = vmatpush.msra.mxu1 %v4038_v9 }
 0x415   :  { %4254 = vmatpush.msra.mxu1 %v4034_v19  ;;  %v2822_v19 = vadd.f32 %v10206_v17, %v2799_v48  ;;  %v3987_v17 = vld [vmem:[%s12066_s13 + $0x108] sm:$0xff]  ;;  %v3548_v48 = vpop.f32.mrf.mxu1 }
 0x417   :  { %v3502_v46 = vpop.f32.mrf.mxu3  ;;  %4255 = vmatpush.msra.mxu1 %v4030_v38  ;;  %v2845_v24 = vadd.f32 %v10227_v10, %v2822_v19  ;;  %v4130_v38 = vld [vmem:[%s12066_s13 + $0x580] sm:$0xff]  ;;  %v3983_v10 = vld [vmem:[%s12066_s13 + $0xe8] sm:$0xff] }
 0x418   :  { %v3503_v32 = vadd.f32 %v3502_v46, %v3480_v4  ;;  %v3999_v4 = vld [vmem:[%s12066_s13 + $0x168] sm:$0xff]  ;;  %v3855_v46 = vld [vmem:[%s12064_s11 + $0x1f8] sm:$0xff]  ;;  %v4102_v19 = vld [vmem:[%s12066_s13 + $0x4a0] sm:$0xff] }
 0x419   :  { %4256 = vmatpush.msra.mxu1 %v4026_v12  ;;  %3929 = vmatpush.msrb.mxu3 %v3855_v46  ;;  %v10670_v11 = vmax.f32 %v2845_v24, 0.0  ;;  %v3849_v12 = vld [vmem:[%s12064_s11 + $0x1c8] sm:$0xff] }
 0x41a   :  { %v3784_v20 = vmax.f32 %v3503_v32, 0.0  ;;  %v4142_v32 = vld [vmem:[%s12066_s13 + $0x5e0] sm:$0xff]  ;;  %v3955_v24 = vld [vmem:[%s12066_s13 + $0x8] sm:$0xff] }
 0x41b   :  { %4257 = vmatpush.msra.mxu1 %v4022_v58  ;;  %4266 = vmatpush.msra.mxu2 %v4142_v32  ;;  %v3971_v58 = vld [vmem:[%s12066_s13 + $0x88] sm:$0xff] }
 0x41c   :  { %3876 = vmatmul.f32.vlgmr.msrb.gmra.mxu0 %v3784_v20  ;;  %3930 = vmatpush.msrb.mxu3 %v3854_v33  ;;  %v3853_v20 = vld [vmem:[%s12064_s11 + $0x1e8] sm:$0xff]  ;;  %v4106_v33 = vld [vmem:[%s12066_s13 + $0x4c0] sm:$0xff] }
 0x41d   :  { %4312 = vmatpush.msrb.mxu0 %v4015_v54  ;;  %4258 = vmatpush.msra.mxu1 %v4018_v0  ;;  %v4134_v54 = vld [vmem:[%s12066_s13 + $0x5a0] sm:$0xff]  ;;  %v3847_v0 = vld [vmem:[%s12064_s11 + $0x1b8] sm:$0xff]  ;;  %v3963_v32 = vld [vmem:[%s12066_s13 + $0x48] sm:$0xff] }
 0x41e   :  { %4267 = vmatpush.msra.mxu2 %v4138_v27  ;;  %3931 = vmatpush.msrb.mxu3 %v3853_v20  ;;  %v3959_v27 = vld [vmem:[%s12066_s13 + $0x28] sm:$0xff]  ;;  %v3844_v20 = vld [vmem:[%s12064_s11 + $0x1a0] sm:$0xff] }
 0x41f   :  { %4313 = vmatpush.msrb.mxu0 %v4011_v45  ;;  %v3851_v45 = vld [vmem:[%s12064_s11 + $0x1d8] sm:$0xff] }
 0x420   :  { %4268 = vmatpush.msra.mxu2 %v4134_v54  ;;  %3932 = vmatpush.msrb.mxu3 %v3852_v41  ;;  %v4016_v41 = vld [vmem:[%s12066_s13 + $0x1f0] sm:$0xff] }
 0x421   :  { %v3505_v3 = vpop.f32.mrf.mxu3  ;;  %4314 = vmatpush.msrb.mxu0 %v4007_v43  ;;  %v3979_v43 = vld [vmem:[%s12066_s13 + $0xc8] sm:$0xff] }
 0x422   :  { %v3506_v62 = vadd.f32 %v3505_v3, %v3483_v23  ;;  %4269 = vmatpush.msra.mxu2 %v4130_v38  ;;  %3933 = vmatpush.msrb.mxu3 %v3851_v45  ;;  %v2825_v23 = vadd.f32 %v10261_v61, %v2802_v8  ;;  %v3848_v61 = vld [vmem:[%s12064_s11 + $0x1c0] sm:$0xff]  ;;  %v3843_v38 = vld [vmem:[%s12064_s11 + $0x198] sm:$0xff] }
 0x423   :  { %4315 = vmatpush.msrb.mxu0 %v4003_v13  ;;  %v4118_v13 = vld [vmem:[%s12066_s13 + $0x520] sm:$0xff] }
 0x424   :  { %v3788_v9 = vmax.f32 %v3506_v62, 0.0  ;;  %4270 = vmatpush.msra.mxu2 %v4126_v63  ;;  %3934 = vmatpush.msrb.mxu3 %v3850_v50  ;;  %v2848_v60 = vadd.f32 %v10280_v39, %v2825_v23  ;;  %v4114_v3 = vld [vmem:[%s12066_s13 + $0x500] sm:$0xff]  ;;  %v3967_v39 = vld [vmem:[%s12066_s13 + $0x68] sm:$0xff]  ;;  %v3525_v62 = vpop.f32.mrf.mxu0  ;;  %v4012_v50 = vld [vmem:[%s12066_s13 + $0x1d0] sm:$0xff] }
 0x425   :  { %4316 = vmatpush.msrb.mxu0 %v3999_v4  ;;  %v3846_v4 = vld [vmem:[%s12064_s11 + $0x1b0] sm:$0xff]  ;;  %v4079_v23 = vld [vmem:[%s12066_s13 + $0x3e8] sm:$0xff] }
 0x426   :  { %3879 = vmatmul.f32.gmra.mxu0 %v3788_v9  ;;  %4271 = vmatpush.msra.mxu2 %v4122_v18  ;;  %v10712_v46 = vmax.f32 %v2848_v60, 0.0  ;;  %v3845_v9 = vld [vmem:[%s12064_s11 + $0x1a8] sm:$0xff]  ;;  %v4090_v18 = vld [vmem:[%s12066_s13 + $0x440] sm:$0xff] }
 0x427   :  { %4317 = vmatpush.msrb.mxu0 %v3995_v2  ;;  %3935 = vmatpush.msrb.mxu3 %v3849_v12  ;;  %v3526_v2 = vadd.f32 %v3525_v62, %v3409_v56  ;;  %v3841_v60 = vld [vmem:[%s12064_s11 + $0x188] sm:$0xff]  ;;  %v2379_v62 = vperm.slane %v10589_v47, 5 }
 0x428   :  { %4272 = vmatpush.msra.mxu2 %v4118_v13  ;;  %v3551_v13 = vpop.f32.mrf.mxu1 }
 0x429   :  { %4318 = vmatpush.msrb.mxu0 %v3991_v31  ;;  %3936 = vmatpush.msrb.mxu3 %v3848_v61  ;;  %v3571_v31 = vpop.f32.mrf.mxu2  ;;  %v3549_v54 = vadd.f32 %v3548_v48, %v3526_v2  ;;  %v4206_v48 = vld [vmem:[%s12066_s13 + $0x7e0] sm:$0xff] }
 0x42a   :  { %4273 = vmatpush.msra.mxu2 %v4114_v3  ;;  %v4075_v3 = vld [vmem:[%s12066_s13 + $0x3c8] sm:$0xff] }
 0x42b   :  { %4319 = vmatpush.msrb.mxu0 %v3987_v17  ;;  %3937 = vmatpush.msrb.mxu3 %v3847_v0  ;;  %v4098_v17 = vld [vmem:[%s12066_s13 + $0x480] sm:$0xff]  ;;  %v3572_v16 = vadd.f32 %v3571_v31, %v3549_v54 }
 0x42c   :  { %4274 = vmatpush.msra.mxu2 %v4110_v21  ;;  %v3528_v8 = vpop.f32.mrf.mxu0  ;;  %v3840_v0 = vld [vmem:[%s12064_s11 + $0x180] sm:$0xff] }
 0x42d   :  { %4320 = vmatpush.msrb.mxu0 %v3983_v10  ;;  %3938 = vmatpush.msrb.mxu3 %v3846_v4  ;;  %v4094_v10 = vld [vmem:[%s12066_s13 + $0x460] sm:$0xff]  ;;  %v3529_v61 = vadd.f32 %v3528_v8, %v3409_v56 }
 0x42e   :  { %4236 = vmatmul.f32.vlgmr.msra.gmra.mxu0 %v10670_v11  ;;  %4275 = vmatpush.msra.mxu2 %v4106_v33  ;;  %v4082_v56 = vld [vmem:[%s12066_s13 + $0x400] sm:$0xff]  ;;  %v4000_v33 = vld [vmem:[%s12066_s13 + $0x170] sm:$0xff] }
 0x42f   :  { %4321 = vmatpush.msrb.mxu0 %v3979_v43  ;;  %3939 = vmatpush.msrb.mxu3 %v3845_v9  ;;  %v3842_v43 = vld [vmem:[%s12064_s11 + $0x190] sm:$0xff]  ;;  %v3552_v4 = vadd.f32 %v3551_v13, %v3529_v61  ;;  %v4202_v9 = vld [vmem:[%s12066_s13 + $0x7c0] sm:$0xff] }
 0x430   :  { %4276 = vmatpush.msra.mxu2 %v4102_v19  ;;  %v3996_v19 = vld [vmem:[%s12066_s13 + $0x150] sm:$0xff]  ;;  %v4190_v8 = vld [vmem:[%s12066_s13 + $0x760] sm:$0xff] }
 0x431   :  { %4322 = vmatpush.msrb.mxu0 %v3975_v40  ;;  %3940 = vmatpush.msrb.mxu3 %v3844_v20  ;;  %v4008_v40 = vld [vmem:[%s12066_s13 + $0x1b0] sm:$0xff]  ;;  %v3574_v21 = vpop.f32.mrf.mxu2  ;;  %v2868_v20 = vadd.f32 %v10278_v34, %v2379_v62 }
 0x432   :  { %4277 = vmatpush.msra.mxu2 %v4098_v17  ;;  %v3575_v2 = vadd.f32 %v3574_v21, %v3552_v4  ;;  %v3992_v17 = vld [vmem:[%s12066_s13 + $0x130] sm:$0xff]  ;;  %v4174_v21 = vld [vmem:[%s12066_s13 + $0x6e0] sm:$0xff]  ;;  %v3410_v4 = vperm.slane %v10531_v26, 2 }
 0x433   :  { %4323 = vmatpush.msrb.mxu0 %v3971_v58  ;;  %3941 = vmatpush.msrb.mxu3 %v3843_v38  ;;  %v4086_v58 = vld [vmem:[%s12066_s13 + $0x420] sm:$0xff]  ;;  %v2891_v34 = vadd.f32 %v10289_v59, %v2868_v20  ;;  %v4055_v59 = vld [vmem:[%s12066_s13 + $0x328] sm:$0xff]  ;;  %v3976_v13 = vld [vmem:[%s12066_s13 + $0xb0] sm:$0xff] }
 0x434   :  { %4278 = vmatpush.msra.mxu2 %v4094_v10  ;;  %v3988_v10 = vld [vmem:[%s12066_s13 + $0x110] sm:$0xff] }
 0x435   :  { %4324 = vmatpush.msrb.mxu0 %v3967_v39  ;;  %3942 = vmatpush.msrb.mxu3 %v3842_v43  ;;  %v4004_v39 = vld [vmem:[%s12066_s13 + $0x190] sm:$0xff] }
 0x436   :  { %4239 = vmatmul.f32.gmra.mxu0 %v10712_v46  ;;  %4279 = vmatpush.msra.mxu2 %v4090_v18  ;;  %v4051_v18 = vld [vmem:[%s12066_s13 + $0x308] sm:$0xff] }
 0x437   :  { %4325 = vmatpush.msrb.mxu0 %v3963_v32  ;;  %3943 = vmatpush.msrb.mxu3 %v3841_v60  ;;  %v4071_v32 = vld [vmem:[%s12066_s13 + $0x3a8] sm:$0xff]  ;;  %v4178_v60 = vld [vmem:[%s12066_s13 + $0x700] sm:$0xff] }
 0x438   :  { %4280 = vmatpush.msra.mxu2 %v4086_v58 }
 0x439   :  { %4326 = vmatpush.msrb.mxu0 %v3959_v27  ;;  %3944 = vmatpush.msrb.mxu3 %v3840_v0  ;;  %v4067_v27 = vld [vmem:[%s12066_s13 + $0x388] sm:$0xff]  ;;  %v3968_v0 = vld [vmem:[%s12066_s13 + $0x70] sm:$0xff] }
 0x43a   :  { %4281 = vmatpush.msra.mxu2 %v4082_v56  ;;  %v3617_v56 = vpop.f32.mrf.mxu0 }
 0x43b   :  { %v3594_v45 = vpop.f32.mrf.mxu3  ;;  %4327 = vmatpush.msrb.mxu0 %v3955_v24  ;;  %4289 = vmatpush.msra.mxu3 %v4206_v48  ;;  %v4063_v24 = vld [vmem:[%s12066_s13 + $0x368] sm:$0xff]  ;;  %v3640_v48 = vpop.f32.mrf.mxu1  ;;  %v3618_v20 = vadd.f32 %v3617_v56, %v3410_v4 }
 0x43c   :  { %v3595_v63 = vadd.f32 %v3594_v45, %v3572_v16  ;;  %v4059_v16 = vld [vmem:[%s12066_s13 + $0x348] sm:$0xff]  ;;  %v4194_v45 = vld [vmem:[%s12066_s13 + $0x780] sm:$0xff] }
 0x43d   :  { %4404 = vmatpush.msra.mxu0 %v4016_v41  ;;  %4290 = vmatpush.msra.mxu3 %v4202_v9  ;;  %v4198_v41 = vld [vmem:[%s12066_s13 + $0x7a0] sm:$0xff]  ;;  %v4135_v56 = vld [vmem:[%s12066_s13 + $0x5a8] sm:$0xff] }
 0x43e   :  { %v3785_v12 = vmax.f32 %v3595_v63, 0.0  ;;  %4328 = vmatmul.f32.vlgmr.msrb.gmra.mxu0 %v10670_v11  ;;  %v2914_v63 = vadd.f32 %v10298_v15, %v2891_v34  ;;  %v4186_v15 = vld [vmem:[%s12066_s13 + $0x740] sm:$0xff]  ;;  %v4017_v34 = vld [vmem:[%s12066_s13 + $0x1f8] sm:$0xff] }
 0x43f   :  { %4405 = vmatpush.msra.mxu0 %v4012_v50  ;;  %4291 = vmatpush.msra.mxu3 %v4198_v41  ;;  %v3984_v50 = vld [vmem:[%s12066_s13 + $0xf0] sm:$0xff]  ;;  %v4166_v9 = vld [vmem:[%s12066_s13 + $0x6a0] sm:$0xff]  ;;  %v4023_v41 = vld [vmem:[%s12066_s13 + $0x228] sm:$0xff] }
 0x440   :  { %3899 = vmatmul.f32.vlgmr.msrb.gmra.mxu1 %v3785_v12  ;;  %v2937_v43 = vadd.f32 %v10312_v1, %v2914_v63  ;;  %v3980_v12 = vld [vmem:[%s12066_s13 + $0xd0] sm:$0xff]  ;;  %v4047_v1 = vld [vmem:[%s12066_s13 + $0x2e8] sm:$0xff]  ;;  %v4154_v63 = vld [vmem:[%s12066_s13 + $0x640] sm:$0xff] }
 0x441   :  { %4335 = vmatpush.msrb.mxu1 %v4079_v23  ;;  %4406 = vmatpush.msra.mxu0 %v4008_v40  ;;  %v4182_v23 = vld [vmem:[%s12066_s13 + $0x720] sm:$0xff]  ;;  %v2871_v40 = vadd.f32 %v10324_v53, %v2379_v62  ;;  %v4043_v53 = vld [vmem:[%s12066_s13 + $0x2c8] sm:$0xff] }
 0x442   :  { %4292 = vmatpush.msra.mxu3 %v4194_v45  ;;  %v10856_v61 = vmax.f32 %v2937_v43, 0.0  ;;  %v4013_v45 = vld [vmem:[%s12066_s13 + $0x1d8] sm:$0xff] }
 0x443   :  { %4336 = vmatpush.msrb.mxu1 %v4075_v3  ;;  %4407 = vmatpush.msra.mxu0 %v4004_v39  ;;  %v2894_v58 = vadd.f32 %v10336_v6, %v2871_v40  ;;  %v3972_v3 = vld [vmem:[%s12066_s13 + $0x90] sm:$0xff]  ;;  %v4039_v6 = vld [vmem:[%s12066_s13 + $0x2a8] sm:$0xff]  ;;  %v4009_v43 = vld [vmem:[%s12066_s13 + $0x1b8] sm:$0xff] }
 0x444   :  { %4293 = vmatpush.msra.mxu3 %v4190_v8  ;;  %v4080_v8 = vld [vmem:[%s12066_s13 + $0x3f0] sm:$0xff] }
 0x445   :  { %v3597_v31 = vpop.f32.mrf.mxu3  ;;  %4337 = vmatpush.msrb.mxu1 %v4071_v32  ;;  %4408 = vmatpush.msra.mxu0 %v4000_v33  ;;  %v2917_v39 = vadd.f32 %v10350_v35, %v2894_v58  ;;  %v4170_v35 = vld [vmem:[%s12066_s13 + $0x6c0] sm:$0xff]  ;;  %v4035_v32 = vld [vmem:[%s12066_s13 + $0x288] sm:$0xff]  ;;  %v3964_v33 = vld [vmem:[%s12066_s13 + $0x50] sm:$0xff] }
 0x446   :  { %v3598_v54 = vadd.f32 %v3597_v31, %v3575_v2  ;;  %4331 = vmatmul.f32.gmra.mxu0 %v10712_v46  ;;  %4294 = vmatpush.msra.mxu3 %v4186_v15  ;;  %v3960_v2 = vld [vmem:[%s12066_s13 + $0x30] sm:$0xff]  ;;  %v4005_v58 = vld [vmem:[%s12066_s13 + $0x198] sm:$0xff] }
 0x447   :  { %4338 = vmatpush.msrb.mxu1 %v4067_v27  ;;  %4409 = vmatpush.msra.mxu0 %v3996_v19  ;;  %v2940_v62 = vadd.f32 %v10372_v37, %v2917_v39  ;;  %v4031_v37 = vld [vmem:[%s12066_s13 + $0x268] sm:$0xff]  ;;  %v3663_v27 = vpop.f32.mrf.mxu2  ;;  %v4162_v19 = vld [vmem:[%s12066_s13 + $0x680] sm:$0xff] }
 0x448   :  { %v3789_v38 = vmax.f32 %v3598_v54, 0.0  ;;  %4295 = vmatpush.msra.mxu3 %v4182_v23  ;;  %v4027_v54 = vld [vmem:[%s12066_s13 + $0x248] sm:$0xff] }
 0x449   :  { %4339 = vmatpush.msrb.mxu1 %v4063_v24  ;;  %4410 = vmatpush.msra.mxu0 %v3992_v17  ;;  %v10898_v31 = vmax.f32 %v2940_v62, 0.0  ;;  %v3956_v24 = vld [vmem:[%s12066_s13 + $0x10] sm:$0xff]  ;;  %v3641_v17 = vadd.f32 %v3640_v48, %v3618_v20  ;;  %v4131_v48 = vld [vmem:[%s12066_s13 + $0x588] sm:$0xff] }
 0x44a   :  { %3902 = vmatmul.f32.gmra.mxu1 %v3789_v38  ;;  %4296 = vmatpush.msra.mxu3 %v4178_v60  ;;  %v4158_v38 = vld [vmem:[%s12066_s13 + $0x660] sm:$0xff] }
 0x44b   :  { %4340 = vmatpush.msrb.mxu1 %v4059_v16  ;;  %4411 = vmatpush.msra.mxu0 %v3988_v10  ;;  %v3664_v16 = vadd.f32 %v3663_v27, %v3641_v17  ;;  %v4019_v10 = vld [vmem:[%s12066_s13 + $0x208] sm:$0xff]  ;;  %v4060_v27 = vld [vmem:[%s12066_s13 + $0x350] sm:$0xff] }
 0x44c   :  { %4297 = vmatpush.msra.mxu3 %v4174_v21 }
 0x44d   :  { %4341 = vmatpush.msrb.mxu1 %v4055_v59  ;;  %4412 = vmatpush.msra.mxu0 %v3984_v50  ;;  %v3620_v59 = vpop.f32.mrf.mxu0 }
 0x44e   :  { %4298 = vmatpush.msra.mxu3 %v4170_v35  ;;  %v3621_v23 = vadd.f32 %v3620_v59, %v3410_v4  ;;  %v4068_v35 = vld [vmem:[%s12066_s13 + $0x390] sm:$0xff]  ;;  %v4001_v4 = vld [vmem:[%s12066_s13 + $0x178] sm:$0xff] }
 0x44f   :  { %4342 = vmatpush.msrb.mxu1 %v4051_v18  ;;  %4413 = vmatpush.msra.mxu0 %v3980_v12  ;;  %v4150_v18 = vld [vmem:[%s12066_s13 + $0x620] sm:$0xff]  ;;  %v3643_v12 = vpop.f32.mrf.mxu1  ;;  %v3666_v60 = vpop.f32.mrf.mxu2  ;;  %v4044_v59 = vld [vmem:[%s12066_s13 + $0x2d0] sm:$0xff] }
 0x450   :  { %4299 = vmatpush.msra.mxu3 %v4166_v9  ;;  %v3644_v39 = vadd.f32 %v3643_v12, %v3621_v23  ;;  %v4064_v9 = vld [vmem:[%s12066_s13 + $0x370] sm:$0xff]  ;;  %v3411_v12 = vperm.slane %v10531_v26, 3  ;;  %v4103_v23 = vld [vmem:[%s12066_s13 + $0x4a8] sm:$0xff] }
 0x451   :  { %4343 = vmatpush.msrb.mxu1 %v4047_v1  ;;  %4414 = vmatpush.msra.mxu0 %v3976_v13  ;;  %v4143_v1 = vld [vmem:[%s12066_s13 + $0x5e8] sm:$0xff]  ;;  %v4076_v13 = vld [vmem:[%s12066_s13 + $0x3d0] sm:$0xff] }
 0x452   :  { %4259 = vmatmul.f32.vlgmr.msra.gmra.mxu1 %v10856_v61  ;;  %4300 = vmatpush.msra.mxu3 %v4162_v19  ;;  %v3667_v21 = vadd.f32 %v3666_v60, %v3644_v39  ;;  %v3997_v19 = vld [vmem:[%s12066_s13 + $0x158] sm:$0xff]  ;;  %v4032_v26 = vld [vmem:[%s12066_s13 + $0x270] sm:$0xff]  ;;  %v4095_v39 = vld [vmem:[%s12066_s13 + $0x468] sm:$0xff] }
 0x453   :  { %4344 = vmatpush.msrb.mxu1 %v4043_v53  ;;  %4415 = vmatpush.msra.mxu0 %v3972_v3  ;;  %v4146_v53 = vld [vmem:[%s12066_s13 + $0x600] sm:$0xff]  ;;  %v2380_v3 = vperm.slane %v10589_v47, 6 }
 0x454   :  { %4301 = vmatpush.msra.mxu3 %v4158_v38 }
 0x455   :  { %4345 = vmatpush.msrb.mxu1 %v4039_v6  ;;  %4416 = vmatpush.msra.mxu0 %v3968_v0  ;;  %v4139_v6 = vld [vmem:[%s12066_s13 + $0x5c8] sm:$0xff]  ;;  %v4072_v0 = vld [vmem:[%s12066_s13 + $0x3b0] sm:$0xff]  ;;  %v2963_v38 = vadd.f32 %v10425_v49, %v2380_v3 }
 0x456   :  { %4302 = vmatpush.msra.mxu3 %v4154_v63  ;;  %v4111_v49 = vld [vmem:[%s12066_s13 + $0x4e8] sm:$0xff] }
 0x457   :  { %4346 = vmatpush.msrb.mxu1 %v4035_v32  ;;  %4417 = vmatpush.msra.mxu0 %v3964_v33  ;;  %v2960_v32 = vadd.f32 %v10370_v44, %v2380_v3  ;;  %v4127_v44 = vld [vmem:[%s12066_s13 + $0x568] sm:$0xff] }
 0x458   :  { %4303 = vmatpush.msra.mxu3 %v4150_v18  ;;  %v3977_v18 = vld [vmem:[%s12066_s13 + $0xb8] sm:$0xff] }
 0x459   :  { %4347 = vmatpush.msrb.mxu1 %v4031_v37  ;;  %4418 = vmatpush.msra.mxu0 %v3960_v2  ;;  %v2983_v37 = vadd.f32 %v10383_v7, %v2960_v32  ;;  %v4123_v7 = vld [vmem:[%s12066_s13 + $0x548] sm:$0xff] }
 0x45a   :  { %4262 = vmatmul.f32.gmra.mxu1 %v10898_v31  ;;  %4304 = vmatpush.msra.mxu3 %v4146_v53  ;;  %v4087_v32 = vld [vmem:[%s12066_s13 + $0x428] sm:$0xff] }
 0x45b   :  { %4348 = vmatpush.msrb.mxu1 %v4027_v54  ;;  %4419 = vmatpush.msra.mxu0 %v3956_v24  ;;  %v3006_v20 = vadd.f32 %v10394_v52, %v2983_v37  ;;  %v4056_v54 = vld [vmem:[%s12066_s13 + $0x330] sm:$0xff]  ;;  %v3993_v24 = vld [vmem:[%s12066_s13 + $0x138] sm:$0xff]  ;;  %v4119_v52 = vld [vmem:[%s12066_s13 + $0x528] sm:$0xff] }
 0x45c   :  { %4420 = vmatmul.f32.vlgmr.msra.gmra.mxu0 %v10670_v11  ;;  %v3957_v37 = vld [vmem:[%s12066_s13 + $0x18] sm:$0xff] }
 0x45d   :  { %v3686_v50 = vpop.f32.mrf.mxu3  ;;  %4349 = vmatpush.msrb.mxu1 %v4023_v41  ;;  %4496 = vmatpush.msrb.mxu0 %v4017_v34  ;;  %v3029_v17 = vadd.f32 %v10414_v57, %v3006_v20  ;;  %v4052_v41 = vld [vmem:[%s12066_s13 + $0x310] sm:$0xff]  ;;  %v3989_v34 = vld [vmem:[%s12066_s13 + $0x118] sm:$0xff]  ;;  %v4115_v57 = vld [vmem:[%s12066_s13 + $0x508] sm:$0xff] }
 0x45e   :  { %v3687_v15 = vadd.f32 %v3686_v50, %v3664_v16  ;;  %v4048_v16 = vld [vmem:[%s12066_s13 + $0x2f0] sm:$0xff]  ;;  %v3981_v50 = vld [vmem:[%s12066_s13 + $0xd8] sm:$0xff]  ;;  %v3755_v60 = vpop.f32.mrf.mxu2 }
 0x45f   :  { %4350 = vmatpush.msrb.mxu1 %v4019_v10  ;;  %4497 = vmatpush.msrb.mxu0 %v4013_v45  ;;  %v3985_v10 = vld [vmem:[%s12066_s13 + $0xf8] sm:$0xff]  ;;  %v2986_v45 = vadd.f32 %v10436_v28, %v2963_v38  ;;  %v11014_v63 = vmax.f32 %v3029_v17, 0.0  ;;  %v4107_v28 = vld [vmem:[%s12066_s13 + $0x4c8] sm:$0xff]  ;;  %v2381_v38 = vperm.slane %v10589_v47, 7 }
 0x460   :  { %v3786_v40 = vmax.f32 %v3687_v15, 0.0  ;;  %v4040_v15 = vld [vmem:[%s12066_s13 + $0x2b0] sm:$0xff] }
 0x461   :  { %4427 = vmatpush.msra.mxu1 %v4080_v8  ;;  %4498 = vmatpush.msrb.mxu0 %v4009_v43  ;;  %v3009_v8 = vadd.f32 %v10444_v22, %v2986_v45  ;;  %v3709_v43 = vpop.f32.mrf.mxu0  ;;  %v4073_v45 = vld [vmem:[%s12066_s13 + $0x3b8] sm:$0xff] }
 0x462   :  { %3922 = vmatmul.f32.vlgmr.msrb.gmra.mxu2 %v3786_v40  ;;  %4351 = vmatmul.f32.vlgmr.msrb.gmra.mxu1 %v10856_v61  ;;  %v4036_v40 = vld [vmem:[%s12066_s13 + $0x290] sm:$0xff]  ;;  %v3710_v3 = vadd.f32 %v3709_v43, %v3411_v12  ;;  %v4191_v43 = vld [vmem:[%s12066_s13 + $0x768] sm:$0xff] }
 0x463   :  { %4358 = vmatpush.msrb.mxu2 %v4143_v1  ;;  %4428 = vmatpush.msra.mxu1 %v4076_v13  ;;  %v3032_v22 = vadd.f32 %v10461_v29, %v3009_v8  ;;  %v3732_v1 = vpop.f32.mrf.mxu1  ;;  %v3973_v13 = vld [vmem:[%s12066_s13 + $0x98] sm:$0xff]  ;;  %v4099_v29 = vld [vmem:[%s12066_s13 + $0x488] sm:$0xff]  ;;  %v3052_v8 = vadd.f32 %v10459_v51, %v2381_v38  ;;  %v4128_v51 = vld [vmem:[%s12066_s13 + $0x570] sm:$0xff] }
 0x464   :  { %4499 = vmatpush.msrb.mxu0 %v4005_v58  ;;  %v3969_v58 = vld [vmem:[%s12066_s13 + $0x78] sm:$0xff] }
 0x465   :  { %4359 = vmatpush.msrb.mxu2 %v4139_v6  ;;  %v3689_v62 = vpop.f32.mrf.mxu3  ;;  %4429 = vmatpush.msra.mxu1 %v4072_v0  ;;  %v11056_v53 = vmax.f32 %v3032_v22, 0.0  ;;  %v4028_v6 = vld [vmem:[%s12066_s13 + $0x250] sm:$0xff]  ;;  %v3965_v0 = vld [vmem:[%s12066_s13 + $0x58] sm:$0xff] }
 0x466   :  { %v3690_v33 = vadd.f32 %v3689_v62, %v3667_v21  ;;  %4423 = vmatmul.f32.gmra.mxu0 %v10712_v46  ;;  %v3733_v21 = vadd.f32 %v3732_v1, %v3710_v3  ;;  %v3961_v62 = vld [vmem:[%s12066_s13 + $0x38] sm:$0xff]  ;;  %v3758_v17 = vpop.f32.mrf.mxu2  ;;  %v4183_v1 = vld [vmem:[%s12066_s13 + $0x728] sm:$0xff] }
 0x467   :  { %4360 = vmatpush.msrb.mxu2 %v4135_v56  ;;  %4430 = vmatpush.msra.mxu1 %v4068_v35  ;;  %v4091_v56 = vld [vmem:[%s12066_s13 + $0x448] sm:$0xff]  ;;  %v4024_v35 = vld [vmem:[%s12066_s13 + $0x230] sm:$0xff]  ;;  %v4065_v22 = vld [vmem:[%s12066_s13 + $0x378] sm:$0xff] }
 0x468   :  { %v3790_v2 = vmax.f32 %v3690_v33, 0.0  ;;  %4500 = vmatpush.msrb.mxu0 %v4001_v4  ;;  %v3756_v4 = vadd.f32 %v3755_v60, %v3733_v21  ;;  %v4020_v33 = vld [vmem:[%s12066_s13 + $0x210] sm:$0xff]  ;;  %v4053_v60 = vld [vmem:[%s12066_s13 + $0x318] sm:$0xff] }
 0x469   :  { %4361 = vmatpush.msrb.mxu2 %v4131_v48  ;;  %4431 = vmatpush.msra.mxu1 %v4064_v9  ;;  %v3712_v48 = vpop.f32.mrf.mxu0  ;;  %v4108_v21 = vld [vmem:[%s12066_s13 + $0x4d0] sm:$0xff] }
 0x46a   :  { %3925 = vmatmul.f32.gmra.mxu2 %v3790_v2  ;;  %4354 = vmatmul.f32.gmra.mxu1 %v10898_v31  ;;  %v3713_v20 = vadd.f32 %v3712_v48, %v3411_v12 }
 0x46b   :  { %4362 = vmatpush.msrb.mxu2 %v4127_v44  ;;  %4432 = vmatpush.msra.mxu1 %v4060_v27  ;;  %v4083_v44 = vld [vmem:[%s12066_s13 + $0x408] sm:$0xff]  ;;  %v3735_v27 = vpop.f32.mrf.mxu1 }
 0x46c   :  { %4501 = vmatpush.msrb.mxu0 %v3997_v19  ;;  %v4144_v19 = vld [vmem:[%s12066_s13 + $0x5f0] sm:$0xff] }
 0x46d   :  { %4363 = vmatpush.msrb.mxu2 %v4123_v7  ;;  %4433 = vmatpush.msra.mxu1 %v4056_v54  ;;  %v4207_v54 = vld [vmem:[%s12066_s13 + $0x7e8] sm:$0xff] }
 0x46e   :  { %4502 = vmatpush.msrb.mxu0 %v3993_v24  ;;  %v4081_v24 = vld [vmem:[%s12066_s13 + $0x3f8] sm:$0xff] }
 0x46f   :  { %4364 = vmatpush.msrb.mxu2 %v4119_v52  ;;  %4434 = vmatpush.msra.mxu1 %v4052_v41  ;;  %v3736_v52 = vadd.f32 %v3735_v27, %v3713_v20  ;;  %v4203_v41 = vld [vmem:[%s12066_s13 + $0x7c8] sm:$0xff]  ;;  %v4092_v27 = vld [vmem:[%s12066_s13 + $0x450] sm:$0xff] }
 0x470   :  { %4503 = vmatpush.msrb.mxu0 %v3989_v34  ;;  %v4140_v34 = vld [vmem:[%s12066_s13 + $0x5d0] sm:$0xff]  ;;  %v4151_v20 = vld [vmem:[%s12066_s13 + $0x628] sm:$0xff] }
 0x471   :  { %4365 = vmatpush.msrb.mxu2 %v4115_v57  ;;  %4435 = vmatpush.msra.mxu1 %v4048_v16  ;;  %v4077_v57 = vld [vmem:[%s12066_s13 + $0x3d8] sm:$0xff]  ;;  %v4199_v16 = vld [vmem:[%s12066_s13 + $0x7a8] sm:$0xff] }
 0x472   :  { %4282 = vmatmul.f32.vlgmr.msra.gmra.mxu2 %v11014_v63  ;;  %4504 = vmatpush.msrb.mxu0 %v3985_v10  ;;  %v4136_v10 = vld [vmem:[%s12066_s13 + $0x5b0] sm:$0xff] }
 0x473   :  { %4366 = vmatpush.msrb.mxu2 %v4111_v49  ;;  %4436 = vmatpush.msra.mxu1 %v4044_v59  ;;  %v4195_v59 = vld [vmem:[%s12066_s13 + $0x788] sm:$0xff] }
 0x474   :  { %4505 = vmatpush.msrb.mxu0 %v3981_v50  ;;  %v4132_v50 = vld [vmem:[%s12066_s13 + $0x590] sm:$0xff] }
 0x475   :  { %4367 = vmatpush.msrb.mxu2 %v4107_v28  ;;  %4437 = vmatpush.msra.mxu1 %v4040_v15  ;;  %v4069_v28 = vld [vmem:[%s12066_s13 + $0x398] sm:$0xff] }
 0x476   :  { %4506 = vmatpush.msrb.mxu0 %v3977_v18  ;;  %v3075_v18 = vadd.f32 %v10472_v5, %v3052_v8  ;;  %v4187_v5 = vld [vmem:[%s12066_s13 + $0x748] sm:$0xff]  ;;  %v4121_v8 = vld [vmem:[%s12066_s13 + $0x538] sm:$0xff] }
 0x477   :  { %4368 = vmatpush.msrb.mxu2 %v4103_v23  ;;  %4438 = vmatpush.msra.mxu1 %v4036_v40  ;;  %v4124_v23 = vld [vmem:[%s12066_s13 + $0x550] sm:$0xff]  ;;  %v4061_v40 = vld [vmem:[%s12066_s13 + $0x358] sm:$0xff] }
 0x478   :  { %4507 = vmatpush.msrb.mxu0 %v3973_v13  ;;  %v3098_v12 = vadd.f32 %v10486_v36, %v3075_v18  ;;  %v4120_v13 = vld [vmem:[%s12066_s13 + $0x530] sm:$0xff] }
 0x479   :  { %4369 = vmatpush.msrb.mxu2 %v4099_v29  ;;  %4439 = vmatpush.msra.mxu1 %v4032_v26  ;;  %v3055_v29 = vadd.f32 %v10512_v25, %v2381_v38  ;;  %v4116_v26 = vld [vmem:[%s12066_s13 + $0x510] sm:$0xff]  ;;  %v4175_v25 = vld [vmem:[%s12066_s13 + $0x6e8] sm:$0xff] }
 0x47a   :  { %4285 = vmatmul.f32.gmra.mxu2 %v11056_v53  ;;  %4508 = vmatpush.msrb.mxu0 %v3969_v58  ;;  %v3121_v36 = vadd.f32 %v10504_v42, %v3098_v12  ;;  %v4179_v42 = vld [vmem:[%s12066_s13 + $0x708] sm:$0xff]  ;;  %v4204_v38 = vld [vmem:[%s12066_s13 + $0x7d0] sm:$0xff]  ;;  %v4105_v12 = vld [vmem:[%s12066_s13 + $0x4b8] sm:$0xff] }
 0x47b   :  { %4370 = vmatpush.msrb.mxu2 %v4095_v39  ;;  %4440 = vmatpush.msra.mxu1 %v4028_v6  ;;  %v3078_v58 = vadd.f32 %v10520_v14, %v3055_v29  ;;  %v4112_v39 = vld [vmem:[%s12066_s13 + $0x4f0] sm:$0xff]  ;;  %v4049_v6 = vld [vmem:[%s12066_s13 + $0x2f8] sm:$0xff]  ;;  %v4171_v14 = vld [vmem:[%s12066_s13 + $0x6c8] sm:$0xff] }
 0x47c   :  { %4509 = vmatpush.msrb.mxu0 %v3965_v0  ;;  %v11174_v3 = vmax.f32 %v3121_v36, 0.0  ;;  %v4172_v18 = vld [vmem:[%s12066_s13 + $0x6d0] sm:$0xff]  ;;  %v4097_v36 = vld [vmem:[%s12066_s13 + $0x478] sm:$0xff] }
 0x47d   :  { %v3778_v9 = vpop.f32.mrf.mxu3  ;;  %4371 = vmatpush.msrb.mxu2 %v4091_v56  ;;  %4441 = vmatpush.msra.mxu1 %v4024_v35  ;;  %v3101_v0 = vadd.f32 %v10533_v30, %v3078_v58  ;;  %v4045_v56 = vld [vmem:[%s12066_s13 + $0x2d8] sm:$0xff]  ;;  %v4167_v30 = vld [vmem:[%s12066_s13 + $0x6a8] sm:$0xff] }
 0x47e   :  { %v3779_v2 = vadd.f32 %v3778_v9, %v3756_v4  ;;  %4510 = vmatpush.msrb.mxu0 %v3961_v62  ;;  %v4104_v62 = vld [vmem:[%s12066_s13 + $0x4b0] sm:$0xff]  ;;  %v4041_v4 = vld [vmem:[%s12066_s13 + $0x2b8] sm:$0xff]  ;;  %v4159_v9 = vld [vmem:[%s12066_s13 + $0x668] sm:$0xff] }
 0x47f   :  { %4372 = vmatpush.msrb.mxu2 %v4087_v32  ;;  %4442 = vmatpush.msra.mxu1 %v4020_v33  ;;  %v3124_v35 = vadd.f32 %v10542_v55, %v3101_v0  ;;  %v4163_v55 = vld [vmem:[%s12066_s13 + $0x688] sm:$0xff]  ;;  %v4100_v32 = vld [vmem:[%s12066_s13 + $0x490] sm:$0xff]  ;;  %v4037_v33 = vld [vmem:[%s12066_s13 + $0x298] sm:$0xff] }
 0x480   :  { %v3787_v7 = vmax.f32 %v3779_v2, 0.0  ;;  %4511 = vmatpush.msrb.mxu0 %v3957_v37  ;;  %4443 = vmatmul.f32.vlgmr.msra.gmra.mxu1 %v10856_v61  ;;  %v4096_v37 = vld [vmem:[%s12066_s13 + $0x470] sm:$0xff]  ;;  %v4033_v2 = vld [vmem:[%s12066_s13 + $0x278] sm:$0xff] }
 0x481   :  { %4373 = vmatpush.msrb.mxu2 %v4083_v44  ;;  %4512 = vmatmul.f32.vlgmr.msrb.gmra.mxu0 %v10670_v11  ;;  %v3759_v11 = vadd.f32 %v3758_v17, %v3736_v52  ;;  %v11215_v48 = vmax.f32 %v3124_v35, 0.0  ;;  %v4155_v44 = vld [vmem:[%s12066_s13 + $0x648] sm:$0xff]  ;;  %v4084_v17 = vld [vmem:[%s12066_s13 + $0x410] sm:$0xff]  ;;  %v4021_v52 = vld [vmem:[%s12066_s13 + $0x218] sm:$0xff] }
 0x482   :  { %3945 = vmatmul.f32.vlgmr.msrb.gmra.mxu3 %v3787_v7  ;;  %4519 = vmatpush.msrb.mxu1 %v4081_v24  ;;  %v4088_v7 = vld [vmem:[%s12066_s13 + $0x430] sm:$0xff]  ;;  %v4147_v24 = vld [vmem:[%s12066_s13 + $0x608] sm:$0xff]  ;;  %v4089_v29 = vld [vmem:[%s12066_s13 + $0x438] sm:$0xff] }
 0x483   :  { %4450 = vmatpush.msra.mxu2 %v4144_v19  ;;  %4381 = vmatpush.msrb.mxu3 %v4207_v54  ;;  %v4029_v19 = vld [vmem:[%s12066_s13 + $0x258] sm:$0xff]  ;;  %v4626_v35 = vld [vmem:[%s12068_s15 + $0xf0] sm:$0xff] }
 0x484   :  { %4374 = vmatmul.f32.vlgmr.msrb.gmra.mxu2 %v11014_v63  ;;  %4520 = vmatpush.msrb.mxu1 %v4077_v57  ;;  %v4025_v54 = vld [vmem:[%s12066_s13 + $0x238] sm:$0xff] }
 0x485   :  { %4382 = vmatpush.msrb.mxu3 %v4203_v41  ;;  %4451 = vmatpush.msra.mxu2 %v4140_v34  ;;  %v3781_v47 = vpop.f32.mrf.mxu3  ;;  %v4208_v41 = vld [vmem:[%s12066_s13 + $0x7f0] sm:$0xff]  ;;  %v4145_v34 = vld [vmem:[%s12066_s13 + $0x5f8] sm:$0xff] }
 0x486   :  { %v3782_v49 = vadd.f32 %v3781_v47, %v3759_v11  ;;  %4521 = vmatpush.msrb.mxu1 %v4073_v45  ;;  %v4141_v57 = vld [vmem:[%s12066_s13 + $0x5d8] sm:$0xff]  ;;  %v4200_v11 = vld [vmem:[%s12066_s13 + $0x7b0] sm:$0xff] }
 0x487   :  { %4383 = vmatpush.msrb.mxu3 %v4199_v16  ;;  %4452 = vmatpush.msra.mxu2 %v4136_v10  ;;  %v4137_v16 = vld [vmem:[%s12066_s13 + $0x5b8] sm:$0xff]  ;;  %v4192_v47 = vld [vmem:[%s12066_s13 + $0x770] sm:$0xff] }
 0x488   :  { %v3791_v15 = vmax.f32 %v3782_v49, 0.0  ;;  %4522 = vmatpush.msrb.mxu1 %v4069_v28  ;;  %v4133_v10 = vld [vmem:[%s12066_s13 + $0x598] sm:$0xff]  ;;  %v4188_v49 = vld [vmem:[%s12066_s13 + $0x750] sm:$0xff] }
 0x489   :  { %4384 = vmatpush.msrb.mxu3 %v4195_v59  ;;  %4453 = vmatpush.msra.mxu2 %v4132_v50  ;;  %v4129_v45 = vld [vmem:[%s12066_s13 + $0x578] sm:$0xff]  ;;  %v4184_v50 = vld [vmem:[%s12066_s13 + $0x730] sm:$0xff] }
 0x48a   :  { %3948 = vmatmul.f32.gmra.mxu3 %v3791_v15  ;;  %4446 = vmatmul.f32.gmra.mxu1 %v10898_v31  ;;  %v4125_v59 = vld [vmem:[%s12066_s13 + $0x558] sm:$0xff]  ;;  %v4180_v28 = vld [vmem:[%s12066_s13 + $0x710] sm:$0xff] }
 0x48b   :  { %4385 = vmatpush.msrb.mxu3 %v4191_v43  ;;  %4454 = vmatpush.msra.mxu2 %v4128_v51  ;;  %v4176_v15 = vld [vmem:[%s12066_s13 + $0x6f0] sm:$0xff]  ;;  %v4113_v43 = vld [vmem:[%s12066_s13 + $0x4f8] sm:$0xff] }
 0x48c   :  { %4515 = vmatmul.f32.gmra.mxu0 %v10712_v46  ;;  %4523 = vmatpush.msrb.mxu1 %v4065_v22  ;;  %v4057_v46 = vld [vmem:[%s12066_s13 + $0x338] sm:$0xff]  ;;  %v4168_v22 = vld [vmem:[%s12066_s13 + $0x6b0] sm:$0xff] }
 0x48d   :  { %4377 = vmatmul.f32.gmra.mxu2 %v11056_v53  ;;  %4386 = vmatpush.msrb.mxu3 %v4187_v5  ;;  %v4109_v51 = vld [vmem:[%s12066_s13 + $0x4d8] sm:$0xff]  ;;  %v4164_v5 = vld [vmem:[%s12066_s13 + $0x690] sm:$0xff] }
 0x48e   :  { %4455 = vmatpush.msra.mxu2 %v4124_v23  ;;  %4524 = vmatpush.msrb.mxu1 %v4061_v40  ;;  %v4101_v23 = vld [vmem:[%s12066_s13 + $0x498] sm:$0xff]  ;;  %v4160_v40 = vld [vmem:[%s12066_s13 + $0x670] sm:$0xff] }
 0x48f   :  { %4387 = vmatpush.msrb.mxu3 %v4183_v1  ;;  %v4156_v1 = vld [vmem:[%s12066_s13 + $0x650] sm:$0xff]  ;;  %v4209_v58 = vld [vmem:[%s12066_s13 + $0x7f8] sm:$0xff] }
 0x490   :  { %4456 = vmatpush.msra.mxu2 %v4120_v13  ;;  %4525 = vmatpush.msrb.mxu1 %v4057_v46  ;;  %v4093_v13 = vld [vmem:[%s12066_s13 + $0x458] sm:$0xff]  ;;  %v4152_v46 = vld [vmem:[%s12066_s13 + $0x630] sm:$0xff] }
 0x491   :  { %4388 = vmatpush.msrb.mxu3 %v4179_v42  ;;  %v4148_v42 = vld [vmem:[%s12066_s13 + $0x610] sm:$0xff]  ;;  %v4201_v0 = vld [vmem:[%s12066_s13 + $0x7b8] sm:$0xff] }
 0x492   :  { %4457 = vmatpush.msra.mxu2 %v4116_v26  ;;  %4526 = vmatpush.msrb.mxu1 %v4053_v60  ;;  %v4085_v26 = vld [vmem:[%s12066_s13 + $0x418] sm:$0xff]  ;;  %v4641_v60 = vld [vmem:[%s12068_s15 + $0x168] sm:$0xff] }
 0x493   :  { %4305 = vmatmul.f32.vlgmr.msra.gmra.mxu3 %v11174_v3  ;;  %4796 = vmatpush.msra.mxu0 %v4641_v60  ;;  %v4728_v60 = vld [vmem:[%s12068_s15 + $0x420] sm:$0xff] }
 0x494   :  { %4389 = vmatpush.msrb.mxu3 %v4175_v25  ;;  %4458 = vmatpush.msra.mxu2 %v4112_v39  ;;  %v4638_v25 = vld [vmem:[%s12068_s15 + $0x150] sm:$0xff]  ;;  %v4205_v39 = vld [vmem:[%s12066_s13 + $0x7d8] sm:$0xff] }
 0x495   :  { %4527 = vmatpush.msrb.mxu1 %v4049_v6  ;;  %v4635_v6 = vld [vmem:[%s12068_s15 + $0x138] sm:$0xff]  ;;  %4797 = vmatpush.msra.mxu0 %v4638_v25  ;;  %v4681_v25 = vld [vmem:[%s12068_s15 + $0x2a8] sm:$0xff] }
 0x496   :  { %4390 = vmatpush.msrb.mxu3 %v4171_v14  ;;  %4459 = vmatpush.msra.mxu2 %v4108_v21  ;;  %v4632_v14 = vld [vmem:[%s12068_s15 + $0x120] sm:$0xff]  ;;  %v4629_v21 = vld [vmem:[%s12068_s15 + $0x108] sm:$0xff] }
 0x497   :  { %4528 = vmatpush.msrb.mxu1 %v4045_v56  ;;  %4798 = vmatpush.msra.mxu0 %v4635_v6  ;;  %v4193_v56 = vld [vmem:[%s12066_s13 + $0x778] sm:$0xff]  ;;  %v4609_v6 = vld [vmem:[%s12068_s15 + $0x68] sm:$0xff] }
 0x498   :  { %4391 = vmatpush.msrb.mxu3 %v4167_v30  ;;  %4460 = vmatpush.msra.mxu2 %v4104_v62  ;;  %v4189_v30 = vld [vmem:[%s12066_s13 + $0x758] sm:$0xff] }
 0x499   :  { %4529 = vmatpush.msrb.mxu1 %v4041_v4  ;;  %4799 = vmatpush.msra.mxu0 %v4632_v14  ;;  %v4623_v62 = vld [vmem:[%s12068_s15 + $0xd8] sm:$0xff]  ;;  %v4689_v4 = vld [vmem:[%s12068_s15 + $0x2e8] sm:$0xff]  ;;  %v3877_v14 = vpop.f32.mrf.mxu0 }
 0x49a   :  { %4392 = vmatpush.msrb.mxu3 %v4163_v55  ;;  %4461 = vmatpush.msra.mxu2 %v4100_v32  ;;  %v4185_v55 = vld [vmem:[%s12066_s13 + $0x738] sm:$0xff]  ;;  %v4686_v32 = vld [vmem:[%s12068_s15 + $0x2d0] sm:$0xff] }
 0x49b   :  { %4530 = vmatpush.msrb.mxu1 %v4037_v33  ;;  %4308 = vmatmul.f32.gmra.mxu3 %v11215_v48  ;;  %v4683_v33 = vld [vmem:[%s12068_s15 + $0x2b8] sm:$0xff] }
 0x49c   :  { %4393 = vmatpush.msrb.mxu3 %v4159_v9  ;;  %4462 = vmatpush.msra.mxu2 %v4096_v37  ;;  %v4181_v9 = vld [vmem:[%s12066_s13 + $0x718] sm:$0xff]  ;;  %v4617_v37 = vld [vmem:[%s12068_s15 + $0xa8] sm:$0xff] }
 0x49d   :  { %4531 = vmatpush.msrb.mxu1 %v4033_v2  ;;  %4800 = vmatpush.msra.mxu0 %v4629_v21  ;;  %v4680_v2 = vld [vmem:[%s12068_s15 + $0x2a0] sm:$0xff] }
 0x49e   :  { %4394 = vmatpush.msrb.mxu3 %v4155_v44  ;;  %4463 = vmatpush.msra.mxu2 %v4092_v27  ;;  %v4177_v44 = vld [vmem:[%s12066_s13 + $0x6f8] sm:$0xff]  ;;  %v4614_v27 = vld [vmem:[%s12068_s15 + $0x90] sm:$0xff] }
 0x49f   :  { %4532 = vmatpush.msrb.mxu1 %v4029_v19  ;;  %4801 = vmatpush.msra.mxu0 %v4626_v35  ;;  %v4677_v19 = vld [vmem:[%s12068_s15 + $0x288] sm:$0xff]  ;;  %v4603_v35 = vld [vmem:[%s12068_s15 + $0x38] sm:$0xff] }
 0x4a0   :  { %4395 = vmatpush.msrb.mxu3 %v4151_v20  ;;  %4464 = vmatpush.msra.mxu2 %v4088_v7  ;;  %v4173_v20 = vld [vmem:[%s12066_s13 + $0x6d8] sm:$0xff] }
 0x4a1   :  { %4533 = vmatpush.msrb.mxu1 %v4025_v54  ;;  %4802 = vmatpush.msra.mxu0 %v4623_v62  ;;  %v4611_v7 = vld [vmem:[%s12068_s15 + $0x78] sm:$0xff] }
 0x4a2   :  { %4396 = vmatpush.msrb.mxu3 %v4147_v24  ;;  %4465 = vmatpush.msra.mxu2 %v4084_v17  ;;  %v4169_v54 = vld [vmem:[%s12066_s13 + $0x6b8] sm:$0xff]  ;;  %v4608_v24 = vld [vmem:[%s12068_s15 + $0x60] sm:$0xff]  ;;  %v4674_v17 = vld [vmem:[%s12068_s15 + $0x270] sm:$0xff] }
 0x4a3   :  { %4534 = vmatpush.msrb.mxu1 %v4021_v52  ;;  %4466 = vmatmul.f32.vlgmr.msra.gmra.mxu2 %v11014_v63  ;;  %v4671_v52 = vld [vmem:[%s12068_s15 + $0x258] sm:$0xff] }
 0x4a4   :  { %4473 = vmatpush.msra.mxu3 %v4208_v41  ;;  %4535 = vmatmul.f32.vlgmr.msrb.gmra.mxu1 %v10856_v61  ;;  %v4196_v61 = vld [vmem:[%s12066_s13 + $0x790] sm:$0xff]  ;;  %v4165_v41 = vld [vmem:[%s12066_s13 + $0x698] sm:$0xff] }
 0x4a5   :  { %4542 = vmatpush.msrb.mxu2 %v4145_v34  ;;  %4397 = vmatmul.f32.vlgmr.msrb.gmra.mxu3 %v11174_v3  ;;  %v4605_v34 = vld [vmem:[%s12068_s15 + $0x48] sm:$0xff]  ;;  %v4719_v62 = vld [vmem:[%s12068_s15 + $0x3d8] sm:$0xff] }
 0x4a6   :  { %4474 = vmatpush.msra.mxu3 %v4204_v38  ;;  %4819 = vmatpush.msra.mxu1 %v4689_v4  ;;  %v4668_v38 = vld [vmem:[%s12068_s15 + $0x240] sm:$0xff] }
 0x4a7   :  { %4543 = vmatpush.msrb.mxu2 %v4141_v57  ;;  %v4161_v57 = vld [vmem:[%s12066_s13 + $0x678] sm:$0xff]  ;;  %v4672_v4 = vld [vmem:[%s12068_s15 + $0x260] sm:$0xff] }
 0x4a8   :  { %4475 = vmatpush.msra.mxu3 %v4200_v11  ;;  %4820 = vmatpush.msra.mxu1 %v4686_v32  ;;  %v4602_v11 = vld [vmem:[%s12068_s15 + $0x30] sm:$0xff]  ;;  %v4716_v32 = vld [vmem:[%s12068_s15 + $0x3c0] sm:$0xff] }
 0x4a9   :  { %4544 = vmatpush.msrb.mxu2 %v4137_v16  ;;  %v4665_v16 = vld [vmem:[%s12068_s15 + $0x228] sm:$0xff] }
 0x4aa   :  { %4476 = vmatpush.msra.mxu3 %v4196_v61  ;;  %4821 = vmatpush.msra.mxu1 %v4683_v33  ;;  %v4157_v61 = vld [vmem:[%s12066_s13 + $0x658] sm:$0xff]  ;;  %v5164_v33 = vld [vmem:[%s12065_s12] ss:$0 sm:$0xff] }
 0x4ab   :  { %4545 = vmatpush.msrb.mxu2 %v4133_v10  ;;  %v4599_v10 = vld [vmem:[%s12068_s15 + $0x18] sm:$0xff] }
 0x4ac   :  { %4469 = vmatmul.f32.gmra.mxu2 %v11056_v53  ;;  %4477 = vmatpush.msra.mxu3 %v4192_v47  ;;  %v4153_v47 = vld [vmem:[%s12066_s13 + $0x638] sm:$0xff] }
 0x4ad   :  { %4538 = vmatmul.f32.gmra.mxu1 %v10898_v31  ;;  %4546 = vmatpush.msrb.mxu2 %v4129_v45  ;;  %v4117_v31 = vld [vmem:[%s12066_s13 + $0x518] sm:$0xff]  ;;  %v4596_v45 = vld [vmem:[%s12068_s15] sm:$0xff] }
 0x4ae   :  { %4400 = vmatmul.f32.gmra.mxu3 %v11215_v48  ;;  %4822 = vmatpush.msra.mxu1 %v4680_v2  ;;  %v4713_v2 = vld [vmem:[%s12068_s15 + $0x3a8] sm:$0xff] }
 0x4af   :  { %4478 = vmatpush.msra.mxu3 %v4188_v49  ;;  %4547 = vmatpush.msrb.mxu2 %v4125_v59  ;;  %v4642_v49 = vld [vmem:[%s12068_s15 + $0x170] sm:$0xff] }
 0x4b0   :  { %4823 = vmatpush.msra.mxu1 %v4677_v19  ;;  %v4662_v59 = vld [vmem:[%s12068_s15 + $0x210] sm:$0xff]  ;;  %v3880_v19 = vpop.f32.mrf.mxu0 }
 0x4b1   :  { %4479 = vmatpush.msra.mxu3 %v4184_v50  ;;  %4548 = vmatpush.msrb.mxu2 %v4121_v8  ;;  %v4659_v50 = vld [vmem:[%s12068_s15 + $0x1f8] sm:$0xff] }
 0x4b2   :  { %4824 = vmatpush.msra.mxu1 %v4674_v17  ;;  %v4149_v8 = vld [vmem:[%s12066_s13 + $0x618] sm:$0xff] }
 0x4b3   :  { %4480 = vmatpush.msra.mxu3 %v4180_v28  ;;  %4549 = vmatpush.msrb.mxu2 %v4117_v31  ;;  %v4639_v28 = vld [vmem:[%s12068_s15 + $0x158] sm:$0xff]  ;;  %v4656_v31 = vld [vmem:[%s12068_s15 + $0x1e0] sm:$0xff] }
 0x4b4   :  { %4825 = vmatpush.msra.mxu1 %v4671_v52  ;;  %v4660_v52 = vld [vmem:[%s12068_s15 + $0x200] sm:$0xff] }
 0x4b5   :  { %4481 = vmatpush.msra.mxu3 %v4176_v15  ;;  %4550 = vmatpush.msrb.mxu2 %v4113_v43  ;;  %v4636_v15 = vld [vmem:[%s12068_s15 + $0x140] sm:$0xff]  ;;  %v4633_v43 = vld [vmem:[%s12068_s15 + $0x128] sm:$0xff] }
 0x4b6   :  { %4826 = vmatpush.msra.mxu1 %v4668_v38  ;;  %v4657_v38 = vld [vmem:[%s12068_s15 + $0x1e8] sm:$0xff] }
 0x4b7   :  { %4482 = vmatpush.msra.mxu3 %v4172_v18  ;;  %4551 = vmatpush.msrb.mxu2 %v4109_v51  ;;  %v4630_v18 = vld [vmem:[%s12068_s15 + $0x110] sm:$0xff]  ;;  %v4653_v51 = vld [vmem:[%s12068_s15 + $0x1c8] sm:$0xff] }
 0x4b8   :  { %4827 = vmatpush.msra.mxu1 %v4665_v16  ;;  %v4701_v16 = vld [vmem:[%s12068_s15 + $0x348] sm:$0xff] }
 0x4b9   :  { %4483 = vmatpush.msra.mxu3 %v4168_v22  ;;  %4552 = vmatpush.msrb.mxu2 %v4105_v12  ;;  %v4650_v22 = vld [vmem:[%s12068_s15 + $0x1b0] sm:$0xff]  ;;  %v4647_v12 = vld [vmem:[%s12068_s15 + $0x198] sm:$0xff] }
 0x4ba   :  { %4828 = vmatpush.msra.mxu1 %v4662_v59 }
 0x4bb   :  { %4484 = vmatpush.msra.mxu3 %v4164_v5  ;;  %4553 = vmatpush.msrb.mxu2 %v4101_v23  ;;  %v4624_v5 = vld [vmem:[%s12068_s15 + $0xe0] sm:$0xff]  ;;  %v4737_v23 = vld [vmem:[%s12068_s15 + $0x468] sm:$0xff] }
 0x4bc   :  { %4829 = vmatpush.msra.mxu1 %v4659_v50  ;;  %v4651_v50 = vld [vmem:[%s12068_s15 + $0x1b8] sm:$0xff] }
 0x4bd   :  { %4485 = vmatpush.msra.mxu3 %v4160_v40  ;;  %4554 = vmatpush.msrb.mxu2 %v4097_v36  ;;  %v4644_v40 = vld [vmem:[%s12068_s15 + $0x180] sm:$0xff]  ;;  %v4621_v36 = vld [vmem:[%s12068_s15 + $0xc8] sm:$0xff]  ;;  %v3900_v21 = vpop.f32.mrf.mxu1 }
 0x4be   :  { %4830 = vmatpush.msra.mxu1 %v4656_v31  ;;  %v4648_v31 = vld [vmem:[%s12068_s15 + $0x1a0] sm:$0xff] }
 0x4bf   :  { %4486 = vmatpush.msra.mxu3 %v4156_v1  ;;  %4555 = vmatpush.msrb.mxu2 %v4093_v13  ;;  %v4690_v1 = vld [vmem:[%s12068_s15 + $0x2f0] sm:$0xff] }
 0x4c0   :  { %4831 = vmatpush.msra.mxu1 %v4653_v51  ;;  %v4734_v13 = vld [vmem:[%s12068_s15 + $0x450] sm:$0xff] }
 0x4c1   :  { %4487 = vmatpush.msra.mxu3 %v4152_v46  ;;  %4556 = vmatpush.msrb.mxu2 %v4089_v29  ;;  %v4615_v46 = vld [vmem:[%s12068_s15 + $0x98] sm:$0xff] }
 0x4c2   :  { %4832 = vmatpush.msra.mxu1 %v4650_v22  ;;  %v4687_v29 = vld [vmem:[%s12068_s15 + $0x2d8] sm:$0xff]  ;;  %v4785_v22 = vld [vmem:[%s12068_s15 + $0x5e8] sm:$0xff] }
 0x4c3   :  { %4488 = vmatpush.msra.mxu3 %v4148_v42  ;;  %4557 = vmatpush.msrb.mxu2 %v4085_v26  ;;  %v4731_v42 = vld [vmem:[%s12068_s15 + $0x438] sm:$0xff]  ;;  %v4684_v26 = vld [vmem:[%s12068_s15 + $0x2c0] sm:$0xff] }
 0x4c4   :  { %4489 = vmatmul.f32.vlgmr.msra.gmra.mxu3 %v11174_v3  ;;  %4558 = vmatmul.f32.vlgmr.msrb.gmra.mxu2 %v11014_v63  ;;  %v4197_v63 = vld [vmem:[%s12066_s13 + $0x798] sm:$0xff] }
 0x4c5   :  { %4565 = vmatpush.msrb.mxu3 %v4209_v58  ;;  %4833 = vmatpush.msra.mxu1 %v4647_v12  ;;  %v4612_v58 = vld [vmem:[%s12068_s15 + $0x80] sm:$0xff]  ;;  %v4645_v12 = vld [vmem:[%s12068_s15 + $0x188] sm:$0xff] }
 0x4c6   :  { %4842 = vmatpush.msra.mxu2 %v4737_v23 }
 0x4c7   :  { %4566 = vmatpush.msrb.mxu3 %v4205_v39  ;;  %4834 = vmatpush.msra.mxu1 %v4644_v40  ;;  %v4725_v39 = vld [vmem:[%s12068_s15 + $0x408] sm:$0xff]  ;;  %v3903_v17 = vpop.f32.mrf.mxu1 }
 0x4c8   :  { %4843 = vmatpush.msra.mxu2 %v4734_v13  ;;  %v4779_v13 = vld [vmem:[%s12068_s15 + $0x5b8] sm:$0xff] }
 0x4c9   :  { %4567 = vmatpush.msrb.mxu3 %v4201_v0  ;;  %4911 = vmatpush.msrb.mxu1 %v4690_v1  ;;  %v4678_v0 = vld [vmem:[%s12068_s15 + $0x290] sm:$0xff]  ;;  %v4735_v1 = vld [vmem:[%s12068_s15 + $0x458] sm:$0xff] }
 0x4ca   :  { %4844 = vmatpush.msra.mxu2 %v4731_v42  ;;  %v4776_v42 = vld [vmem:[%s12068_s15 + $0x5a0] sm:$0xff] }
 0x4cb   :  { %4568 = vmatpush.msrb.mxu3 %v4197_v63  ;;  %4912 = vmatpush.msrb.mxu1 %v4687_v29  ;;  %v4606_v63 = vld [vmem:[%s12068_s15 + $0x50] sm:$0xff] }
 0x4cc   :  { %4492 = vmatmul.f32.gmra.mxu3 %v11215_v48  ;;  %4561 = vmatmul.f32.gmra.mxu2 %v11056_v53  ;;  %v4620_v53 = vld [vmem:[%s12068_s15 + $0xc0] sm:$0xff] }
 0x4cd   :  { %4569 = vmatpush.msrb.mxu3 %v4193_v56  ;;  %4803 = vmatpush.msra.mxu0 %v4620_v53  ;;  %v4722_v56 = vld [vmem:[%s12068_s15 + $0x3f0] sm:$0xff]  ;;  %v4600_v53 = vld [vmem:[%s12068_s15 + $0x20] sm:$0xff] }
 0x4ce   :  { %4913 = vmatpush.msrb.mxu1 %v4684_v26  ;;  %4845 = vmatpush.msra.mxu2 %v4728_v60  ;;  %v4729_v26 = vld [vmem:[%s12068_s15 + $0x428] sm:$0xff] }
 0x4cf   :  { %4570 = vmatpush.msrb.mxu3 %v4189_v30  ;;  %4804 = vmatpush.msra.mxu0 %v4617_v37  ;;  %v4675_v30 = vld [vmem:[%s12068_s15 + $0x278] sm:$0xff]  ;;  %v4597_v37 = vld [vmem:[%s12068_s15 + $0x8] sm:$0xff]  ;;  %v4260_v51 = vpop.f32.mrf.mxu1 }
 0x4d0   :  { %4914 = vmatpush.msrb.mxu1 %v4681_v25  ;;  %4846 = vmatpush.msra.mxu2 %v4725_v39  ;;  %v4773_v39 = vld [vmem:[%s12068_s15 + $0x588] sm:$0xff] }
 0x4d1   :  { %4571 = vmatpush.msrb.mxu3 %v4185_v55  ;;  %4805 = vmatpush.msra.mxu0 %v4614_v27  ;;  %v3878_v27 = vadd.f32 %v5164_v33, %v3877_v14 }
 0x4d2   :  { %4915 = vmatpush.msrb.mxu1 %v4678_v0  ;;  %4847 = vmatpush.msra.mxu2 %v4722_v56 }
 0x4d3   :  { %4572 = vmatpush.msrb.mxu3 %v4181_v9  ;;  %4806 = vmatpush.msra.mxu0 %v4611_v7  ;;  %v4669_v9 = vld [vmem:[%s12068_s15 + $0x248] sm:$0xff]  ;;  %v3901_v7 = vadd.f32 %v3900_v21, %v3878_v27  ;;  %v4723_v21 = vld [vmem:[%s12068_s15 + $0x3f8] sm:$0xff] }
 0x4d4   :  { %4916 = vmatpush.msrb.mxu1 %v4675_v30  ;;  %4848 = vmatpush.msra.mxu2 %v4719_v62  ;;  %v4643_v62 = vld [vmem:[%s12068_s15 + $0x178] sm:$0xff] }
 0x4d5   :  { %4573 = vmatpush.msrb.mxu3 %v4177_v44  ;;  %4807 = vmatpush.msra.mxu0 %v4608_v24  ;;  %v4666_v44 = vld [vmem:[%s12068_s15 + $0x230] sm:$0xff]  ;;  %v4707_v24 = vld [vmem:[%s12068_s15 + $0x378] sm:$0xff] }
 0x4d6   :  { %4917 = vmatpush.msrb.mxu1 %v4672_v4  ;;  %4849 = vmatpush.msra.mxu2 %v4716_v32  ;;  %v4767_v4 = vld [vmem:[%s12068_s15 + $0x558] sm:$0xff]  ;;  %v4640_v32 = vld [vmem:[%s12068_s15 + $0x160] sm:$0xff] }
 0x4d7   :  { %4574 = vmatpush.msrb.mxu3 %v4173_v20  ;;  %4808 = vmatpush.msra.mxu0 %v4605_v34  ;;  %v4710_v20 = vld [vmem:[%s12068_s15 + $0x390] sm:$0xff]  ;;  %v4263_v0 = vpop.f32.mrf.mxu1 }
 0x4d8   :  { %4918 = vmatpush.msrb.mxu1 %v4669_v9  ;;  %4850 = vmatpush.msra.mxu2 %v4713_v2  ;;  %v4717_v9 = vld [vmem:[%s12068_s15 + $0x3c8] sm:$0xff] }
 0x4d9   :  { %4575 = vmatpush.msrb.mxu3 %v4169_v54  ;;  %4809 = vmatpush.msra.mxu0 %v4602_v11  ;;  %v4663_v54 = vld [vmem:[%s12068_s15 + $0x218] sm:$0xff]  ;;  %v4637_v2 = vld [vmem:[%s12068_s15 + $0x148] sm:$0xff] }
 0x4da   :  { %4919 = vmatpush.msrb.mxu1 %v4666_v44  ;;  %4851 = vmatpush.msra.mxu2 %v4710_v20  ;;  %v4761_v44 = vld [vmem:[%s12068_s15 + $0x528] sm:$0xff] }
 0x4db   :  { %4576 = vmatpush.msrb.mxu3 %v4165_v41  ;;  %4810 = vmatpush.msra.mxu0 %v4599_v10  ;;  %v4704_v41 = vld [vmem:[%s12068_s15 + $0x360] sm:$0xff]  ;;  %v4654_v10 = vld [vmem:[%s12068_s15 + $0x1d0] sm:$0xff] }
 0x4dc   :  { %4920 = vmatpush.msrb.mxu1 %v4663_v54  ;;  %4852 = vmatpush.msra.mxu2 %v4707_v24  ;;  %v4634_v24 = vld [vmem:[%s12068_s15 + $0x130] sm:$0xff] }
 0x4dd   :  { %4577 = vmatpush.msrb.mxu3 %v4161_v57  ;;  %4811 = vmatpush.msra.mxu0 %v4596_v45  ;;  %v4698_v45 = vld [vmem:[%s12068_s15 + $0x330] sm:$0xff] }
 0x4de   :  { %4921 = vmatpush.msrb.mxu1 %v4660_v52  ;;  %4853 = vmatpush.msra.mxu2 %v4704_v41  ;;  %v4711_v52 = vld [vmem:[%s12068_s15 + $0x398] sm:$0xff] }
 0x4df   :  { %4578 = vmatpush.msrb.mxu3 %v4157_v61  ;;  %4888 = vmatpush.msrb.mxu0 %v4642_v49  ;;  %v11644_v49 = vld [vmem:[%s12067_s14] sm:$0xf]  ;;  %v4352_v41 = vpop.f32.mrf.mxu1 }
 0x4e0   :  { %4922 = vmatpush.msrb.mxu1 %v4657_v38  ;;  %4854 = vmatpush.msra.mxu2 %v4701_v16  ;;  %v4213_v20 = vperm.slane %v11644_v49, 1  ;;  %v4631_v38 = vld [vmem:[%s12068_s15 + $0x118] sm:$0xff] }
 0x4e1   :  { %4579 = vmatpush.msrb.mxu3 %v4153_v47  ;;  %4889 = vmatpush.msrb.mxu0 %v4639_v28  ;;  %v3881_v47 = vadd.f32 %v5164_v33, %v3880_v19  ;;  %v4695_v28 = vld [vmem:[%s12068_s15 + $0x318] sm:$0xff]  ;;  %v4764_v33 = vld [vmem:[%s12068_s15 + $0x540] sm:$0xff]  ;;  %v4714_v19 = vld [vmem:[%s12068_s15 + $0x3b0] sm:$0xff] }
 0x4e2   :  { %4923 = vmatpush.msrb.mxu1 %v4654_v10  ;;  %4855 = vmatpush.msra.mxu2 %v4698_v45  ;;  %v4628_v10 = vld [vmem:[%s12068_s15 + $0x100] sm:$0xff]  ;;  %v4705_v45 = vld [vmem:[%s12068_s15 + $0x368] sm:$0xff] }
 0x4e3   :  { %4580 = vmatpush.msrb.mxu3 %v4149_v8  ;;  %4890 = vmatpush.msrb.mxu0 %v4636_v15  ;;  %v3904_v59 = vadd.f32 %v3903_v17, %v3881_v47  ;;  %v4237_v8 = vpop.f32.mrf.mxu0  ;;  %v4758_v17 = vld [vmem:[%s12068_s15 + $0x510] sm:$0xff]  ;;  %v4752_v47 = vld [vmem:[%s12068_s15 + $0x4e0] sm:$0xff] }
 0x4e4   :  { %4581 = vmatmul.f32.vlgmr.msrb.gmra.mxu3 %v11174_v3  ;;  %v4627_v3 = vld [vmem:[%s12068_s15 + $0xf8] sm:$0xff]  ;;  %4924 = vmatpush.msrb.mxu1 %v4651_v50  ;;  %v4625_v50 = vld [vmem:[%s12068_s15 + $0xe8] sm:$0xff] }
 0x4e5   :  { %4891 = vmatpush.msrb.mxu0 %v4633_v43  ;;  %v3923_v55 = vpop.f32.mrf.mxu2  ;;  %4856 = vmatpush.msra.mxu2 %v4695_v28  ;;  %v4692_v43 = vld [vmem:[%s12068_s15 + $0x300] sm:$0xff]  ;;  %v4702_v28 = vld [vmem:[%s12068_s15 + $0x350] sm:$0xff] }
 0x4e6   :  { %v3924_v34 = vadd.f32 %v3923_v55, %v3901_v7  ;;  %4925 = vmatpush.msrb.mxu1 %v4648_v31  ;;  %4865 = vmatpush.msra.mxu3 %v4785_v22  ;;  %v4720_v55 = vld [vmem:[%s12068_s15 + $0x3e0] sm:$0xff] }
 0x4e7   :  { %4892 = vmatpush.msrb.mxu0 %v4630_v18  ;;  %v4212_v18 = vperm.slane %v11644_v49, 0  ;;  %4857 = vmatpush.msra.mxu2 %v4692_v43 }
 0x4e8   :  { %4926 = vmatpush.msrb.mxu1 %v4645_v12  ;;  %v4619_v12 = vld [vmem:[%s12068_s15 + $0xb8] sm:$0xff] }
 0x4e9   :  { %4893 = vmatpush.msrb.mxu0 %v4627_v3 }
 0x4eb   :  { %4894 = vmatpush.msrb.mxu0 %v4624_v5  ;;  %v4738_v5 = vld [vmem:[%s12068_s15 + $0x470] sm:$0xff]  ;;  %v4240_v60 = vpop.f32.mrf.mxu0 }
 0x4ec   :  { %4584 = vmatmul.f32.gmra.mxu3 %v11215_v48  ;;  %v4618_v48 = vld [vmem:[%s12068_s15 + $0xb0] sm:$0xff]  ;;  %4934 = vmatpush.msrb.mxu2 %v4738_v5  ;;  %v4241_v56 = vadd.f32 %v4240_v60, %v4212_v18  ;;  %v4743_v5 = vld [vmem:[%s12068_s15 + $0x498] sm:$0xff]  ;;  %v4688_v60 = vld [vmem:[%s12068_s15 + $0x2e0] sm:$0xff] }
 0x4ed   :  { %4895 = vmatpush.msrb.mxu0 %v4621_v36  ;;  %v3926_v57 = vpop.f32.mrf.mxu2  ;;  %v4782_v36 = vld [vmem:[%s12068_s15 + $0x5d0] sm:$0xff] }
 0x4ee   :  { %v3927_v15 = vadd.f32 %v3926_v57, %v3904_v59  ;;  %4866 = vmatpush.msra.mxu3 %v4782_v36  ;;  %4935 = vmatpush.msrb.mxu2 %v4735_v1  ;;  %v4755_v57 = vld [vmem:[%s12068_s15 + $0x4f8] sm:$0xff] }
 0x4ef   :  { %4896 = vmatpush.msrb.mxu0 %v4618_v48  ;;  %v4238_v48 = vadd.f32 %v4237_v8, %v4212_v18  ;;  %v4749_v8 = vld [vmem:[%s12068_s15 + $0x4c8] sm:$0xff]  ;;  %v4746_v18 = vld [vmem:[%s12068_s15 + $0x4b0] sm:$0xff]  ;;  %v4691_v1 = vld [vmem:[%s12068_s15 + $0x2f8] sm:$0xff] }
 0x4f0   :  { %4867 = vmatpush.msra.mxu3 %v4779_v13 }
 0x4f1   :  { %4897 = vmatpush.msrb.mxu0 %v4615_v46  ;;  %v4732_v46 = vld [vmem:[%s12068_s15 + $0x440] sm:$0xff]  ;;  %v4261_v29 = vadd.f32 %v4260_v51, %v4238_v48  ;;  %v4699_v51 = vld [vmem:[%s12068_s15 + $0x338] sm:$0xff] }
 0x4f2   :  { %4936 = vmatpush.msrb.mxu2 %v4732_v46  ;;  %4868 = vmatpush.msra.mxu3 %v4776_v42  ;;  %v4616_v48 = vld [vmem:[%s12068_s15 + $0xa0] sm:$0xff]  ;;  %v4786_v42 = vld [vmem:[%s12068_s15 + $0x5f0] sm:$0xff] }
 0x4f3   :  { %4898 = vmatpush.msrb.mxu0 %v4612_v58  ;;  %v4329_v7 = vpop.f32.mrf.mxu0  ;;  %v4740_v46 = vld [vmem:[%s12068_s15 + $0x480] sm:$0xff] }
 0x4f4   :  { %4937 = vmatpush.msrb.mxu2 %v4729_v26  ;;  %4869 = vmatpush.msra.mxu3 %v4773_v39  ;;  %v4330_v16 = vadd.f32 %v4329_v7, %v4213_v20  ;;  %v4685_v39 = vld [vmem:[%s12068_s15 + $0x2c8] sm:$0xff] }
 0x4f5   :  { %4899 = vmatpush.msrb.mxu0 %v4609_v6  ;;  %v4283_v40 = vpop.f32.mrf.mxu2  ;;  %v4726_v6 = vld [vmem:[%s12068_s15 + $0x410] sm:$0xff]  ;;  %v4765_v7 = vld [vmem:[%s12068_s15 + $0x548] sm:$0xff] }
 0x4f6   :  { %v4284_v58 = vadd.f32 %v4283_v40, %v4261_v29  ;;  %4938 = vmatpush.msrb.mxu2 %v4726_v6  ;;  %v4353_v59 = vadd.f32 %v4352_v41, %v4330_v16  ;;  %v4355_v40 = vpop.f32.mrf.mxu1  ;;  %v4693_v29 = vld [vmem:[%s12068_s15 + $0x308] sm:$0xff]  ;;  %v4610_v6 = vld [vmem:[%s12068_s15 + $0x70] sm:$0xff]  ;;  %v4756_v16 = vld [vmem:[%s12068_s15 + $0x500] sm:$0xff] }
 0x4f7   :  { %4900 = vmatpush.msrb.mxu0 %v4606_v63  ;;  %v4770_v63 = vld [vmem:[%s12068_s15 + $0x570] sm:$0xff] }
 0x4f8   :  { %4870 = vmatpush.msra.mxu3 %v4770_v63  ;;  %4939 = vmatpush.msrb.mxu2 %v4723_v21  ;;  %v4682_v21 = vld [vmem:[%s12068_s15 + $0x2b0] sm:$0xff] }
 0x4f9   :  { %4901 = vmatpush.msrb.mxu0 %v4603_v35 }
 0x4fa   :  { %4871 = vmatpush.msra.mxu3 %v4767_v4  ;;  %4940 = vmatpush.msrb.mxu2 %v4720_v55  ;;  %v4777_v4 = vld [vmem:[%s12068_s15 + $0x5a8] sm:$0xff]  ;;  %v4604_v55 = vld [vmem:[%s12068_s15 + $0x40] sm:$0xff] }
 0x4fb   :  { %4902 = vmatpush.msrb.mxu0 %v4600_v53  ;;  %v4264_v53 = vadd.f32 %v4263_v0, %v4241_v56  ;;  %v4783_v0 = vld [vmem:[%s12068_s15 + $0x5d8] sm:$0xff] }
 0x4fc   :  { %4872 = vmatpush.msra.mxu3 %v4764_v33  ;;  %4941 = vmatpush.msrb.mxu2 %v4717_v9  ;;  %v4607_v56 = vld [vmem:[%s12068_s15 + $0x58] sm:$0xff]  ;;  %v4774_v33 = vld [vmem:[%s12068_s15 + $0x590] sm:$0xff]  ;;  %v4601_v9 = vld [vmem:[%s12068_s15 + $0x28] sm:$0xff] }
 0x4fd   :  { %4903 = vmatpush.msrb.mxu0 %v4597_v37  ;;  %v4286_v35 = vpop.f32.mrf.mxu2 }
 0x4fe   :  { %v4287_v37 = vadd.f32 %v4286_v35, %v4264_v53  ;;  %4873 = vmatpush.msra.mxu3 %v4761_v44  ;;  %4942 = vmatpush.msrb.mxu2 %v4714_v19  ;;  %v4780_v35 = vld [vmem:[%s12068_s15 + $0x5c0] sm:$0xff]  ;;  %v4598_v44 = vld [vmem:[%s12068_s15 + $0x10] sm:$0xff]  ;;  %v4444_v41 = vpop.f32.mrf.mxu1 }
 0x4ff   :  { %v4768_v19 = vld [vmem:[%s12068_s15 + $0x560] sm:$0xff] }
 0x500   :  { %4874 = vmatpush.msra.mxu3 %v4758_v17  ;;  %4943 = vmatpush.msrb.mxu2 %v4711_v52  ;;  %v4762_v17 = vld [vmem:[%s12068_s15 + $0x530] sm:$0xff]  ;;  %v4214_v52 = vperm.slane %v11644_v49, 2 }
 0x502   :  { %4875 = vmatpush.msra.mxu3 %v4755_v57  ;;  %v4661_v57 = vld [vmem:[%s12068_s15 + $0x208] sm:$0xff] }
 0x504   :  { %4876 = vmatpush.msra.mxu3 %v4752_v47  ;;  %v4753_v47 = vld [vmem:[%s12068_s15 + $0x4e8] sm:$0xff] }
 0x505   :  { %v3946_v11 = vpop.f32.mrf.mxu3 }
 0x506   :  { %v3947_v61 = vadd.f32 %v3946_v11, %v3924_v34  ;;  %v4708_v11 = vld [vmem:[%s12068_s15 + $0x380] sm:$0xff]  ;;  %4877 = vmatpush.msra.mxu3 %v4749_v8 }
 0x507   :  { %4944 = vmatpush.msrb.mxu2 %v4708_v11 }
 0x508   :  { %3952 = vst [vmem:[%s12070_s17] sm:$0xff] %v3947_v61  ;;  %v4375_v61 = vpop.f32.mrf.mxu2  ;;  %4878 = vmatpush.msra.mxu3 %v4746_v18  ;;  %v4649_v18 = vld [vmem:[%s12068_s15 + $0x1a8] sm:$0xff] }
 0x509   :  { %4945 = vmatpush.msrb.mxu2 %v4705_v45  ;;  %v4376_v31 = vadd.f32 %v4375_v61, %v4353_v59  ;;  %v4655_v59 = vld [vmem:[%s12068_s15 + $0x1d8] sm:$0xff] }
 0x50a   :  { %4879 = vmatpush.msra.mxu3 %v4743_v5  ;;  %v4646_v5 = vld [vmem:[%s12068_s15 + $0x190] sm:$0xff] }
 0x50b   :  { %4946 = vmatpush.msrb.mxu2 %v4702_v28 }
 0x50c   :  { %4880 = vmatpush.msra.mxu3 %v4740_v46 }
 0x50d   :  { %v3949_v3 = vpop.f32.mrf.mxu3  ;;  %4947 = vmatpush.msrb.mxu2 %v4699_v51  ;;  %v4447_v51 = vpop.f32.mrf.mxu1 }
 0x50e   :  { %v3950_v23 = vadd.f32 %v3949_v3, %v3927_v15  ;;  %v4622_v15 = vld [vmem:[%s12068_s15 + $0xd0] sm:$0xff]  ;;  %v4332_v3 = vpop.f32.mrf.mxu0  ;;  %4957 = vmatpush.msrb.mxu3 %v4786_v42 }
 0x50f   :  { %v4333_v13 = vadd.f32 %v4332_v3, %v4213_v20  ;;  %v4670_v20 = vld [vmem:[%s12068_s15 + $0x250] sm:$0xff]  ;;  %v4744_v3 = vld [vmem:[%s12068_s15 + $0x4a0] sm:$0xff] }
 0x510   :  { %3953 = vst [vmem:[%s12070_s17 + $0x8] sm:$0xff] %v3950_v23  ;;  %v4696_v23 = vld [vmem:[%s12068_s15 + $0x320] sm:$0xff]  ;;  %v4378_v26 = vpop.f32.mrf.mxu2  ;;  %4958 = vmatpush.msrb.mxu3 %v4783_v0  ;;  %v4715_v0 = vld [vmem:[%s12068_s15 + $0x3b8] sm:$0xff]  ;;  %s5088_s17 = sshll.u32 %s12072_s19, 4  ;;  %s5089_s17 = int_to_ptr.hbm [resolvable:$true] %s5088_s17 }
 0x511   :  { %4948 = vmatpush.msrb.mxu2 %v4696_v23  ;;  %v4739_v23 = vld [vmem:[%s12068_s15 + $0x478] sm:$0xff] }
 0x512   :  { %4959 = vmatpush.msrb.mxu3 %v4780_v35  ;;  %5094 = dma.vmem_to_hbm [thread:$0]  %s5087_s22, 1024, %s5089_s17, [#allocation3], %s5203_s5, %s5203_s5, %s5204_s23  }
 0x513   :  { %4949 = vmatpush.msrb.mxu2 %v4693_v29  ;;  %v4733_v29 = vld [vmem:[%s12068_s15 + $0x448] sm:$0xff] }
 0x514   :  { %4960 = vmatpush.msrb.mxu3 %v4777_v4 }
 0x516   :  { %v4306_v25 = vpop.f32.mrf.mxu3  ;;  %4961 = vmatpush.msrb.mxu3 %v4774_v33 }
 0x517   :  { %v4307_v14 = vadd.f32 %v4306_v25, %v4284_v58  ;;  %v4613_v58 = vld [vmem:[%s12068_s15 + $0x88] sm:$0xff]  ;;  %v4356_v25 = vadd.f32 %v4355_v40, %v4333_v13  ;;  %v4736_v13 = vld [vmem:[%s12068_s15 + $0x460] sm:$0xff] }
 0x519   :  { %v11701_v30 = vmax.f32 %v4307_v14, 0.0  ;;  %v4379_v14 = vadd.f32 %v4378_v26, %v4356_v25  ;;  %v4727_v25 = vld [vmem:[%s12068_s15 + $0x418] sm:$0xff] }
 0x51b   :  { %4812 = vmatmul.f32.vlgmr.msra.gmra.mxu0 %v11701_v30 }
 0x51c   :  { %4980 = vmatpush.msra.mxu0 %v4643_v62 }
 0x51e   :  { %v4309_v27 = vpop.f32.mrf.mxu3  ;;  %4981 = vmatpush.msra.mxu0 %v4640_v32  ;;  %v4679_v32 = vld [vmem:[%s12068_s15 + $0x298] sm:$0xff] }
 0x51f   :  { %v4310_v54 = vadd.f32 %v4309_v27, %v4287_v37  ;;  %v4676_v37 = vld [vmem:[%s12068_s15 + $0x280] sm:$0xff]  ;;  %v4673_v27 = vld [vmem:[%s12068_s15 + $0x268] sm:$0xff] }
 0x520   :  { %4982 = vmatpush.msra.mxu0 %v4637_v2  ;;  %v4771_v2 = vld [vmem:[%s12068_s15 + $0x578] sm:$0xff] }
 0x521   :  { %v11741_v34 = vmax.f32 %v4310_v54, 0.0  ;;  %4962 = vmatpush.msrb.mxu3 %v4771_v2  ;;  %v4667_v54 = vld [vmem:[%s12068_s15 + $0x238] sm:$0xff]  ;;  %v4536_v35 = vpop.f32.mrf.mxu1 }
 0x522   :  { %4983 = vmatpush.msra.mxu0 %v4634_v24  ;;  %v4421_v24 = vpop.f32.mrf.mxu0 }
 0x523   :  { %4815 = vmatmul.f32.gmra.mxu0 %v11741_v34  ;;  %4963 = vmatpush.msrb.mxu3 %v4768_v19  ;;  %v4422_v61 = vadd.f32 %v4421_v24, %v4214_v52 }
 0x524   :  { %4984 = vmatpush.msra.mxu0 %v4631_v38  ;;  %v4759_v38 = vld [vmem:[%s12068_s15 + $0x518] sm:$0xff] }
 0x525   :  { %4964 = vmatpush.msrb.mxu3 %v4765_v7  ;;  %v4445_v45 = vadd.f32 %v4444_v41, %v4422_v61  ;;  %v4781_v41 = vld [vmem:[%s12068_s15 + $0x5c8] sm:$0xff]  ;;  %v4775_v61 = vld [vmem:[%s12068_s15 + $0x598] sm:$0xff] }
 0x526   :  { %4985 = vmatpush.msra.mxu0 %v4628_v10  ;;  %v4467_v11 = vpop.f32.mrf.mxu2  ;;  %v4658_v10 = vld [vmem:[%s12068_s15 + $0x1f0] sm:$0xff] }
 0x527   :  { %4965 = vmatpush.msrb.mxu3 %v4762_v17  ;;  %v4468_v8 = vadd.f32 %v4467_v11, %v4445_v45  ;;  %v4778_v11 = vld [vmem:[%s12068_s15 + $0x5b0] sm:$0xff] }
 0x528   :  { %v4398_v43 = vpop.f32.mrf.mxu3  ;;  %4986 = vmatpush.msra.mxu0 %v4625_v50  ;;  %v4750_v50 = vld [vmem:[%s12068_s15 + $0x4d0] sm:$0xff] }
 0x529   :  { %v4399_v22 = vadd.f32 %v4398_v43, %v4376_v31  ;;  %4966 = vmatpush.msrb.mxu3 %v4759_v38  ;;  %v4766_v45 = vld [vmem:[%s12068_s15 + $0x550] sm:$0xff] }
 0x52a   :  { %4987 = vmatpush.msra.mxu0 %v4622_v15  ;;  %v4424_v28 = vpop.f32.mrf.mxu0  ;;  %v4747_v15 = vld [vmem:[%s12068_s15 + $0x4b8] sm:$0xff]  ;;  %v4539_v19 = vpop.f32.mrf.mxu1 }
 0x52b   :  { %v11789_v36 = vmax.f32 %v4399_v22, 0.0  ;;  %4904 = vmatmul.f32.vlgmr.msrb.gmra.mxu0 %v11701_v30  ;;  %4967 = vmatpush.msrb.mxu3 %v4756_v16  ;;  %v4425_v22 = vadd.f32 %v4424_v28, %v4214_v52  ;;  %v4784_v52 = vld [vmem:[%s12068_s15 + $0x5e0] sm:$0xff]  ;;  %v4751_v28 = vld [vmem:[%s12068_s15 + $0x4d8] sm:$0xff] }
 0x52c   :  { %4988 = vmatpush.msra.mxu0 %v4619_v12 }
 0x52d   :  { %4835 = vmatmul.f32.vlgmr.msra.gmra.mxu1 %v11789_v36  ;;  %4968 = vmatpush.msrb.mxu3 %v4753_v47  ;;  %v4769_v47 = vld [vmem:[%s12068_s15 + $0x568] sm:$0xff] }
 0x52e   :  { %5003 = vmatpush.msra.mxu1 %v4691_v1  ;;  %4989 = vmatpush.msra.mxu0 %v4616_v48  ;;  %v4741_v1 = vld [vmem:[%s12068_s15 + $0x488] sm:$0xff]  ;;  %v4448_v48 = vadd.f32 %v4447_v51, %v4425_v22  ;;  %v4788_v22 = vld [vmem:[%s12069_s16] sm:$0x7] }
 0x52f   :  { %4969 = vmatpush.msrb.mxu3 %v4750_v50  ;;  %v4470_v40 = vpop.f32.mrf.mxu2  ;;  %v4760_v50 = vld [vmem:[%s12068_s15 + $0x520] sm:$0xff] }
 0x530   :  { %5004 = vmatpush.msra.mxu1 %v4688_v60  ;;  %4990 = vmatpush.msra.mxu0 %v4613_v58  ;;  %v4471_v46 = vadd.f32 %v4470_v40, %v4448_v48  ;;  %v4730_v60 = vld [vmem:[%s12068_s15 + $0x430] sm:$0xff] }
 0x531   :  { %v4401_v63 = vpop.f32.mrf.mxu3  ;;  %4970 = vmatpush.msrb.mxu3 %v4747_v15  ;;  %v4745_v15 = vld [vmem:[%s12068_s15 + $0x4a8] sm:$0xff] }
 0x532   :  { %v4402_v62 = vadd.f32 %v4401_v63, %v4379_v14  ;;  %5005 = vmatpush.msra.mxu1 %v4685_v39  ;;  %4991 = vmatpush.msra.mxu0 %v4610_v6  ;;  %v4721_v39 = vld [vmem:[%s12068_s15 + $0x3e8] sm:$0xff]  ;;  %v4718_v6 = vld [vmem:[%s12068_s15 + $0x3d0] sm:$0xff]  ;;  %v4712_v14 = vld [vmem:[%s12068_s15 + $0x3a0] sm:$0xff]  ;;  %v4513_v63 = vpop.f32.mrf.mxu0 }
 0x533   :  { %4907 = vmatmul.f32.gmra.mxu0 %v11741_v34  ;;  %4971 = vmatpush.msrb.mxu3 %v4744_v3 }
 0x534   :  { %v11839_v53 = vmax.f32 %v4402_v62, 0.0  ;;  %5006 = vmatpush.msra.mxu1 %v4682_v21  ;;  %4992 = vmatpush.msra.mxu0 %v4607_v56  ;;  %v4215_v21 = vperm.slane %v11644_v49, 3  ;;  %v4709_v56 = vld [vmem:[%s12068_s15 + $0x388] sm:$0xff]  ;;  %v4706_v62 = vld [vmem:[%s12068_s15 + $0x370] sm:$0xff]  ;;  %v4700_v49 = vld [vmem:[%s12068_s15 + $0x340] sm:$0xff] }
 0x535   :  { %4972 = vmatpush.msrb.mxu3 %v4741_v1 }
 0x536   :  { %4838 = vmatmul.f32.gmra.mxu1 %v11839_v53  ;;  %4993 = vmatpush.msra.mxu0 %v4604_v55  ;;  %v4514_v55 = vadd.f32 %v4513_v63, %v4215_v21 }
 0x537   :  { %5007 = vmatpush.msra.mxu1 %v4679_v32 }
 0x538   :  { %4994 = vmatpush.msra.mxu0 %v4601_v9  ;;  %v4537_v32 = vadd.f32 %v4536_v35, %v4514_v55  ;;  %v4697_v9 = vld [vmem:[%s12068_s15 + $0x328] sm:$0xff] }
 0x539   :  { %5008 = vmatpush.msra.mxu1 %v4676_v37 }
 0x53a   :  { %4995 = vmatpush.msra.mxu0 %v4598_v44  ;;  %v4516_v37 = vpop.f32.mrf.mxu0 }
 0x53b   :  { %5009 = vmatpush.msra.mxu1 %v4673_v27  ;;  %4996 = vmatmul.f32.vlgmr.msra.gmra.mxu0 %v11701_v30  ;;  %v4664_v30 = vld [vmem:[%s12068_s15 + $0x220] sm:$0xff]  ;;  %v4694_v27 = vld [vmem:[%s12068_s15 + $0x310] sm:$0xff] }
 0x53d   :  { %5010 = vmatpush.msra.mxu1 %v4670_v20  ;;  %v4517_v20 = vadd.f32 %v4516_v37, %v4215_v21 }
 0x53e   :  { %4927 = vmatmul.f32.vlgmr.msrb.gmra.mxu1 %v11789_v36 }
 0x53f   :  { %5011 = vmatpush.msra.mxu1 %v4667_v54  ;;  %v4787_v54 = vld [vmem:[%s12068_s15 + $0x5f8] sm:$0xff]  ;;  %v4540_v17 = vadd.f32 %v4539_v19, %v4517_v20 }
 0x541   :  { %5012 = vmatpush.msra.mxu1 %v4664_v30 }
 0x543   :  { %5013 = vmatpush.msra.mxu1 %v4661_v57  ;;  %4999 = vmatmul.f32.gmra.mxu0 %v11741_v34  ;;  %v4652_v34 = vld [vmem:[%s12068_s15 + $0x1c0] sm:$0xff] }
 0x545   :  { %5014 = vmatpush.msra.mxu1 %v4658_v10  ;;  %v4772_v10 = vld [vmem:[%s12068_s15 + $0x580] sm:$0xff] }
 0x546   :  { %4930 = vmatmul.f32.gmra.mxu1 %v11839_v53 }
 0x547   :  { %v4490_v31 = vpop.f32.mrf.mxu3  ;;  %5015 = vmatpush.msra.mxu1 %v4655_v59  ;;  %v4559_v4 = vpop.f32.mrf.mxu2  ;;  %v4763_v59 = vld [vmem:[%s12068_s15 + $0x538] sm:$0xff] }
 0x548   :  { %v4491_v43 = vadd.f32 %v4490_v31, %v4468_v8  ;;  %v4560_v33 = vadd.f32 %v4559_v4, %v4537_v32  ;;  %v4757_v8 = vld [vmem:[%s12068_s15 + $0x508] sm:$0xff]  ;;  %v4748_v31 = vld [vmem:[%s12068_s15 + $0x4c0] sm:$0xff] }
 0x549   :  { %5016 = vmatpush.msra.mxu1 %v4652_v34  ;;  %v4754_v34 = vld [vmem:[%s12068_s15 + $0x4f0] sm:$0xff] }
 0x54a   :  { %v11919_v12 = vmax.f32 %v4491_v43, 0.0  ;;  %v4742_v43 = vld [vmem:[%s12068_s15 + $0x490] sm:$0xff] }
 0x54b   :  { %5017 = vmatpush.msra.mxu1 %v4649_v18 }
 0x54c   :  { %4858 = vmatmul.f32.vlgmr.msra.gmra.mxu2 %v11919_v12 }
 0x54d   :  { %5018 = vmatpush.msra.mxu1 %v4646_v5  ;;  %5026 = vmatpush.msra.mxu2 %v4739_v23 }
 0x54e   :  { %5019 = vmatmul.f32.vlgmr.msra.gmra.mxu1 %v11789_v36  ;;  %v4724_v36 = vld [vmem:[%s12068_s15 + $0x400] sm:$0xff] }
 0x54f   :  { %v4493_v42 = vpop.f32.mrf.mxu3  ;;  %5027 = vmatpush.msra.mxu2 %v4736_v13  ;;  %v4562_v24 = vpop.f32.mrf.mxu2 }
 0x550   :  { %v4494_v26 = vadd.f32 %v4493_v42, %v4471_v46  ;;  %v4563_v30 = vadd.f32 %v4562_v24, %v4540_v17 }
 0x551   :  { %5028 = vmatpush.msra.mxu2 %v4733_v29 }
 0x552   :  { %v4594_v58 = vmax.f32 %v4494_v26, 0.0 }
 0x553   :  { %5029 = vmatpush.msra.mxu2 %v4730_v60 }
 0x554   :  { %4861 = vmatmul.f32.gmra.mxu2 %v4594_v58 }
 0x555   :  { %5030 = vmatpush.msra.mxu2 %v4727_v25 }
 0x556   :  { %5022 = vmatmul.f32.gmra.mxu1 %v11839_v53  ;;  %v4703_v53 = vld [vmem:[%s12068_s15 + $0x358] sm:$0xff] }
 0x557   :  { %5031 = vmatpush.msra.mxu2 %v4724_v36  ;;  %v4791_v36 = vperm.slane %v4788_v22, 1 }
 0x559   :  { %5032 = vmatpush.msra.mxu2 %v4721_v39 }
 0x55b   :  { %5033 = vmatpush.msra.mxu2 %v4718_v6 }
 0x55c   :  { %4950 = vmatmul.f32.vlgmr.msrb.gmra.mxu2 %v11919_v12 }
 0x55d   :  { %5034 = vmatpush.msra.mxu2 %v4715_v0 }
 0x55f   :  { %5035 = vmatpush.msra.mxu2 %v4712_v14 }
 0x561   :  { %5036 = vmatpush.msra.mxu2 %v4709_v56 }
 0x563   :  { %5037 = vmatpush.msra.mxu2 %v4706_v62 }
 0x564   :  { %4953 = vmatmul.f32.gmra.mxu2 %v4594_v58 }
 0x565   :  { %5038 = vmatpush.msra.mxu2 %v4703_v53 }
 0x567   :  { %v4582_v2 = vpop.f32.mrf.mxu3  ;;  %5039 = vmatpush.msra.mxu2 %v4700_v49 }
 0x568   :  { %v4583_v44 = vadd.f32 %v4582_v2, %v4560_v33  ;;  %v4792_v33 = vperm.slane %v4788_v22, 2 }
 0x569   :  { %5040 = vmatpush.msra.mxu2 %v4697_v9 }
 0x56a   :  { %v4591_v7 = vmax.f32 %v4583_v44, 0.0 }
 0x56b   :  { %5041 = vmatpush.msra.mxu2 %v4694_v27 }
 0x56c   :  { %4881 = vmatmul.f32.vlgmr.msra.gmra.mxu3 %v4591_v7  ;;  %5042 = vmatmul.f32.vlgmr.msra.gmra.mxu2 %v11919_v12  ;;  %v4790_v12 = vperm.slane %v4788_v22, 0 }
 0x56d   :  { %5049 = vmatpush.msra.mxu3 %v4787_v54 }
 0x56f   :  { %v4585_v38 = vpop.f32.mrf.mxu3  ;;  %5050 = vmatpush.msra.mxu3 %v4784_v52 }
 0x570   :  { %v4586_v57 = vadd.f32 %v4585_v38, %v4563_v30 }
 0x571   :  { %5051 = vmatpush.msra.mxu3 %v4781_v41 }
 0x572   :  { %v4595_v16 = vmax.f32 %v4586_v57, 0.0 }
 0x573   :  { %5052 = vmatpush.msra.mxu3 %v4778_v11 }
 0x574   :  { %4884 = vmatmul.f32.gmra.mxu3 %v4595_v16  ;;  %5045 = vmatmul.f32.gmra.mxu2 %v4594_v58 }
 0x575   :  { %5053 = vmatpush.msra.mxu3 %v4775_v61 }
 0x577   :  { %5054 = vmatpush.msra.mxu3 %v4772_v10 }
 0x579   :  { %5055 = vmatpush.msra.mxu3 %v4769_v47 }
 0x57b   :  { %5056 = vmatpush.msra.mxu3 %v4766_v45 }
 0x57c   :  { %4973 = vmatmul.f32.vlgmr.msrb.gmra.mxu3 %v4591_v7 }
 0x57d   :  { %5057 = vmatpush.msra.mxu3 %v4763_v59 }
 0x57f   :  { %5058 = vmatpush.msra.mxu3 %v4760_v50 }
 0x581   :  { %5059 = vmatpush.msra.mxu3 %v4757_v8 }
 0x583   :  { %5060 = vmatpush.msra.mxu3 %v4754_v34 }
 0x584   :  { %4976 = vmatmul.f32.gmra.mxu3 %v4595_v16 }
 0x585   :  { %5061 = vmatpush.msra.mxu3 %v4751_v28 }
 0x587   :  { %5062 = vmatpush.msra.mxu3 %v4748_v31 }
 0x589   :  { %5063 = vmatpush.msra.mxu3 %v4745_v15 }
 0x58b   :  { %5064 = vmatpush.msra.mxu3 %v4742_v43 }
 0x58c   :  { %5065 = vmatmul.f32.vlgmr.msra.gmra.mxu3 %v4591_v7 }
 0x594   :  { %5068 = vmatmul.f32.gmra.mxu3 %v4595_v16 }
 0x598   :  { %v4813_v18 = vpop.f32.mrf.mxu0 }
 0x599   :  { %v4814_v40 = vadd.f32 %v4813_v18, %v4790_v12 }
 0x5a0   :  { %v4816_v5 = vpop.f32.mrf.mxu0 }
 0x5a1   :  { %v4817_v26 = vadd.f32 %v4816_v5, %v4790_v12 }
 0x5a8   :  { %v4905_v42 = vpop.f32.mrf.mxu0 }
 0x5a9   :  { %v4906_v14 = vadd.f32 %v4905_v42, %v4791_v36 }
 0x5aa   :  { %v4836_v51 = vpop.f32.mrf.mxu1 }
 0x5ab   :  { %v4837_v48 = vadd.f32 %v4836_v51, %v4814_v40 }
 0x5b0   :  { %v4908_v63 = vpop.f32.mrf.mxu0 }
 0x5b1   :  { %v4909_v53 = vadd.f32 %v4908_v63, %v4791_v36 }
 0x5b3   :  { %v4839_v23 = vpop.f32.mrf.mxu1 }
 0x5b4   :  { %v4840_v58 = vadd.f32 %v4839_v23, %v4817_v26 }
 0x5b8   :  { %v4997_v49 = vpop.f32.mrf.mxu0 }
 0x5b9   :  { %v4998_v19 = vadd.f32 %v4997_v49, %v4792_v33 }
 0x5bb   :  { %v4928_v60 = vpop.f32.mrf.mxu1 }
 0x5bc   :  { %v4929_v21 = vadd.f32 %v4928_v60, %v4906_v14 }
 0x5c0   :  { %v5000_v54 = vpop.f32.mrf.mxu0 }
 0x5c1   :  { %v5001_v30 = vadd.f32 %v5000_v54, %v4792_v33 }
 0x5c3   :  { %v4931_v56 = vpop.f32.mrf.mxu1 }
 0x5c4   :  { %v4932_v32 = vadd.f32 %v4931_v56, %v4909_v53 }
 0x5cb   :  { %v5020_v37 = vpop.f32.mrf.mxu1 }
 0x5cc   :  { %v5021_v20 = vadd.f32 %v5020_v37, %v4998_v19 }
 0x5cf   :  { %v4859_v3 = vpop.f32.mrf.mxu2 }
 0x5d0   :  { %v4860_v13 = vadd.f32 %v4859_v3, %v4837_v48 }
 0x5d3   :  { %v5023_v52 = vpop.f32.mrf.mxu1 }
 0x5d4   :  { %v5024_v38 = vadd.f32 %v5023_v52, %v5001_v30 }
 0x5d7   :  { %v4862_v1 = vpop.f32.mrf.mxu2 }
 0x5d8   :  { %v4863_v39 = vadd.f32 %v4862_v1, %v4840_v58 }
 0x5df   :  { %v4951_v25 = vpop.f32.mrf.mxu2 }
 0x5e0   :  { %v4952_v35 = vadd.f32 %v4951_v25, %v4929_v21 }
 0x5e7   :  { %v4954_v62 = vpop.f32.mrf.mxu2 }
 0x5e8   :  { %v4955_v9 = vadd.f32 %v4954_v62, %v4932_v32 }
 0x5ef   :  { %v4882_v46 = vpop.f32.mrf.mxu3  ;;  %v5043_v27 = vpop.f32.mrf.mxu2 }
 0x5f0   :  { %v4883_v29 = vadd.f32 %v4882_v46, %v4860_v13  ;;  %v5044_v7 = vadd.f32 %v5043_v27, %v5021_v20 }
 0x5f2   :  { %5072 = vst [vmem:[%s12071_s18] sm:$0xff] %v4883_v29 }
 0x5f7   :  { %v4885_v6 = vpop.f32.mrf.mxu3  ;;  %v5046_v41 = vpop.f32.mrf.mxu2 }
 0x5f8   :  { %v4886_v0 = vadd.f32 %v4885_v6, %v4863_v39  ;;  %v5047_v57 = vadd.f32 %v5046_v41, %v5024_v38 }
 0x5fa   :  { %5075 = vst [vmem:[%s12071_s18 + $0x18] sm:$0xff] %v4886_v0 }
 0x5ff   :  { %v4974_v4 = vpop.f32.mrf.mxu3 }
 0x600   :  { %v4975_v55 = vadd.f32 %v4974_v4, %v4952_v35 }
 0x602   :  { %5073 = vst [vmem:[%s12071_s18 + $0x8] sm:$0xff] %v4975_v55 }
 0x607   :  { %v4977_v2 = vpop.f32.mrf.mxu3 }
 0x608   :  { %v4978_v44 = vadd.f32 %v4977_v2, %v4955_v9 }
 0x60a   :  { %5076 = vst [vmem:[%s12071_s18 + $0x20] sm:$0xff] %v4978_v44 }
 0x60f   :  { %v5066_v24 = vpop.f32.mrf.mxu3 }
 0x610   :  { %v5067_v17 = vadd.f32 %v5066_v24, %v5044_v7 }
 0x612   :  { %5074 = vst [vmem:[%s12071_s18 + $0x10] sm:$0xff] %v5067_v17 }
 0x617   :  { %v5069_v11 = vpop.f32.mrf.mxu3 }
 0x618   :  { %v5070_v16 = vadd.f32 %v5069_v11, %v5047_v57 }
 0x61a   :  { %5077 = vst [vmem:[%s12071_s18 + $0x28] sm:$0xff] %v5070_v16 }
 0x61b   :  { %5198 = dma.done.wait [#allocation3], 1024  }
 0x61c   :  { %5199 = vsyncadd [#allocation3], 4294966272 }
 0x61d   :  { %5103 = vsyncpa [#allocation3], 1 }

</bundles_post_ra>
